<compile_context>
chip_gen: v7x
topology: tpu7x:2x2x1
jax: 0.10.0
libtpu: 0.0.40
codegen_flags: <defaults>
</compile_context>

<pallas_src>
import functools

import jax
import jax.numpy as jnp
from jax.experimental import pallas as pl
from jax.experimental.pallas import tpu as pltpu


def _round_up(x, m):
    return (x + m - 1) // m * m


# ---------------------------------------------------------------------------
# Pallas kernels
# ---------------------------------------------------------------------------

def _conv3x3_s1_kernel(*refs, ho, wo, cin, relu, has_residual):
    """Direct 3x3 stride-1 conv for one image via an in-VMEM im2col slab.

    refs (inputs, outputs, scratch):
      x_ref : (ho+2, wo+2, cin) bf16  spatially padded input
      w_ref : (9*cin, Np)       bf16  BN-scale-folded weights (Np = cout pad 128)
      b_ref : (1, Np)           f32   bias
      res_ref (optional): (ho*wo, Np) bf16 lane-padded residual (skip branch)
      o_ref : (ho*wo, Np)       bf16  output
      im_ref: (ho*wo, 9*cin)    bf16  VMEM im2col scratch
    """
    if has_residual:
        x_ref, w_ref, b_ref, res_ref, o_ref, im_ref = refs
    else:
        x_ref, w_ref, b_ref, o_ref, im_ref = refs
        res_ref = None

    # Build the im2col slab with 9 vector copies, then a single MXU dot with
    # K = 9*cin (72..432) instead of 9 K=cin dots (keeps the systolic depth busy
    # and avoids 9 MRF drains / f32 accumulator adds on v5e/v6e).
    for di in range(3):
        for dj in range(3):
            k0 = (di * 3 + dj) * cin
            im_ref[:, k0:k0 + cin] = (
                x_ref[di:di + ho, dj:dj + wo, :].reshape(ho * wo, cin))

    y = jnp.dot(im_ref[...], w_ref[...],
                preferred_element_type=jnp.float32) + b_ref[...]
    if has_residual:
        y = y + res_ref[...].astype(jnp.float32)
    if relu:
        y = jnp.maximum(y, 0.0)
    o_ref[...] = y.astype(o_ref.dtype)


def _matmul_bias_kernel(x_ref, w_ref, b_ref, o_ref, *, relu):
    """Single-dot (tm, K) @ (K, Np) + bias (+ReLU); K and N are full-dim blocks."""
    y = jnp.dot(x_ref[...], w_ref[...],
                preferred_element_type=jnp.float32) + b_ref[...]
    if relu:
        y = jnp.maximum(y, 0.0)
    o_ref[...] = y.astype(o_ref.dtype)


def _maxpool_kernel(x_ref, o_ref, *, c):
    """2x2/s2 max pool of one output row.

    x_ref: (2, Wh, 2*c)  -- the two input rows; last dim interleaves (even col,
                            odd col) channel groups via a free contiguous reshape.
    o_ref: (Wh, c)
    """
    m = jnp.maximum(x_ref[0], x_ref[1])              # max over the row pair
    o_ref[...] = jnp.maximum(m[:, :c], m[:, c:])     # max over the column pair


# ---------------------------------------------------------------------------
# Pallas wrappers
# ---------------------------------------------------------------------------

def fused_matmul_bias(x, w, bias, *, relu):
    """x:(M,K) @ w:(K,Np) + bias (+ReLU) -> bf16 (M,Np).  1-D grid over M."""
    M, K = x.shape
    Np = w.shape[1]
    tm = min(_round_up(M, 8), 512)      # larger tiles amortize per-step overhead
    Mp = _round_up(M, tm)
    if Mp != M:
        x = jnp.pad(x, ((0, Mp - M), (0, 0)))
    x = x.astype(jnp.bfloat16)

    out = pl.pallas_call(
        functools.partial(_matmul_bias_kernel, relu=relu),
        out_shape=jax.ShapeDtypeStruct((Mp, Np), jnp.bfloat16),
        grid=(Mp // tm,),
        in_specs=[
            pl.BlockSpec((tm, K), lambda i: (i, 0)),
            pl.BlockSpec((K, Np), lambda i: (0, 0)),
            pl.BlockSpec((1, Np), lambda i: (0, 0)),
        ],
        out_specs=pl.BlockSpec((tm, Np), lambda i: (i, 0)),
        compiler_params=pltpu.CompilerParams(
            dimension_semantics=("parallel",)),
    )(x, w, bias)
    return out[:M]


def conv3x3_s1(x, p, *, relu, residual=None):
    """3x3 stride-1 Conv + folded-BN bias (+ optional fused residual add) (+ReLU)."""
    kh, kw, cin, cout = p["shape"]
    N, H, W, _ = x.shape
    Ho, Wo = H, W
    Hp, Wp = H + 2, W + 2
    Np = p["w2"].shape[1]
    # TODO(synk): write producers into a pre-padded halo buffer to avoid this pad.
    xp = jnp.pad(x.astype(jnp.bfloat16), ((0, 0), (1, 1), (1, 1), (0, 0)))

    has_res = residual is not None
    in_specs = [
        pl.BlockSpec((None, Hp, Wp, cin), lambda n: (n, 0, 0, 0)),
        pl.BlockSpec(p["w2"].shape, lambda n: (0, 0)),
        pl.BlockSpec((1, Np), lambda n: (0, 0)),
    ]
    args = [xp, p["w2"], p["bias"]]
    if has_res:
        in_specs.append(pl.BlockSpec((None, Ho * Wo, Np), lambda n: (n, 0, 0)))
        args.append(residual)

    out = pl.pallas_call(
        functools.partial(_conv3x3_s1_kernel, ho=Ho, wo=Wo, cin=cin,
                          relu=relu, has_residual=has_res),
        out_shape=jax.ShapeDtypeStruct((N, Ho * Wo, Np), jnp.bfloat16),
        grid=(N,),                       # one image per grid step
        in_specs=in_specs,
        out_specs=pl.BlockSpec((None, Ho * Wo, Np), lambda n: (n, 0, 0)),
        scratch_shapes=[pltpu.VMEM((Ho * Wo, 9 * cin), jnp.bfloat16)],
        compiler_params=pltpu.CompilerParams(
            dimension_semantics=("parallel",)),
    )(*args)
    return out[:, :, :cout].reshape(N, Ho, Wo, cout)


def maxpool2x2(x):
    """2x2, stride-2 max pool (NHWC), pooling done fully in-kernel."""
    N, H, W, C = x.shape
    assert H % 2 == 0 and W % 2 == 0
    Hh, Wh = H // 2, W // 2
    # Free contiguous reshape: (N,H,W,C) -> (N*Hh, 2, Wh, 2C); no HBM slices.
    xr = x.reshape(N * Hh, 2, Wh, 2 * C)
    out = pl.pallas_call(
        functools.partial(_maxpool_kernel, c=C),
        out_shape=jax.ShapeDtypeStruct((N * Hh, Wh, C), x.dtype),
        grid=(N * Hh,),
        in_specs=[pl.BlockSpec((None, 2, Wh, 2 * C), lambda i: (i, 0, 0, 0))],
        out_specs=pl.BlockSpec((None, Wh, C), lambda i: (i, 0, 0)),
        compiler_params=pltpu.CompilerParams(
            dimension_semantics=("parallel",)),
    )(xr)
    return out.reshape(N, Hh, Wh, C)


# ---------------------------------------------------------------------------
# Glue: im2col (only for the two tiny stride-2 3x3 convs), 1x1 convs, upsample
# ---------------------------------------------------------------------------

def _im2col(x, kh, kw, stride, pad):
    N, H, W, C = x.shape
    xp = jnp.pad(x, ((0, 0), (pad, pad), (pad, pad), (0, 0)))
    Ho = (H + 2 * pad - kh) // stride + 1
    Wo = (W + 2 * pad - kw) // stride + 1
    cols = []
    for i in range(kh):
        for j in range(kw):
            cols.append(xp[:, i:i + (Ho - 1) * stride + 1:stride,
                           j:j + (Wo - 1) * stride + 1:stride, :])
    patches = jnp.concatenate(cols, axis=-1)          # (N, Ho, Wo, kh*kw*C)
    return patches.reshape(N * Ho * Wo, kh * kw * C), (N, Ho, Wo)


def conv_bn_act(x, p, *, stride=1, relu=True):
    """Conv2d(bias=False) + folded BatchNorm + optional ReLU, NHWC, bf16 out."""
    kh, kw, cin, cout = p["shape"]
    if kh == 1 and kw == 1:
        if stride != 1:
            x = x[:, ::stride, ::stride, :]
        N, H, W, _ = x.shape
        y = fused_matmul_bias(x.reshape(N * H * W, cin), p["w2"], p["bias"],
                              relu=relu)
        return y[:, :cout].reshape(N, H, W, cout)
    if stride == 1:
        return conv3x3_s1(x, p, relu=relu)
    # TODO(synk): the two small 3x3 stride-2 encoder convs still use a JAX im2col;
    # they could be fused like the stride-1 path with strided in-kernel reads.
    cols, (N, Ho, Wo) = _im2col(x, kh, kw, stride, (kh - 1) // 2)
    y = fused_matmul_bias(cols, p["w2"], p["bias"], relu=relu)
    return y[:, :cout].reshape(N, Ho, Wo, cout)


def conv1x1_padded(x, p, *, stride=1):
    """1x1 conv + folded-BN bias (no ReLU); returns lane-padded (N, H*W, Np) bf16
    so it can be fed straight into the fused residual input of conv3x3_s1."""
    if stride != 1:
        x = x[:, ::stride, ::stride, :]
    N, H, W, cin = x.shape
    y = fused_matmul_bias(x.reshape(N * H * W, cin), p["w2"], p["bias"],
                          relu=False)
    return y.reshape(N, H * W, p["w2"].shape[1])


def upsample2(x):  # nearest-neighbour x2 (matches F.interpolate mode="nearest")
    return jnp.repeat(jnp.repeat(x, 2, axis=1), 2, axis=2)


# ---------------------------------------------------------------------------
# Parameters (deterministic, synthetic); BN scale folded + N-padded at init.
# ---------------------------------------------------------------------------

def _conv_params(key, kh, kw, cin, cout):
    k1, k2, k3 = jax.random.split(key, 3)
    w = 0.1 * jax.random.normal(k1, (kh, kw, cin, cout), jnp.float32)
    scale = 1.0 + 0.05 * jax.random.normal(k2, (cout,), jnp.float32)
    bias = 0.05 * jax.random.normal(k3, (cout,), jnp.float32)
    Np = _round_up(cout, 128)
    # fold BN scale into the weights; pad N to the lane width once, cast to bf16
    # TODO(synk): real-checkpoint fold is gamma/sqrt(var+eps) on w and
    # beta - mean*scale on the bias.
    w2 = w.reshape(kh * kw * cin, cout) * scale[None, :]
    w2 = jnp.pad(w2, ((0, 0), (0, Np - cout))).astype(jnp.bfloat16)
    b2 = jnp.pad(bias.reshape(1, cout), ((0, 0), (0, Np - cout))).astype(jnp.float32)
    return {"shape": (kh, kw, cin, cout), "w2": w2, "bias": b2}


def init_params(key):
    names_shapes = {
        # encoder (mini resnet-style: stem + 2 residual stages)
        "stem":     (3, 3, 1, 8),
        "b1_conv1": (3, 3, 8, 16),
        "b1_conv2": (3, 3, 16, 16),
        "b1_skip":  (1, 1, 8, 16),
        "b2_conv1": (3, 3, 16, 32),
        "b2_conv2": (3, 3, 32, 32),
        "b2_skip":  (1, 1, 16, 32),
        # UNet++ decoder (dense nested skips)
        "x01_1": (3, 3, 16 + 8, 8),        "x01_2": (3, 3, 8, 8),
        "x11_1": (3, 3, 32 + 16, 16),      "x11_2": (3, 3, 16, 16),
        "x02_1": (3, 3, 16 + 8 + 8, 8),    "x02_2": (3, 3, 8, 8),
        "fin_1": (3, 3, 8, 8),             "fin_2": (3, 3, 8, 8),
    }
    keys = jax.random.split(key, len(names_shapes))
    return {n: _conv_params(k, *s) for (n, s), k in zip(names_shapes.items(), keys)}


# ---------------------------------------------------------------------------
# Segmentation_part.forward  (encoder -> UNet++ decoder, decoder output returned)
# ---------------------------------------------------------------------------

def segmentation_part_forward(x_nchw, P):
    x = jnp.transpose(x_nchw, (0, 2, 3, 1)).astype(jnp.bfloat16)  # NCHW -> NHWC

    # ---- encoder ----
    # f0 = x (identity feature; dropped by the UNet++ decoder, as in smp)
    f1 = conv_bn_act(x, P["stem"], stride=2)                     # s2,  8 ch
    p = maxpool2x2(f1)                                           # s4
    s = conv1x1_padded(p, P["b1_skip"])                          # lane-padded skip
    y = conv_bn_act(p, P["b1_conv1"])
    f2 = conv3x3_s1(y, P["b1_conv2"], relu=True, residual=s)     # s4, 16 ch (fused add+ReLU)
    s = conv1x1_padded(f2, P["b2_skip"], stride=2)
    y = conv_bn_act(f2, P["b2_conv1"], stride=2)
    f3 = conv3x3_s1(y, P["b2_conv2"], relu=True, residual=s)     # s8, 32 ch (fused add+ReLU)

    # ---- UNet++ decoder (nested dense skips) ----
    def dec_block(deep, skips, p1, p2):
        h = upsample2(deep)
        if skips:
            h = jnp.concatenate([h] + skips, axis=-1)
        h = conv_bn_act(h, p1)
        h = conv_bn_act(h, p2)
        return h

    x01 = dec_block(f2, [f1], P["x01_1"], P["x01_2"])            # s2
    x11 = dec_block(f3, [f2], P["x11_1"], P["x11_2"])            # s4
    x02 = dec_block(x11, [f1, x01], P["x02_1"], P["x02_2"])      # s2
    out = dec_block(x02, [], P["fin_1"], P["fin_2"])             # s1 (full res)

    return jnp.transpose(out, (0, 3, 1, 2)).astype(jnp.float32)  # NHWC -> NCHW


# ---------------------------------------------------------------------------
# main
# ---------------------------------------------------------------------------

if __name__ == "__main__":
    key = jax.random.PRNGKey(0)
    kx, kp = jax.random.split(key)

    # in_channels=1, as in smp.UnetPlusPlus(..., in_channels=1)
    x = jax.random.normal(kx, (2, 1, 16, 16), jnp.float32)       # NCHW
    params = init_params(kp)

    # params are closed over (static metadata stays Python-side; weights are
    # trace-time constants).
    fwd = jax.jit(lambda inp: segmentation_part_forward(inp, params))
    out = fwd(x)
    jax.block_until_ready(out)

    assert out.shape == (2, 8, 16, 16), out.shape                # decoder output, NCHW
    assert jnp.all(jnp.isfinite(out))
    print("KERNEL_OK")
</pallas_src>

<mosaic_0001>
module attributes {stable_mosaic.version = 11 : i64} {
  func.func @_maxpool_kernel(%arg0: i32, %arg1: memref<1x2x4x16xbf16, #tpu.memory_space<vmem>>, %arg2: memref<1x4x8xbf16, #tpu.memory_space<vmem>>) attributes {dimension_semantics = [#tpu.dimension_semantics<parallel>], iteration_bounds = array<i64: 8>, scalar_prefetch = 0 : i64, scratch_operands = 0 : i64, tpu.core_type = #tpu.core_type<tc>, window_params = [{transform_indices = @transform_0, window_bounds = array<i64: 1, 2, 4, 16>}, {transform_indices = @transform_1, window_bounds = array<i64: 1, 4, 8>}]} {
    %c0 = arith.constant 0 : index
    %c0_0 = arith.constant 0 : index
    %c0_1 = arith.constant 0 : index
    %c0_2 = arith.constant 0 : index
    %0 = vector.load %arg1[%c0, %c0_0, %c0_1, %c0_2] : memref<1x2x4x16xbf16, #tpu.memory_space<vmem>>, vector<1x1x4x16xbf16>
    %1 = vector.shape_cast %0 : vector<1x1x4x16xbf16> to vector<4x16xbf16>
    %c0_3 = arith.constant 0 : index
    %c1 = arith.constant 1 : index
    %c0_4 = arith.constant 0 : index
    %c0_5 = arith.constant 0 : index
    %2 = vector.load %arg1[%c0_3, %c1, %c0_4, %c0_5] : memref<1x2x4x16xbf16, #tpu.memory_space<vmem>>, vector<1x1x4x16xbf16>
    %3 = vector.shape_cast %2 : vector<1x1x4x16xbf16> to vector<4x16xbf16>
    %4 = arith.maximumf %1, %3 : vector<4x16xbf16>
    %5 = vector.extract_strided_slice %4 {offsets = [0, 0], sizes = [4, 8], strides = [1, 1]} : vector<4x16xbf16> to vector<4x8xbf16>
    %6 = vector.extract_strided_slice %4 {offsets = [0, 8], sizes = [4, 8], strides = [1, 1]} : vector<4x16xbf16> to vector<4x8xbf16>
    %7 = arith.maximumf %5, %6 : vector<4x8xbf16>
    %c0_6 = arith.constant 0 : index
    %c0_7 = arith.constant 0 : index
    %c0_8 = arith.constant 0 : index
    %8 = vector.load %arg2[%c0_6, %c0_7, %c0_8] : memref<1x4x8xbf16, #tpu.memory_space<vmem>>, vector<1x4x8xbf16>
    %9 = vector.shape_cast %8 : vector<1x4x8xbf16> to vector<4x8xbf16>
    %10 = vector.shape_cast %7 : vector<4x8xbf16> to vector<1x4x8xbf16>
    tpu.vector_store %arg2[%c0_6, %c0_7, %c0_8], %10 {strides = array<i32>} : memref<1x4x8xbf16, #tpu.memory_space<vmem>>, vector<1x4x8xbf16>,
    return
  }
  func.func @transform_0(%arg0: i32) -> (i32, i32, i32, i32) {
    %c0_i32 = arith.constant 0 : i32
    %c0_i32_0 = arith.constant 0 : i32
    %c0_i32_1 = arith.constant 0 : i32
    %c0_i32_2 = arith.constant 0 : i32
    return %arg0, %c0_i32, %c0_i32_0, %c0_i32_1 : i32, i32, i32, i32
  }
  func.func @transform_1(%arg0: i32) -> (i32, i32, i32) {
    %c0_i32 = arith.constant 0 : i32
    %c0_i32_0 = arith.constant 0 : i32
    %c0_i32_1 = arith.constant 0 : i32
    return %arg0, %c0_i32, %c0_i32_0 : i32, i32, i32
  }
}

module attributes {stable_mosaic.version = 11 : i64} {
  func.func @_matmul_bias_kernel(%arg0: i32, %arg1: memref<128x9xbf16, #tpu.memory_space<vmem>>, %arg2: memref<9x128xbf16, #tpu.memory_space<vmem>>, %arg3: memref<1x128xf32, #tpu.memory_space<vmem>>, %arg4: memref<128x128xbf16, #tpu.memory_space<vmem>>) attributes {dimension_semantics = [#tpu.dimension_semantics<parallel>], iteration_bounds = array<i64: 1>, scalar_prefetch = 0 : i64, scratch_operands = 0 : i64, tpu.core_type = #tpu.core_type<tc>, window_params = [{transform_indices = @transform_0, window_bounds = array<i64: 128, 9>}, {pipeline_mode = #tpu.pipeline_mode<synchronous>, transform_indices = @transform_1, window_bounds = array<i64: 9, 128>}, {pipeline_mode = #tpu.pipeline_mode<synchronous>, transform_indices = @transform_2, window_bounds = array<i64: 1, 128>}, {transform_indices = @transform_3, window_bounds = array<i64: 128, 128>}]} {
    %c0 = arith.constant 0 : index
    %c0_0 = arith.constant 0 : index
    %0 = vector.load %arg1[%c0, %c0_0] : memref<128x9xbf16, #tpu.memory_space<vmem>>, vector<128x9xbf16>
    %c0_1 = arith.constant 0 : index
    %c0_2 = arith.constant 0 : index
    %1 = vector.load %arg2[%c0_1, %c0_2] : memref<9x128xbf16, #tpu.memory_space<vmem>>, vector<9x128xbf16>
    %cst = arith.constant dense<0.000000e+00> : vector<128x128xf32>
    %2 = tpu.matmul %0, %1, %cst {dimension_numbers = #tpu.dot_dimension_numbers<[1], [0], [0], [1], [0, 0, 1, 1], [], []>} : vector<128x9xbf16>, vector<9x128xbf16>, vector<128x128xf32> -> vector<128x128xf32>
    %c0_3 = arith.constant 0 : index
    %c0_4 = arith.constant 0 : index
    %3 = vector.load %arg3[%c0_3, %c0_4] : memref<1x128xf32, #tpu.memory_space<vmem>>, vector<1x128xf32>
    %4 = vector.broadcast %3 : vector<1x128xf32> to vector<128x128xf32>
    %5 = arith.addf %2, %4 : vector<128x128xf32>
    %cst_5 = arith.constant 0.000000e+00 : f32
    %6 = vector.broadcast %cst_5 : f32 to vector<128x128xf32>
    %7 = arith.maximumf %5, %6 : vector<128x128xf32>
    %8 = arith.truncf %7 : vector<128x128xf32> to vector<128x128xbf16>
    %c0_6 = arith.constant 0 : index
    %c0_7 = arith.constant 0 : index
    %9 = vector.load %arg4[%c0_6, %c0_7] : memref<128x128xbf16, #tpu.memory_space<vmem>>, vector<128x128xbf16>
    tpu.vector_store %arg4[%c0_6, %c0_7], %8 {strides = array<i32>} : memref<128x128xbf16, #tpu.memory_space<vmem>>, vector<128x128xbf16>,
    return
  }
  func.func @transform_0(%arg0: i32) -> (i32, i32) {
    %c0_i32 = arith.constant 0 : i32
    %c0_i32_0 = arith.constant 0 : i32
    return %arg0, %c0_i32 : i32, i32
  }
  func.func @transform_1(%arg0: i32) -> (i32, i32) {
    %c0_i32 = arith.constant 0 : i32
    %c0_i32_0 = arith.constant 0 : i32
    %c0_i32_1 = arith.constant 0 : i32
    return %c0_i32, %c0_i32_0 : i32, i32
  }
  func.func @transform_2(%arg0: i32) -> (i32, i32) {
    %c0_i32 = arith.constant 0 : i32
    %c0_i32_0 = arith.constant 0 : i32
    %c0_i32_1 = arith.constant 0 : i32
    return %c0_i32, %c0_i32_0 : i32, i32
  }
  func.func @transform_3(%arg0: i32) -> (i32, i32) {
    %c0_i32 = arith.constant 0 : i32
    %c0_i32_0 = arith.constant 0 : i32
    return %arg0, %c0_i32 : i32, i32
  }
}

module attributes {stable_mosaic.version = 11 : i64} {
  func.func @_matmul_bias_kernel(%arg0: i32, %arg1: memref<32x8xbf16, #tpu.memory_space<vmem>>, %arg2: memref<8x128xbf16, #tpu.memory_space<vmem>>, %arg3: memref<1x128xf32, #tpu.memory_space<vmem>>, %arg4: memref<32x128xbf16, #tpu.memory_space<vmem>>) attributes {dimension_semantics = [#tpu.dimension_semantics<parallel>], iteration_bounds = array<i64: 1>, scalar_prefetch = 0 : i64, scratch_operands = 0 : i64, tpu.core_type = #tpu.core_type<tc>, window_params = [{transform_indices = @transform_0, window_bounds = array<i64: 32, 8>}, {pipeline_mode = #tpu.pipeline_mode<synchronous>, transform_indices = @transform_1, window_bounds = array<i64: 8, 128>}, {pipeline_mode = #tpu.pipeline_mode<synchronous>, transform_indices = @transform_2, window_bounds = array<i64: 1, 128>}, {transform_indices = @transform_3, window_bounds = array<i64: 32, 128>}]} {
    %c0 = arith.constant 0 : index
    %c0_0 = arith.constant 0 : index
    %0 = vector.load %arg1[%c0, %c0_0] : memref<32x8xbf16, #tpu.memory_space<vmem>>, vector<32x8xbf16>
    %c0_1 = arith.constant 0 : index
    %c0_2 = arith.constant 0 : index
    %1 = vector.load %arg2[%c0_1, %c0_2] : memref<8x128xbf16, #tpu.memory_space<vmem>>, vector<8x128xbf16>
    %cst = arith.constant dense<0.000000e+00> : vector<32x128xf32>
    %2 = tpu.matmul %0, %1, %cst {dimension_numbers = #tpu.dot_dimension_numbers<[1], [0], [0], [1], [0, 0, 1, 1], [], []>} : vector<32x8xbf16>, vector<8x128xbf16>, vector<32x128xf32> -> vector<32x128xf32>
    %c0_3 = arith.constant 0 : index
    %c0_4 = arith.constant 0 : index
    %3 = vector.load %arg3[%c0_3, %c0_4] : memref<1x128xf32, #tpu.memory_space<vmem>>, vector<1x128xf32>
    %4 = vector.broadcast %3 : vector<1x128xf32> to vector<32x128xf32>
    %5 = arith.addf %2, %4 : vector<32x128xf32>
    %6 = arith.truncf %5 : vector<32x128xf32> to vector<32x128xbf16>
    %c0_5 = arith.constant 0 : index
    %c0_6 = arith.constant 0 : index
    %7 = vector.load %arg4[%c0_5, %c0_6] : memref<32x128xbf16, #tpu.memory_space<vmem>>, vector<32x128xbf16>
    tpu.vector_store %arg4[%c0_5, %c0_6], %6 {strides = array<i32>} : memref<32x128xbf16, #tpu.memory_space<vmem>>, vector<32x128xbf16>,
    return
  }
  func.func @transform_0(%arg0: i32) -> (i32, i32) {
    %c0_i32 = arith.constant 0 : i32
    %c0_i32_0 = arith.constant 0 : i32
    return %arg0, %c0_i32 : i32, i32
  }
  func.func @transform_1(%arg0: i32) -> (i32, i32) {
    %c0_i32 = arith.constant 0 : i32
    %c0_i32_0 = arith.constant 0 : i32
    %c0_i32_1 = arith.constant 0 : i32
    return %c0_i32, %c0_i32_0 : i32, i32
  }
  func.func @transform_2(%arg0: i32) -> (i32, i32) {
    %c0_i32 = arith.constant 0 : i32
    %c0_i32_0 = arith.constant 0 : i32
    %c0_i32_1 = arith.constant 0 : i32
    return %c0_i32, %c0_i32_0 : i32, i32
  }
  func.func @transform_3(%arg0: i32) -> (i32, i32) {
    %c0_i32 = arith.constant 0 : i32
    %c0_i32_0 = arith.constant 0 : i32
    return %arg0, %c0_i32 : i32, i32
  }
}

module attributes {stable_mosaic.version = 11 : i64} {
  func.func @_conv3x3_s1_kernel(%arg0: i32, %arg1: memref<1x6x6x8xbf16, #tpu.memory_space<vmem>>, %arg2: memref<72x128xbf16, #tpu.memory_space<vmem>>, %arg3: memref<1x128xf32, #tpu.memory_space<vmem>>, %arg4: memref<1x16x128xbf16, #tpu.memory_space<vmem>>, %arg5: memref<16x72xbf16, #tpu.memory_space<vmem>>) attributes {dimension_semantics = [#tpu.dimension_semantics<parallel>], iteration_bounds = array<i64: 2>, scalar_prefetch = 0 : i64, scratch_operands = 1 : i64, tpu.core_type = #tpu.core_type<tc>, window_params = [{transform_indices = @transform_0, window_bounds = array<i64: 1, 6, 6, 8>}, {pipeline_mode = #tpu.pipeline_mode<synchronous>, transform_indices = @transform_1, window_bounds = array<i64: 72, 128>}, {pipeline_mode = #tpu.pipeline_mode<synchronous>, transform_indices = @transform_2, window_bounds = array<i64: 1, 128>}, {transform_indices = @transform_3, window_bounds = array<i64: 1, 16, 128>}]} {
    %c0 = arith.constant 0 : index
    %c0_0 = arith.constant 0 : index
    %c0_1 = arith.constant 0 : index
    %c0_2 = arith.constant 0 : index
    %0 = vector.load %arg1[%c0, %c0_0, %c0_1, %c0_2] : memref<1x6x6x8xbf16, #tpu.memory_space<vmem>>, vector<1x4x4x8xbf16>
    %1 = vector.shape_cast %0 : vector<1x4x4x8xbf16> to vector<4x4x8xbf16>
    %2 = vector.shape_cast %1 : vector<4x4x8xbf16> to vector<16x8xbf16>
    %c0_3 = arith.constant 0 : index
    %c0_4 = arith.constant 0 : index
    %3 = vector.load %arg5[%c0_3, %c0_4] : memref<16x72xbf16, #tpu.memory_space<vmem>>, vector<16x8xbf16>
    tpu.vector_store %arg5[%c0_3, %c0_4], %2 {strides = array<i32>} : memref<16x72xbf16, #tpu.memory_space<vmem>>, vector<16x8xbf16>,
    %c0_5 = arith.constant 0 : index
    %c0_6 = arith.constant 0 : index
    %c1 = arith.constant 1 : index
    %c0_7 = arith.constant 0 : index
    %4 = vector.load %arg1[%c0_5, %c0_6, %c1, %c0_7] : memref<1x6x6x8xbf16, #tpu.memory_space<vmem>>, vector<1x4x4x8xbf16>
    %5 = vector.shape_cast %4 : vector<1x4x4x8xbf16> to vector<4x4x8xbf16>
    %6 = vector.shape_cast %5 : vector<4x4x8xbf16> to vector<16x8xbf16>
    %c0_8 = arith.constant 0 : index
    %c8 = arith.constant 8 : index
    %7 = vector.load %arg5[%c0_8, %c8] : memref<16x72xbf16, #tpu.memory_space<vmem>>, vector<16x8xbf16>
    tpu.vector_store %arg5[%c0_8, %c8], %6 {strides = array<i32>} : memref<16x72xbf16, #tpu.memory_space<vmem>>, vector<16x8xbf16>,
    %c0_9 = arith.constant 0 : index
    %c0_10 = arith.constant 0 : index
    %c2 = arith.constant 2 : index
    %c0_11 = arith.constant 0 : index
    %8 = vector.load %arg1[%c0_9, %c0_10, %c2, %c0_11] : memref<1x6x6x8xbf16, #tpu.memory_space<vmem>>, vector<1x4x4x8xbf16>
    %9 = vector.shape_cast %8 : vector<1x4x4x8xbf16> to vector<4x4x8xbf16>
    %10 = vector.shape_cast %9 : vector<4x4x8xbf16> to vector<16x8xbf16>
    %c0_12 = arith.constant 0 : index
    %c16 = arith.constant 16 : index
    %11 = vector.load %arg5[%c0_12, %c16] : memref<16x72xbf16, #tpu.memory_space<vmem>>, vector<16x8xbf16>
    tpu.vector_store %arg5[%c0_12, %c16], %10 {strides = array<i32>} : memref<16x72xbf16, #tpu.memory_space<vmem>>, vector<16x8xbf16>,
    %c0_13 = arith.constant 0 : index
    %c1_14 = arith.constant 1 : index
    %c0_15 = arith.constant 0 : index
    %c0_16 = arith.constant 0 : index
    %12 = vector.load %arg1[%c0_13, %c1_14, %c0_15, %c0_16] : memref<1x6x6x8xbf16, #tpu.memory_space<vmem>>, vector<1x4x4x8xbf16>
    %13 = vector.shape_cast %12 : vector<1x4x4x8xbf16> to vector<4x4x8xbf16>
    %14 = vector.shape_cast %13 : vector<4x4x8xbf16> to vector<16x8xbf16>
    %c0_17 = arith.constant 0 : index
    %c24 = arith.constant 24 : index
    %15 = vector.load %arg5[%c0_17, %c24] : memref<16x72xbf16, #tpu.memory_space<vmem>>, vector<16x8xbf16>
    tpu.vector_store %arg5[%c0_17, %c24], %14 {strides = array<i32>} : memref<16x72xbf16, #tpu.memory_space<vmem>>, vector<16x8xbf16>,
    %c0_18 = arith.constant 0 : index
    %c1_19 = arith.constant 1 : index
    %c1_20 = arith.constant 1 : index
    %c0_21 = arith.constant 0 : index
    %16 = vector.load %arg1[%c0_18, %c1_19, %c1_20, %c0_21] : memref<1x6x6x8xbf16, #tpu.memory_space<vmem>>, vector<1x4x4x8xbf16>
    %17 = vector.shape_cast %16 : vector<1x4x4x8xbf16> to vector<4x4x8xbf16>
    %18 = vector.shape_cast %17 : vector<4x4x8xbf16> to vector<16x8xbf16>
    %c0_22 = arith.constant 0 : index
    %c32 = arith.constant 32 : index
    %19 = vector.load %arg5[%c0_22, %c32] : memref<16x72xbf16, #tpu.memory_space<vmem>>, vector<16x8xbf16>
    tpu.vector_store %arg5[%c0_22, %c32], %18 {strides = array<i32>} : memref<16x72xbf16, #tpu.memory_space<vmem>>, vector<16x8xbf16>,
    %c0_23 = arith.constant 0 : index
    %c1_24 = arith.constant 1 : index
    %c2_25 = arith.constant 2 : index
    %c0_26 = arith.constant 0 : index
    %20 = vector.load %arg1[%c0_23, %c1_24, %c2_25, %c0_26] : memref<1x6x6x8xbf16, #tpu.memory_space<vmem>>, vector<1x4x4x8xbf16>
    %21 = vector.shape_cast %20 : vector<1x4x4x8xbf16> to vector<4x4x8xbf16>
    %22 = vector.shape_cast %21 : vector<4x4x8xbf16> to vector<16x8xbf16>
    %c0_27 = arith.constant 0 : index
    %c40 = arith.constant 40 : index
    %23 = vector.load %arg5[%c0_27, %c40] : memref<16x72xbf16, #tpu.memory_space<vmem>>, vector<16x8xbf16>
    tpu.vector_store %arg5[%c0_27, %c40], %22 {strides = array<i32>} : memref<16x72xbf16, #tpu.memory_space<vmem>>, vector<16x8xbf16>,
    %c0_28 = arith.constant 0 : index
    %c2_29 = arith.constant 2 : index
    %c0_30 = arith.constant 0 : index
    %c0_31 = arith.constant 0 : index
    %24 = vector.load %arg1[%c0_28, %c2_29, %c0_30, %c0_31] : memref<1x6x6x8xbf16, #tpu.memory_space<vmem>>, vector<1x4x4x8xbf16>
    %25 = vector.shape_cast %24 : vector<1x4x4x8xbf16> to vector<4x4x8xbf16>
    %26 = vector.shape_cast %25 : vector<4x4x8xbf16> to vector<16x8xbf16>
    %c0_32 = arith.constant 0 : index
    %c48 = arith.constant 48 : index
    %27 = vector.load %arg5[%c0_32, %c48] : memref<16x72xbf16, #tpu.memory_space<vmem>>, vector<16x8xbf16>
    tpu.vector_store %arg5[%c0_32, %c48], %26 {strides = array<i32>} : memref<16x72xbf16, #tpu.memory_space<vmem>>, vector<16x8xbf16>,
    %c0_33 = arith.constant 0 : index
    %c2_34 = arith.constant 2 : index
    %c1_35 = arith.constant 1 : index
    %c0_36 = arith.constant 0 : index
    %28 = vector.load %arg1[%c0_33, %c2_34, %c1_35, %c0_36] : memref<1x6x6x8xbf16, #tpu.memory_space<vmem>>, vector<1x4x4x8xbf16>
    %29 = vector.shape_cast %28 : vector<1x4x4x8xbf16> to vector<4x4x8xbf16>
    %30 = vector.shape_cast %29 : vector<4x4x8xbf16> to vector<16x8xbf16>
    %c0_37 = arith.constant 0 : index
    %c56 = arith.constant 56 : index
    %31 = vector.load %arg5[%c0_37, %c56] : memref<16x72xbf16, #tpu.memory_space<vmem>>, vector<16x8xbf16>
    tpu.vector_store %arg5[%c0_37, %c56], %30 {strides = array<i32>} : memref<16x72xbf16, #tpu.memory_space<vmem>>, vector<16x8xbf16>,
    %c0_38 = arith.constant 0 : index
    %c2_39 = arith.constant 2 : index
    %c2_40 = arith.constant 2 : index
    %c0_41 = arith.constant 0 : index
    %32 = vector.load %arg1[%c0_38, %c2_39, %c2_40, %c0_41] : memref<1x6x6x8xbf16, #tpu.memory_space<vmem>>, vector<1x4x4x8xbf16>
    %33 = vector.shape_cast %32 : vector<1x4x4x8xbf16> to vector<4x4x8xbf16>
    %34 = vector.shape_cast %33 : vector<4x4x8xbf16> to vector<16x8xbf16>
    %c0_42 = arith.constant 0 : index
    %c64 = arith.constant 64 : index
    %35 = vector.load %arg5[%c0_42, %c64] : memref<16x72xbf16, #tpu.memory_space<vmem>>, vector<16x8xbf16>
    tpu.vector_store %arg5[%c0_42, %c64], %34 {strides = array<i32>} : memref<16x72xbf16, #tpu.memory_space<vmem>>, vector<16x8xbf16>,
    %c0_43 = arith.constant 0 : index
    %c0_44 = arith.constant 0 : index
    %36 = vector.load %arg5[%c0_43, %c0_44] : memref<16x72xbf16, #tpu.memory_space<vmem>>, vector<16x72xbf16>
    %c0_45 = arith.constant 0 : index
    %c0_46 = arith.constant 0 : index
    %37 = vector.load %arg2[%c0_45, %c0_46] : memref<72x128xbf16, #tpu.memory_space<vmem>>, vector<72x128xbf16>
    %cst = arith.constant dense<0.000000e+00> : vector<16x128xf32>
    %38 = tpu.matmul %36, %37, %cst {dimension_numbers = #tpu.dot_dimension_numbers<[1], [0], [0], [1], [0, 0, 1, 1], [], []>} : vector<16x72xbf16>, vector<72x128xbf16>, vector<16x128xf32> -> vector<16x128xf32>
    %c0_47 = arith.constant 0 : index
    %c0_48 = arith.constant 0 : index
    %39 = vector.load %arg3[%c0_47, %c0_48] : memref<1x128xf32, #tpu.memory_space<vmem>>, vector<1x128xf32>
    %40 = vector.broadcast %39 : vector<1x128xf32> to vector<16x128xf32>
    %41 = arith.addf %38, %40 : vector<16x128xf32>
    %cst_49 = arith.constant 0.000000e+00 : f32
    %42 = vector.broadcast %cst_49 : f32 to vector<16x128xf32>
    %43 = arith.maximumf %41, %42 : vector<16x128xf32>
    %44 = arith.truncf %43 : vector<16x128xf32> to vector<16x128xbf16>
    %c0_50 = arith.constant 0 : index
    %c0_51 = arith.constant 0 : index
    %c0_52 = arith.constant 0 : index
    %45 = vector.load %arg4[%c0_50, %c0_51, %c0_52] : memref<1x16x128xbf16, #tpu.memory_space<vmem>>, vector<1x16x128xbf16>
    %46 = vector.shape_cast %45 : vector<1x16x128xbf16> to vector<16x128xbf16>
    %47 = vector.shape_cast %44 : vector<16x128xbf16> to vector<1x16x128xbf16>
    tpu.vector_store %arg4[%c0_50, %c0_51, %c0_52], %47 {strides = array<i32>} : memref<1x16x128xbf16, #tpu.memory_space<vmem>>, vector<1x16x128xbf16>,
    return
  }
  func.func @transform_0(%arg0: i32) -> (i32, i32, i32, i32) {
    %c0_i32 = arith.constant 0 : i32
    %c0_i32_0 = arith.constant 0 : i32
    %c0_i32_1 = arith.constant 0 : i32
    %c0_i32_2 = arith.constant 0 : i32
    return %arg0, %c0_i32, %c0_i32_0, %c0_i32_1 : i32, i32, i32, i32
  }
  func.func @transform_1(%arg0: i32) -> (i32, i32) {
    %c0_i32 = arith.constant 0 : i32
    %c0_i32_0 = arith.constant 0 : i32
    %c0_i32_1 = arith.constant 0 : i32
    return %c0_i32, %c0_i32_0 : i32, i32
  }
  func.func @transform_2(%arg0: i32) -> (i32, i32) {
    %c0_i32 = arith.constant 0 : i32
    %c0_i32_0 = arith.constant 0 : i32
    %c0_i32_1 = arith.constant 0 : i32
    return %c0_i32, %c0_i32_0 : i32, i32
  }
  func.func @transform_3(%arg0: i32) -> (i32, i32, i32) {
    %c0_i32 = arith.constant 0 : i32
    %c0_i32_0 = arith.constant 0 : i32
    %c0_i32_1 = arith.constant 0 : i32
    return %arg0, %c0_i32, %c0_i32_0 : i32, i32, i32
  }
}

module attributes {stable_mosaic.version = 11 : i64} {
  func.func @_matmul_bias_kernel(%arg0: i32, %arg1: memref<8x16xbf16, #tpu.memory_space<vmem>>, %arg2: memref<16x128xbf16, #tpu.memory_space<vmem>>, %arg3: memref<1x128xf32, #tpu.memory_space<vmem>>, %arg4: memref<8x128xbf16, #tpu.memory_space<vmem>>) attributes {dimension_semantics = [#tpu.dimension_semantics<parallel>], iteration_bounds = array<i64: 1>, scalar_prefetch = 0 : i64, scratch_operands = 0 : i64, tpu.core_type = #tpu.core_type<tc>, window_params = [{transform_indices = @transform_0, window_bounds = array<i64: 8, 16>}, {pipeline_mode = #tpu.pipeline_mode<synchronous>, transform_indices = @transform_1, window_bounds = array<i64: 16, 128>}, {pipeline_mode = #tpu.pipeline_mode<synchronous>, transform_indices = @transform_2, window_bounds = array<i64: 1, 128>}, {transform_indices = @transform_3, window_bounds = array<i64: 8, 128>}]} {
    %c0 = arith.constant 0 : index
    %c0_0 = arith.constant 0 : index
    %0 = vector.load %arg1[%c0, %c0_0] : memref<8x16xbf16, #tpu.memory_space<vmem>>, vector<8x16xbf16>
    %c0_1 = arith.constant 0 : index
    %c0_2 = arith.constant 0 : index
    %1 = vector.load %arg2[%c0_1, %c0_2] : memref<16x128xbf16, #tpu.memory_space<vmem>>, vector<16x128xbf16>
    %cst = arith.constant dense<0.000000e+00> : vector<8x128xf32>
    %2 = tpu.matmul %0, %1, %cst {dimension_numbers = #tpu.dot_dimension_numbers<[1], [0], [0], [1], [0, 0, 1, 1], [], []>} : vector<8x16xbf16>, vector<16x128xbf16>, vector<8x128xf32> -> vector<8x128xf32>
    %c0_3 = arith.constant 0 : index
    %c0_4 = arith.constant 0 : index
    %3 = vector.load %arg3[%c0_3, %c0_4] : memref<1x128xf32, #tpu.memory_space<vmem>>, vector<1x128xf32>
    %4 = vector.broadcast %3 : vector<1x128xf32> to vector<8x128xf32>
    %5 = arith.addf %2, %4 : vector<8x128xf32>
    %6 = arith.truncf %5 : vector<8x128xf32> to vector<8x128xbf16>
    %c0_5 = arith.constant 0 : index
    %c0_6 = arith.constant 0 : index
    %7 = vector.load %arg4[%c0_5, %c0_6] : memref<8x128xbf16, #tpu.memory_space<vmem>>, vector<8x128xbf16>
    tpu.vector_store %arg4[%c0_5, %c0_6], %6 {strides = array<i32>} : memref<8x128xbf16, #tpu.memory_space<vmem>>, vector<8x128xbf16>,
    return
  }
  func.func @transform_0(%arg0: i32) -> (i32, i32) {
    %c0_i32 = arith.constant 0 : i32
    %c0_i32_0 = arith.constant 0 : i32
    return %arg0, %c0_i32 : i32, i32
  }
  func.func @transform_1(%arg0: i32) -> (i32, i32) {
    %c0_i32 = arith.constant 0 : i32
    %c0_i32_0 = arith.constant 0 : i32
    %c0_i32_1 = arith.constant 0 : i32
    return %c0_i32, %c0_i32_0 : i32, i32
  }
  func.func @transform_2(%arg0: i32) -> (i32, i32) {
    %c0_i32 = arith.constant 0 : i32
    %c0_i32_0 = arith.constant 0 : i32
    %c0_i32_1 = arith.constant 0 : i32
    return %c0_i32, %c0_i32_0 : i32, i32
  }
  func.func @transform_3(%arg0: i32) -> (i32, i32) {
    %c0_i32 = arith.constant 0 : i32
    %c0_i32_0 = arith.constant 0 : i32
    return %arg0, %c0_i32 : i32, i32
  }
}

module attributes {stable_mosaic.version = 11 : i64} {
  func.func @_conv3x3_s1_kernel(%arg0: i32, %arg1: memref<1x6x6x16xbf16, #tpu.memory_space<vmem>>, %arg2: memref<144x128xbf16, #tpu.memory_space<vmem>>, %arg3: memref<1x128xf32, #tpu.memory_space<vmem>>, %arg4: memref<1x16x128xbf16, #tpu.memory_space<vmem>>, %arg5: memref<1x16x128xbf16, #tpu.memory_space<vmem>>, %arg6: memref<16x144xbf16, #tpu.memory_space<vmem>>) attributes {dimension_semantics = [#tpu.dimension_semantics<parallel>], iteration_bounds = array<i64: 2>, scalar_prefetch = 0 : i64, scratch_operands = 1 : i64, tpu.core_type = #tpu.core_type<tc>, window_params = [{transform_indices = @transform_0, window_bounds = array<i64: 1, 6, 6, 16>}, {pipeline_mode = #tpu.pipeline_mode<synchronous>, transform_indices = @transform_1, window_bounds = array<i64: 144, 128>}, {pipeline_mode = #tpu.pipeline_mode<synchronous>, transform_indices = @transform_2, window_bounds = array<i64: 1, 128>}, {transform_indices = @transform_3, window_bounds = array<i64: 1, 16, 128>}, {transform_indices = @transform_4, window_bounds = array<i64: 1, 16, 128>}]} {
    %c0 = arith.constant 0 : index
    %c0_0 = arith.constant 0 : index
    %c0_1 = arith.constant 0 : index
    %c0_2 = arith.constant 0 : index
    %0 = vector.load %arg1[%c0, %c0_0, %c0_1, %c0_2] : memref<1x6x6x16xbf16, #tpu.memory_space<vmem>>, vector<1x4x4x16xbf16>
    %1 = vector.shape_cast %0 : vector<1x4x4x16xbf16> to vector<4x4x16xbf16>
    %2 = vector.shape_cast %1 : vector<4x4x16xbf16> to vector<16x16xbf16>
    %c0_3 = arith.constant 0 : index
    %c0_4 = arith.constant 0 : index
    %3 = vector.load %arg6[%c0_3, %c0_4] : memref<16x144xbf16, #tpu.memory_space<vmem>>, vector<16x16xbf16>
    tpu.vector_store %arg6[%c0_3, %c0_4], %2 {strides = array<i32>} : memref<16x144xbf16, #tpu.memory_space<vmem>>, vector<16x16xbf16>,
    %c0_5 = arith.constant 0 : index
    %c0_6 = arith.constant 0 : index
    %c1 = arith.constant 1 : index
    %c0_7 = arith.constant 0 : index
    %4 = vector.load %arg1[%c0_5, %c0_6, %c1, %c0_7] : memref<1x6x6x16xbf16, #tpu.memory_space<vmem>>, vector<1x4x4x16xbf16>
    %5 = vector.shape_cast %4 : vector<1x4x4x16xbf16> to vector<4x4x16xbf16>
    %6 = vector.shape_cast %5 : vector<4x4x16xbf16> to vector<16x16xbf16>
    %c0_8 = arith.constant 0 : index
    %c16 = arith.constant 16 : index
    %7 = vector.load %arg6[%c0_8, %c16] : memref<16x144xbf16, #tpu.memory_space<vmem>>, vector<16x16xbf16>
    tpu.vector_store %arg6[%c0_8, %c16], %6 {strides = array<i32>} : memref<16x144xbf16, #tpu.memory_space<vmem>>, vector<16x16xbf16>,
    %c0_9 = arith.constant 0 : index
    %c0_10 = arith.constant 0 : index
    %c2 = arith.constant 2 : index
    %c0_11 = arith.constant 0 : index
    %8 = vector.load %arg1[%c0_9, %c0_10, %c2, %c0_11] : memref<1x6x6x16xbf16, #tpu.memory_space<vmem>>, vector<1x4x4x16xbf16>
    %9 = vector.shape_cast %8 : vector<1x4x4x16xbf16> to vector<4x4x16xbf16>
    %10 = vector.shape_cast %9 : vector<4x4x16xbf16> to vector<16x16xbf16>
    %c0_12 = arith.constant 0 : index
    %c32 = arith.constant 32 : index
    %11 = vector.load %arg6[%c0_12, %c32] : memref<16x144xbf16, #tpu.memory_space<vmem>>, vector<16x16xbf16>
    tpu.vector_store %arg6[%c0_12, %c32], %10 {strides = array<i32>} : memref<16x144xbf16, #tpu.memory_space<vmem>>, vector<16x16xbf16>,
    %c0_13 = arith.constant 0 : index
    %c1_14 = arith.constant 1 : index
    %c0_15 = arith.constant 0 : index
    %c0_16 = arith.constant 0 : index
    %12 = vector.load %arg1[%c0_13, %c1_14, %c0_15, %c0_16] : memref<1x6x6x16xbf16, #tpu.memory_space<vmem>>, vector<1x4x4x16xbf16>
    %13 = vector.shape_cast %12 : vector<1x4x4x16xbf16> to vector<4x4x16xbf16>
    %14 = vector.shape_cast %13 : vector<4x4x16xbf16> to vector<16x16xbf16>
    %c0_17 = arith.constant 0 : index
    %c48 = arith.constant 48 : index
    %15 = vector.load %arg6[%c0_17, %c48] : memref<16x144xbf16, #tpu.memory_space<vmem>>, vector<16x16xbf16>
    tpu.vector_store %arg6[%c0_17, %c48], %14 {strides = array<i32>} : memref<16x144xbf16, #tpu.memory_space<vmem>>, vector<16x16xbf16>,
    %c0_18 = arith.constant 0 : index
    %c1_19 = arith.constant 1 : index
    %c1_20 = arith.constant 1 : index
    %c0_21 = arith.constant 0 : index
    %16 = vector.load %arg1[%c0_18, %c1_19, %c1_20, %c0_21] : memref<1x6x6x16xbf16, #tpu.memory_space<vmem>>, vector<1x4x4x16xbf16>
    %17 = vector.shape_cast %16 : vector<1x4x4x16xbf16> to vector<4x4x16xbf16>
    %18 = vector.shape_cast %17 : vector<4x4x16xbf16> to vector<16x16xbf16>
    %c0_22 = arith.constant 0 : index
    %c64 = arith.constant 64 : index
    %19 = vector.load %arg6[%c0_22, %c64] : memref<16x144xbf16, #tpu.memory_space<vmem>>, vector<16x16xbf16>
    tpu.vector_store %arg6[%c0_22, %c64], %18 {strides = array<i32>} : memref<16x144xbf16, #tpu.memory_space<vmem>>, vector<16x16xbf16>,
    %c0_23 = arith.constant 0 : index
    %c1_24 = arith.constant 1 : index
    %c2_25 = arith.constant 2 : index
    %c0_26 = arith.constant 0 : index
    %20 = vector.load %arg1[%c0_23, %c1_24, %c2_25, %c0_26] : memref<1x6x6x16xbf16, #tpu.memory_space<vmem>>, vector<1x4x4x16xbf16>
    %21 = vector.shape_cast %20 : vector<1x4x4x16xbf16> to vector<4x4x16xbf16>
    %22 = vector.shape_cast %21 : vector<4x4x16xbf16> to vector<16x16xbf16>
    %c0_27 = arith.constant 0 : index
    %c80 = arith.constant 80 : index
    %23 = vector.load %arg6[%c0_27, %c80] : memref<16x144xbf16, #tpu.memory_space<vmem>>, vector<16x16xbf16>
    tpu.vector_store %arg6[%c0_27, %c80], %22 {strides = array<i32>} : memref<16x144xbf16, #tpu.memory_space<vmem>>, vector<16x16xbf16>,
    %c0_28 = arith.constant 0 : index
    %c2_29 = arith.constant 2 : index
    %c0_30 = arith.constant 0 : index
    %c0_31 = arith.constant 0 : index
    %24 = vector.load %arg1[%c0_28, %c2_29, %c0_30, %c0_31] : memref<1x6x6x16xbf16, #tpu.memory_space<vmem>>, vector<1x4x4x16xbf16>
    %25 = vector.shape_cast %24 : vector<1x4x4x16xbf16> to vector<4x4x16xbf16>
    %26 = vector.shape_cast %25 : vector<4x4x16xbf16> to vector<16x16xbf16>
    %c0_32 = arith.constant 0 : index
    %c96 = arith.constant 96 : index
    %27 = vector.load %arg6[%c0_32, %c96] : memref<16x144xbf16, #tpu.memory_space<vmem>>, vector<16x16xbf16>
    tpu.vector_store %arg6[%c0_32, %c96], %26 {strides = array<i32>} : memref<16x144xbf16, #tpu.memory_space<vmem>>, vector<16x16xbf16>,
    %c0_33 = arith.constant 0 : index
    %c2_34 = arith.constant 2 : index
    %c1_35 = arith.constant 1 : index
    %c0_36 = arith.constant 0 : index
    %28 = vector.load %arg1[%c0_33, %c2_34, %c1_35, %c0_36] : memref<1x6x6x16xbf16, #tpu.memory_space<vmem>>, vector<1x4x4x16xbf16>
    %29 = vector.shape_cast %28 : vector<1x4x4x16xbf16> to vector<4x4x16xbf16>
    %30 = vector.shape_cast %29 : vector<4x4x16xbf16> to vector<16x16xbf16>
    %c0_37 = arith.constant 0 : index
    %c112 = arith.constant 112 : index
    %31 = vector.load %arg6[%c0_37, %c112] : memref<16x144xbf16, #tpu.memory_space<vmem>>, vector<16x16xbf16>
    tpu.vector_store %arg6[%c0_37, %c112], %30 {strides = array<i32>} : memref<16x144xbf16, #tpu.memory_space<vmem>>, vector<16x16xbf16>,
    %c0_38 = arith.constant 0 : index
    %c2_39 = arith.constant 2 : index
    %c2_40 = arith.constant 2 : index
    %c0_41 = arith.constant 0 : index
    %32 = vector.load %arg1[%c0_38, %c2_39, %c2_40, %c0_41] : memref<1x6x6x16xbf16, #tpu.memory_space<vmem>>, vector<1x4x4x16xbf16>
    %33 = vector.shape_cast %32 : vector<1x4x4x16xbf16> to vector<4x4x16xbf16>
    %34 = vector.shape_cast %33 : vector<4x4x16xbf16> to vector<16x16xbf16>
    %c0_42 = arith.constant 0 : index
    %c128 = arith.constant 128 : index
    %35 = vector.load %arg6[%c0_42, %c128] : memref<16x144xbf16, #tpu.memory_space<vmem>>, vector<16x16xbf16>
    tpu.vector_store %arg6[%c0_42, %c128], %34 {strides = array<i32>} : memref<16x144xbf16, #tpu.memory_space<vmem>>, vector<16x16xbf16>,
    %c0_43 = arith.constant 0 : index
    %c0_44 = arith.constant 0 : index
    %36 = vector.load %arg6[%c0_43, %c0_44] : memref<16x144xbf16, #tpu.memory_space<vmem>>, vector<16x144xbf16>
    %c0_45 = arith.constant 0 : index
    %c0_46 = arith.constant 0 : index
    %37 = vector.load %arg2[%c0_45, %c0_46] : memref<144x128xbf16, #tpu.memory_space<vmem>>, vector<144x128xbf16>
    %cst = arith.constant dense<0.000000e+00> : vector<16x128xf32>
    %38 = tpu.matmul %36, %37, %cst {dimension_numbers = #tpu.dot_dimension_numbers<[1], [0], [0], [1], [0, 0, 1, 1], [], []>} : vector<16x144xbf16>, vector<144x128xbf16>, vector<16x128xf32> -> vector<16x128xf32>
    %c0_47 = arith.constant 0 : index
    %c0_48 = arith.constant 0 : index
    %39 = vector.load %arg3[%c0_47, %c0_48] : memref<1x128xf32, #tpu.memory_space<vmem>>, vector<1x128xf32>
    %40 = vector.broadcast %39 : vector<1x128xf32> to vector<16x128xf32>
    %41 = arith.addf %38, %40 : vector<16x128xf32>
    %c0_49 = arith.constant 0 : index
    %c0_50 = arith.constant 0 : index
    %c0_51 = arith.constant 0 : index
    %42 = vector.load %arg4[%c0_49, %c0_50, %c0_51] : memref<1x16x128xbf16, #tpu.memory_space<vmem>>, vector<1x16x128xbf16>
    %43 = vector.shape_cast %42 : vector<1x16x128xbf16> to vector<16x128xbf16>
    %44 = arith.extf %43 : vector<16x128xbf16> to vector<16x128xf32>
    %45 = arith.addf %41, %44 : vector<16x128xf32>
    %cst_52 = arith.constant 0.000000e+00 : f32
    %46 = vector.broadcast %cst_52 : f32 to vector<16x128xf32>
    %47 = arith.maximumf %45, %46 : vector<16x128xf32>
    %48 = arith.truncf %47 : vector<16x128xf32> to vector<16x128xbf16>
    %c0_53 = arith.constant 0 : index
    %c0_54 = arith.constant 0 : index
    %c0_55 = arith.constant 0 : index
    %49 = vector.load %arg5[%c0_53, %c0_54, %c0_55] : memref<1x16x128xbf16, #tpu.memory_space<vmem>>, vector<1x16x128xbf16>
    %50 = vector.shape_cast %49 : vector<1x16x128xbf16> to vector<16x128xbf16>
    %51 = vector.shape_cast %48 : vector<16x128xbf16> to vector<1x16x128xbf16>
    tpu.vector_store %arg5[%c0_53, %c0_54, %c0_55], %51 {strides = array<i32>} : memref<1x16x128xbf16, #tpu.memory_space<vmem>>, vector<1x16x128xbf16>,
    return
  }
  func.func @transform_0(%arg0: i32) -> (i32, i32, i32, i32) {
    %c0_i32 = arith.constant 0 : i32
    %c0_i32_0 = arith.constant 0 : i32
    %c0_i32_1 = arith.constant 0 : i32
    %c0_i32_2 = arith.constant 0 : i32
    return %arg0, %c0_i32, %c0_i32_0, %c0_i32_1 : i32, i32, i32, i32
  }
  func.func @transform_1(%arg0: i32) -> (i32, i32) {
    %c0_i32 = arith.constant 0 : i32
    %c0_i32_0 = arith.constant 0 : i32
    %c0_i32_1 = arith.constant 0 : i32
    return %c0_i32, %c0_i32_0 : i32, i32
  }
  func.func @transform_2(%arg0: i32) -> (i32, i32) {
    %c0_i32 = arith.constant 0 : i32
    %c0_i32_0 = arith.constant 0 : i32
    %c0_i32_1 = arith.constant 0 : i32
    return %c0_i32, %c0_i32_0 : i32, i32
  }
  func.func @transform_3(%arg0: i32) -> (i32, i32, i32) {
    %c0_i32 = arith.constant 0 : i32
    %c0_i32_0 = arith.constant 0 : i32
    %c0_i32_1 = arith.constant 0 : i32
    return %arg0, %c0_i32, %c0_i32_0 : i32, i32, i32
  }
  func.func @transform_4(%arg0: i32) -> (i32, i32, i32) {
    %c0_i32 = arith.constant 0 : i32
    %c0_i32_0 = arith.constant 0 : i32
    %c0_i32_1 = arith.constant 0 : i32
    return %arg0, %c0_i32, %c0_i32_0 : i32, i32, i32
  }
}

module attributes {stable_mosaic.version = 11 : i64} {
  func.func @_matmul_bias_kernel(%arg0: i32, %arg1: memref<8x144xbf16, #tpu.memory_space<vmem>>, %arg2: memref<144x128xbf16, #tpu.memory_space<vmem>>, %arg3: memref<1x128xf32, #tpu.memory_space<vmem>>, %arg4: memref<8x128xbf16, #tpu.memory_space<vmem>>) attributes {dimension_semantics = [#tpu.dimension_semantics<parallel>], iteration_bounds = array<i64: 1>, scalar_prefetch = 0 : i64, scratch_operands = 0 : i64, tpu.core_type = #tpu.core_type<tc>, window_params = [{transform_indices = @transform_0, window_bounds = array<i64: 8, 144>}, {pipeline_mode = #tpu.pipeline_mode<synchronous>, transform_indices = @transform_1, window_bounds = array<i64: 144, 128>}, {pipeline_mode = #tpu.pipeline_mode<synchronous>, transform_indices = @transform_2, window_bounds = array<i64: 1, 128>}, {transform_indices = @transform_3, window_bounds = array<i64: 8, 128>}]} {
    %c0 = arith.constant 0 : index
    %c0_0 = arith.constant 0 : index
    %0 = vector.load %arg1[%c0, %c0_0] : memref<8x144xbf16, #tpu.memory_space<vmem>>, vector<8x144xbf16>
    %c0_1 = arith.constant 0 : index
    %c0_2 = arith.constant 0 : index
    %1 = vector.load %arg2[%c0_1, %c0_2] : memref<144x128xbf16, #tpu.memory_space<vmem>>, vector<144x128xbf16>
    %cst = arith.constant dense<0.000000e+00> : vector<8x128xf32>
    %2 = tpu.matmul %0, %1, %cst {dimension_numbers = #tpu.dot_dimension_numbers<[1], [0], [0], [1], [0, 0, 1, 1], [], []>} : vector<8x144xbf16>, vector<144x128xbf16>, vector<8x128xf32> -> vector<8x128xf32>
    %c0_3 = arith.constant 0 : index
    %c0_4 = arith.constant 0 : index
    %3 = vector.load %arg3[%c0_3, %c0_4] : memref<1x128xf32, #tpu.memory_space<vmem>>, vector<1x128xf32>
    %4 = vector.broadcast %3 : vector<1x128xf32> to vector<8x128xf32>
    %5 = arith.addf %2, %4 : vector<8x128xf32>
    %cst_5 = arith.constant 0.000000e+00 : f32
    %6 = vector.broadcast %cst_5 : f32 to vector<8x128xf32>
    %7 = arith.maximumf %5, %6 : vector<8x128xf32>
    %8 = arith.truncf %7 : vector<8x128xf32> to vector<8x128xbf16>
    %c0_6 = arith.constant 0 : index
    %c0_7 = arith.constant 0 : index
    %9 = vector.load %arg4[%c0_6, %c0_7] : memref<8x128xbf16, #tpu.memory_space<vmem>>, vector<8x128xbf16>
    tpu.vector_store %arg4[%c0_6, %c0_7], %8 {strides = array<i32>} : memref<8x128xbf16, #tpu.memory_space<vmem>>, vector<8x128xbf16>,
    return
  }
  func.func @transform_0(%arg0: i32) -> (i32, i32) {
    %c0_i32 = arith.constant 0 : i32
    %c0_i32_0 = arith.constant 0 : i32
    return %arg0, %c0_i32 : i32, i32
  }
  func.func @transform_1(%arg0: i32) -> (i32, i32) {
    %c0_i32 = arith.constant 0 : i32
    %c0_i32_0 = arith.constant 0 : i32
    %c0_i32_1 = arith.constant 0 : i32
    return %c0_i32, %c0_i32_0 : i32, i32
  }
  func.func @transform_2(%arg0: i32) -> (i32, i32) {
    %c0_i32 = arith.constant 0 : i32
    %c0_i32_0 = arith.constant 0 : i32
    %c0_i32_1 = arith.constant 0 : i32
    return %c0_i32, %c0_i32_0 : i32, i32
  }
  func.func @transform_3(%arg0: i32) -> (i32, i32) {
    %c0_i32 = arith.constant 0 : i32
    %c0_i32_0 = arith.constant 0 : i32
    return %arg0, %c0_i32 : i32, i32
  }
}

module attributes {stable_mosaic.version = 11 : i64} {
  func.func @_conv3x3_s1_kernel(%arg0: i32, %arg1: memref<1x4x4x32xbf16, #tpu.memory_space<vmem>>, %arg2: memref<288x128xbf16, #tpu.memory_space<vmem>>, %arg3: memref<1x128xf32, #tpu.memory_space<vmem>>, %arg4: memref<1x4x128xbf16, #tpu.memory_space<vmem>>, %arg5: memref<1x4x128xbf16, #tpu.memory_space<vmem>>, %arg6: memref<4x288xbf16, #tpu.memory_space<vmem>>) attributes {dimension_semantics = [#tpu.dimension_semantics<parallel>], iteration_bounds = array<i64: 2>, scalar_prefetch = 0 : i64, scratch_operands = 1 : i64, tpu.core_type = #tpu.core_type<tc>, window_params = [{transform_indices = @transform_0, window_bounds = array<i64: 1, 4, 4, 32>}, {pipeline_mode = #tpu.pipeline_mode<synchronous>, transform_indices = @transform_1, window_bounds = array<i64: 288, 128>}, {pipeline_mode = #tpu.pipeline_mode<synchronous>, transform_indices = @transform_2, window_bounds = array<i64: 1, 128>}, {transform_indices = @transform_3, window_bounds = array<i64: 1, 4, 128>}, {transform_indices = @transform_4, window_bounds = array<i64: 1, 4, 128>}]} {
    %c0 = arith.constant 0 : index
    %c0_0 = arith.constant 0 : index
    %c0_1 = arith.constant 0 : index
    %c0_2 = arith.constant 0 : index
    %0 = vector.load %arg1[%c0, %c0_0, %c0_1, %c0_2] : memref<1x4x4x32xbf16, #tpu.memory_space<vmem>>, vector<1x2x2x32xbf16>
    %1 = vector.shape_cast %0 : vector<1x2x2x32xbf16> to vector<2x2x32xbf16>
    %2 = vector.shape_cast %1 : vector<2x2x32xbf16> to vector<4x32xbf16>
    %c0_3 = arith.constant 0 : index
    %c0_4 = arith.constant 0 : index
    %3 = vector.load %arg6[%c0_3, %c0_4] : memref<4x288xbf16, #tpu.memory_space<vmem>>, vector<4x32xbf16>
    tpu.vector_store %arg6[%c0_3, %c0_4], %2 {strides = array<i32>} : memref<4x288xbf16, #tpu.memory_space<vmem>>, vector<4x32xbf16>,
    %c0_5 = arith.constant 0 : index
    %c0_6 = arith.constant 0 : index
    %c1 = arith.constant 1 : index
    %c0_7 = arith.constant 0 : index
    %4 = vector.load %arg1[%c0_5, %c0_6, %c1, %c0_7] : memref<1x4x4x32xbf16, #tpu.memory_space<vmem>>, vector<1x2x2x32xbf16>
    %5 = vector.shape_cast %4 : vector<1x2x2x32xbf16> to vector<2x2x32xbf16>
    %6 = vector.shape_cast %5 : vector<2x2x32xbf16> to vector<4x32xbf16>
    %c0_8 = arith.constant 0 : index
    %c32 = arith.constant 32 : index
    %7 = vector.load %arg6[%c0_8, %c32] : memref<4x288xbf16, #tpu.memory_space<vmem>>, vector<4x32xbf16>
    tpu.vector_store %arg6[%c0_8, %c32], %6 {strides = array<i32>} : memref<4x288xbf16, #tpu.memory_space<vmem>>, vector<4x32xbf16>,
    %c0_9 = arith.constant 0 : index
    %c0_10 = arith.constant 0 : index
    %c2 = arith.constant 2 : index
    %c0_11 = arith.constant 0 : index
    %8 = vector.load %arg1[%c0_9, %c0_10, %c2, %c0_11] : memref<1x4x4x32xbf16, #tpu.memory_space<vmem>>, vector<1x2x2x32xbf16>
    %9 = vector.shape_cast %8 : vector<1x2x2x32xbf16> to vector<2x2x32xbf16>
    %10 = vector.shape_cast %9 : vector<2x2x32xbf16> to vector<4x32xbf16>
    %c0_12 = arith.constant 0 : index
    %c64 = arith.constant 64 : index
    %11 = vector.load %arg6[%c0_12, %c64] : memref<4x288xbf16, #tpu.memory_space<vmem>>, vector<4x32xbf16>
    tpu.vector_store %arg6[%c0_12, %c64], %10 {strides = array<i32>} : memref<4x288xbf16, #tpu.memory_space<vmem>>, vector<4x32xbf16>,
    %c0_13 = arith.constant 0 : index
    %c1_14 = arith.constant 1 : index
    %c0_15 = arith.constant 0 : index
    %c0_16 = arith.constant 0 : index
    %12 = vector.load %arg1[%c0_13, %c1_14, %c0_15, %c0_16] : memref<1x4x4x32xbf16, #tpu.memory_space<vmem>>, vector<1x2x2x32xbf16>
    %13 = vector.shape_cast %12 : vector<1x2x2x32xbf16> to vector<2x2x32xbf16>
    %14 = vector.shape_cast %13 : vector<2x2x32xbf16> to vector<4x32xbf16>
    %c0_17 = arith.constant 0 : index
    %c96 = arith.constant 96 : index
    %15 = vector.load %arg6[%c0_17, %c96] : memref<4x288xbf16, #tpu.memory_space<vmem>>, vector<4x32xbf16>
    tpu.vector_store %arg6[%c0_17, %c96], %14 {strides = array<i32>} : memref<4x288xbf16, #tpu.memory_space<vmem>>, vector<4x32xbf16>,
    %c0_18 = arith.constant 0 : index
    %c1_19 = arith.constant 1 : index
    %c1_20 = arith.constant 1 : index
    %c0_21 = arith.constant 0 : index
    %16 = vector.load %arg1[%c0_18, %c1_19, %c1_20, %c0_21] : memref<1x4x4x32xbf16, #tpu.memory_space<vmem>>, vector<1x2x2x32xbf16>
    %17 = vector.shape_cast %16 : vector<1x2x2x32xbf16> to vector<2x2x32xbf16>
    %18 = vector.shape_cast %17 : vector<2x2x32xbf16> to vector<4x32xbf16>
    %c0_22 = arith.constant 0 : index
    %c128 = arith.constant 128 : index
    %19 = vector.load %arg6[%c0_22, %c128] : memref<4x288xbf16, #tpu.memory_space<vmem>>, vector<4x32xbf16>
    tpu.vector_store %arg6[%c0_22, %c128], %18 {strides = array<i32>} : memref<4x288xbf16, #tpu.memory_space<vmem>>, vector<4x32xbf16>,
    %c0_23 = arith.constant 0 : index
    %c1_24 = arith.constant 1 : index
    %c2_25 = arith.constant 2 : index
    %c0_26 = arith.constant 0 : index
    %20 = vector.load %arg1[%c0_23, %c1_24, %c2_25, %c0_26] : memref<1x4x4x32xbf16, #tpu.memory_space<vmem>>, vector<1x2x2x32xbf16>
    %21 = vector.shape_cast %20 : vector<1x2x2x32xbf16> to vector<2x2x32xbf16>
    %22 = vector.shape_cast %21 : vector<2x2x32xbf16> to vector<4x32xbf16>
    %c0_27 = arith.constant 0 : index
    %c160 = arith.constant 160 : index
    %23 = vector.load %arg6[%c0_27, %c160] : memref<4x288xbf16, #tpu.memory_space<vmem>>, vector<4x32xbf16>
    tpu.vector_store %arg6[%c0_27, %c160], %22 {strides = array<i32>} : memref<4x288xbf16, #tpu.memory_space<vmem>>, vector<4x32xbf16>,
    %c0_28 = arith.constant 0 : index
    %c2_29 = arith.constant 2 : index
    %c0_30 = arith.constant 0 : index
    %c0_31 = arith.constant 0 : index
    %24 = vector.load %arg1[%c0_28, %c2_29, %c0_30, %c0_31] : memref<1x4x4x32xbf16, #tpu.memory_space<vmem>>, vector<1x2x2x32xbf16>
    %25 = vector.shape_cast %24 : vector<1x2x2x32xbf16> to vector<2x2x32xbf16>
    %26 = vector.shape_cast %25 : vector<2x2x32xbf16> to vector<4x32xbf16>
    %c0_32 = arith.constant 0 : index
    %c192 = arith.constant 192 : index
    %27 = vector.load %arg6[%c0_32, %c192] : memref<4x288xbf16, #tpu.memory_space<vmem>>, vector<4x32xbf16>
    tpu.vector_store %arg6[%c0_32, %c192], %26 {strides = array<i32>} : memref<4x288xbf16, #tpu.memory_space<vmem>>, vector<4x32xbf16>,
    %c0_33 = arith.constant 0 : index
    %c2_34 = arith.constant 2 : index
    %c1_35 = arith.constant 1 : index
    %c0_36 = arith.constant 0 : index
    %28 = vector.load %arg1[%c0_33, %c2_34, %c1_35, %c0_36] : memref<1x4x4x32xbf16, #tpu.memory_space<vmem>>, vector<1x2x2x32xbf16>
    %29 = vector.shape_cast %28 : vector<1x2x2x32xbf16> to vector<2x2x32xbf16>
    %30 = vector.shape_cast %29 : vector<2x2x32xbf16> to vector<4x32xbf16>
    %c0_37 = arith.constant 0 : index
    %c224 = arith.constant 224 : index
    %31 = vector.load %arg6[%c0_37, %c224] : memref<4x288xbf16, #tpu.memory_space<vmem>>, vector<4x32xbf16>
    tpu.vector_store %arg6[%c0_37, %c224], %30 {strides = array<i32>} : memref<4x288xbf16, #tpu.memory_space<vmem>>, vector<4x32xbf16>,
    %c0_38 = arith.constant 0 : index
    %c2_39 = arith.constant 2 : index
    %c2_40 = arith.constant 2 : index
    %c0_41 = arith.constant 0 : index
    %32 = vector.load %arg1[%c0_38, %c2_39, %c2_40, %c0_41] : memref<1x4x4x32xbf16, #tpu.memory_space<vmem>>, vector<1x2x2x32xbf16>
    %33 = vector.shape_cast %32 : vector<1x2x2x32xbf16> to vector<2x2x32xbf16>
    %34 = vector.shape_cast %33 : vector<2x2x32xbf16> to vector<4x32xbf16>
    %c0_42 = arith.constant 0 : index
    %c256 = arith.constant 256 : index
    %35 = vector.load %arg6[%c0_42, %c256] : memref<4x288xbf16, #tpu.memory_space<vmem>>, vector<4x32xbf16>
    tpu.vector_store %arg6[%c0_42, %c256], %34 {strides = array<i32>} : memref<4x288xbf16, #tpu.memory_space<vmem>>, vector<4x32xbf16>,
    %c0_43 = arith.constant 0 : index
    %c0_44 = arith.constant 0 : index
    %36 = vector.load %arg6[%c0_43, %c0_44] : memref<4x288xbf16, #tpu.memory_space<vmem>>, vector<4x288xbf16>
    %c0_45 = arith.constant 0 : index
    %c0_46 = arith.constant 0 : index
    %37 = vector.load %arg2[%c0_45, %c0_46] : memref<288x128xbf16, #tpu.memory_space<vmem>>, vector<288x128xbf16>
    %cst = arith.constant dense<0.000000e+00> : vector<4x128xf32>
    %38 = tpu.matmul %36, %37, %cst {dimension_numbers = #tpu.dot_dimension_numbers<[1], [0], [0], [1], [0, 0, 1, 1], [], []>} : vector<4x288xbf16>, vector<288x128xbf16>, vector<4x128xf32> -> vector<4x128xf32>
    %c0_47 = arith.constant 0 : index
    %c0_48 = arith.constant 0 : index
    %39 = vector.load %arg3[%c0_47, %c0_48] : memref<1x128xf32, #tpu.memory_space<vmem>>, vector<1x128xf32>
    %40 = vector.broadcast %39 : vector<1x128xf32> to vector<4x128xf32>
    %41 = arith.addf %38, %40 : vector<4x128xf32>
    %c0_49 = arith.constant 0 : index
    %c0_50 = arith.constant 0 : index
    %c0_51 = arith.constant 0 : index
    %42 = vector.load %arg4[%c0_49, %c0_50, %c0_51] : memref<1x4x128xbf16, #tpu.memory_space<vmem>>, vector<1x4x128xbf16>
    %43 = vector.shape_cast %42 : vector<1x4x128xbf16> to vector<4x128xbf16>
    %44 = arith.extf %43 : vector<4x128xbf16> to vector<4x128xf32>
    %45 = arith.addf %41, %44 : vector<4x128xf32>
    %cst_52 = arith.constant 0.000000e+00 : f32
    %46 = vector.broadcast %cst_52 : f32 to vector<4x128xf32>
    %47 = arith.maximumf %45, %46 : vector<4x128xf32>
    %48 = arith.truncf %47 : vector<4x128xf32> to vector<4x128xbf16>
    %c0_53 = arith.constant 0 : index
    %c0_54 = arith.constant 0 : index
    %c0_55 = arith.constant 0 : index
    %49 = vector.load %arg5[%c0_53, %c0_54, %c0_55] : memref<1x4x128xbf16, #tpu.memory_space<vmem>>, vector<1x4x128xbf16>
    %50 = vector.shape_cast %49 : vector<1x4x128xbf16> to vector<4x128xbf16>
    %51 = vector.shape_cast %48 : vector<4x128xbf16> to vector<1x4x128xbf16>
    tpu.vector_store %arg5[%c0_53, %c0_54, %c0_55], %51 {strides = array<i32>} : memref<1x4x128xbf16, #tpu.memory_space<vmem>>, vector<1x4x128xbf16>,
    return
  }
  func.func @transform_0(%arg0: i32) -> (i32, i32, i32, i32) {
    %c0_i32 = arith.constant 0 : i32
    %c0_i32_0 = arith.constant 0 : i32
    %c0_i32_1 = arith.constant 0 : i32
    %c0_i32_2 = arith.constant 0 : i32
    return %arg0, %c0_i32, %c0_i32_0, %c0_i32_1 : i32, i32, i32, i32
  }
  func.func @transform_1(%arg0: i32) -> (i32, i32) {
    %c0_i32 = arith.constant 0 : i32
    %c0_i32_0 = arith.constant 0 : i32
    %c0_i32_1 = arith.constant 0 : i32
    return %c0_i32, %c0_i32_0 : i32, i32
  }
  func.func @transform_2(%arg0: i32) -> (i32, i32) {
    %c0_i32 = arith.constant 0 : i32
    %c0_i32_0 = arith.constant 0 : i32
    %c0_i32_1 = arith.constant 0 : i32
    return %c0_i32, %c0_i32_0 : i32, i32
  }
  func.func @transform_3(%arg0: i32) -> (i32, i32, i32) {
    %c0_i32 = arith.constant 0 : i32
    %c0_i32_0 = arith.constant 0 : i32
    %c0_i32_1 = arith.constant 0 : i32
    return %arg0, %c0_i32, %c0_i32_0 : i32, i32, i32
  }
  func.func @transform_4(%arg0: i32) -> (i32, i32, i32) {
    %c0_i32 = arith.constant 0 : i32
    %c0_i32_0 = arith.constant 0 : i32
    %c0_i32_1 = arith.constant 0 : i32
    return %arg0, %c0_i32, %c0_i32_0 : i32, i32, i32
  }
}

module attributes {stable_mosaic.version = 11 : i64} {
  func.func @_conv3x3_s1_kernel(%arg0: i32, %arg1: memref<1x6x6x48xbf16, #tpu.memory_space<vmem>>, %arg2: memref<432x128xbf16, #tpu.memory_space<vmem>>, %arg3: memref<1x128xf32, #tpu.memory_space<vmem>>, %arg4: memref<1x16x128xbf16, #tpu.memory_space<vmem>>, %arg5: memref<16x432xbf16, #tpu.memory_space<vmem>>) attributes {dimension_semantics = [#tpu.dimension_semantics<parallel>], iteration_bounds = array<i64: 2>, scalar_prefetch = 0 : i64, scratch_operands = 1 : i64, tpu.core_type = #tpu.core_type<tc>, window_params = [{transform_indices = @transform_0, window_bounds = array<i64: 1, 6, 6, 48>}, {pipeline_mode = #tpu.pipeline_mode<synchronous>, transform_indices = @transform_1, window_bounds = array<i64: 432, 128>}, {pipeline_mode = #tpu.pipeline_mode<synchronous>, transform_indices = @transform_2, window_bounds = array<i64: 1, 128>}, {transform_indices = @transform_3, window_bounds = array<i64: 1, 16, 128>}]} {
    %c0 = arith.constant 0 : index
    %c0_0 = arith.constant 0 : index
    %c0_1 = arith.constant 0 : index
    %c0_2 = arith.constant 0 : index
    %0 = vector.load %arg1[%c0, %c0_0, %c0_1, %c0_2] : memref<1x6x6x48xbf16, #tpu.memory_space<vmem>>, vector<1x4x4x48xbf16>
    %1 = vector.shape_cast %0 : vector<1x4x4x48xbf16> to vector<4x4x48xbf16>
    %2 = vector.shape_cast %1 : vector<4x4x48xbf16> to vector<16x48xbf16>
    %c0_3 = arith.constant 0 : index
    %c0_4 = arith.constant 0 : index
    %3 = vector.load %arg5[%c0_3, %c0_4] : memref<16x432xbf16, #tpu.memory_space<vmem>>, vector<16x48xbf16>
    tpu.vector_store %arg5[%c0_3, %c0_4], %2 {strides = array<i32>} : memref<16x432xbf16, #tpu.memory_space<vmem>>, vector<16x48xbf16>,
    %c0_5 = arith.constant 0 : index
    %c0_6 = arith.constant 0 : index
    %c1 = arith.constant 1 : index
    %c0_7 = arith.constant 0 : index
    %4 = vector.load %arg1[%c0_5, %c0_6, %c1, %c0_7] : memref<1x6x6x48xbf16, #tpu.memory_space<vmem>>, vector<1x4x4x48xbf16>
    %5 = vector.shape_cast %4 : vector<1x4x4x48xbf16> to vector<4x4x48xbf16>
    %6 = vector.shape_cast %5 : vector<4x4x48xbf16> to vector<16x48xbf16>
    %c0_8 = arith.constant 0 : index
    %c48 = arith.constant 48 : index
    %7 = vector.load %arg5[%c0_8, %c48] : memref<16x432xbf16, #tpu.memory_space<vmem>>, vector<16x48xbf16>
    tpu.vector_store %arg5[%c0_8, %c48], %6 {strides = array<i32>} : memref<16x432xbf16, #tpu.memory_space<vmem>>, vector<16x48xbf16>,
    %c0_9 = arith.constant 0 : index
    %c0_10 = arith.constant 0 : index
    %c2 = arith.constant 2 : index
    %c0_11 = arith.constant 0 : index
    %8 = vector.load %arg1[%c0_9, %c0_10, %c2, %c0_11] : memref<1x6x6x48xbf16, #tpu.memory_space<vmem>>, vector<1x4x4x48xbf16>
    %9 = vector.shape_cast %8 : vector<1x4x4x48xbf16> to vector<4x4x48xbf16>
    %10 = vector.shape_cast %9 : vector<4x4x48xbf16> to vector<16x48xbf16>
    %c0_12 = arith.constant 0 : index
    %c96 = arith.constant 96 : index
    %11 = vector.load %arg5[%c0_12, %c96] : memref<16x432xbf16, #tpu.memory_space<vmem>>, vector<16x48xbf16>
    tpu.vector_store %arg5[%c0_12, %c96], %10 {strides = array<i32>} : memref<16x432xbf16, #tpu.memory_space<vmem>>, vector<16x48xbf16>,
    %c0_13 = arith.constant 0 : index
    %c1_14 = arith.constant 1 : index
    %c0_15 = arith.constant 0 : index
    %c0_16 = arith.constant 0 : index
    %12 = vector.load %arg1[%c0_13, %c1_14, %c0_15, %c0_16] : memref<1x6x6x48xbf16, #tpu.memory_space<vmem>>, vector<1x4x4x48xbf16>
    %13 = vector.shape_cast %12 : vector<1x4x4x48xbf16> to vector<4x4x48xbf16>
    %14 = vector.shape_cast %13 : vector<4x4x48xbf16> to vector<16x48xbf16>
    %c0_17 = arith.constant 0 : index
    %c144 = arith.constant 144 : index
    %15 = vector.load %arg5[%c0_17, %c144] : memref<16x432xbf16, #tpu.memory_space<vmem>>, vector<16x48xbf16>
    tpu.vector_store %arg5[%c0_17, %c144], %14 {strides = array<i32>} : memref<16x432xbf16, #tpu.memory_space<vmem>>, vector<16x48xbf16>,
    %c0_18 = arith.constant 0 : index
    %c1_19 = arith.constant 1 : index
    %c1_20 = arith.constant 1 : index
    %c0_21 = arith.constant 0 : index
    %16 = vector.load %arg1[%c0_18, %c1_19, %c1_20, %c0_21] : memref<1x6x6x48xbf16, #tpu.memory_space<vmem>>, vector<1x4x4x48xbf16>
    %17 = vector.shape_cast %16 : vector<1x4x4x48xbf16> to vector<4x4x48xbf16>
    %18 = vector.shape_cast %17 : vector<4x4x48xbf16> to vector<16x48xbf16>
    %c0_22 = arith.constant 0 : index
    %c192 = arith.constant 192 : index
    %19 = vector.load %arg5[%c0_22, %c192] : memref<16x432xbf16, #tpu.memory_space<vmem>>, vector<16x48xbf16>
    tpu.vector_store %arg5[%c0_22, %c192], %18 {strides = array<i32>} : memref<16x432xbf16, #tpu.memory_space<vmem>>, vector<16x48xbf16>,
    %c0_23 = arith.constant 0 : index
    %c1_24 = arith.constant 1 : index
    %c2_25 = arith.constant 2 : index
    %c0_26 = arith.constant 0 : index
    %20 = vector.load %arg1[%c0_23, %c1_24, %c2_25, %c0_26] : memref<1x6x6x48xbf16, #tpu.memory_space<vmem>>, vector<1x4x4x48xbf16>
    %21 = vector.shape_cast %20 : vector<1x4x4x48xbf16> to vector<4x4x48xbf16>
    %22 = vector.shape_cast %21 : vector<4x4x48xbf16> to vector<16x48xbf16>
    %c0_27 = arith.constant 0 : index
    %c240 = arith.constant 240 : index
    %23 = vector.load %arg5[%c0_27, %c240] : memref<16x432xbf16, #tpu.memory_space<vmem>>, vector<16x48xbf16>
    tpu.vector_store %arg5[%c0_27, %c240], %22 {strides = array<i32>} : memref<16x432xbf16, #tpu.memory_space<vmem>>, vector<16x48xbf16>,
    %c0_28 = arith.constant 0 : index
    %c2_29 = arith.constant 2 : index
    %c0_30 = arith.constant 0 : index
    %c0_31 = arith.constant 0 : index
    %24 = vector.load %arg1[%c0_28, %c2_29, %c0_30, %c0_31] : memref<1x6x6x48xbf16, #tpu.memory_space<vmem>>, vector<1x4x4x48xbf16>
    %25 = vector.shape_cast %24 : vector<1x4x4x48xbf16> to vector<4x4x48xbf16>
    %26 = vector.shape_cast %25 : vector<4x4x48xbf16> to vector<16x48xbf16>
    %c0_32 = arith.constant 0 : index
    %c288 = arith.constant 288 : index
    %27 = vector.load %arg5[%c0_32, %c288] : memref<16x432xbf16, #tpu.memory_space<vmem>>, vector<16x48xbf16>
    tpu.vector_store %arg5[%c0_32, %c288], %26 {strides = array<i32>} : memref<16x432xbf16, #tpu.memory_space<vmem>>, vector<16x48xbf16>,
    %c0_33 = arith.constant 0 : index
    %c2_34 = arith.constant 2 : index
    %c1_35 = arith.constant 1 : index
    %c0_36 = arith.constant 0 : index
    %28 = vector.load %arg1[%c0_33, %c2_34, %c1_35, %c0_36] : memref<1x6x6x48xbf16, #tpu.memory_space<vmem>>, vector<1x4x4x48xbf16>
    %29 = vector.shape_cast %28 : vector<1x4x4x48xbf16> to vector<4x4x48xbf16>
    %30 = vector.shape_cast %29 : vector<4x4x48xbf16> to vector<16x48xbf16>
    %c0_37 = arith.constant 0 : index
    %c336 = arith.constant 336 : index
    %31 = vector.load %arg5[%c0_37, %c336] : memref<16x432xbf16, #tpu.memory_space<vmem>>, vector<16x48xbf16>
    tpu.vector_store %arg5[%c0_37, %c336], %30 {strides = array<i32>} : memref<16x432xbf16, #tpu.memory_space<vmem>>, vector<16x48xbf16>,
    %c0_38 = arith.constant 0 : index
    %c2_39 = arith.constant 2 : index
    %c2_40 = arith.constant 2 : index
    %c0_41 = arith.constant 0 : index
    %32 = vector.load %arg1[%c0_38, %c2_39, %c2_40, %c0_41] : memref<1x6x6x48xbf16, #tpu.memory_space<vmem>>, vector<1x4x4x48xbf16>
    %33 = vector.shape_cast %32 : vector<1x4x4x48xbf16> to vector<4x4x48xbf16>
    %34 = vector.shape_cast %33 : vector<4x4x48xbf16> to vector<16x48xbf16>
    %c0_42 = arith.constant 0 : index
    %c384 = arith.constant 384 : index
    %35 = vector.load %arg5[%c0_42, %c384] : memref<16x432xbf16, #tpu.memory_space<vmem>>, vector<16x48xbf16>
    tpu.vector_store %arg5[%c0_42, %c384], %34 {strides = array<i32>} : memref<16x432xbf16, #tpu.memory_space<vmem>>, vector<16x48xbf16>,
    %c0_43 = arith.constant 0 : index
    %c0_44 = arith.constant 0 : index
    %36 = vector.load %arg5[%c0_43, %c0_44] : memref<16x432xbf16, #tpu.memory_space<vmem>>, vector<16x432xbf16>
    %c0_45 = arith.constant 0 : index
    %c0_46 = arith.constant 0 : index
    %37 = vector.load %arg2[%c0_45, %c0_46] : memref<432x128xbf16, #tpu.memory_space<vmem>>, vector<432x128xbf16>
    %cst = arith.constant dense<0.000000e+00> : vector<16x128xf32>
    %38 = tpu.matmul %36, %37, %cst {dimension_numbers = #tpu.dot_dimension_numbers<[1], [0], [0], [1], [0, 0, 1, 1], [], []>} : vector<16x432xbf16>, vector<432x128xbf16>, vector<16x128xf32> -> vector<16x128xf32>
    %c0_47 = arith.constant 0 : index
    %c0_48 = arith.constant 0 : index
    %39 = vector.load %arg3[%c0_47, %c0_48] : memref<1x128xf32, #tpu.memory_space<vmem>>, vector<1x128xf32>
    %40 = vector.broadcast %39 : vector<1x128xf32> to vector<16x128xf32>
    %41 = arith.addf %38, %40 : vector<16x128xf32>
    %cst_49 = arith.constant 0.000000e+00 : f32
    %42 = vector.broadcast %cst_49 : f32 to vector<16x128xf32>
    %43 = arith.maximumf %41, %42 : vector<16x128xf32>
    %44 = arith.truncf %43 : vector<16x128xf32> to vector<16x128xbf16>
    %c0_50 = arith.constant 0 : index
    %c0_51 = arith.constant 0 : index
    %c0_52 = arith.constant 0 : index
    %45 = vector.load %arg4[%c0_50, %c0_51, %c0_52] : memref<1x16x128xbf16, #tpu.memory_space<vmem>>, vector<1x16x128xbf16>
    %46 = vector.shape_cast %45 : vector<1x16x128xbf16> to vector<16x128xbf16>
    %47 = vector.shape_cast %44 : vector<16x128xbf16> to vector<1x16x128xbf16>
    tpu.vector_store %arg4[%c0_50, %c0_51, %c0_52], %47 {strides = array<i32>} : memref<1x16x128xbf16, #tpu.memory_space<vmem>>, vector<1x16x128xbf16>,
    return
  }
  func.func @transform_0(%arg0: i32) -> (i32, i32, i32, i32) {
    %c0_i32 = arith.constant 0 : i32
    %c0_i32_0 = arith.constant 0 : i32
    %c0_i32_1 = arith.constant 0 : i32
    %c0_i32_2 = arith.constant 0 : i32
    return %arg0, %c0_i32, %c0_i32_0, %c0_i32_1 : i32, i32, i32, i32
  }
  func.func @transform_1(%arg0: i32) -> (i32, i32) {
    %c0_i32 = arith.constant 0 : i32
    %c0_i32_0 = arith.constant 0 : i32
    %c0_i32_1 = arith.constant 0 : i32
    return %c0_i32, %c0_i32_0 : i32, i32
  }
  func.func @transform_2(%arg0: i32) -> (i32, i32) {
    %c0_i32 = arith.constant 0 : i32
    %c0_i32_0 = arith.constant 0 : i32
    %c0_i32_1 = arith.constant 0 : i32
    return %c0_i32, %c0_i32_0 : i32, i32
  }
  func.func @transform_3(%arg0: i32) -> (i32, i32, i32) {
    %c0_i32 = arith.constant 0 : i32
    %c0_i32_0 = arith.constant 0 : i32
    %c0_i32_1 = arith.constant 0 : i32
    return %arg0, %c0_i32, %c0_i32_0 : i32, i32, i32
  }
}

module attributes {stable_mosaic.version = 11 : i64} {
  func.func @_conv3x3_s1_kernel(%arg0: i32, %arg1: memref<1x6x6x16xbf16, #tpu.memory_space<vmem>>, %arg2: memref<144x128xbf16, #tpu.memory_space<vmem>>, %arg3: memref<1x128xf32, #tpu.memory_space<vmem>>, %arg4: memref<1x16x128xbf16, #tpu.memory_space<vmem>>, %arg5: memref<16x144xbf16, #tpu.memory_space<vmem>>) attributes {dimension_semantics = [#tpu.dimension_semantics<parallel>], iteration_bounds = array<i64: 2>, scalar_prefetch = 0 : i64, scratch_operands = 1 : i64, tpu.core_type = #tpu.core_type<tc>, window_params = [{transform_indices = @transform_0, window_bounds = array<i64: 1, 6, 6, 16>}, {pipeline_mode = #tpu.pipeline_mode<synchronous>, transform_indices = @transform_1, window_bounds = array<i64: 144, 128>}, {pipeline_mode = #tpu.pipeline_mode<synchronous>, transform_indices = @transform_2, window_bounds = array<i64: 1, 128>}, {transform_indices = @transform_3, window_bounds = array<i64: 1, 16, 128>}]} {
    %c0 = arith.constant 0 : index
    %c0_0 = arith.constant 0 : index
    %c0_1 = arith.constant 0 : index
    %c0_2 = arith.constant 0 : index
    %0 = vector.load %arg1[%c0, %c0_0, %c0_1, %c0_2] : memref<1x6x6x16xbf16, #tpu.memory_space<vmem>>, vector<1x4x4x16xbf16>
    %1 = vector.shape_cast %0 : vector<1x4x4x16xbf16> to vector<4x4x16xbf16>
    %2 = vector.shape_cast %1 : vector<4x4x16xbf16> to vector<16x16xbf16>
    %c0_3 = arith.constant 0 : index
    %c0_4 = arith.constant 0 : index
    %3 = vector.load %arg5[%c0_3, %c0_4] : memref<16x144xbf16, #tpu.memory_space<vmem>>, vector<16x16xbf16>
    tpu.vector_store %arg5[%c0_3, %c0_4], %2 {strides = array<i32>} : memref<16x144xbf16, #tpu.memory_space<vmem>>, vector<16x16xbf16>,
    %c0_5 = arith.constant 0 : index
    %c0_6 = arith.constant 0 : index
    %c1 = arith.constant 1 : index
    %c0_7 = arith.constant 0 : index
    %4 = vector.load %arg1[%c0_5, %c0_6, %c1, %c0_7] : memref<1x6x6x16xbf16, #tpu.memory_space<vmem>>, vector<1x4x4x16xbf16>
    %5 = vector.shape_cast %4 : vector<1x4x4x16xbf16> to vector<4x4x16xbf16>
    %6 = vector.shape_cast %5 : vector<4x4x16xbf16> to vector<16x16xbf16>
    %c0_8 = arith.constant 0 : index
    %c16 = arith.constant 16 : index
    %7 = vector.load %arg5[%c0_8, %c16] : memref<16x144xbf16, #tpu.memory_space<vmem>>, vector<16x16xbf16>
    tpu.vector_store %arg5[%c0_8, %c16], %6 {strides = array<i32>} : memref<16x144xbf16, #tpu.memory_space<vmem>>, vector<16x16xbf16>,
    %c0_9 = arith.constant 0 : index
    %c0_10 = arith.constant 0 : index
    %c2 = arith.constant 2 : index
    %c0_11 = arith.constant 0 : index
    %8 = vector.load %arg1[%c0_9, %c0_10, %c2, %c0_11] : memref<1x6x6x16xbf16, #tpu.memory_space<vmem>>, vector<1x4x4x16xbf16>
    %9 = vector.shape_cast %8 : vector<1x4x4x16xbf16> to vector<4x4x16xbf16>
    %10 = vector.shape_cast %9 : vector<4x4x16xbf16> to vector<16x16xbf16>
    %c0_12 = arith.constant 0 : index
    %c32 = arith.constant 32 : index
    %11 = vector.load %arg5[%c0_12, %c32] : memref<16x144xbf16, #tpu.memory_space<vmem>>, vector<16x16xbf16>
    tpu.vector_store %arg5[%c0_12, %c32], %10 {strides = array<i32>} : memref<16x144xbf16, #tpu.memory_space<vmem>>, vector<16x16xbf16>,
    %c0_13 = arith.constant 0 : index
    %c1_14 = arith.constant 1 : index
    %c0_15 = arith.constant 0 : index
    %c0_16 = arith.constant 0 : index
    %12 = vector.load %arg1[%c0_13, %c1_14, %c0_15, %c0_16] : memref<1x6x6x16xbf16, #tpu.memory_space<vmem>>, vector<1x4x4x16xbf16>
    %13 = vector.shape_cast %12 : vector<1x4x4x16xbf16> to vector<4x4x16xbf16>
    %14 = vector.shape_cast %13 : vector<4x4x16xbf16> to vector<16x16xbf16>
    %c0_17 = arith.constant 0 : index
    %c48 = arith.constant 48 : index
    %15 = vector.load %arg5[%c0_17, %c48] : memref<16x144xbf16, #tpu.memory_space<vmem>>, vector<16x16xbf16>
    tpu.vector_store %arg5[%c0_17, %c48], %14 {strides = array<i32>} : memref<16x144xbf16, #tpu.memory_space<vmem>>, vector<16x16xbf16>,
    %c0_18 = arith.constant 0 : index
    %c1_19 = arith.constant 1 : index
    %c1_20 = arith.constant 1 : index
    %c0_21 = arith.constant 0 : index
    %16 = vector.load %arg1[%c0_18, %c1_19, %c1_20, %c0_21] : memref<1x6x6x16xbf16, #tpu.memory_space<vmem>>, vector<1x4x4x16xbf16>
    %17 = vector.shape_cast %16 : vector<1x4x4x16xbf16> to vector<4x4x16xbf16>
    %18 = vector.shape_cast %17 : vector<4x4x16xbf16> to vector<16x16xbf16>
    %c0_22 = arith.constant 0 : index
    %c64 = arith.constant 64 : index
    %19 = vector.load %arg5[%c0_22, %c64] : memref<16x144xbf16, #tpu.memory_space<vmem>>, vector<16x16xbf16>
    tpu.vector_store %arg5[%c0_22, %c64], %18 {strides = array<i32>} : memref<16x144xbf16, #tpu.memory_space<vmem>>, vector<16x16xbf16>,
    %c0_23 = arith.constant 0 : index
    %c1_24 = arith.constant 1 : index
    %c2_25 = arith.constant 2 : index
    %c0_26 = arith.constant 0 : index
    %20 = vector.load %arg1[%c0_23, %c1_24, %c2_25, %c0_26] : memref<1x6x6x16xbf16, #tpu.memory_space<vmem>>, vector<1x4x4x16xbf16>
    %21 = vector.shape_cast %20 : vector<1x4x4x16xbf16> to vector<4x4x16xbf16>
    %22 = vector.shape_cast %21 : vector<4x4x16xbf16> to vector<16x16xbf16>
    %c0_27 = arith.constant 0 : index
    %c80 = arith.constant 80 : index
    %23 = vector.load %arg5[%c0_27, %c80] : memref<16x144xbf16, #tpu.memory_space<vmem>>, vector<16x16xbf16>
    tpu.vector_store %arg5[%c0_27, %c80], %22 {strides = array<i32>} : memref<16x144xbf16, #tpu.memory_space<vmem>>, vector<16x16xbf16>,
    %c0_28 = arith.constant 0 : index
    %c2_29 = arith.constant 2 : index
    %c0_30 = arith.constant 0 : index
    %c0_31 = arith.constant 0 : index
    %24 = vector.load %arg1[%c0_28, %c2_29, %c0_30, %c0_31] : memref<1x6x6x16xbf16, #tpu.memory_space<vmem>>, vector<1x4x4x16xbf16>
    %25 = vector.shape_cast %24 : vector<1x4x4x16xbf16> to vector<4x4x16xbf16>
    %26 = vector.shape_cast %25 : vector<4x4x16xbf16> to vector<16x16xbf16>
    %c0_32 = arith.constant 0 : index
    %c96 = arith.constant 96 : index
    %27 = vector.load %arg5[%c0_32, %c96] : memref<16x144xbf16, #tpu.memory_space<vmem>>, vector<16x16xbf16>
    tpu.vector_store %arg5[%c0_32, %c96], %26 {strides = array<i32>} : memref<16x144xbf16, #tpu.memory_space<vmem>>, vector<16x16xbf16>,
    %c0_33 = arith.constant 0 : index
    %c2_34 = arith.constant 2 : index
    %c1_35 = arith.constant 1 : index
    %c0_36 = arith.constant 0 : index
    %28 = vector.load %arg1[%c0_33, %c2_34, %c1_35, %c0_36] : memref<1x6x6x16xbf16, #tpu.memory_space<vmem>>, vector<1x4x4x16xbf16>
    %29 = vector.shape_cast %28 : vector<1x4x4x16xbf16> to vector<4x4x16xbf16>
    %30 = vector.shape_cast %29 : vector<4x4x16xbf16> to vector<16x16xbf16>
    %c0_37 = arith.constant 0 : index
    %c112 = arith.constant 112 : index
    %31 = vector.load %arg5[%c0_37, %c112] : memref<16x144xbf16, #tpu.memory_space<vmem>>, vector<16x16xbf16>
    tpu.vector_store %arg5[%c0_37, %c112], %30 {strides = array<i32>} : memref<16x144xbf16, #tpu.memory_space<vmem>>, vector<16x16xbf16>,
    %c0_38 = arith.constant 0 : index
    %c2_39 = arith.constant 2 : index
    %c2_40 = arith.constant 2 : index
    %c0_41 = arith.constant 0 : index
    %32 = vector.load %arg1[%c0_38, %c2_39, %c2_40, %c0_41] : memref<1x6x6x16xbf16, #tpu.memory_space<vmem>>, vector<1x4x4x16xbf16>
    %33 = vector.shape_cast %32 : vector<1x4x4x16xbf16> to vector<4x4x16xbf16>
    %34 = vector.shape_cast %33 : vector<4x4x16xbf16> to vector<16x16xbf16>
    %c0_42 = arith.constant 0 : index
    %c128 = arith.constant 128 : index
    %35 = vector.load %arg5[%c0_42, %c128] : memref<16x144xbf16, #tpu.memory_space<vmem>>, vector<16x16xbf16>
    tpu.vector_store %arg5[%c0_42, %c128], %34 {strides = array<i32>} : memref<16x144xbf16, #tpu.memory_space<vmem>>, vector<16x16xbf16>,
    %c0_43 = arith.constant 0 : index
    %c0_44 = arith.constant 0 : index
    %36 = vector.load %arg5[%c0_43, %c0_44] : memref<16x144xbf16, #tpu.memory_space<vmem>>, vector<16x144xbf16>
    %c0_45 = arith.constant 0 : index
    %c0_46 = arith.constant 0 : index
    %37 = vector.load %arg2[%c0_45, %c0_46] : memref<144x128xbf16, #tpu.memory_space<vmem>>, vector<144x128xbf16>
    %cst = arith.constant dense<0.000000e+00> : vector<16x128xf32>
    %38 = tpu.matmul %36, %37, %cst {dimension_numbers = #tpu.dot_dimension_numbers<[1], [0], [0], [1], [0, 0, 1, 1], [], []>} : vector<16x144xbf16>, vector<144x128xbf16>, vector<16x128xf32> -> vector<16x128xf32>
    %c0_47 = arith.constant 0 : index
    %c0_48 = arith.constant 0 : index
    %39 = vector.load %arg3[%c0_47, %c0_48] : memref<1x128xf32, #tpu.memory_space<vmem>>, vector<1x128xf32>
    %40 = vector.broadcast %39 : vector<1x128xf32> to vector<16x128xf32>
    %41 = arith.addf %38, %40 : vector<16x128xf32>
    %cst_49 = arith.constant 0.000000e+00 : f32
    %42 = vector.broadcast %cst_49 : f32 to vector<16x128xf32>
    %43 = arith.maximumf %41, %42 : vector<16x128xf32>
    %44 = arith.truncf %43 : vector<16x128xf32> to vector<16x128xbf16>
    %c0_50 = arith.constant 0 : index
    %c0_51 = arith.constant 0 : index
    %c0_52 = arith.constant 0 : index
    %45 = vector.load %arg4[%c0_50, %c0_51, %c0_52] : memref<1x16x128xbf16, #tpu.memory_space<vmem>>, vector<1x16x128xbf16>
    %46 = vector.shape_cast %45 : vector<1x16x128xbf16> to vector<16x128xbf16>
    %47 = vector.shape_cast %44 : vector<16x128xbf16> to vector<1x16x128xbf16>
    tpu.vector_store %arg4[%c0_50, %c0_51, %c0_52], %47 {strides = array<i32>} : memref<1x16x128xbf16, #tpu.memory_space<vmem>>, vector<1x16x128xbf16>,
    return
  }
  func.func @transform_0(%arg0: i32) -> (i32, i32, i32, i32) {
    %c0_i32 = arith.constant 0 : i32
    %c0_i32_0 = arith.constant 0 : i32
    %c0_i32_1 = arith.constant 0 : i32
    %c0_i32_2 = arith.constant 0 : i32
    return %arg0, %c0_i32, %c0_i32_0, %c0_i32_1 : i32, i32, i32, i32
  }
  func.func @transform_1(%arg0: i32) -> (i32, i32) {
    %c0_i32 = arith.constant 0 : i32
    %c0_i32_0 = arith.constant 0 : i32
    %c0_i32_1 = arith.constant 0 : i32
    return %c0_i32, %c0_i32_0 : i32, i32
  }
  func.func @transform_2(%arg0: i32) -> (i32, i32) {
    %c0_i32 = arith.constant 0 : i32
    %c0_i32_0 = arith.constant 0 : i32
    %c0_i32_1 = arith.constant 0 : i32
    return %c0_i32, %c0_i32_0 : i32, i32
  }
  func.func @transform_3(%arg0: i32) -> (i32, i32, i32) {
    %c0_i32 = arith.constant 0 : i32
    %c0_i32_0 = arith.constant 0 : i32
    %c0_i32_1 = arith.constant 0 : i32
    return %arg0, %c0_i32, %c0_i32_0 : i32, i32, i32
  }
}

module attributes {stable_mosaic.version = 11 : i64} {
  func.func @_conv3x3_s1_kernel(%arg0: i32, %arg1: memref<1x10x10x24xbf16, #tpu.memory_space<vmem>>, %arg2: memref<216x128xbf16, #tpu.memory_space<vmem>>, %arg3: memref<1x128xf32, #tpu.memory_space<vmem>>, %arg4: memref<1x64x128xbf16, #tpu.memory_space<vmem>>, %arg5: memref<64x216xbf16, #tpu.memory_space<vmem>>) attributes {dimension_semantics = [#tpu.dimension_semantics<parallel>], iteration_bounds = array<i64: 2>, scalar_prefetch = 0 : i64, scratch_operands = 1 : i64, tpu.core_type = #tpu.core_type<tc>, window_params = [{transform_indices = @transform_0, window_bounds = array<i64: 1, 10, 10, 24>}, {pipeline_mode = #tpu.pipeline_mode<synchronous>, transform_indices = @transform_1, window_bounds = array<i64: 216, 128>}, {pipeline_mode = #tpu.pipeline_mode<synchronous>, transform_indices = @transform_2, window_bounds = array<i64: 1, 128>}, {transform_indices = @transform_3, window_bounds = array<i64: 1, 64, 128>}]} {
    %c0 = arith.constant 0 : index
    %c0_0 = arith.constant 0 : index
    %c0_1 = arith.constant 0 : index
    %c0_2 = arith.constant 0 : index
    %0 = vector.load %arg1[%c0, %c0_0, %c0_1, %c0_2] : memref<1x10x10x24xbf16, #tpu.memory_space<vmem>>, vector<1x8x8x24xbf16>
    %1 = vector.shape_cast %0 : vector<1x8x8x24xbf16> to vector<8x8x24xbf16>
    %2 = vector.shape_cast %1 : vector<8x8x24xbf16> to vector<64x24xbf16>
    %c0_3 = arith.constant 0 : index
    %c0_4 = arith.constant 0 : index
    %3 = vector.load %arg5[%c0_3, %c0_4] : memref<64x216xbf16, #tpu.memory_space<vmem>>, vector<64x24xbf16>
    tpu.vector_store %arg5[%c0_3, %c0_4], %2 {strides = array<i32>} : memref<64x216xbf16, #tpu.memory_space<vmem>>, vector<64x24xbf16>,
    %c0_5 = arith.constant 0 : index
    %c0_6 = arith.constant 0 : index
    %c1 = arith.constant 1 : index
    %c0_7 = arith.constant 0 : index
    %4 = vector.load %arg1[%c0_5, %c0_6, %c1, %c0_7] : memref<1x10x10x24xbf16, #tpu.memory_space<vmem>>, vector<1x8x8x24xbf16>
    %5 = vector.shape_cast %4 : vector<1x8x8x24xbf16> to vector<8x8x24xbf16>
    %6 = vector.shape_cast %5 : vector<8x8x24xbf16> to vector<64x24xbf16>
    %c0_8 = arith.constant 0 : index
    %c24 = arith.constant 24 : index
    %7 = vector.load %arg5[%c0_8, %c24] : memref<64x216xbf16, #tpu.memory_space<vmem>>, vector<64x24xbf16>
    tpu.vector_store %arg5[%c0_8, %c24], %6 {strides = array<i32>} : memref<64x216xbf16, #tpu.memory_space<vmem>>, vector<64x24xbf16>,
    %c0_9 = arith.constant 0 : index
    %c0_10 = arith.constant 0 : index
    %c2 = arith.constant 2 : index
    %c0_11 = arith.constant 0 : index
    %8 = vector.load %arg1[%c0_9, %c0_10, %c2, %c0_11] : memref<1x10x10x24xbf16, #tpu.memory_space<vmem>>, vector<1x8x8x24xbf16>
    %9 = vector.shape_cast %8 : vector<1x8x8x24xbf16> to vector<8x8x24xbf16>
    %10 = vector.shape_cast %9 : vector<8x8x24xbf16> to vector<64x24xbf16>
    %c0_12 = arith.constant 0 : index
    %c48 = arith.constant 48 : index
    %11 = vector.load %arg5[%c0_12, %c48] : memref<64x216xbf16, #tpu.memory_space<vmem>>, vector<64x24xbf16>
    tpu.vector_store %arg5[%c0_12, %c48], %10 {strides = array<i32>} : memref<64x216xbf16, #tpu.memory_space<vmem>>, vector<64x24xbf16>,
    %c0_13 = arith.constant 0 : index
    %c1_14 = arith.constant 1 : index
    %c0_15 = arith.constant 0 : index
    %c0_16 = arith.constant 0 : index
    %12 = vector.load %arg1[%c0_13, %c1_14, %c0_15, %c0_16] : memref<1x10x10x24xbf16, #tpu.memory_space<vmem>>, vector<1x8x8x24xbf16>
    %13 = vector.shape_cast %12 : vector<1x8x8x24xbf16> to vector<8x8x24xbf16>
    %14 = vector.shape_cast %13 : vector<8x8x24xbf16> to vector<64x24xbf16>
    %c0_17 = arith.constant 0 : index
    %c72 = arith.constant 72 : index
    %15 = vector.load %arg5[%c0_17, %c72] : memref<64x216xbf16, #tpu.memory_space<vmem>>, vector<64x24xbf16>
    tpu.vector_store %arg5[%c0_17, %c72], %14 {strides = array<i32>} : memref<64x216xbf16, #tpu.memory_space<vmem>>, vector<64x24xbf16>,
    %c0_18 = arith.constant 0 : index
    %c1_19 = arith.constant 1 : index
    %c1_20 = arith.constant 1 : index
    %c0_21 = arith.constant 0 : index
    %16 = vector.load %arg1[%c0_18, %c1_19, %c1_20, %c0_21] : memref<1x10x10x24xbf16, #tpu.memory_space<vmem>>, vector<1x8x8x24xbf16>
    %17 = vector.shape_cast %16 : vector<1x8x8x24xbf16> to vector<8x8x24xbf16>
    %18 = vector.shape_cast %17 : vector<8x8x24xbf16> to vector<64x24xbf16>
    %c0_22 = arith.constant 0 : index
    %c96 = arith.constant 96 : index
    %19 = vector.load %arg5[%c0_22, %c96] : memref<64x216xbf16, #tpu.memory_space<vmem>>, vector<64x24xbf16>
    tpu.vector_store %arg5[%c0_22, %c96], %18 {strides = array<i32>} : memref<64x216xbf16, #tpu.memory_space<vmem>>, vector<64x24xbf16>,
    %c0_23 = arith.constant 0 : index
    %c1_24 = arith.constant 1 : index
    %c2_25 = arith.constant 2 : index
    %c0_26 = arith.constant 0 : index
    %20 = vector.load %arg1[%c0_23, %c1_24, %c2_25, %c0_26] : memref<1x10x10x24xbf16, #tpu.memory_space<vmem>>, vector<1x8x8x24xbf16>
    %21 = vector.shape_cast %20 : vector<1x8x8x24xbf16> to vector<8x8x24xbf16>
    %22 = vector.shape_cast %21 : vector<8x8x24xbf16> to vector<64x24xbf16>
    %c0_27 = arith.constant 0 : index
    %c120 = arith.constant 120 : index
    %23 = vector.load %arg5[%c0_27, %c120] : memref<64x216xbf16, #tpu.memory_space<vmem>>, vector<64x24xbf16>
    tpu.vector_store %arg5[%c0_27, %c120], %22 {strides = array<i32>} : memref<64x216xbf16, #tpu.memory_space<vmem>>, vector<64x24xbf16>,
    %c0_28 = arith.constant 0 : index
    %c2_29 = arith.constant 2 : index
    %c0_30 = arith.constant 0 : index
    %c0_31 = arith.constant 0 : index
    %24 = vector.load %arg1[%c0_28, %c2_29, %c0_30, %c0_31] : memref<1x10x10x24xbf16, #tpu.memory_space<vmem>>, vector<1x8x8x24xbf16>
    %25 = vector.shape_cast %24 : vector<1x8x8x24xbf16> to vector<8x8x24xbf16>
    %26 = vector.shape_cast %25 : vector<8x8x24xbf16> to vector<64x24xbf16>
    %c0_32 = arith.constant 0 : index
    %c144 = arith.constant 144 : index
    %27 = vector.load %arg5[%c0_32, %c144] : memref<64x216xbf16, #tpu.memory_space<vmem>>, vector<64x24xbf16>
    tpu.vector_store %arg5[%c0_32, %c144], %26 {strides = array<i32>} : memref<64x216xbf16, #tpu.memory_space<vmem>>, vector<64x24xbf16>,
    %c0_33 = arith.constant 0 : index
    %c2_34 = arith.constant 2 : index
    %c1_35 = arith.constant 1 : index
    %c0_36 = arith.constant 0 : index
    %28 = vector.load %arg1[%c0_33, %c2_34, %c1_35, %c0_36] : memref<1x10x10x24xbf16, #tpu.memory_space<vmem>>, vector<1x8x8x24xbf16>
    %29 = vector.shape_cast %28 : vector<1x8x8x24xbf16> to vector<8x8x24xbf16>
    %30 = vector.shape_cast %29 : vector<8x8x24xbf16> to vector<64x24xbf16>
    %c0_37 = arith.constant 0 : index
    %c168 = arith.constant 168 : index
    %31 = vector.load %arg5[%c0_37, %c168] : memref<64x216xbf16, #tpu.memory_space<vmem>>, vector<64x24xbf16>
    tpu.vector_store %arg5[%c0_37, %c168], %30 {strides = array<i32>} : memref<64x216xbf16, #tpu.memory_space<vmem>>, vector<64x24xbf16>,
    %c0_38 = arith.constant 0 : index
    %c2_39 = arith.constant 2 : index
    %c2_40 = arith.constant 2 : index
    %c0_41 = arith.constant 0 : index
    %32 = vector.load %arg1[%c0_38, %c2_39, %c2_40, %c0_41] : memref<1x10x10x24xbf16, #tpu.memory_space<vmem>>, vector<1x8x8x24xbf16>
    %33 = vector.shape_cast %32 : vector<1x8x8x24xbf16> to vector<8x8x24xbf16>
    %34 = vector.shape_cast %33 : vector<8x8x24xbf16> to vector<64x24xbf16>
    %c0_42 = arith.constant 0 : index
    %c192 = arith.constant 192 : index
    %35 = vector.load %arg5[%c0_42, %c192] : memref<64x216xbf16, #tpu.memory_space<vmem>>, vector<64x24xbf16>
    tpu.vector_store %arg5[%c0_42, %c192], %34 {strides = array<i32>} : memref<64x216xbf16, #tpu.memory_space<vmem>>, vector<64x24xbf16>,
    %c0_43 = arith.constant 0 : index
    %c0_44 = arith.constant 0 : index
    %36 = vector.load %arg5[%c0_43, %c0_44] : memref<64x216xbf16, #tpu.memory_space<vmem>>, vector<64x216xbf16>
    %c0_45 = arith.constant 0 : index
    %c0_46 = arith.constant 0 : index
    %37 = vector.load %arg2[%c0_45, %c0_46] : memref<216x128xbf16, #tpu.memory_space<vmem>>, vector<216x128xbf16>
    %cst = arith.constant dense<0.000000e+00> : vector<64x128xf32>
    %38 = tpu.matmul %36, %37, %cst {dimension_numbers = #tpu.dot_dimension_numbers<[1], [0], [0], [1], [0, 0, 1, 1], [], []>} : vector<64x216xbf16>, vector<216x128xbf16>, vector<64x128xf32> -> vector<64x128xf32>
    %c0_47 = arith.constant 0 : index
    %c0_48 = arith.constant 0 : index
    %39 = vector.load %arg3[%c0_47, %c0_48] : memref<1x128xf32, #tpu.memory_space<vmem>>, vector<1x128xf32>
    %40 = vector.broadcast %39 : vector<1x128xf32> to vector<64x128xf32>
    %41 = arith.addf %38, %40 : vector<64x128xf32>
    %cst_49 = arith.constant 0.000000e+00 : f32
    %42 = vector.broadcast %cst_49 : f32 to vector<64x128xf32>
    %43 = arith.maximumf %41, %42 : vector<64x128xf32>
    %44 = arith.truncf %43 : vector<64x128xf32> to vector<64x128xbf16>
    %c0_50 = arith.constant 0 : index
    %c0_51 = arith.constant 0 : index
    %c0_52 = arith.constant 0 : index
    %45 = vector.load %arg4[%c0_50, %c0_51, %c0_52] : memref<1x64x128xbf16, #tpu.memory_space<vmem>>, vector<1x64x128xbf16>
    %46 = vector.shape_cast %45 : vector<1x64x128xbf16> to vector<64x128xbf16>
    %47 = vector.shape_cast %44 : vector<64x128xbf16> to vector<1x64x128xbf16>
    tpu.vector_store %arg4[%c0_50, %c0_51, %c0_52], %47 {strides = array<i32>} : memref<1x64x128xbf16, #tpu.memory_space<vmem>>, vector<1x64x128xbf16>,
    return
  }
  func.func @transform_0(%arg0: i32) -> (i32, i32, i32, i32) {
    %c0_i32 = arith.constant 0 : i32
    %c0_i32_0 = arith.constant 0 : i32
    %c0_i32_1 = arith.constant 0 : i32
    %c0_i32_2 = arith.constant 0 : i32
    return %arg0, %c0_i32, %c0_i32_0, %c0_i32_1 : i32, i32, i32, i32
  }
  func.func @transform_1(%arg0: i32) -> (i32, i32) {
    %c0_i32 = arith.constant 0 : i32
    %c0_i32_0 = arith.constant 0 : i32
    %c0_i32_1 = arith.constant 0 : i32
    return %c0_i32, %c0_i32_0 : i32, i32
  }
  func.func @transform_2(%arg0: i32) -> (i32, i32) {
    %c0_i32 = arith.constant 0 : i32
    %c0_i32_0 = arith.constant 0 : i32
    %c0_i32_1 = arith.constant 0 : i32
    return %c0_i32, %c0_i32_0 : i32, i32
  }
  func.func @transform_3(%arg0: i32) -> (i32, i32, i32) {
    %c0_i32 = arith.constant 0 : i32
    %c0_i32_0 = arith.constant 0 : i32
    %c0_i32_1 = arith.constant 0 : i32
    return %arg0, %c0_i32, %c0_i32_0 : i32, i32, i32
  }
}

module attributes {stable_mosaic.version = 11 : i64} {
  func.func @_conv3x3_s1_kernel(%arg0: i32, %arg1: memref<1x10x10x8xbf16, #tpu.memory_space<vmem>>, %arg2: memref<72x128xbf16, #tpu.memory_space<vmem>>, %arg3: memref<1x128xf32, #tpu.memory_space<vmem>>, %arg4: memref<1x64x128xbf16, #tpu.memory_space<vmem>>, %arg5: memref<64x72xbf16, #tpu.memory_space<vmem>>) attributes {dimension_semantics = [#tpu.dimension_semantics<parallel>], iteration_bounds = array<i64: 2>, scalar_prefetch = 0 : i64, scratch_operands = 1 : i64, tpu.core_type = #tpu.core_type<tc>, window_params = [{transform_indices = @transform_0, window_bounds = array<i64: 1, 10, 10, 8>}, {pipeline_mode = #tpu.pipeline_mode<synchronous>, transform_indices = @transform_1, window_bounds = array<i64: 72, 128>}, {pipeline_mode = #tpu.pipeline_mode<synchronous>, transform_indices = @transform_2, window_bounds = array<i64: 1, 128>}, {transform_indices = @transform_3, window_bounds = array<i64: 1, 64, 128>}]} {
    %c0 = arith.constant 0 : index
    %c0_0 = arith.constant 0 : index
    %c0_1 = arith.constant 0 : index
    %c0_2 = arith.constant 0 : index
    %0 = vector.load %arg1[%c0, %c0_0, %c0_1, %c0_2] : memref<1x10x10x8xbf16, #tpu.memory_space<vmem>>, vector<1x8x8x8xbf16>
    %1 = vector.shape_cast %0 : vector<1x8x8x8xbf16> to vector<8x8x8xbf16>
    %2 = vector.shape_cast %1 : vector<8x8x8xbf16> to vector<64x8xbf16>
    %c0_3 = arith.constant 0 : index
    %c0_4 = arith.constant 0 : index
    %3 = vector.load %arg5[%c0_3, %c0_4] : memref<64x72xbf16, #tpu.memory_space<vmem>>, vector<64x8xbf16>
    tpu.vector_store %arg5[%c0_3, %c0_4], %2 {strides = array<i32>} : memref<64x72xbf16, #tpu.memory_space<vmem>>, vector<64x8xbf16>,
    %c0_5 = arith.constant 0 : index
    %c0_6 = arith.constant 0 : index
    %c1 = arith.constant 1 : index
    %c0_7 = arith.constant 0 : index
    %4 = vector.load %arg1[%c0_5, %c0_6, %c1, %c0_7] : memref<1x10x10x8xbf16, #tpu.memory_space<vmem>>, vector<1x8x8x8xbf16>
    %5 = vector.shape_cast %4 : vector<1x8x8x8xbf16> to vector<8x8x8xbf16>
    %6 = vector.shape_cast %5 : vector<8x8x8xbf16> to vector<64x8xbf16>
    %c0_8 = arith.constant 0 : index
    %c8 = arith.constant 8 : index
    %7 = vector.load %arg5[%c0_8, %c8] : memref<64x72xbf16, #tpu.memory_space<vmem>>, vector<64x8xbf16>
    tpu.vector_store %arg5[%c0_8, %c8], %6 {strides = array<i32>} : memref<64x72xbf16, #tpu.memory_space<vmem>>, vector<64x8xbf16>,
    %c0_9 = arith.constant 0 : index
    %c0_10 = arith.constant 0 : index
    %c2 = arith.constant 2 : index
    %c0_11 = arith.constant 0 : index
    %8 = vector.load %arg1[%c0_9, %c0_10, %c2, %c0_11] : memref<1x10x10x8xbf16, #tpu.memory_space<vmem>>, vector<1x8x8x8xbf16>
    %9 = vector.shape_cast %8 : vector<1x8x8x8xbf16> to vector<8x8x8xbf16>
    %10 = vector.shape_cast %9 : vector<8x8x8xbf16> to vector<64x8xbf16>
    %c0_12 = arith.constant 0 : index
    %c16 = arith.constant 16 : index
    %11 = vector.load %arg5[%c0_12, %c16] : memref<64x72xbf16, #tpu.memory_space<vmem>>, vector<64x8xbf16>
    tpu.vector_store %arg5[%c0_12, %c16], %10 {strides = array<i32>} : memref<64x72xbf16, #tpu.memory_space<vmem>>, vector<64x8xbf16>,
    %c0_13 = arith.constant 0 : index
    %c1_14 = arith.constant 1 : index
    %c0_15 = arith.constant 0 : index
    %c0_16 = arith.constant 0 : index
    %12 = vector.load %arg1[%c0_13, %c1_14, %c0_15, %c0_16] : memref<1x10x10x8xbf16, #tpu.memory_space<vmem>>, vector<1x8x8x8xbf16>
    %13 = vector.shape_cast %12 : vector<1x8x8x8xbf16> to vector<8x8x8xbf16>
    %14 = vector.shape_cast %13 : vector<8x8x8xbf16> to vector<64x8xbf16>
    %c0_17 = arith.constant 0 : index
    %c24 = arith.constant 24 : index
    %15 = vector.load %arg5[%c0_17, %c24] : memref<64x72xbf16, #tpu.memory_space<vmem>>, vector<64x8xbf16>
    tpu.vector_store %arg5[%c0_17, %c24], %14 {strides = array<i32>} : memref<64x72xbf16, #tpu.memory_space<vmem>>, vector<64x8xbf16>,
    %c0_18 = arith.constant 0 : index
    %c1_19 = arith.constant 1 : index
    %c1_20 = arith.constant 1 : index
    %c0_21 = arith.constant 0 : index
    %16 = vector.load %arg1[%c0_18, %c1_19, %c1_20, %c0_21] : memref<1x10x10x8xbf16, #tpu.memory_space<vmem>>, vector<1x8x8x8xbf16>
    %17 = vector.shape_cast %16 : vector<1x8x8x8xbf16> to vector<8x8x8xbf16>
    %18 = vector.shape_cast %17 : vector<8x8x8xbf16> to vector<64x8xbf16>
    %c0_22 = arith.constant 0 : index
    %c32 = arith.constant 32 : index
    %19 = vector.load %arg5[%c0_22, %c32] : memref<64x72xbf16, #tpu.memory_space<vmem>>, vector<64x8xbf16>
    tpu.vector_store %arg5[%c0_22, %c32], %18 {strides = array<i32>} : memref<64x72xbf16, #tpu.memory_space<vmem>>, vector<64x8xbf16>,
    %c0_23 = arith.constant 0 : index
    %c1_24 = arith.constant 1 : index
    %c2_25 = arith.constant 2 : index
    %c0_26 = arith.constant 0 : index
    %20 = vector.load %arg1[%c0_23, %c1_24, %c2_25, %c0_26] : memref<1x10x10x8xbf16, #tpu.memory_space<vmem>>, vector<1x8x8x8xbf16>
    %21 = vector.shape_cast %20 : vector<1x8x8x8xbf16> to vector<8x8x8xbf16>
    %22 = vector.shape_cast %21 : vector<8x8x8xbf16> to vector<64x8xbf16>
    %c0_27 = arith.constant 0 : index
    %c40 = arith.constant 40 : index
    %23 = vector.load %arg5[%c0_27, %c40] : memref<64x72xbf16, #tpu.memory_space<vmem>>, vector<64x8xbf16>
    tpu.vector_store %arg5[%c0_27, %c40], %22 {strides = array<i32>} : memref<64x72xbf16, #tpu.memory_space<vmem>>, vector<64x8xbf16>,
    %c0_28 = arith.constant 0 : index
    %c2_29 = arith.constant 2 : index
    %c0_30 = arith.constant 0 : index
    %c0_31 = arith.constant 0 : index
    %24 = vector.load %arg1[%c0_28, %c2_29, %c0_30, %c0_31] : memref<1x10x10x8xbf16, #tpu.memory_space<vmem>>, vector<1x8x8x8xbf16>
    %25 = vector.shape_cast %24 : vector<1x8x8x8xbf16> to vector<8x8x8xbf16>
    %26 = vector.shape_cast %25 : vector<8x8x8xbf16> to vector<64x8xbf16>
    %c0_32 = arith.constant 0 : index
    %c48 = arith.constant 48 : index
    %27 = vector.load %arg5[%c0_32, %c48] : memref<64x72xbf16, #tpu.memory_space<vmem>>, vector<64x8xbf16>
    tpu.vector_store %arg5[%c0_32, %c48], %26 {strides = array<i32>} : memref<64x72xbf16, #tpu.memory_space<vmem>>, vector<64x8xbf16>,
    %c0_33 = arith.constant 0 : index
    %c2_34 = arith.constant 2 : index
    %c1_35 = arith.constant 1 : index
    %c0_36 = arith.constant 0 : index
    %28 = vector.load %arg1[%c0_33, %c2_34, %c1_35, %c0_36] : memref<1x10x10x8xbf16, #tpu.memory_space<vmem>>, vector<1x8x8x8xbf16>
    %29 = vector.shape_cast %28 : vector<1x8x8x8xbf16> to vector<8x8x8xbf16>
    %30 = vector.shape_cast %29 : vector<8x8x8xbf16> to vector<64x8xbf16>
    %c0_37 = arith.constant 0 : index
    %c56 = arith.constant 56 : index
    %31 = vector.load %arg5[%c0_37, %c56] : memref<64x72xbf16, #tpu.memory_space<vmem>>, vector<64x8xbf16>
    tpu.vector_store %arg5[%c0_37, %c56], %30 {strides = array<i32>} : memref<64x72xbf16, #tpu.memory_space<vmem>>, vector<64x8xbf16>,
    %c0_38 = arith.constant 0 : index
    %c2_39 = arith.constant 2 : index
    %c2_40 = arith.constant 2 : index
    %c0_41 = arith.constant 0 : index
    %32 = vector.load %arg1[%c0_38, %c2_39, %c2_40, %c0_41] : memref<1x10x10x8xbf16, #tpu.memory_space<vmem>>, vector<1x8x8x8xbf16>
    %33 = vector.shape_cast %32 : vector<1x8x8x8xbf16> to vector<8x8x8xbf16>
    %34 = vector.shape_cast %33 : vector<8x8x8xbf16> to vector<64x8xbf16>
    %c0_42 = arith.constant 0 : index
    %c64 = arith.constant 64 : index
    %35 = vector.load %arg5[%c0_42, %c64] : memref<64x72xbf16, #tpu.memory_space<vmem>>, vector<64x8xbf16>
    tpu.vector_store %arg5[%c0_42, %c64], %34 {strides = array<i32>} : memref<64x72xbf16, #tpu.memory_space<vmem>>, vector<64x8xbf16>,
    %c0_43 = arith.constant 0 : index
    %c0_44 = arith.constant 0 : index
    %36 = vector.load %arg5[%c0_43, %c0_44] : memref<64x72xbf16, #tpu.memory_space<vmem>>, vector<64x72xbf16>
    %c0_45 = arith.constant 0 : index
    %c0_46 = arith.constant 0 : index
    %37 = vector.load %arg2[%c0_45, %c0_46] : memref<72x128xbf16, #tpu.memory_space<vmem>>, vector<72x128xbf16>
    %cst = arith.constant dense<0.000000e+00> : vector<64x128xf32>
    %38 = tpu.matmul %36, %37, %cst {dimension_numbers = #tpu.dot_dimension_numbers<[1], [0], [0], [1], [0, 0, 1, 1], [], []>} : vector<64x72xbf16>, vector<72x128xbf16>, vector<64x128xf32> -> vector<64x128xf32>
    %c0_47 = arith.constant 0 : index
    %c0_48 = arith.constant 0 : index
    %39 = vector.load %arg3[%c0_47, %c0_48] : memref<1x128xf32, #tpu.memory_space<vmem>>, vector<1x128xf32>
    %40 = vector.broadcast %39 : vector<1x128xf32> to vector<64x128xf32>
    %41 = arith.addf %38, %40 : vector<64x128xf32>
    %cst_49 = arith.constant 0.000000e+00 : f32
    %42 = vector.broadcast %cst_49 : f32 to vector<64x128xf32>
    %43 = arith.maximumf %41, %42 : vector<64x128xf32>
    %44 = arith.truncf %43 : vector<64x128xf32> to vector<64x128xbf16>
    %c0_50 = arith.constant 0 : index
    %c0_51 = arith.constant 0 : index
    %c0_52 = arith.constant 0 : index
    %45 = vector.load %arg4[%c0_50, %c0_51, %c0_52] : memref<1x64x128xbf16, #tpu.memory_space<vmem>>, vector<1x64x128xbf16>
    %46 = vector.shape_cast %45 : vector<1x64x128xbf16> to vector<64x128xbf16>
    %47 = vector.shape_cast %44 : vector<64x128xbf16> to vector<1x64x128xbf16>
    tpu.vector_store %arg4[%c0_50, %c0_51, %c0_52], %47 {strides = array<i32>} : memref<1x64x128xbf16, #tpu.memory_space<vmem>>, vector<1x64x128xbf16>,
    return
  }
  func.func @transform_0(%arg0: i32) -> (i32, i32, i32, i32) {
    %c0_i32 = arith.constant 0 : i32
    %c0_i32_0 = arith.constant 0 : i32
    %c0_i32_1 = arith.constant 0 : i32
    %c0_i32_2 = arith.constant 0 : i32
    return %arg0, %c0_i32, %c0_i32_0, %c0_i32_1 : i32, i32, i32, i32
  }
  func.func @transform_1(%arg0: i32) -> (i32, i32) {
    %c0_i32 = arith.constant 0 : i32
    %c0_i32_0 = arith.constant 0 : i32
    %c0_i32_1 = arith.constant 0 : i32
    return %c0_i32, %c0_i32_0 : i32, i32
  }
  func.func @transform_2(%arg0: i32) -> (i32, i32) {
    %c0_i32 = arith.constant 0 : i32
    %c0_i32_0 = arith.constant 0 : i32
    %c0_i32_1 = arith.constant 0 : i32
    return %c0_i32, %c0_i32_0 : i32, i32
  }
  func.func @transform_3(%arg0: i32) -> (i32, i32, i32) {
    %c0_i32 = arith.constant 0 : i32
    %c0_i32_0 = arith.constant 0 : i32
    %c0_i32_1 = arith.constant 0 : i32
    return %arg0, %c0_i32, %c0_i32_0 : i32, i32, i32
  }
}

module attributes {stable_mosaic.version = 11 : i64} {
  func.func @_conv3x3_s1_kernel(%arg0: i32, %arg1: memref<1x10x10x32xbf16, #tpu.memory_space<vmem>>, %arg2: memref<288x128xbf16, #tpu.memory_space<vmem>>, %arg3: memref<1x128xf32, #tpu.memory_space<vmem>>, %arg4: memref<1x64x128xbf16, #tpu.memory_space<vmem>>, %arg5: memref<64x288xbf16, #tpu.memory_space<vmem>>) attributes {dimension_semantics = [#tpu.dimension_semantics<parallel>], iteration_bounds = array<i64: 2>, scalar_prefetch = 0 : i64, scratch_operands = 1 : i64, tpu.core_type = #tpu.core_type<tc>, window_params = [{transform_indices = @transform_0, window_bounds = array<i64: 1, 10, 10, 32>}, {pipeline_mode = #tpu.pipeline_mode<synchronous>, transform_indices = @transform_1, window_bounds = array<i64: 288, 128>}, {pipeline_mode = #tpu.pipeline_mode<synchronous>, transform_indices = @transform_2, window_bounds = array<i64: 1, 128>}, {transform_indices = @transform_3, window_bounds = array<i64: 1, 64, 128>}]} {
    %c0 = arith.constant 0 : index
    %c0_0 = arith.constant 0 : index
    %c0_1 = arith.constant 0 : index
    %c0_2 = arith.constant 0 : index
    %0 = vector.load %arg1[%c0, %c0_0, %c0_1, %c0_2] : memref<1x10x10x32xbf16, #tpu.memory_space<vmem>>, vector<1x8x8x32xbf16>
    %1 = vector.shape_cast %0 : vector<1x8x8x32xbf16> to vector<8x8x32xbf16>
    %2 = vector.shape_cast %1 : vector<8x8x32xbf16> to vector<64x32xbf16>
    %c0_3 = arith.constant 0 : index
    %c0_4 = arith.constant 0 : index
    %3 = vector.load %arg5[%c0_3, %c0_4] : memref<64x288xbf16, #tpu.memory_space<vmem>>, vector<64x32xbf16>
    tpu.vector_store %arg5[%c0_3, %c0_4], %2 {strides = array<i32>} : memref<64x288xbf16, #tpu.memory_space<vmem>>, vector<64x32xbf16>,
    %c0_5 = arith.constant 0 : index
    %c0_6 = arith.constant 0 : index
    %c1 = arith.constant 1 : index
    %c0_7 = arith.constant 0 : index
    %4 = vector.load %arg1[%c0_5, %c0_6, %c1, %c0_7] : memref<1x10x10x32xbf16, #tpu.memory_space<vmem>>, vector<1x8x8x32xbf16>
    %5 = vector.shape_cast %4 : vector<1x8x8x32xbf16> to vector<8x8x32xbf16>
    %6 = vector.shape_cast %5 : vector<8x8x32xbf16> to vector<64x32xbf16>
    %c0_8 = arith.constant 0 : index
    %c32 = arith.constant 32 : index
    %7 = vector.load %arg5[%c0_8, %c32] : memref<64x288xbf16, #tpu.memory_space<vmem>>, vector<64x32xbf16>
    tpu.vector_store %arg5[%c0_8, %c32], %6 {strides = array<i32>} : memref<64x288xbf16, #tpu.memory_space<vmem>>, vector<64x32xbf16>,
    %c0_9 = arith.constant 0 : index
    %c0_10 = arith.constant 0 : index
    %c2 = arith.constant 2 : index
    %c0_11 = arith.constant 0 : index
    %8 = vector.load %arg1[%c0_9, %c0_10, %c2, %c0_11] : memref<1x10x10x32xbf16, #tpu.memory_space<vmem>>, vector<1x8x8x32xbf16>
    %9 = vector.shape_cast %8 : vector<1x8x8x32xbf16> to vector<8x8x32xbf16>
    %10 = vector.shape_cast %9 : vector<8x8x32xbf16> to vector<64x32xbf16>
    %c0_12 = arith.constant 0 : index
    %c64 = arith.constant 64 : index
    %11 = vector.load %arg5[%c0_12, %c64] : memref<64x288xbf16, #tpu.memory_space<vmem>>, vector<64x32xbf16>
    tpu.vector_store %arg5[%c0_12, %c64], %10 {strides = array<i32>} : memref<64x288xbf16, #tpu.memory_space<vmem>>, vector<64x32xbf16>,
    %c0_13 = arith.constant 0 : index
    %c1_14 = arith.constant 1 : index
    %c0_15 = arith.constant 0 : index
    %c0_16 = arith.constant 0 : index
    %12 = vector.load %arg1[%c0_13, %c1_14, %c0_15, %c0_16] : memref<1x10x10x32xbf16, #tpu.memory_space<vmem>>, vector<1x8x8x32xbf16>
    %13 = vector.shape_cast %12 : vector<1x8x8x32xbf16> to vector<8x8x32xbf16>
    %14 = vector.shape_cast %13 : vector<8x8x32xbf16> to vector<64x32xbf16>
    %c0_17 = arith.constant 0 : index
    %c96 = arith.constant 96 : index
    %15 = vector.load %arg5[%c0_17, %c96] : memref<64x288xbf16, #tpu.memory_space<vmem>>, vector<64x32xbf16>
    tpu.vector_store %arg5[%c0_17, %c96], %14 {strides = array<i32>} : memref<64x288xbf16, #tpu.memory_space<vmem>>, vector<64x32xbf16>,
    %c0_18 = arith.constant 0 : index
    %c1_19 = arith.constant 1 : index
    %c1_20 = arith.constant 1 : index
    %c0_21 = arith.constant 0 : index
    %16 = vector.load %arg1[%c0_18, %c1_19, %c1_20, %c0_21] : memref<1x10x10x32xbf16, #tpu.memory_space<vmem>>, vector<1x8x8x32xbf16>
    %17 = vector.shape_cast %16 : vector<1x8x8x32xbf16> to vector<8x8x32xbf16>
    %18 = vector.shape_cast %17 : vector<8x8x32xbf16> to vector<64x32xbf16>
    %c0_22 = arith.constant 0 : index
    %c128 = arith.constant 128 : index
    %19 = vector.load %arg5[%c0_22, %c128] : memref<64x288xbf16, #tpu.memory_space<vmem>>, vector<64x32xbf16>
    tpu.vector_store %arg5[%c0_22, %c128], %18 {strides = array<i32>} : memref<64x288xbf16, #tpu.memory_space<vmem>>, vector<64x32xbf16>,
    %c0_23 = arith.constant 0 : index
    %c1_24 = arith.constant 1 : index
    %c2_25 = arith.constant 2 : index
    %c0_26 = arith.constant 0 : index
    %20 = vector.load %arg1[%c0_23, %c1_24, %c2_25, %c0_26] : memref<1x10x10x32xbf16, #tpu.memory_space<vmem>>, vector<1x8x8x32xbf16>
    %21 = vector.shape_cast %20 : vector<1x8x8x32xbf16> to vector<8x8x32xbf16>
    %22 = vector.shape_cast %21 : vector<8x8x32xbf16> to vector<64x32xbf16>
    %c0_27 = arith.constant 0 : index
    %c160 = arith.constant 160 : index
    %23 = vector.load %arg5[%c0_27, %c160] : memref<64x288xbf16, #tpu.memory_space<vmem>>, vector<64x32xbf16>
    tpu.vector_store %arg5[%c0_27, %c160], %22 {strides = array<i32>} : memref<64x288xbf16, #tpu.memory_space<vmem>>, vector<64x32xbf16>,
    %c0_28 = arith.constant 0 : index
    %c2_29 = arith.constant 2 : index
    %c0_30 = arith.constant 0 : index
    %c0_31 = arith.constant 0 : index
    %24 = vector.load %arg1[%c0_28, %c2_29, %c0_30, %c0_31] : memref<1x10x10x32xbf16, #tpu.memory_space<vmem>>, vector<1x8x8x32xbf16>
    %25 = vector.shape_cast %24 : vector<1x8x8x32xbf16> to vector<8x8x32xbf16>
    %26 = vector.shape_cast %25 : vector<8x8x32xbf16> to vector<64x32xbf16>
    %c0_32 = arith.constant 0 : index
    %c192 = arith.constant 192 : index
    %27 = vector.load %arg5[%c0_32, %c192] : memref<64x288xbf16, #tpu.memory_space<vmem>>, vector<64x32xbf16>
    tpu.vector_store %arg5[%c0_32, %c192], %26 {strides = array<i32>} : memref<64x288xbf16, #tpu.memory_space<vmem>>, vector<64x32xbf16>,
    %c0_33 = arith.constant 0 : index
    %c2_34 = arith.constant 2 : index
    %c1_35 = arith.constant 1 : index
    %c0_36 = arith.constant 0 : index
    %28 = vector.load %arg1[%c0_33, %c2_34, %c1_35, %c0_36] : memref<1x10x10x32xbf16, #tpu.memory_space<vmem>>, vector<1x8x8x32xbf16>
    %29 = vector.shape_cast %28 : vector<1x8x8x32xbf16> to vector<8x8x32xbf16>
    %30 = vector.shape_cast %29 : vector<8x8x32xbf16> to vector<64x32xbf16>
    %c0_37 = arith.constant 0 : index
    %c224 = arith.constant 224 : index
    %31 = vector.load %arg5[%c0_37, %c224] : memref<64x288xbf16, #tpu.memory_space<vmem>>, vector<64x32xbf16>
    tpu.vector_store %arg5[%c0_37, %c224], %30 {strides = array<i32>} : memref<64x288xbf16, #tpu.memory_space<vmem>>, vector<64x32xbf16>,
    %c0_38 = arith.constant 0 : index
    %c2_39 = arith.constant 2 : index
    %c2_40 = arith.constant 2 : index
    %c0_41 = arith.constant 0 : index
    %32 = vector.load %arg1[%c0_38, %c2_39, %c2_40, %c0_41] : memref<1x10x10x32xbf16, #tpu.memory_space<vmem>>, vector<1x8x8x32xbf16>
    %33 = vector.shape_cast %32 : vector<1x8x8x32xbf16> to vector<8x8x32xbf16>
    %34 = vector.shape_cast %33 : vector<8x8x32xbf16> to vector<64x32xbf16>
    %c0_42 = arith.constant 0 : index
    %c256 = arith.constant 256 : index
    %35 = vector.load %arg5[%c0_42, %c256] : memref<64x288xbf16, #tpu.memory_space<vmem>>, vector<64x32xbf16>
    tpu.vector_store %arg5[%c0_42, %c256], %34 {strides = array<i32>} : memref<64x288xbf16, #tpu.memory_space<vmem>>, vector<64x32xbf16>,
    %c0_43 = arith.constant 0 : index
    %c0_44 = arith.constant 0 : index
    %36 = vector.load %arg5[%c0_43, %c0_44] : memref<64x288xbf16, #tpu.memory_space<vmem>>, vector<64x288xbf16>
    %c0_45 = arith.constant 0 : index
    %c0_46 = arith.constant 0 : index
    %37 = vector.load %arg2[%c0_45, %c0_46] : memref<288x128xbf16, #tpu.memory_space<vmem>>, vector<288x128xbf16>
    %cst = arith.constant dense<0.000000e+00> : vector<64x128xf32>
    %38 = tpu.matmul %36, %37, %cst {dimension_numbers = #tpu.dot_dimension_numbers<[1], [0], [0], [1], [0, 0, 1, 1], [], []>} : vector<64x288xbf16>, vector<288x128xbf16>, vector<64x128xf32> -> vector<64x128xf32>
    %c0_47 = arith.constant 0 : index
    %c0_48 = arith.constant 0 : index
    %39 = vector.load %arg3[%c0_47, %c0_48] : memref<1x128xf32, #tpu.memory_space<vmem>>, vector<1x128xf32>
    %40 = vector.broadcast %39 : vector<1x128xf32> to vector<64x128xf32>
    %41 = arith.addf %38, %40 : vector<64x128xf32>
    %cst_49 = arith.constant 0.000000e+00 : f32
    %42 = vector.broadcast %cst_49 : f32 to vector<64x128xf32>
    %43 = arith.maximumf %41, %42 : vector<64x128xf32>
    %44 = arith.truncf %43 : vector<64x128xf32> to vector<64x128xbf16>
    %c0_50 = arith.constant 0 : index
    %c0_51 = arith.constant 0 : index
    %c0_52 = arith.constant 0 : index
    %45 = vector.load %arg4[%c0_50, %c0_51, %c0_52] : memref<1x64x128xbf16, #tpu.memory_space<vmem>>, vector<1x64x128xbf16>
    %46 = vector.shape_cast %45 : vector<1x64x128xbf16> to vector<64x128xbf16>
    %47 = vector.shape_cast %44 : vector<64x128xbf16> to vector<1x64x128xbf16>
    tpu.vector_store %arg4[%c0_50, %c0_51, %c0_52], %47 {strides = array<i32>} : memref<1x64x128xbf16, #tpu.memory_space<vmem>>, vector<1x64x128xbf16>,
    return
  }
  func.func @transform_0(%arg0: i32) -> (i32, i32, i32, i32) {
    %c0_i32 = arith.constant 0 : i32
    %c0_i32_0 = arith.constant 0 : i32
    %c0_i32_1 = arith.constant 0 : i32
    %c0_i32_2 = arith.constant 0 : i32
    return %arg0, %c0_i32, %c0_i32_0, %c0_i32_1 : i32, i32, i32, i32
  }
  func.func @transform_1(%arg0: i32) -> (i32, i32) {
    %c0_i32 = arith.constant 0 : i32
    %c0_i32_0 = arith.constant 0 : i32
    %c0_i32_1 = arith.constant 0 : i32
    return %c0_i32, %c0_i32_0 : i32, i32
  }
  func.func @transform_2(%arg0: i32) -> (i32, i32) {
    %c0_i32 = arith.constant 0 : i32
    %c0_i32_0 = arith.constant 0 : i32
    %c0_i32_1 = arith.constant 0 : i32
    return %c0_i32, %c0_i32_0 : i32, i32
  }
  func.func @transform_3(%arg0: i32) -> (i32, i32, i32) {
    %c0_i32 = arith.constant 0 : i32
    %c0_i32_0 = arith.constant 0 : i32
    %c0_i32_1 = arith.constant 0 : i32
    return %arg0, %c0_i32, %c0_i32_0 : i32, i32, i32
  }
}

module attributes {stable_mosaic.version = 11 : i64} {
  func.func @_conv3x3_s1_kernel(%arg0: i32, %arg1: memref<1x18x18x8xbf16, #tpu.memory_space<vmem>>, %arg2: memref<72x128xbf16, #tpu.memory_space<vmem>>, %arg3: memref<1x128xf32, #tpu.memory_space<vmem>>, %arg4: memref<1x256x128xbf16, #tpu.memory_space<vmem>>, %arg5: memref<256x72xbf16, #tpu.memory_space<vmem>>) attributes {dimension_semantics = [#tpu.dimension_semantics<parallel>], iteration_bounds = array<i64: 2>, scalar_prefetch = 0 : i64, scratch_operands = 1 : i64, tpu.core_type = #tpu.core_type<tc>, window_params = [{transform_indices = @transform_0, window_bounds = array<i64: 1, 18, 18, 8>}, {pipeline_mode = #tpu.pipeline_mode<synchronous>, transform_indices = @transform_1, window_bounds = array<i64: 72, 128>}, {pipeline_mode = #tpu.pipeline_mode<synchronous>, transform_indices = @transform_2, window_bounds = array<i64: 1, 128>}, {transform_indices = @transform_3, window_bounds = array<i64: 1, 256, 128>}]} {
    %c0 = arith.constant 0 : index
    %c0_0 = arith.constant 0 : index
    %c0_1 = arith.constant 0 : index
    %c0_2 = arith.constant 0 : index
    %0 = vector.load %arg1[%c0, %c0_0, %c0_1, %c0_2] : memref<1x18x18x8xbf16, #tpu.memory_space<vmem>>, vector<1x16x16x8xbf16>
    %1 = vector.shape_cast %0 : vector<1x16x16x8xbf16> to vector<16x16x8xbf16>
    %2 = vector.shape_cast %1 : vector<16x16x8xbf16> to vector<256x8xbf16>
    %c0_3 = arith.constant 0 : index
    %c0_4 = arith.constant 0 : index
    %3 = vector.load %arg5[%c0_3, %c0_4] : memref<256x72xbf16, #tpu.memory_space<vmem>>, vector<256x8xbf16>
    tpu.vector_store %arg5[%c0_3, %c0_4], %2 {strides = array<i32>} : memref<256x72xbf16, #tpu.memory_space<vmem>>, vector<256x8xbf16>,
    %c0_5 = arith.constant 0 : index
    %c0_6 = arith.constant 0 : index
    %c1 = arith.constant 1 : index
    %c0_7 = arith.constant 0 : index
    %4 = vector.load %arg1[%c0_5, %c0_6, %c1, %c0_7] : memref<1x18x18x8xbf16, #tpu.memory_space<vmem>>, vector<1x16x16x8xbf16>
    %5 = vector.shape_cast %4 : vector<1x16x16x8xbf16> to vector<16x16x8xbf16>
    %6 = vector.shape_cast %5 : vector<16x16x8xbf16> to vector<256x8xbf16>
    %c0_8 = arith.constant 0 : index
    %c8 = arith.constant 8 : index
    %7 = vector.load %arg5[%c0_8, %c8] : memref<256x72xbf16, #tpu.memory_space<vmem>>, vector<256x8xbf16>
    tpu.vector_store %arg5[%c0_8, %c8], %6 {strides = array<i32>} : memref<256x72xbf16, #tpu.memory_space<vmem>>, vector<256x8xbf16>,
    %c0_9 = arith.constant 0 : index
    %c0_10 = arith.constant 0 : index
    %c2 = arith.constant 2 : index
    %c0_11 = arith.constant 0 : index
    %8 = vector.load %arg1[%c0_9, %c0_10, %c2, %c0_11] : memref<1x18x18x8xbf16, #tpu.memory_space<vmem>>, vector<1x16x16x8xbf16>
    %9 = vector.shape_cast %8 : vector<1x16x16x8xbf16> to vector<16x16x8xbf16>
    %10 = vector.shape_cast %9 : vector<16x16x8xbf16> to vector<256x8xbf16>
    %c0_12 = arith.constant 0 : index
    %c16 = arith.constant 16 : index
    %11 = vector.load %arg5[%c0_12, %c16] : memref<256x72xbf16, #tpu.memory_space<vmem>>, vector<256x8xbf16>
    tpu.vector_store %arg5[%c0_12, %c16], %10 {strides = array<i32>} : memref<256x72xbf16, #tpu.memory_space<vmem>>, vector<256x8xbf16>,
    %c0_13 = arith.constant 0 : index
    %c1_14 = arith.constant 1 : index
    %c0_15 = arith.constant 0 : index
    %c0_16 = arith.constant 0 : index
    %12 = vector.load %arg1[%c0_13, %c1_14, %c0_15, %c0_16] : memref<1x18x18x8xbf16, #tpu.memory_space<vmem>>, vector<1x16x16x8xbf16>
    %13 = vector.shape_cast %12 : vector<1x16x16x8xbf16> to vector<16x16x8xbf16>
    %14 = vector.shape_cast %13 : vector<16x16x8xbf16> to vector<256x8xbf16>
    %c0_17 = arith.constant 0 : index
    %c24 = arith.constant 24 : index
    %15 = vector.load %arg5[%c0_17, %c24] : memref<256x72xbf16, #tpu.memory_space<vmem>>, vector<256x8xbf16>
    tpu.vector_store %arg5[%c0_17, %c24], %14 {strides = array<i32>} : memref<256x72xbf16, #tpu.memory_space<vmem>>, vector<256x8xbf16>,
    %c0_18 = arith.constant 0 : index
    %c1_19 = arith.constant 1 : index
    %c1_20 = arith.constant 1 : index
    %c0_21 = arith.constant 0 : index
    %16 = vector.load %arg1[%c0_18, %c1_19, %c1_20, %c0_21] : memref<1x18x18x8xbf16, #tpu.memory_space<vmem>>, vector<1x16x16x8xbf16>
    %17 = vector.shape_cast %16 : vector<1x16x16x8xbf16> to vector<16x16x8xbf16>
    %18 = vector.shape_cast %17 : vector<16x16x8xbf16> to vector<256x8xbf16>
    %c0_22 = arith.constant 0 : index
    %c32 = arith.constant 32 : index
    %19 = vector.load %arg5[%c0_22, %c32] : memref<256x72xbf16, #tpu.memory_space<vmem>>, vector<256x8xbf16>
    tpu.vector_store %arg5[%c0_22, %c32], %18 {strides = array<i32>} : memref<256x72xbf16, #tpu.memory_space<vmem>>, vector<256x8xbf16>,
    %c0_23 = arith.constant 0 : index
    %c1_24 = arith.constant 1 : index
    %c2_25 = arith.constant 2 : index
    %c0_26 = arith.constant 0 : index
    %20 = vector.load %arg1[%c0_23, %c1_24, %c2_25, %c0_26] : memref<1x18x18x8xbf16, #tpu.memory_space<vmem>>, vector<1x16x16x8xbf16>
    %21 = vector.shape_cast %20 : vector<1x16x16x8xbf16> to vector<16x16x8xbf16>
    %22 = vector.shape_cast %21 : vector<16x16x8xbf16> to vector<256x8xbf16>
    %c0_27 = arith.constant 0 : index
    %c40 = arith.constant 40 : index
    %23 = vector.load %arg5[%c0_27, %c40] : memref<256x72xbf16, #tpu.memory_space<vmem>>, vector<256x8xbf16>
    tpu.vector_store %arg5[%c0_27, %c40], %22 {strides = array<i32>} : memref<256x72xbf16, #tpu.memory_space<vmem>>, vector<256x8xbf16>,
    %c0_28 = arith.constant 0 : index
    %c2_29 = arith.constant 2 : index
    %c0_30 = arith.constant 0 : index
    %c0_31 = arith.constant 0 : index
    %24 = vector.load %arg1[%c0_28, %c2_29, %c0_30, %c0_31] : memref<1x18x18x8xbf16, #tpu.memory_space<vmem>>, vector<1x16x16x8xbf16>
    %25 = vector.shape_cast %24 : vector<1x16x16x8xbf16> to vector<16x16x8xbf16>
    %26 = vector.shape_cast %25 : vector<16x16x8xbf16> to vector<256x8xbf16>
    %c0_32 = arith.constant 0 : index
    %c48 = arith.constant 48 : index
    %27 = vector.load %arg5[%c0_32, %c48] : memref<256x72xbf16, #tpu.memory_space<vmem>>, vector<256x8xbf16>
    tpu.vector_store %arg5[%c0_32, %c48], %26 {strides = array<i32>} : memref<256x72xbf16, #tpu.memory_space<vmem>>, vector<256x8xbf16>,
    %c0_33 = arith.constant 0 : index
    %c2_34 = arith.constant 2 : index
    %c1_35 = arith.constant 1 : index
    %c0_36 = arith.constant 0 : index
    %28 = vector.load %arg1[%c0_33, %c2_34, %c1_35, %c0_36] : memref<1x18x18x8xbf16, #tpu.memory_space<vmem>>, vector<1x16x16x8xbf16>
    %29 = vector.shape_cast %28 : vector<1x16x16x8xbf16> to vector<16x16x8xbf16>
    %30 = vector.shape_cast %29 : vector<16x16x8xbf16> to vector<256x8xbf16>
    %c0_37 = arith.constant 0 : index
    %c56 = arith.constant 56 : index
    %31 = vector.load %arg5[%c0_37, %c56] : memref<256x72xbf16, #tpu.memory_space<vmem>>, vector<256x8xbf16>
    tpu.vector_store %arg5[%c0_37, %c56], %30 {strides = array<i32>} : memref<256x72xbf16, #tpu.memory_space<vmem>>, vector<256x8xbf16>,
    %c0_38 = arith.constant 0 : index
    %c2_39 = arith.constant 2 : index
    %c2_40 = arith.constant 2 : index
    %c0_41 = arith.constant 0 : index
    %32 = vector.load %arg1[%c0_38, %c2_39, %c2_40, %c0_41] : memref<1x18x18x8xbf16, #tpu.memory_space<vmem>>, vector<1x16x16x8xbf16>
    %33 = vector.shape_cast %32 : vector<1x16x16x8xbf16> to vector<16x16x8xbf16>
    %34 = vector.shape_cast %33 : vector<16x16x8xbf16> to vector<256x8xbf16>
    %c0_42 = arith.constant 0 : index
    %c64 = arith.constant 64 : index
    %35 = vector.load %arg5[%c0_42, %c64] : memref<256x72xbf16, #tpu.memory_space<vmem>>, vector<256x8xbf16>
    tpu.vector_store %arg5[%c0_42, %c64], %34 {strides = array<i32>} : memref<256x72xbf16, #tpu.memory_space<vmem>>, vector<256x8xbf16>,
    %c0_43 = arith.constant 0 : index
    %c0_44 = arith.constant 0 : index
    %36 = vector.load %arg5[%c0_43, %c0_44] : memref<256x72xbf16, #tpu.memory_space<vmem>>, vector<256x72xbf16>
    %c0_45 = arith.constant 0 : index
    %c0_46 = arith.constant 0 : index
    %37 = vector.load %arg2[%c0_45, %c0_46] : memref<72x128xbf16, #tpu.memory_space<vmem>>, vector<72x128xbf16>
    %cst = arith.constant dense<0.000000e+00> : vector<256x128xf32>
    %38 = tpu.matmul %36, %37, %cst {dimension_numbers = #tpu.dot_dimension_numbers<[1], [0], [0], [1], [0, 0, 1, 1], [], []>} : vector<256x72xbf16>, vector<72x128xbf16>, vector<256x128xf32> -> vector<256x128xf32>
    %c0_47 = arith.constant 0 : index
    %c0_48 = arith.constant 0 : index
    %39 = vector.load %arg3[%c0_47, %c0_48] : memref<1x128xf32, #tpu.memory_space<vmem>>, vector<1x128xf32>
    %40 = vector.broadcast %39 : vector<1x128xf32> to vector<256x128xf32>
    %41 = arith.addf %38, %40 : vector<256x128xf32>
    %cst_49 = arith.constant 0.000000e+00 : f32
    %42 = vector.broadcast %cst_49 : f32 to vector<256x128xf32>
    %43 = arith.maximumf %41, %42 : vector<256x128xf32>
    %44 = arith.truncf %43 : vector<256x128xf32> to vector<256x128xbf16>
    %c0_50 = arith.constant 0 : index
    %c0_51 = arith.constant 0 : index
    %c0_52 = arith.constant 0 : index
    %45 = vector.load %arg4[%c0_50, %c0_51, %c0_52] : memref<1x256x128xbf16, #tpu.memory_space<vmem>>, vector<1x256x128xbf16>
    %46 = vector.shape_cast %45 : vector<1x256x128xbf16> to vector<256x128xbf16>
    %47 = vector.shape_cast %44 : vector<256x128xbf16> to vector<1x256x128xbf16>
    tpu.vector_store %arg4[%c0_50, %c0_51, %c0_52], %47 {strides = array<i32>} : memref<1x256x128xbf16, #tpu.memory_space<vmem>>, vector<1x256x128xbf16>,
    return
  }
  func.func @transform_0(%arg0: i32) -> (i32, i32, i32, i32) {
    %c0_i32 = arith.constant 0 : i32
    %c0_i32_0 = arith.constant 0 : i32
    %c0_i32_1 = arith.constant 0 : i32
    %c0_i32_2 = arith.constant 0 : i32
    return %arg0, %c0_i32, %c0_i32_0, %c0_i32_1 : i32, i32, i32, i32
  }
  func.func @transform_1(%arg0: i32) -> (i32, i32) {
    %c0_i32 = arith.constant 0 : i32
    %c0_i32_0 = arith.constant 0 : i32
    %c0_i32_1 = arith.constant 0 : i32
    return %c0_i32, %c0_i32_0 : i32, i32
  }
  func.func @transform_2(%arg0: i32) -> (i32, i32) {
    %c0_i32 = arith.constant 0 : i32
    %c0_i32_0 = arith.constant 0 : i32
    %c0_i32_1 = arith.constant 0 : i32
    return %c0_i32, %c0_i32_0 : i32, i32
  }
  func.func @transform_3(%arg0: i32) -> (i32, i32, i32) {
    %c0_i32 = arith.constant 0 : i32
    %c0_i32_0 = arith.constant 0 : i32
    %c0_i32_1 = arith.constant 0 : i32
    return %arg0, %c0_i32, %c0_i32_0 : i32, i32, i32
  }
}

</mosaic_0001>

<bundles_post_ra>
// kernel: _lambda_.18
= control target key start
LH: loop header
LB: loop body
LE: loop exit
PB: predicated region body
PF: predicated region fallthrough
CT: control target
= control target key end

     0   :  { %vm44_vm0 = vcmask 1043456   ;;  %vm37_vm1 = vcmask 64512   ;;  %s195_s1 = inlined_call_operand.vmem [shape: bf16[8,128], index: 1, kind: input, shape index: {}]   ;;  %s196_s0 = inlined_call_operand.vmem [shape: bf16[32,8], index: 0, kind: input, shape index: {}]   ;;  %s197_s2 = inlined_call_operand.vmem [shape: f32[1,128], index: 2, kind: input, shape index: {}]   ;;  %s198_s3 = inlined_call_operand.vmem [shape: bf16[32,128], index: 3, kind: output, shape index: {}]  }
   0x1   :  { %v19_v0 = vld [vmem:[%s195_s1] sm:$0xf]  ;;  %v156_v3 = vld [vmem:[%s196_s0 + $0x8] sm:$0xff]  }
   0x2   :  { %154 = vmatprep.subr.msk.bf16.mxu0 %vm44_vm0, %v19_v0  ;;  %v46_v1 = vsel %vm44_vm0, %v19_v0, 0  ;;  %v155_v2 = vld [vmem:[%s196_s0] sm:$0xff]  }
   0x3   :  { %149 = vmatpush3.bf16.msra.mxu0 %v46_v1  ;;  %150 = vmatprep.mubr.msk.bf16.mxu0 %vm37_vm1, %v155_v2  ;;  %v121_v5 = vld [vmem:[%s197_s2] ss:$0 sm:$0xff] }
   0x6   :  { %151 = vmatmul.mubr.msk.bf16.vlgmr.msra.gmra.mrb[0].mxu0 %vm37_vm1, %v156_v3 }
  0xd9   :  { %v152_v4 = vpop.f32.mrb[0].mxu0 }
  0xda   :  { %v82_v6 = vpop.f32.mrb[1].mxu0  ;;  %v91_v8 = vadd.f32 %v152_v4, %v121_v5 }
  0xdb   :  { %v153_v7 = vpop.f32.mrb[2].mxu0  ;;  %v83_v11 = vadd.f32 %v121_v5, %v82_v6 }
  0xdc   :  { %v94_v9 = vadd.f32 %v153_v7, %v121_v5  ;;  %v85_v10 = vpop.f32.mrb[3].mxu0 }
  0xdd   :  { %v86_v12 = vadd.f32 %v121_v5, %v85_v10 }
  0xde   :  { %v142_v13 = vpack.c.bf16 %v94_v9, %v91_v8 }
  0xdf   :  { %v137_v14 = vpack.c.bf16 %v86_v12, %v83_v11 }
  0xe0   :  { %144 = vst [vmem:[%s198_s3 + $0x8] sm:$0xff] %v142_v13  }
  0xe1   :  { %138 = vst [vmem:[%s198_s3] sm:$0xff] %v137_v14  }

// kernel: _lambda_.17
= control target key start
LH: loop header
LB: loop body
LE: loop exit
PB: predicated region body
PF: predicated region fallthrough
CT: control target
= control target key end

     0   :  { %s204_s6 = smov 0   ;;  %s225_s0 = inlined_call_operand.vmem [shape: bf16[8,2,4,16], index: 0, kind: input, shape index: {}]   ;;  %s226_s1 = inlined_call_operand.vmem [shape: bf16[8,4,8], index: 1, kind: output, shape index: {}]  }
   0x1 LB: > { %s179_s7 = sadd.s32 4294967295, %s206_s6   ;;  %p183_p0 = scmp.ge.s32.totalorder %s206_s6, 1  ;;  %s206_s6 = sphi %s204_s6, %s11_s6  }
   0x2   : > { %p87_p1 = scmp.lt.s32.totalorder %s206_s6, 9 }
   0x4   : > { %p88_p2 = pnand %p183_p0, %p87_p1 }
   0x5   : > { %p106_p3 = scmp.lt.s32.totalorder (!%p88_p2), %s179_s7, 7  ;;  %s208_s12 = smov (!%p88_p2), 120   ;;  %vm124_vm0 = vcmask (!%p88_p2), 58368  }
   0x6   : > { %91 = sbr.rel (%p88_p2) target bundleno = 137 (0x89), region = 24 }
   0xd   : > { %s228_s7 = smov (!%p106_p3, %s179_s7), 7 }
   0xe   : > { %s190_s8 = sshll.u32 %s228_s7, 2  ;;  %s186_s13 = sshll.u32 %s228_s7, 1 }
   0xf   : > { %s110_s11 = scalar_lea.vmem %s225_s0, %s190_s8  ;;  %s114_s16 = scalar_lea.vmem %s226_s1, %s186_s13 }
  0x10   : > { %v115_v0 = vld [vmem:[%s110_s11] sm:$0x3]  ;;  %v187_v1 = vld [vmem:[%s110_s11 + $0x2] sm:$0x3] }
  0x11   : > { %v118_v2 = vmax.bf16 %v187_v1, %v115_v0 }
  0x13   : > { %120 = vrot.lane.b32.xlu0 %v118_v2, %s208_s12 }
  0x85   : > { %v121_v3 = vpop.permute.xlu0 %120 }
  0x86   : > { %v123_v4 = vmax.bf16 %v121_v3, %v118_v2 }
  0x88   : > { %125 = vst.msk [vmem:[%s114_s16] sm:$0x3] %vm124_vm0, %v123_v4 }
  0x89 PF: > { %s11_s6 = sadd.s32 1, %s206_s6  }
  0x8a   : > { %p8_p4 = scmp.ge.s32.totalorder %s11_s6, 10  }
  0x8c   :  { %10 = sbr.rel (!%p8_p4) target bundleno = 1 (0x1), region = 55 }

// kernel: _lambda_.16
= control target key start
LH: loop header
LB: loop body
LE: loop exit
PB: predicated region body
PF: predicated region fallthrough
CT: control target
= control target key end

     0   :  { %vm110_vm0 = vcmask 1043456   ;;  %vm111_vm1 = vcmask 1044480   ;;  %vm85_vm2 = vcmask 72704   ;;  %v450_v1 = vmov 65535   ;;  %s533_s1 = inlined_call_operand.vmem [shape: bf16[9,128], index: 1, kind: input, shape index: {}]   ;;  %s534_s0 = inlined_call_operand.vmem [shape: bf16[128,9], index: 0, kind: input, shape index: {}]   ;;  %s535_s2 = inlined_call_operand.vmem [shape: f32[1,128], index: 2, kind: input, shape index: {}]   ;;  %s536_s3 = inlined_call_operand.vmem [shape: bf16[128,128], index: 3, kind: output, shape index: {}]  }
   0x1   :  { %v441_v0 = vld [vmem:[%s533_s1] sm:$0x1f]   ;;  %v112_v2 = vsel %vm110_vm0, 4294967295, %v450_v1  ;;  %v444_v7 = vld [vmem:[%s534_s0 + $0x8] sm:$0xff]   ;;  %v446_v9 = vld [vmem:[%s534_s0 + $0x10] sm:$0xff]  }
   0x2   :  { %v442_v3 = vld [vmem:[%s534_s0] sm:$0xff]   ;;  %v113_v4 = vsel %vm111_vm1, %v112_v2, 0  ;;  %v445_v8 = vld [vmem:[%s534_s0 + $0x28] sm:$0xff]   ;;  %v447_v10 = vld [vmem:[%s534_s0 + $0x30] sm:$0xff]  }
   0x3   :  { %v443_v5 = vld [vmem:[%s534_s0 + $0x20] sm:$0xff]   ;;  %v115_v6 = vand.u32 %v441_v0, %v113_v4  ;;  %422 = vmatprep.mubr.msk.bf16.mxu0 %vm85_vm2, %v442_v3  ;;  %v448_v11 = vld [vmem:[%s534_s0 + $0x18] sm:$0xff]  }
   0x4   :  { %430 = vmatprep.mubr.msk.bf16.mxu1 %vm85_vm2, %v443_v5  ;;  %v449_v12 = vld [vmem:[%s534_s0 + $0x38] sm:$0xff]   ;;  %v314_v13 = vld [vmem:[%s535_s2] ss:$0 sm:$0xff] }
   0x5   :  { %420 = vmatprep.subr.bf16.mxu0 %v115_v6  ;;  %438 = vmatprep.subr.bf16.mxu1 %v115_v6 }
   0x6   :  { %421 = vmatpush3.bf16.msra.mxu0 %v115_v6  ;;  %439 = vmatpush3.bf16.msra.mxu1 %v115_v6 }
   0x9   :  { %423 = vmatmul.mubr.msk.bf16.vlgmr.msra.gmra.mrb[0].mxu0 %vm85_vm2, %v444_v7  ;;  %431 = vmatmul.mubr.msk.bf16.vlgmr.msra.gmra.mrb[0].mxu1 %vm85_vm2, %v445_v8 }
   0xa   :  { %426 = vmatprep.mubr.msk.bf16.mxu0 %vm85_vm2, %v446_v9  ;;  %434 = vmatprep.mubr.msk.bf16.mxu1 %vm85_vm2, %v447_v10 }
  0x11   :  { %427 = vmatmul.mubr.msk.bf16.gmra.mrb[4].mxu0 %vm85_vm2, %v448_v11  ;;  %435 = vmatmul.mubr.msk.bf16.gmra.mrb[4].mxu1 %vm85_vm2, %v449_v12 }
  0xdc   :  { %v424_v14 = vpop.f32.mrb[0].mxu0  ;;  %v432_v15 = vpop.f32.mrb[0].mxu1 }
  0xdd   :  { %v160_v16 = vadd.f32 %v424_v14, %v314_v13  ;;  %v192_v17 = vadd.f32 %v432_v15, %v314_v13  ;;  %v151_v18 = vpop.f32.mrb[1].mxu0  ;;  %v183_v19 = vpop.f32.mrb[1].mxu1 }
  0xde   :  { %v152_v20 = vadd.f32 %v314_v13, %v151_v18  ;;  %v184_v21 = vadd.f32 %v314_v13, %v183_v19  ;;  %v425_v22 = vpop.f32.mrb[2].mxu0  ;;  %v433_v23 = vpop.f32.mrb[2].mxu1 }
  0xdf   :  { %v163_v24 = vadd.f32 %v425_v22, %v314_v13  ;;  %v195_v25 = vadd.f32 %v433_v23, %v314_v13  ;;  %v154_v26 = vpop.f32.mrb[3].mxu0  ;;  %v186_v27 = vpop.f32.mrb[3].mxu1  ;;  %v216_v30 = vmax.f32 %v160_v16, 0.0  ;;  %v224_v31 = vmax.f32 %v192_v17, 0.0 }
  0xe0   :  { %v155_v28 = vadd.f32 %v314_v13, %v154_v26  ;;  %v187_v29 = vadd.f32 %v314_v13, %v186_v27  ;;  %v214_v34 = vmax.f32 %v152_v20, 0.0  ;;  %v222_v35 = vmax.f32 %v184_v21, 0.0 }
  0xe1   :  { %v217_v32 = vmax.f32 %v163_v24, 0.0  ;;  %v225_v33 = vmax.f32 %v195_v25, 0.0 }
  0xe2   :  { %v215_v36 = vmax.f32 %v155_v28, 0.0  ;;  %v223_v37 = vmax.f32 %v187_v29, 0.0 }
  0xe3   :  { %v372_v38 = vpack.c.bf16 %v217_v32, %v216_v30  ;;  %v392_v39 = vpack.c.bf16 %v225_v33, %v224_v31 }
  0xe4   :  { %v367_v40 = vpack.c.bf16 %v215_v36, %v214_v34  ;;  %v387_v41 = vpack.c.bf16 %v223_v37, %v222_v35  ;;  %v428_v42 = vpop.f32.mrb[4].mxu0  ;;  %v436_v43 = vpop.f32.mrb[4].mxu1 }
  0xe5   :  { %404 = vst [vmem:[%s536_s3 + $0x8] sm:$0xff] %v372_v38   ;;  %408 = vst [vmem:[%s536_s3 + $0x28] sm:$0xff] %v392_v39   ;;  %v176_v44 = vadd.f32 %v428_v42, %v314_v13  ;;  %v208_v45 = vadd.f32 %v436_v43, %v314_v13  ;;  %v167_v46 = vpop.f32.mrb[5].mxu0  ;;  %v199_v47 = vpop.f32.mrb[5].mxu1 }
  0xe6   :  { %368 = vst [vmem:[%s536_s3] sm:$0xff] %v367_v40   ;;  %407 = vst [vmem:[%s536_s3 + $0x20] sm:$0xff] %v387_v41   ;;  %v168_v48 = vadd.f32 %v314_v13, %v167_v46  ;;  %v200_v49 = vadd.f32 %v314_v13, %v199_v47  ;;  %v429_v50 = vpop.f32.mrb[6].mxu0  ;;  %v437_v51 = vpop.f32.mrb[6].mxu1 }
  0xe7   :  { %v179_v52 = vadd.f32 %v429_v50, %v314_v13  ;;  %v211_v53 = vadd.f32 %v437_v51, %v314_v13  ;;  %v170_v54 = vpop.f32.mrb[7].mxu0  ;;  %v202_v55 = vpop.f32.mrb[7].mxu1  ;;  %v220_v58 = vmax.f32 %v176_v44, 0.0  ;;  %v228_v59 = vmax.f32 %v208_v45, 0.0 }
  0xe8   :  { %v171_v56 = vadd.f32 %v314_v13, %v170_v54  ;;  %v203_v57 = vadd.f32 %v314_v13, %v202_v55  ;;  %v218_v62 = vmax.f32 %v168_v48, 0.0  ;;  %v226_v63 = vmax.f32 %v200_v49, 0.0 }
  0xe9   :  { %v221_v60 = vmax.f32 %v179_v52, 0.0  ;;  %v229_v61 = vmax.f32 %v211_v53, 0.0 }
  0xea   :  { %v219_v0 = vmax.f32 %v171_v56, 0.0  ;;  %v227_v1 = vmax.f32 %v203_v57, 0.0 }
  0xeb   :  { %v382_v2 = vpack.c.bf16 %v221_v60, %v220_v58  ;;  %v402_v3 = vpack.c.bf16 %v229_v61, %v228_v59 }
  0xec   :  { %v377_v4 = vpack.c.bf16 %v219_v0, %v218_v62  ;;  %v397_v5 = vpack.c.bf16 %v227_v1, %v226_v63 }
  0xed   :  { %406 = vst [vmem:[%s536_s3 + $0x18] sm:$0xff] %v382_v2   ;;  %410 = vst [vmem:[%s536_s3 + $0x38] sm:$0xff] %v402_v3  }
  0xee   :  { %405 = vst [vmem:[%s536_s3 + $0x10] sm:$0xff] %v377_v4   ;;  %409 = vst [vmem:[%s536_s3 + $0x30] sm:$0xff] %v397_v5  }

// kernel: _lambda_.19
= control target key start
LH: loop header
LB: loop body
LE: loop exit
PB: predicated region body
PF: predicated region fallthrough
CT: control target
= control target key end

     0   :  { %s1207_s12 = smov 0   ;;  %s1337_s0 = inlined_call_operand.vmem [shape: bf16[2,6,6,8], index: 0, kind: input, shape index: {}]   ;;  %s1338_s1 = inlined_call_operand.vmem [shape: bf16[72,128], index: 1, kind: input, shape index: {}]   ;;  %s1339_s2 = inlined_call_operand.vmem [shape: f32[1,128], index: 2, kind: input, shape index: {}]   ;;  %s1340_s3 = inlined_call_operand.vmem [shape: bf16[2,16,128], index: 3, kind: output, shape index: {}]  }
   0x1 LB: > { %s1024_s13 = sadd.s32 4294967295, %s1174_s12   ;;  %p1028_p0 = scmp.ge.s32.totalorder %s1174_s12, 1  ;;  %s1174_s12 = sphi %s1207_s12, %s13_s12  }
   0x2   : > { %p137_p1 = scmp.lt.s32.totalorder %s1174_s12, 3 }
   0x4   : > { %p138_p2 = pnand %p1028_p0, %p137_p1 }
   0x5   : > { %p161_p3 = scmp.lt.s32.totalorder (!%p138_p2), %s1024_s13, 1  ;;  %v185_v0 = vlaneseq (!%p138_p2)  ;;  %vm365_vm0 = vcmask (!%p138_p2), 1040384   ;;  %vm366_vm1 = vcmask (!%p138_p2), 1042434   ;;  %v1176_v1 = vmov (!%p138_p2), 1983009808   ;;  %v1155_v12 = vld [vmem:[%s1338_s1] sm:$0xff] (!%p138_p2)  }
   0x6   : > { %141 = sbr.rel (%p138_p2) target bundleno = 402 (0x192), region = 32  ;;  %v183_v2 = vunpack.c.l.s4 (!%p138_p2), %v1176_v1  ;;  %vm367_vm2 = vmor (!%p138_p2), %vm365_vm0, %vm366_vm1  ;;  %vm368_vm3 = vcmask (!%p138_p2), 1044484   ;;  %vm370_vm4 = vcmask (!%p138_p2), 1046534   ;;  %vm240_vm6 = vsmask.f32 (!%p138_p2), 1280  ;;  %s1178_s20 = smov (!%p138_p2), 24  }
   0x7   : > { %v186_v3 = vshrl.u32 (!%p138_p2), %v185_v0, 7  ;;  %vm369_vm5 = vmor (!%p138_p2), %vm367_vm2, %vm368_vm3  ;;  %vm241_vm7 = vsmask.f32 (!%p138_p2), 3336  ;;  %vm243_vm8 = vsmask.f32 (!%p138_p2), 5392  ;;  %v1177_v22 = vmov (!%p138_p2), 0.0  }
   0x8   : > { %v184_v4 = vunpack.c.0.s8 (!%p138_p2), %v183_v2  ;;  %vm1234_vm9 = vmor (!%p138_p2), %vm369_vm5, %vm370_vm4  ;;  %1117 = vmatprep.subr.bf16.mxu0 (!%p138_p2), %v1177_v22  ;;  %vm245_vm10 = vsmask.f32 (!%p138_p2), 7448  ;;  %s1179_s21 = smov (!%p138_p2), 48   ;;  %s1180_s22 = smov (!%p138_p2), 16   ;;  %vm198_vm14 = vcmask (!%p138_p2), 64512   ;;  %vm912_vm15 = vcmask (!%p138_p2), 1043456  }
   0x9   : > { %1118 = vmatpush3.bf16.msra.mxu0 (!%p138_p2), %v1155_v12  ;;  %vm242_vm11 = vmor (!%p138_p2), %vm240_vm6, %vm241_vm7  ;;  %s1181_s4 = smov (!%p138_p2), 8   ;;  %s1182_s5 = smov (!%p138_p2), 32   ;;  %vm1184_vm0 = vmmov (!%p138_p2), 0   ;;  %vm323_vm1 = vcmask (!%p138_p2), 130112   ;;  %vm408_vm2 = vcmask (!%p138_p2), 195712   ;;  %vm439_vm3 = vcmask (!%p138_p2), 261312  }
   0xa   : > { %v1223_v5 = vsub.s32 (!%p138_p2), %v184_v4, %v186_v3  ;;  %1119 = vmatprep.subr.bf16.mxu0 (!%p138_p2), %v1177_v22  ;;  %vm244_vm12 = vmor (!%p138_p2), %vm242_vm11, %vm243_vm8  ;;  %s1183_s6 = smov (!%p138_p2), 40   ;;  %1127 = vmatprep.mubr.msk.bf16.mxu0 (!%p138_p2), %vm1184_vm0, %v1177_v22  ;;  %s1185_s7 = smov (!%p138_p2), 64   ;;  %vm557_vm4 = vcmask (!%p138_p2), 326912   ;;  %vm635_vm5 = vcmask (!%p138_p2), 392512   ;;  %vm666_vm6 = vcmask (!%p138_p2), 458112  }
   0xb   : > { %vm1274_vm13 = vmor (!%p138_p2), %vm244_vm12, %vm245_vm10  ;;  %s1186_s8 = smov (!%p138_p2), 56   ;;  %vm784_vm7 = vcmask (!%p138_p2), 523712   ;;  %vm862_vm8 = vcmask (!%p138_p2), 589312  }
   0xd   : > { %s1346_s13 = smov (!%p161_p3, %s1024_s13), 1 }
   0xe   : > { %s1131_s14 = smul.u32 24, %s1346_s13  ;;  %s1103_s11 = sshll.u32 %s1346_s13, 3 }
   0xf   : > { %s170_s16 = scalar_lea.vmem %s1340_s3, %s1103_s11 }
  0x10   : > { %s1221_s17 = scalar_lea.vmem %s1337_s0, %s1131_s14 }
  0x11   : > { %v1162_v6 = vld.sshfl [vmem:[%s1221_s17 + $0x4] sm:$0xf pattern:$0x76325410] }
  0x12   : > { %v1163_v7 = vld.sshfl [vmem:[%s1221_s17 + $0xc] sm:$0xf pattern:$0x76325410] }
  0x13   : > { %v1036_v8 = vld.sshfl [vmem:[%s1221_s17] sm:$0x12 pattern:$0x76325410]  ;;  %v435_v17 = vcombine.low %v1162_v6, %v1163_v7 }
  0x14   : > { %v1037_v9 = vld.sshfl [vmem:[%s1221_s17 + $0x4] sm:$0x12 pattern:$0x76325410]  ;;  %v340_v10 = vcombine.high %v1036_v8, %v1036_v8  ;;  %v1040_v11 = vrot.slane %v1036_v8, 9 }
  0x15   : > { %v1038_v13 = vld.sshfl [vmem:[%s1221_s17 + $0x8] sm:$0x12 pattern:$0x76325410]  ;;  %v348_v14 = vcombine.high %v1037_v9, %v1037_v9  ;;  %v1041_v16 = vrot.slane %v1037_v9, 9  ;;  %436 = vrot.lane.b32.xlu1 %v435_v17, %s1178_s20 }
  0x16   : > { %v1039_v18 = vld.sshfl [vmem:[%s1221_s17 + $0xc] sm:$0x12 pattern:$0x76325410]  ;;  %v356_v19 = vcombine.high %v1038_v13, %v1038_v13  ;;  %v374_v20 = vrot.slane %v340_v10, 7  ;;  %v1042_v21 = vrot.slane %v1038_v13, 9 }
  0x17   : > { %v364_v23 = vcombine.high %v1039_v18, %v1039_v18  ;;  %v378_v24 = vrot.slane %v348_v14, 7  ;;  %v1043_v25 = vrot.slane %v1039_v18, 9  ;;  %v1164_v28 = vld.sshfl [vmem:[%s1221_s17 + $0x8] sm:$0xf pattern:$0x76325410] }
  0x18   : > { %v375_v26 = vsel %vm1234_vm9, %v1040_v11, %v374_v20  ;;  %v382_v27 = vrot.slane %v356_v19, 7  ;;  %v1165_v31 = vld.sshfl [vmem:[%s1221_s17 + $0x10] sm:$0xf pattern:$0x76325410] }
  0x19   : > { %v1246_v29 = vsel %vm1234_vm9, %v1041_v16, %v378_v24  ;;  %v386_v30 = vrot.slane %v364_v23, 7  ;;  %v1032_v34 = vld.sshfl [vmem:[%s1221_s17] sm:$0x13 pattern:$0x76325410]  ;;  %v662_v44 = vcombine.low %v1164_v28, %v1165_v31  ;;  %v1158_v28 = vld [vmem:[%s1338_s1 + $0x8] sm:$0xff]  }
  0x1a   : > { %v1251_v32 = vsel %vm1234_vm9, %v1042_v21, %v382_v27  ;;  %v388_v33 = vcombine.low %v375_v26, %v1246_v29  ;;  %v1033_v36 = vld.sshfl [vmem:[%s1221_s17 + $0x4] sm:$0x13 pattern:$0x76325410]  ;;  %v215_v37 = vcombine.high %v1032_v34, %v1032_v34  ;;  %v248_v38 = vshrl.u32 %v1032_v34, 16  ;;  %1120 = vmatpush3.bf16.msra.mxu0 %v1158_v28 }
  0x1b   : > { %v1257_v35 = vsel %vm1234_vm9, %v1043_v25, %v386_v30  ;;  %v1034_v41 = vld.sshfl [vmem:[%s1221_s17 + $0x8] sm:$0x13 pattern:$0x76325410]  ;;  %v223_v42 = vcombine.high %v1033_v36, %v1033_v36  ;;  %v251_v43 = vshll.u32 %v1032_v34, 16  ;;  %v262_v52 = vshrl.u32 %v1033_v36, 16  ;;  %663 = vrot.lane.b32.xlu1 %v662_v44, %s1179_s21  ;;  %1121 = vmatprep.subr.bf16.mxu0 %v1177_v22 }
  0x1c   : > { %v389_v39 = vcombine.low %v1251_v32, %v1257_v35  ;;  %v396_v40 = vrot.slane %v388_v33, %v1223_v5  ;;  %v1035_v45 = vld.sshfl [vmem:[%s1221_s17 + $0xc] sm:$0x13 pattern:$0x76325410]  ;;  %v231_v46 = vcombine.high %v1034_v41, %v1034_v41  ;;  %v250_v47 = vrot.slane %v248_v38, 6 }
  0x1d   : > { %v257_v48 = vshll.u32 %v215_v37, 16  ;;  %v239_v50 = vcombine.high %v1035_v45, %v1035_v45  ;;  %v253_v51 = vrot.slane %v251_v43, 7  ;;  %v265_v54 = vshll.u32 %v1033_v36, 16 }
  0x1e   : > { %v1268_v49 = vrot.slane %v389_v39, %v1223_v5  ;;  %v271_v55 = vshll.u32 %v223_v42, 16  ;;  %v276_v56 = vshrl.u32 %v1034_v41, 16  ;;  %v264_v59 = vrot.slane %v262_v52, 6 }
  0x1f   : > { %v259_v53 = vrot.slane %v257_v48, 7  ;;  %v254_v58 = vor.u32 %v253_v51, %v250_v47  ;;  %v279_v60 = vshll.u32 %v1034_v41, 16  ;;  %v1055_v61 = vld.sshfl [vmem:[%s1221_s17 + $0x10] sm:$0x13 pattern:$0x76325410]  ;;  %v615_v44 = vcombine.low %v1246_v29, %v1251_v32 }
  0x20   : > { %v404_v57 = vcombine.low %v396_v40, %v1268_v49  ;;  %v267_v63 = vrot.slane %v265_v54, 7  ;;  %v273_v0 = vrot.slane %v271_v55, 7  ;;  %v278_v1 = vrot.slane %v276_v56, 6  ;;  %v1159_v40 = vld [vmem:[%s1338_s1 + $0x10] sm:$0xff]  }
  0x21   : > { %v285_v2 = vshll.u32 %v231_v46, 16  ;;  %v255_v3 = vrot.slane %v254_v58, 2  ;;  %v281_v4 = vrot.slane %v279_v60, 7  ;;  %v290_v6 = vshrl.u32 %v1035_v45, 16  ;;  %1122 = vmatpush3.bf16.msra.mxu0 %v1159_v40 }
  0x22   : > { %405 = vrot.lane.b32.xlu0 %v404_v57, %s1180_s22  ;;  %v293_v7 = vshll.u32 %v1035_v45, 16  ;;  %v268_v8 = vor.u32 %v267_v63, %v264_v59  ;;  %v299_v10 = vshll.u32 %v239_v50, 16  ;;  %v480_v11 = vcombine.high %v1055_v61, %v1055_v61  ;;  %v1063_v12 = vld.sshfl [vmem:[%s1221_s17 + $0x10] sm:$0x12 pattern:$0x76325410]  ;;  %1123 = vmatprep.subr.bf16.mxu0 %v1177_v22 }
  0x23   : > { %v287_v9 = vrot.slane %v285_v2, 7  ;;  %v260_v13 = vsel %vm1274_vm13, %v255_v3, %v259_v53  ;;  %v282_v14 = vor.u32 %v281_v4, %v278_v1  ;;  %v292_v16 = vrot.slane %v290_v6, 6  ;;  %v1079_v23 = vld.sshfl [vmem:[%s1221_s17 + $0x14] sm:$0x13 pattern:$0x76325410] }
  0x24   : > { %v295_v17 = vrot.slane %v293_v7, 7  ;;  %v269_v18 = vrot.slane %v268_v8, 2  ;;  %v301_v19 = vrot.slane %v299_v10, 7  ;;  %v524_v20 = vshrl.u32 %v1055_v61, 16  ;;  %v1160_v3 = vld [vmem:[%s1338_s1 + $0x18] sm:$0xff]  }
  0x25   : > { %v527_v21 = vshll.u32 %v1055_v61, 16  ;;  %v283_v24 = vrot.slane %v282_v14, 2  ;;  %v533_v26 = vshll.u32 %v480_v11, 16  ;;  %v598_v27 = vcombine.high %v1063_v12, %v1063_v12  ;;  %1124 = vmatpush3.bf16.msra.mxu0 %v1160_v3  ;;  %v1161_v10 = vld [vmem:[%s1338_s1 + $0x20] ss:$0 sps:$4 sm:$0xff]  }
  0x26   : > { %v296_v25 = vor.u32 %v295_v17, %v292_v16  ;;  %v274_v30 = vsel %vm1274_vm13, %v269_v18, %v273_v0  ;;  %v526_v31 = vrot.slane %v524_v20, 6  ;;  %v1067_v34 = vrot.slane %v1063_v12, 9  ;;  %v1087_v50 = vld.sshfl [vmem:[%s1221_s17 + $0x14] sm:$0x12 pattern:$0x76325410]  ;;  %1125 = vmatprep.subr.bf16.mxu0 %v1177_v22 }
  0x27   : > { %v529_v33 = vrot.slane %v527_v21, 7  ;;  %v288_v36 = vsel %vm1274_vm13, %v283_v24, %v287_v9  ;;  %v303_v38 = vcombine.low %v260_v13, %v274_v30  ;;  %v535_v39 = vrot.slane %v533_v26, 7  ;;  %v1166_v55 = vld.sshfl [vmem:[%s1221_s17] sm:$0xf pattern:$0x76325410] }
  0x28   : > { %v297_v37 = vrot.slane %v296_v25, 2  ;;  %v537_v42 = vcombine.low %v274_v30, %v288_v36  ;;  %v613_v43 = vrot.slane %v598_v27, 7  ;;  %v707_v47 = vcombine.high %v1079_v23, %v1079_v23  ;;  %v1167_v58 = vld.sshfl [vmem:[%s1221_s17 + $0x8] sm:$0xf pattern:$0x76325410] }
  0x29   : > { %v530_v41 = vor.u32 %v529_v33, %v526_v31  ;;  %v311_v46 = vrot.slane %v303_v38, %v1223_v5  ;;  %v751_v48 = vshrl.u32 %v1079_v23, 16  ;;  %v623_v32 = vrot.slane %v615_v44, %v1223_v5  ;;  %v1092_v31 = vld [vmem:[%s1339_s2] ss:$0 sm:$0xff] }
  0x2a   : > { %v302_v45 = vsel %vm1274_vm13, %v297_v37, %v301_v19  ;;  %v545_v53 = vrot.slane %v537_v42, %v1223_v5  ;;  %v614_v54 = vsel %vm1234_vm9, %v1067_v34, %v613_v43  ;;  %v754_v57 = vshll.u32 %v1079_v23, 16 }
  0x2b   : > { %v304_v51 = vcombine.low %v288_v36, %v302_v45  ;;  %v531_v52 = vrot.slane %v530_v41, 2  ;;  %v616_v29 = vcombine.low %v1257_v35, %v614_v54  ;;  %v753_v56 = vrot.slane %v751_v48, 6 }
  0x2c   : > { %v760_v61 = vshll.u32 %v707_v47, 16  ;;  %v825_v63 = vcombine.high %v1087_v50, %v1087_v50  ;;  %v756_v2 = vrot.slane %v754_v57, 7  ;;  %v1091_v35 = vrot.slane %v1087_v50, 9 }
  0x2d   : > { %v318_v59 = vrot.slane %v304_v51, %v1223_v5  ;;  %v536_v60 = vsel %vm1274_vm13, %v531_v52, %v535_v39  ;;  %v630_v1 = vrot.slane %v616_v29, %v1223_v5  ;;  %v196_v17 = vcombine.low %v1166_v55, %v1167_v58 }
  0x2e   : > { %v538_v0 = vcombine.low %v302_v45, %v536_v60  ;;  %v840_v6 = vrot.slane %v825_v63, 7  ;;  %v757_v8 = vor.u32 %v756_v2, %v753_v56  ;;  %v762_v9 = vrot.slane %v760_v61, 7 }
  0x2f   : > { %v319_v4 = vcombine.low %v311_v46, %v318_v59  ;;  %v631_v11 = vcombine.low %v623_v32, %v630_v1  ;;  %199 = vst.msk [vmem:[#allocation2] sm:$0xff] %vm198_vm14, %v196_v17  ;;  %v914_v20 = vsel %vm912_vm15, %v1161_v10, 0 }
  0x30   : > { %v552_v7 = vrot.slane %v538_v0, %v1223_v5  ;;  %v841_v12 = vsel %vm1234_vm9, %v1091_v35, %v840_v6  ;;  %v758_v14 = vrot.slane %v757_v8, 2  ;;  %1126 = vmatpush3.bf16.msra.mxu0 %v914_v20  ;;  %vm908_vm9 = vcmask 588800  }
  0x31   : > { %320 = vrot.lane.b32.xlu0 %v319_v4, %s1181_s4  ;;  %v843_v16 = vcombine.low %v614_v54, %v841_v12 }
  0x32   : > { %v553_v13 = vcombine.low %v545_v53, %v552_v7  ;;  %v763_v18 = vsel %vm1274_vm13, %v758_v14, %v762_v9 }
  0x33   : > { %v857_v19 = vrot.slane %v843_v16, %v1223_v5  ;;  %v765_v15 = vcombine.low %v536_v60, %v763_v18 }
  0x34   : > { %554 = vrot.lane.b32.xlu1 %v553_v13, %s1182_s5 }
  0x35   : > { %632 = vrot.lane.b32.xlu0 %v631_v11, %s1183_s6  ;;  %v858_v21 = vcombine.low %v1268_v49, %v857_v19  ;;  %v779_v23 = vrot.slane %v765_v15, %v1223_v5 }
  0x37   : > { %v780_v24 = vcombine.low %v318_v59, %v779_v23 }
  0x38   : > { %859 = vrot.lane.b32.xlu1 %v858_v21, %s1185_s7 }
  0x39   : > { %781 = vrot.lane.b32.xlu0 %v780_v24, %s1186_s8 }
  0x87   : > { %v437_v62 = vpop.permute.xlu1 %436 }
  0x8d   : > { %v664_v26 = vpop.permute.xlu1 %663 }
  0x94   : > { %v406_v25 = vpop.permute.xlu0 %405 }
  0xa3   : > { %v321_v27 = vpop.permute.xlu0 %320 }
  0xa4   : > { %324 = vst.msk [vmem:[#allocation2] sm:$0xff] %vm323_vm1, %v321_v27 }
  0xa5   : > { %409 = vst.msk [vmem:[#allocation2] sm:$0xff] %vm408_vm2, %v406_v25 }
  0xa6   : > { %v555_v49 = vpop.permute.xlu1 %554  ;;  %440 = vst.msk [vmem:[#allocation2] sm:$0xff] %vm439_vm3, %v437_v62 }
  0xa7   : > { %558 = vst.msk [vmem:[#allocation2] sm:$0xff] %vm557_vm4, %v555_v49  ;;  %v633_v5 = vpop.permute.xlu0 %632 }
  0xa8   : > { %636 = vst.msk [vmem:[#allocation2] sm:$0xff] %vm635_vm5, %v633_v5 }
  0xa9   : > { %667 = vst.msk [vmem:[#allocation2] sm:$0xff] %vm666_vm6, %v664_v26 }
  0xaa   : > { %v860_v22 = vpop.permute.xlu1 %859 }
  0xab   : > { %v782_v28 = vpop.permute.xlu0 %781 }
  0xac   : > { %785 = vst.msk [vmem:[#allocation2] sm:$0xff] %vm784_vm7, %v782_v28 }
  0xad   : > { %863 = vst.msk [vmem:[#allocation2] sm:$0xff] %vm862_vm8, %v860_v22 }
  0xb4   : > { %v864_v30 = vld [vmem:[#allocation2] sm:$0xff] }
  0xb5   : > { %1128 = vmatmul.mubr.msk.bf16.vlgmr.msra.gmra.mrb[0].mxu0 %vm908_vm9, %v864_v30 }
 0x188   : > { %v950_v33 = vpop.f32.mrb[0].mxu0 }
 0x189   : > { %v951_v34 = vadd.f32 %v1092_v31, %v950_v33  ;;  %v1129_v36 = vpop.f32.mrb[1].mxu0 }
 0x18a   : > { %v953_v37 = vpop.f32.mrb[2].mxu0 }
 0x18b   : > { %v954_v38 = vadd.f32 %v1092_v31, %v953_v37  ;;  %v1130_v39 = vpop.f32.mrb[3].mxu0  ;;  %v957_v40 = vmax.f32 %v951_v34, 0.0 }
 0x18d   : > { %v958_v41 = vmax.f32 %v954_v38, 0.0 }
 0x18f   : > { %v1109_v42 = vpack.c.bf16 %v958_v41, %v957_v40 }
 0x191   : > { %1110 = vst [vmem:[%s170_s16] sm:$0xff] %v1109_v42  }
 0x192 PF: > { %s13_s12 = sadd.s32 1, %s1174_s12  }
 0x193   : > { %p10_p4 = scmp.ge.s32.totalorder %s13_s12, 4  }
 0x195   :  { %12 = sbr.rel (!%p10_p4) target bundleno = 1 (0x1), region = 64 }

// kernel: _lambda_.21
= control target key start
LH: loop header
LB: loop body
LE: loop exit
PB: predicated region body
PF: predicated region fallthrough
CT: control target
= control target key end

     0   :  { %v95_v0 = vmov 0.0   ;;  %vm96_vm0 = vmmov 0   ;;  %vm31_vm1 = vcmask 130048   ;;  %s129_s1 = inlined_call_operand.vmem [shape: bf16[16,128], index: 1, kind: input, shape index: {}]   ;;  %s130_s0 = inlined_call_operand.vmem [shape: bf16[8,16], index: 0, kind: input, shape index: {}]   ;;  %s131_s2 = inlined_call_operand.vmem [shape: f32[1,128], index: 2, kind: input, shape index: {}]   ;;  %s132_s3 = inlined_call_operand.vmem [shape: bf16[8,128], index: 3, kind: output, shape index: {}]  }
   0x1   :  { %86 = vmatprep.subr.bf16.mxu0 %v95_v0  ;;  %v94_v1 = vld [vmem:[%s129_s1] sm:$0xff]   ;;  %88 = vmatprep.mubr.msk.bf16.mxu0 %vm96_vm0, %v95_v0 }
   0x2   :  { %87 = vmatpush3.bf16.msra.mxu0 %v94_v1  ;;  %v15_v2 = vld [vmem:[%s130_s0] sm:$0xf] }
   0x3   :  { %v81_v3 = vld [vmem:[%s131_s2] ss:$0 sm:$0xff] }
   0x5   :  { %89 = vmatmul.mubr.msk.bf16.vlgmr.msra.gmra.mrb[0].mxu0 %vm31_vm1, %v15_v2 }
  0xd8   :  { %v69_v4 = vpop.f32.mrb[0].mxu0 }
  0xd9   :  { %v70_v5 = vadd.f32 %v81_v3, %v69_v4  ;;  %v90_v6 = vpop.f32.mrb[1].mxu0 }
  0xda   :  { %v72_v7 = vpop.f32.mrb[2].mxu0 }
  0xdb   :  { %v75_v8 = vpack.c.bf16 %v70_v5, %v70_v5  ;;  %v91_v9 = vpop.f32.mrb[3].mxu0 }
  0xdd   :  { %76 = vst [vmem:[%s132_s3] sm:$0xf] %v75_v8 }

// kernel: _lambda_.20
= control target key start
LH: loop header
LB: loop body
LE: loop exit
PB: predicated region body
PF: predicated region fallthrough
CT: control target
= control target key end

     0   :  { %s1297_s15 = smov 0   ;;  %s1462_s0 = inlined_call_operand.vmem [shape: bf16[2,6,6,16], index: 0, kind: input, shape index: {}]   ;;  %s1463_s1 = inlined_call_operand.vmem [shape: bf16[144,128], index: 1, kind: input, shape index: {}]   ;;  %s1464_s2 = inlined_call_operand.vmem [shape: f32[1,128], index: 2, kind: input, shape index: {}]   ;;  %s1465_s3 = inlined_call_operand.vmem [shape: bf16[2,16,128], index: 3, kind: input, shape index: {}]   ;;  %s1466_s4 = inlined_call_operand.vmem [shape: bf16[2,16,128], index: 4, kind: output, shape index: {}]  }
   0x1 LB: > { %s1118_s16 = sadd.s32 4294967295, %s1261_s15   ;;  %p1122_p0 = scmp.ge.s32.totalorder %s1261_s15, 1  ;;  %s1261_s15 = sphi %s1297_s15, %s14_s15  }
   0x2   : > { %p172_p1 = scmp.lt.s32.totalorder %s1261_s15, 3 }
   0x4   : > { %p173_p2 = pnand %p1122_p0, %p172_p1 }
   0x5   : > { %p203_p3 = scmp.lt.s32.totalorder (!%p173_p2), %s1118_s16, 1  ;;  %vm412_vm0 = vcmask (!%p173_p2), 1040384   ;;  %vm413_vm1 = vcmask (!%p173_p2), 1042434   ;;  %vm415_vm3 = vcmask (!%p173_p2), 1044484   ;;  %v1238_v0 = vld [vmem:[%s1463_s1] sm:$0xff] (!%p173_p2)   ;;  %v232_v3 = vlaneseq (!%p173_p2)  ;;  %v1239_v5 = vld [vmem:[%s1463_s1 + $0x8] sm:$0xff] (!%p173_p2)  }
   0x6   : > { %176 = sbr.rel (%p173_p2) target bundleno = 402 (0x192), region = 36  ;;  %vm414_vm2 = vmor (!%p173_p2), %vm412_vm0, %vm413_vm1  ;;  %v1263_v1 = vmov (!%p173_p2), 1983009808   ;;  %v1264_v4 = vmov (!%p173_p2), 0   ;;  %vm287_vm4 = vsmask.f32 (!%p173_p2), 1280 }
   0x7   : > { %v230_v2 = vunpack.c.l.s4 (!%p173_p2), %v1263_v1  ;;  %992 = vmatprep.subr.bf16.mxu0 (!%p173_p2), %v1264_v4  ;;  %vm416_vm5 = vmor (!%p173_p2), %vm414_vm2, %vm415_vm3  ;;  %vm417_vm6 = vcmask (!%p173_p2), 1046534   ;;  %vm288_vm7 = vsmask.f32 (!%p173_p2), 3336  ;;  %vm290_vm8 = vsmask.f32 (!%p173_p2), 5392  ;;  %v1240_v16 = vld [vmem:[%s1463_s1 + $0x10] sm:$0xff] (!%p173_p2)  }
   0x8   : > { %993 = vmatpush1.bf16.msra.mxu0 (!%p173_p2), %v1238_v0  ;;  %v233_v8 = vshrl.u32 (!%p173_p2), %v232_v3, 7  ;;  %vm1324_vm9 = vmor (!%p173_p2), %vm416_vm5, %vm417_vm6  ;;  %vm292_vm10 = vsmask.f32 (!%p173_p2), 7448  ;;  %v1241_v31 = vld [vmem:[%s1463_s1 + $0x18] sm:$0xff] (!%p173_p2)   ;;  %v1242_v45 = vld [vmem:[%s1463_s1 + $0x20] sm:$0xff] (!%p173_p2)   ;;  %s1265_s5 = smov (!%p173_p2), 48  }
   0x9   : > { %994 = vmatprep.subr.bf16.mxu0 (!%p173_p2), %v1264_v4  ;;  %v231_v7 = vunpack.c.0.s8 (!%p173_p2), %v230_v2  ;;  %vm1360_vm11 = vmor (!%p173_p2), %vm287_vm4, %vm288_vm7  ;;  %s1266_s6 = smov (!%p173_p2), 32   ;;  %v1245_v38 = vld [vmem:[%s1463_s1 + $0x28] sm:$0xff] (!%p173_p2)   ;;  %s1267_s13 = smov (!%p173_p2), 16   ;;  %vm245_vm14 = vcmask (!%p173_p2), 130048   ;;  %vm370_vm15 = vcmask (!%p173_p2), 261248   ;;  %vm455_vm0 = vcmask (!%p173_p2), 392448  }
   0xa   : > { %vm1378_vm12 = vmor (!%p173_p2), %vm1360_vm11, %vm290_vm8  ;;  %s1268_s18 = smov (!%p173_p2), 64   ;;  %s1270_s20 = smov (!%p173_p2), 96   ;;  %vm486_vm1 = vcmask (!%p173_p2), 523648   ;;  %vm604_vm2 = vcmask (!%p173_p2), 654848   ;;  %vm682_vm3 = vcmask (!%p173_p2), 786048   ;;  %vm713_vm4 = vcmask (!%p173_p2), 917248  }
   0xb   : > { %v1333_v24 = vsub.s32 (!%p173_p2), %v231_v7, %v233_v8  ;;  %vm1388_vm13 = vmor (!%p173_p2), %vm1378_vm12, %vm292_vm10  ;;  %s1271_s21 = smov (!%p173_p2), 112   ;;  %vm831_vm5 = vcmask (!%p173_p2), 1048448  }
   0xc   : > { %995 = vmatpush1.bf16.msra.mxu0 (!%p173_p2), %v1239_v5 }
   0xd   : > { %s1476_s16 = smov (!%p203_p3, %s1118_s16), 1  ;;  %996 = vmatprep.subr.bf16.mxu0 %v1264_v4 }
   0xe   : > { %s1216_s19 = smul.u32 24, %s1476_s16 }
  0x10   : > { %s1315_s22 = scalar_lea.vmem %s1462_s0, %s1216_s19  ;;  %997 = vmatpush1.bf16.msra.mxu0 %v1240_v16  ;;  %s1269_s19 = smov 80  }
  0x11   : > { %v1132_v6 = vld.sshfl [vmem:[%s1315_s22] sm:$0x12 pattern:$0x76325410]  ;;  %998 = vmatprep.subr.bf16.mxu0 %v1264_v4 }
  0x12   : > { %v1133_v9 = vld.sshfl [vmem:[%s1315_s22 + $0x4] sm:$0x12 pattern:$0x76325410]  ;;  %v387_v10 = vcombine.high %v1132_v6, %v1132_v6  ;;  %v1136_v11 = vrot.slane %v1132_v6, 9 }
  0x13   : > { %v1134_v12 = vld.sshfl [vmem:[%s1315_s22 + $0x8] sm:$0x12 pattern:$0x76325410]  ;;  %v395_v13 = vcombine.high %v1133_v9, %v1133_v9  ;;  %v1137_v15 = vrot.slane %v1133_v9, 9 }
  0x14   : > { %v1135_v17 = vld.sshfl [vmem:[%s1315_s22 + $0xc] sm:$0x12 pattern:$0x76325410]  ;;  %v403_v18 = vcombine.high %v1134_v12, %v1134_v12  ;;  %v421_v19 = vrot.slane %v387_v10, 7  ;;  %v1138_v20 = vrot.slane %v1134_v12, 9  ;;  %999 = vmatpush1.bf16.msra.mxu0 %v1241_v31 }
  0x15   : > { %v411_v21 = vcombine.high %v1135_v17, %v1135_v17  ;;  %v425_v22 = vrot.slane %v395_v13, 7  ;;  %v1139_v23 = vrot.slane %v1135_v17, 9  ;;  %v1249_v27 = vld.sshfl [vmem:[%s1315_s22 + $0x4] sm:$0xf pattern:$0x76325410]  ;;  %1000 = vmatprep.subr.bf16.mxu0 %v1264_v4 }
  0x16   : > { %v422_v25 = vsel %vm1324_vm9, %v1136_v11, %v421_v19  ;;  %v429_v26 = vrot.slane %v403_v18, 7  ;;  %v1250_v30 = vld.sshfl [vmem:[%s1315_s22 + $0xc] sm:$0xf pattern:$0x76325410] }
  0x17   : > { %v1340_v28 = vsel %vm1324_vm9, %v1137_v15, %v425_v22  ;;  %v433_v29 = vrot.slane %v411_v21, 7  ;;  %v1128_v34 = vld.sshfl [vmem:[%s1315_s22] sm:$0x13 pattern:$0x76325410]  ;;  %v482_v46 = vcombine.low %v1249_v27, %v1250_v30 }
  0x18   : > { %v1348_v32 = vsel %vm1324_vm9, %v1138_v20, %v429_v26  ;;  %v435_v33 = vcombine.low %v422_v25, %v1340_v28  ;;  %v1129_v36 = vld.sshfl [vmem:[%s1315_s22 + $0x4] sm:$0x13 pattern:$0x76325410]  ;;  %v262_v37 = vcombine.high %v1128_v34, %v1128_v34  ;;  %v295_v39 = vshrl.u32 %v1128_v34, 16  ;;  %1001 = vmatpush1.bf16.msra.mxu0 %v1242_v45 }
  0x19   : > { %v1355_v35 = vsel %vm1324_vm9, %v1139_v23, %v433_v29  ;;  %v1130_v42 = vld.sshfl [vmem:[%s1315_s22 + $0x8] sm:$0x13 pattern:$0x76325410]  ;;  %v270_v43 = vcombine.high %v1129_v36, %v1129_v36  ;;  %v298_v44 = vshll.u32 %v1128_v34, 16  ;;  %v309_v55 = vshrl.u32 %v1129_v36, 16  ;;  %483 = vrot.lane.b32.xlu1 %v482_v46, %s1265_s5  ;;  %1002 = vmatprep.subr.bf16.mxu0 %v1264_v4 }
  0x1a   : > { %v436_v40 = vcombine.low %v1348_v32, %v1355_v35  ;;  %v443_v41 = vrot.slane %v435_v33, %v1333_v24  ;;  %v1131_v47 = vld.sshfl [vmem:[%s1315_s22 + $0xc] sm:$0x13 pattern:$0x76325410]  ;;  %v278_v48 = vcombine.high %v1130_v42, %v1130_v42  ;;  %v297_v49 = vrot.slane %v295_v39, 6 }
  0x1b   : > { %v304_v50 = vshll.u32 %v262_v37, 16  ;;  %v286_v52 = vcombine.high %v1131_v47, %v1131_v47  ;;  %v300_v54 = vrot.slane %v298_v44, 7  ;;  %v312_v57 = vshll.u32 %v1129_v36, 16 }
  0x1c   : > { %v1373_v51 = vrot.slane %v436_v40, %v1333_v24  ;;  %v318_v58 = vshll.u32 %v270_v43, 16  ;;  %v323_v59 = vshrl.u32 %v1130_v42, 16  ;;  %v311_v62 = vrot.slane %v309_v55, 6  ;;  %1003 = vmatpush1.bf16.msra.mxu0 %v1245_v38 }
  0x1d   : > { %v306_v56 = vrot.slane %v304_v50, 7  ;;  %v301_v61 = vor.u32 %v300_v54, %v297_v49  ;;  %v326_v63 = vshll.u32 %v1130_v42, 16  ;;  %v1151_v0 = vld.sshfl [vmem:[%s1315_s22 + $0x10] sm:$0x13 pattern:$0x76325410]  ;;  %v662_v46 = vcombine.low %v1340_v28, %v1348_v32  ;;  %1004 = vmatprep.subr.bf16.mxu0 %v1264_v4 }
  0x1e   : > { %v451_v60 = vcombine.low %v443_v41, %v1373_v51  ;;  %v314_v2 = vrot.slane %v312_v57, 7  ;;  %v320_v3 = vrot.slane %v318_v58, 7  ;;  %v325_v5 = vrot.slane %v323_v59, 6 }
  0x1f   : > { %v332_v6 = vshll.u32 %v278_v48, 16  ;;  %v1159_v7 = vld.sshfl [vmem:[%s1315_s22 + $0x10] sm:$0x12 pattern:$0x76325410]  ;;  %v302_v8 = vrot.slane %v301_v61, 2  ;;  %v527_v16 = vcombine.high %v1151_v0, %v1151_v0  ;;  %v670_v58 = vrot.slane %v662_v46, %v1333_v24 }
  0x20   : > { %452 = vrot.lane.b32.xlu0 %v451_v60, %s1266_s6  ;;  %v328_v9 = vrot.slane %v326_v63, 7  ;;  %v337_v10 = vshrl.u32 %v1131_v47, 16  ;;  %v340_v11 = vshll.u32 %v1131_v47, 16  ;;  %v315_v12 = vor.u32 %v314_v2, %v311_v62  ;;  %v1246_v47 = vld [vmem:[%s1463_s1 + $0x30] sm:$0xff]  }
  0x21   : > { %v334_v13 = vrot.slane %v332_v6, 7  ;;  %v346_v15 = vshll.u32 %v286_v52, 16  ;;  %v307_v17 = vsel %vm1388_vm13, %v302_v8, %v306_v56  ;;  %v571_v23 = vshrl.u32 %v1151_v0, 16  ;;  %1005 = vmatpush1.bf16.msra.mxu0 %v1246_v47 }
  0x22   : > { %v329_v18 = vor.u32 %v328_v9, %v325_v5  ;;  %v339_v19 = vrot.slane %v337_v10, 6  ;;  %v342_v20 = vrot.slane %v340_v11, 7  ;;  %v316_v21 = vrot.slane %v315_v12, 2  ;;  %1006 = vmatprep.subr.bf16.mxu0 %v1264_v4 }
  0x23   : > { %v348_v22 = vrot.slane %v346_v15, 7  ;;  %v574_v25 = vshll.u32 %v1151_v0, 16  ;;  %v580_v29 = vshll.u32 %v527_v16, 16  ;;  %v645_v30 = vcombine.high %v1159_v7, %v1159_v7  ;;  %v1248_v16 = vld [vmem:[%s1463_s1 + $0x40] sm:$0xff]  }
  0x24   : > { %v330_v26 = vrot.slane %v329_v18, 2  ;;  %v343_v27 = vor.u32 %v342_v20, %v339_v19  ;;  %v1397_v31 = vld.sshfl [vmem:[%s1315_s22 + $0x8] sm:$0xf pattern:$0x76325410]  ;;  %v321_v33 = vsel %vm1388_vm13, %v316_v21, %v320_v3  ;;  %v573_v34 = vrot.slane %v571_v23, 6 }
  0x25   : > { %v576_v36 = vrot.slane %v574_v25, 7  ;;  %v1163_v37 = vrot.slane %v1159_v7, 9  ;;  %v350_v41 = vcombine.low %v307_v17, %v321_v33  ;;  %v582_v42 = vrot.slane %v580_v29, 7 }
  0x26   : > { %v335_v39 = vsel %vm1388_vm13, %v330_v26, %v334_v13  ;;  %v344_v40 = vrot.slane %v343_v27, 2  ;;  %v1175_v43 = vld.sshfl [vmem:[%s1315_s22 + $0x14] sm:$0x13 pattern:$0x76325410]  ;;  %v660_v45 = vrot.slane %v645_v30, 7 }
  0x27   : > { %v577_v44 = vor.u32 %v576_v36, %v573_v34  ;;  %v584_v49 = vcombine.low %v321_v33, %v335_v39  ;;  %v1252_v50 = vld.sshfl [vmem:[%s1315_s22 + $0x10] sm:$0xf pattern:$0x76325410]  ;;  %v358_v53 = vrot.slane %v350_v41, %v1333_v24  ;;  %v754_v59 = vcombine.high %v1175_v43, %v1175_v43 }
  0x28   : > { %v349_v48 = vsel %vm1388_vm13, %v344_v40, %v348_v22  ;;  %v661_v55 = vsel %vm1324_vm9, %v1163_v37, %v660_v45  ;;  %v1183_v28 = vld.sshfl [vmem:[%s1315_s22 + $0x14] sm:$0x12 pattern:$0x76325410]  ;;  %v798_v62 = vshrl.u32 %v1175_v43, 16  ;;  %v801_v63 = vshll.u32 %v1175_v43, 16 }
  0x29   : > { %v351_v52 = vcombine.low %v335_v39, %v349_v48  ;;  %v578_v54 = vrot.slane %v577_v44, 2  ;;  %v1253_v32 = vld.sshfl [vmem:[%s1315_s22] sm:$0xf pattern:$0x76325410]  ;;  %v663_v57 = vcombine.low %v1355_v35, %v661_v55  ;;  %v592_v2 = vrot.slane %v584_v49, %v1333_v24  ;;  %v1247_v35 = vld [vmem:[%s1463_s1 + $0x38] sm:$0xff]  }
  0x2a   : > { %v1254_v56 = vld.sshfl [vmem:[%s1315_s22 + $0x8] sm:$0xf pattern:$0x76325410]  ;;  %v807_v5 = vshll.u32 %v754_v59, 16  ;;  %v800_v7 = vrot.slane %v798_v62, 6  ;;  %v872_v12 = vcombine.high %v1183_v28, %v1183_v28  ;;  %1007 = vmatpush1.bf16.msra.mxu0 %v1247_v35  ;;  %v709_v21 = vcombine.low %v1397_v31, %v1252_v50 }
  0x2b   : > { %v365_v60 = vrot.slane %v351_v52, %v1333_v24  ;;  %v583_v61 = vsel %vm1388_vm13, %v578_v54, %v582_v42  ;;  %v677_v3 = vrot.slane %v663_v57, %v1333_v24  ;;  %v803_v8 = vrot.slane %v801_v63, 7  ;;  %1008 = vmatprep.subr.bf16.mxu0 %v1264_v4  ;;  %s1203_s22 = sshll.u32 %s1476_s16, 3  ;;  %v1188_v39 = vld [vmem:[%s1464_s2] ss:$0 sm:$0xff] }
  0x2c   : > { %v585_v0 = vcombine.low %v349_v48, %v583_v61  ;;  %v809_v11 = vrot.slane %v807_v5, 7  ;;  %v1187_v15 = vrot.slane %v1183_v28, 9  ;;  %v887_v18 = vrot.slane %v872_v12, 7  ;;  %s212_s25 = scalar_lea.vmem %s1465_s3, %s1203_s22  ;;  %s217_s29 = scalar_lea.vmem %s1466_s4, %s1203_s22 }
  0x2d   : > { %v366_v6 = vcombine.low %v358_v53, %v365_v60  ;;  %v678_v10 = vcombine.low %v670_v58, %v677_v3  ;;  %v804_v13 = vor.u32 %v803_v8, %v800_v7  ;;  %v243_v20 = vcombine.low %v1253_v32, %v1254_v56  ;;  %v1208_v38 = vld [vmem:[%s212_s25] sm:$0xff]  }
  0x2e   : > { %v599_v9 = vrot.slane %v585_v0, %v1333_v24  ;;  %v888_v22 = vsel %vm1324_vm9, %v1187_v15, %v887_v18  ;;  %1009 = vmatpush1.bf16.msra.mxu0 %v1248_v16  ;;  %v1209_v40 = vunpack.c.l.bf16 %v1208_v38  ;;  %v1210_v44 = vunpack.c.h.bf16 %v1208_v38 }
  0x2f   : > { %367 = vrot.lane.b32.xlu0 %v366_v6, %s1267_s13  ;;  %v805_v19 = vrot.slane %v804_v13, 2  ;;  %v890_v25 = vcombine.low %v661_v55, %v888_v22  ;;  %246 = vst.msk [vmem:[#allocation2] sm:$0xff] %vm245_vm14, %v243_v20 }
  0x30   : > { %v600_v17 = vcombine.low %v592_v2, %v599_v9 }
  0x31   : > { %v810_v23 = vsel %vm1388_vm13, %v805_v19, %v809_v11  ;;  %v904_v4 = vrot.slane %v890_v25, %v1333_v24 }
  0x32   : > { %601 = vrot.lane.b32.xlu1 %v600_v17, %s1268_s18  ;;  %v812_v26 = vcombine.low %v583_v61, %v810_v23 }
  0x33   : > { %679 = vrot.lane.b32.xlu0 %v678_v10, %s1269_s19  ;;  %v905_v29 = vcombine.low %v1373_v51, %v904_v4 }
  0x34   : > { %v826_v27 = vrot.slane %v812_v26, %v1333_v24 }
  0x35   : > { %907 = vst.msk [vmem:[#allocation2 + $0x8] sm:$0xff] %vm245_vm14, %v905_v29 }
  0x36   : > { %710 = vrot.lane.b32.xlu1 %v709_v21, %s1270_s20  ;;  %v827_v14 = vcombine.low %v365_v60, %v826_v27 }
  0x38   : > { %828 = vrot.lane.b32.xlu0 %v827_v14, %s1271_s21 }
  0x3c   : > { %v909_v1 = vld [vmem:[#allocation2 + $0x8] sm:$0xff] }
  0x3d   : > { %1198 = vmatprep.mubr.msk.bf16.mxu0 %vm245_vm14, %v909_v1 }
  0x8b   : > { %v484_v31 = vpop.permute.xlu1 %483 }
  0x92   : > { %v453_v30 = vpop.permute.xlu0 %452 }
  0xa1   : > { %v368_v33 = vpop.permute.xlu0 %367 }
  0xa2   : > { %371 = vst.msk [vmem:[#allocation2] sm:$0xff] %vm370_vm15, %v368_v33 }
  0xa3   : > { %456 = vst.msk [vmem:[#allocation2] sm:$0xff] %vm455_vm0, %v453_v30 }
  0xa4   : > { %v602_v24 = vpop.permute.xlu1 %601  ;;  %487 = vst.msk [vmem:[#allocation2] sm:$0xff] %vm486_vm1, %v484_v31 }
  0xa5   : > { %605 = vst.msk [vmem:[#allocation2] sm:$0xff] %vm604_vm2, %v602_v24  ;;  %v680_v51 = vpop.permute.xlu0 %679 }
  0xa6   : > { %683 = vst.msk [vmem:[#allocation2] sm:$0xff] %vm682_vm3, %v680_v51 }
  0xa8   : > { %v711_v34 = vpop.permute.xlu1 %710 }
  0xa9   : > { %714 = vst.msk [vmem:[#allocation2] sm:$0xff] %vm713_vm4, %v711_v34 }
  0xaa   : > { %v829_v36 = vpop.permute.xlu0 %828 }
  0xab   : > { %832 = vst.msk [vmem:[#allocation2] sm:$0xff] %vm831_vm5, %v829_v36 }
  0xb2   : > { %v908_v37 = vld [vmem:[#allocation2] sm:$0xff] }
  0xb3   : > { %1025 = vmatmul.mubr.bf16.vlgmr.msra.gmra.mrb[0].mxu0 %v908_v37 }
 0x186   : > { %v1026_v41 = vpop.f32.mrb[0].mxu0 }
 0x187   : > { %v1027_v42 = vadd.f32 %v1188_v39, %v1026_v41  ;;  %v1028_v43 = vpop.f32.mrb[1].mxu0 }
 0x188   : > { %v1029_v45 = vpop.f32.mrb[2].mxu0 }
 0x189   : > { %v1037_v46 = vadd.f32 %v1209_v40, %v1027_v42  ;;  %v1030_v47 = vadd.f32 %v1188_v39, %v1029_v45  ;;  %v1031_v48 = vpop.f32.mrb[3].mxu0 }
 0x18b   : > { %v1038_v49 = vadd.f32 %v1210_v44, %v1030_v47  ;;  %v1039_v50 = vmax.f32 %v1037_v46, 0.0 }
 0x18d   : > { %v1040_v52 = vmax.f32 %v1038_v49, 0.0 }
 0x18f   : > { %v1214_v53 = vpack.c.bf16 %v1040_v52, %v1039_v50 }
 0x191   : > { %1215 = vst [vmem:[%s217_s29] sm:$0xff] %v1214_v53  }
 0x192 PF: > { %s14_s15 = sadd.s32 1, %s1261_s15  }
 0x193   : > { %p11_p4 = scmp.ge.s32.totalorder %s14_s15, 4  }
 0x195   :  { %13 = sbr.rel (!%p11_p4) target bundleno = 1 (0x1), region = 71 }

// kernel: _lambda_.22
= control target key start
LH: loop header
LB: loop body
LE: loop exit
PB: predicated region body
PF: predicated region fallthrough
CT: control target
= control target key end

     0   :  { %v177_v0 = vmov 0   ;;  %vm101_vm0 = vcmask 130048   ;;  %s234_s1 = inlined_call_operand.vmem [shape: bf16[144,128], index: 1, kind: input, shape index: {}]   ;;  %s235_s0 = inlined_call_operand.vmem [shape: bf16[8,144], index: 0, kind: input, shape index: {}]   ;;  %s236_s2 = inlined_call_operand.vmem [shape: f32[1,128], index: 2, kind: input, shape index: {}]   ;;  %s237_s3 = inlined_call_operand.vmem [shape: bf16[8,128], index: 3, kind: output, shape index: {}]  }
   0x1   :  { %105 = vmatprep.subr.bf16.mxu0 %v177_v0  ;;  %v166_v1 = vld [vmem:[%s234_s1] sm:$0xff]   ;;  %v167_v2 = vld [vmem:[%s234_s1 + $0x8] sm:$0xff]   ;;  %v168_v3 = vld [vmem:[%s234_s1 + $0x10] sm:$0xff]  }
   0x2   :  { %106 = vmatpush1.bf16.msra.mxu0 %v166_v1  ;;  %v15_v4 = vld [vmem:[%s235_s0] sm:$0xff]  ;;  %v169_v5 = vld [vmem:[%s234_s1 + $0x18] sm:$0xff]   ;;  %v171_v8 = vld [vmem:[%s234_s1 + $0x28] sm:$0xff]  }
   0x3   :  { %107 = vmatprep.subr.bf16.mxu0 %v177_v0  ;;  %v154_v6 = vcombine.high %v15_v4, %v15_v4  ;;  %v170_v7 = vld [vmem:[%s234_s1 + $0x20] sm:$0xff]   ;;  %v172_v9 = vld [vmem:[%s234_s1 + $0x30] sm:$0xff]   ;;  %v173_v10 = vld [vmem:[%s234_s1 + $0x38] sm:$0xff]   ;;  %v153_v12 = vcombine.low %v15_v4, %v15_v4 }
   0x4   :  { %v174_v11 = vld [vmem:[%s234_s1 + $0x40] sm:$0xff]  }
   0x5   :  { %164 = vmatprep.mubr.msk.bf16.mxu0 %vm101_vm0, %v154_v6  ;;  %v152_v13 = vld [vmem:[%s236_s2] ss:$0 sm:$0xff] }
   0x6   :  { %108 = vmatpush1.bf16.msra.mxu0 %v167_v2 }
   0x7   :  { %109 = vmatprep.subr.bf16.mxu0 %v177_v0 }
   0xa   :  { %110 = vmatpush1.bf16.msra.mxu0 %v168_v3 }
   0xb   :  { %111 = vmatprep.subr.bf16.mxu0 %v177_v0 }
   0xe   :  { %112 = vmatpush1.bf16.msra.mxu0 %v169_v5 }
   0xf   :  { %113 = vmatprep.subr.bf16.mxu0 %v177_v0 }
  0x12   :  { %114 = vmatpush1.bf16.msra.mxu0 %v170_v7 }
  0x13   :  { %115 = vmatprep.subr.bf16.mxu0 %v177_v0 }
  0x16   :  { %116 = vmatpush1.bf16.msra.mxu0 %v171_v8 }
  0x17   :  { %117 = vmatprep.subr.bf16.mxu0 %v177_v0 }
  0x1a   :  { %118 = vmatpush1.bf16.msra.mxu0 %v172_v9 }
  0x1b   :  { %119 = vmatprep.subr.bf16.mxu0 %v177_v0 }
  0x1e   :  { %120 = vmatpush1.bf16.msra.mxu0 %v173_v10 }
  0x1f   :  { %121 = vmatprep.subr.bf16.mxu0 %v177_v0 }
  0x22   :  { %122 = vmatpush1.bf16.msra.mxu0 %v174_v11 }
  0x25   :  { %138 = vmatmul.mubr.bf16.vlgmr.msra.gmra.mrb[0].mxu0 %v153_v12 }
  0xf8   :  { %v139_v14 = vpop.f32.mrb[0].mxu0 }
  0xf9   :  { %v140_v15 = vadd.f32 %v152_v13, %v139_v14  ;;  %v141_v16 = vpop.f32.mrb[1].mxu0 }
  0xfa   :  { %v142_v17 = vpop.f32.mrb[2].mxu0 }
  0xfb   :  { %v145_v18 = vmax.f32 %v140_v15, 0.0  ;;  %v143_v19 = vpop.f32.mrb[3].mxu0 }
  0xfd   :  { %v146_v20 = vpack.c.bf16 %v145_v18, %v145_v18 }
  0xff   :  { %147 = vst [vmem:[%s237_s3] sm:$0xf] %v146_v20 }

// kernel: _lambda_.23
= control target key start
LH: loop header
LB: loop body
LE: loop exit
PB: predicated region body
PF: predicated region fallthrough
CT: control target
= control target key end

     0   :  { %s1021_s15 = smov 0   ;;  %s1154_s0 = inlined_call_operand.vmem [shape: bf16[2,4,4,32], index: 0, kind: input, shape index: {}]   ;;  %s1155_s1 = inlined_call_operand.vmem [shape: bf16[288,128], index: 1, kind: input, shape index: {}]   ;;  %s1156_s2 = inlined_call_operand.vmem [shape: f32[1,128], index: 2, kind: input, shape index: {}]   ;;  %s1157_s3 = inlined_call_operand.vmem [shape: bf16[2,4,128], index: 3, kind: input, shape index: {}]   ;;  %s1158_s4 = inlined_call_operand.vmem [shape: bf16[2,4,128], index: 4, kind: output, shape index: {}]  }
   0x1 LB: > { %s849_s16 = sadd.s32 4294967295, %s987_s15   ;;  %p853_p0 = scmp.ge.s32.totalorder %s987_s15, 1  ;;  %s987_s15 = sphi %s1021_s15, %s14_s15  }
   0x2   : > { %p171_p1 = scmp.lt.s32.totalorder %s987_s15, 3 }
   0x4   : > { %p172_p2 = pnand %p853_p0, %p171_p1 }
   0x5   : > { %p200_p3 = scmp.lt.s32.totalorder (!%p172_p2), %s849_s16, 1  ;;  %v222_v0 = vlaneseq (!%p172_p2)  ;;  %vm249_vm0 = vsmask.f32 (!%p172_p2), 256  ;;  %v989_v1 = vmov (!%p172_p2), 1935823168   ;;  %v962_v5 = vld [vmem:[%s1155_s1 + $0x40] sm:$0xff] (!%p172_p2)  }
   0x6   : > { %175 = sbr.rel (%p172_p2) target bundleno = 388 (0x184), region = 36  ;;  %v220_v2 = vunpack.c.l.s4 (!%p172_p2), %v989_v1  ;;  %vm250_vm1 = vsmask.f32 (!%p172_p2), 1284  ;;  %vm252_vm2 = vsmask.f32 (!%p172_p2), 2312  ;;  %914 = vmatprep.subr.bf16.mxu0 (!%p172_p2), %v962_v5  ;;  %v963_v20 = vld [vmem:[%s1155_s1] sm:$0xff] (!%p172_p2)  }
   0x7   : > { %v1031_v3 = vshrl.u32 (!%p172_p2), %v222_v0, 7  ;;  %vm251_vm3 = vmor (!%p172_p2), %vm249_vm0, %vm250_vm1  ;;  %vm254_vm4 = vsmask.f32 (!%p172_p2), 3340  ;;  %vm256_vm5 = vsmask.f32 (!%p172_p2), 4368  ;;  %vm227_vm14 = vcmask (!%p172_p2), 254976   ;;  %915 = vmatpush3.bf16.msra.mxu0 (!%p172_p2), %v963_v20 }
   0x8   : > { %v221_v4 = vunpack.c.0.s8 (!%p172_p2), %v220_v2  ;;  %vm253_vm6 = vmor (!%p172_p2), %vm251_vm3, %vm252_vm2  ;;  %vm258_vm7 = vsmask.f32 (!%p172_p2), 5396  ;;  %vm260_vm10 = vsmask.f32 (!%p172_p2), 6424  ;;  %vm262_vm13 = vsmask.f32 (!%p172_p2), 7452 }
   0x9   : > { %vm255_vm8 = vmor (!%p172_p2), %vm253_vm6, %vm254_vm4  ;;  %v964_v28 = vld [vmem:[%s1155_s1 + $0x48] sm:$0xff] (!%p172_p2)   ;;  %s990_s27 = smov (!%p172_p2), 32   ;;  %s991_s28 = smov (!%p172_p2), 64   ;;  %v966_v42 = vld [vmem:[%s1155_s1 + $0x50] sm:$0xff] (!%p172_p2)   ;;  %v993_v63 = vmov (!%p172_p2), 0.0   ;;  %vm994_vm0 = vmmov (!%p172_p2), 0  }
   0xa   : > { %vm257_vm9 = vmor (!%p172_p2), %vm255_vm8, %vm256_vm5  ;;  %v1043_v6 = vsub.s32 (!%p172_p2), %v221_v4, %v1031_v3  ;;  %916 = vmatprep.subr.bf16.mxu0 (!%p172_p2), %v964_v28  ;;  %v965_v39 = vld [vmem:[%s1155_s1 + $0x8] sm:$0xff] (!%p172_p2)   ;;  %v967_v47 = vld [vmem:[%s1155_s1 + $0x10] sm:$0xff] (!%p172_p2)   ;;  %939 = vmatprep.subr.bf16.mxu1 (!%p172_p2), %v993_v63  ;;  %vm293_vm1 = vcmask (!%p172_p2), 517376   ;;  %vm326_vm2 = vcmask (!%p172_p2), 779776   ;;  %vm344_vm3 = vcmask (!%p172_p2), 1042176  }
   0xb   : > { %vm259_vm11 = vmor (!%p172_p2), %vm257_vm9, %vm258_vm7  ;;  %917 = vmatpush3.bf16.msra.mxu0 (!%p172_p2), %v965_v39  ;;  %v968_v50 = vld [vmem:[%s1155_s1 + $0x58] sm:$0xff] (!%p172_p2)   ;;  %v970_v62 = vld [vmem:[%s1155_s1 + $0x60] sm:$0xff] (!%p172_p2)   ;;  %943 = vmatprep.mubr.msk.bf16.mxu1 (!%p172_p2), %vm994_vm0, %v993_v63  ;;  %vm694_vm4 = vcmask (!%p172_p2), 261120  }
   0xc   : > { %vm261_vm12 = vmor (!%p172_p2), %vm259_vm11, %vm260_vm10  ;;  %918 = vmatprep.subr.bf16.mxu0 (!%p172_p2), %v966_v42  ;;  %v969_v55 = vld [vmem:[%s1155_s1 + $0x18] sm:$0xff] (!%p172_p2)   ;;  %v971_v1 = vld [vmem:[%s1155_s1 + $0x20] sm:$0xff] (!%p172_p2)  }
   0xd   : > { %s1162_s16 = smov (!%p200_p3, %s849_s16), 1  ;;  %vm1060_vm15 = vmor %vm261_vm12, %vm262_vm13  ;;  %v972_v2 = vld [vmem:[%s1155_s1 + $0x68] sm:$0xff]   ;;  %v975_v4 = vld [vmem:[%s1155_s1 + $0x80] sm:$0xff]  }
   0xe   : > { %s913_s17 = sshll.u32 %s1162_s16, 3  ;;  %v973_v5 = vld [vmem:[%s1155_s1 + $0x28] sm:$0xff]   ;;  %940 = vmatpush3.bf16.msra.mxu1 %v975_v4  ;;  %s856_s10 = sshll.u32 %s1162_s16, 1 }
   0xf   : > { %s1037_s20 = scalar_lea.vmem %s1154_s0, %s913_s17  ;;  %919 = vmatpush3.bf16.msra.mxu0 %v967_v47  ;;  %s992_s17 = smov 96   ;;  %941 = vmatprep.subr.bf16.mxu1 %v993_v63 }
  0x10   : > { %v875_v7 = vld.sshfl [vmem:[%s1037_s20 + $0x2] sm:$0x10 pattern:$0x75316420]  ;;  %v878_v8 = vld [vmem:[%s1037_s20 + $0x4] sm:$0x1]  ;;  %920 = vmatprep.subr.bf16.mxu0 %v968_v50  ;;  %s208_s13 = scalar_lea.vmem %s1157_s3, %s856_s10  ;;  %s212_s19 = scalar_lea.vmem %s1158_s4, %s856_s10 }
  0x11   : > { %v1048_v9 = vld.sshfl [vmem:[%s1037_s20 + $0x4] sm:$0x10 pattern:$0x75316420]  ;;  %v879_v10 = vld [vmem:[%s1037_s20 + $0x6] sm:$0x1] }
  0x12   : > { %v877_v11 = vcombine.high %v875_v7, %v1048_v9  ;;  %v862_v12 = vld.sshfl [vmem:[%s1037_s20] sm:$0x10 pattern:$0x75316420]  ;;  %v431_v14 = vcombine.low %v878_v8, %v879_v10  ;;  %v865_v26 = vld [vmem:[%s1037_s20 + $0x2] sm:$0x1] }
  0x13   : > { %v864_v13 = vcombine.high %v862_v12, %v875_v7  ;;  %v858_v15 = vld.sshfl [vmem:[%s1037_s20] sm:$0x11 pattern:$0x75316420]  ;;  %v866_v27 = vld [vmem:[%s1037_s20 + $0x4] sm:$0x1]  ;;  %921 = vmatpush3.bf16.msra.mxu0 %v969_v55 }
  0x14   : > { %v421_v16 = vrot.slane %v877_v11, %v1043_v6  ;;  %v859_v17 = vld.sshfl [vmem:[%s1037_s20 + $0x2] sm:$0x11 pattern:$0x75316420]  ;;  %v240_v18 = vcombine.high %v858_v15, %v858_v15  ;;  %v265_v19 = vshrl.u32 %v858_v15, 16  ;;  %v438_v33 = vrot.slane %v431_v14, %v1043_v6  ;;  %922 = vmatprep.subr.bf16.mxu0 %v970_v62  ;;  %v978_v7 = vld [vmem:[%s1155_s1 + $0x88] sm:$0xff]  }
  0x15   : > { %v322_v21 = vrot.slane %v864_v13, %v1043_v6  ;;  %v248_v22 = vcombine.high %v859_v17, %v859_v17  ;;  %v274_v24 = vshrl.u32 %v859_v17, 16  ;;  %v882_v25 = vld.sshfl [vmem:[%s1037_s20 + $0x4] sm:$0x11 pattern:$0x75316420]  ;;  %v333_v45 = vcombine.low %v865_v26, %v866_v27  ;;  %v976_v8 = vld [vmem:[%s1155_s1 + $0x30] sm:$0xff]   ;;  %942 = vmatpush3.bf16.msra.mxu1 %v978_v7 }
  0x16   : > { %422 = vrot.lane.b32.xlu0 %v421_v16, %s990_s27  ;;  %v270_v29 = vshll.u32 %v240_v18, 16  ;;  %v883_v30 = vld.sshfl [vmem:[%s1037_s20 + $0x6] sm:$0x11 pattern:$0x75316420]  ;;  %v454_v31 = vcombine.high %v882_v25, %v882_v25  ;;  %v464_v32 = vshrl.u32 %v882_v25, 16 }
  0x17   : > { %323 = vrot.lane.b32.xlu1 %v322_v21, %s991_s28  ;;  %v279_v34 = vshll.u32 %v248_v22, 16  ;;  %v462_v35 = vcombine.high %v883_v30, %v883_v30  ;;  %v473_v36 = vshrl.u32 %v883_v30, 16  ;;  %v889_v48 = vld.sshfl [vmem:[%s1037_s20 + $0x6] sm:$0x10 pattern:$0x75316420]  ;;  %v340_v58 = vrot.slane %v333_v45, %v1043_v6  ;;  %923 = vmatpush3.bf16.msra.mxu0 %v971_v1 }
  0x18   : > { %v272_v37 = vsel %vm1060_vm15, %v265_v19, %v270_v29  ;;  %v469_v38 = vshll.u32 %v454_v31, 16  ;;  %v890_v53 = vcombine.high %v1048_v9, %v889_v48  ;;  %v214_v56 = vld [vmem:[%s1037_s20] sm:$0x1]  ;;  %v215_v60 = vld [vmem:[%s1037_s20 + $0x2] sm:$0x1]  ;;  %924 = vmatprep.subr.bf16.mxu0 %v972_v2  ;;  %v977_v9 = vld [vmem:[%s1155_s1 + $0x78] sm:$0xff]  }
  0x19   : > { %v281_v40 = vsel %vm1060_vm15, %v274_v24, %v279_v34  ;;  %v478_v41 = vshll.u32 %v462_v35, 16  ;;  %v218_v61 = vcombine.low %v214_v56, %v215_v60  ;;  %v979_v10 = vld [vmem:[%s1155_s1 + $0x38] sm:$0xff]   ;;  %v995_v15 = vmov 1983009808   ;;  %v778_v30 = vld [vmem:[%s208_s13] sm:$0x3] }
  0x1a   : > { %v282_v43 = vcombine.low %v272_v37, %v281_v40  ;;  %v471_v44 = vsel %vm1060_vm15, %v464_v32, %v469_v38  ;;  %v520_v59 = vrot.slane %v890_v53, %v1043_v6  ;;  %v570_v16 = vunpack.c.l.s4 %v995_v15 }
  0x1b   : > { %439 = vrot.lane.b32.xlu1 %v438_v33, %s991_s28  ;;  %v480_v46 = vsel %vm1060_vm15, %v473_v36, %v478_v41  ;;  %v384_v49 = vcombine.low %v281_v40, %v471_v44  ;;  %v225_v0 = vrot.slane %v218_v61, %v1043_v6  ;;  %925 = vmatpush3.bf16.msra.mxu0 %v973_v5  ;;  %v779_v37 = vunpack.c.l.bf16 %v778_v30 }
  0x1c   : > { %v289_v51 = vrot.slane %v282_v43, %v1043_v6  ;;  %v481_v52 = vcombine.low %v471_v44, %v480_v46  ;;  %522 = vst.msk [vmem:[#allocation2 + $0x4] sm:$0x3] %vm227_vm14, %v520_v59  ;;  %v571_v19 = vunpack.c.0.s8 %v570_v16 }
  0x1d   : > { %v391_v54 = vrot.slane %v384_v49, %v1043_v6  ;;  %228 = vst.msk [vmem:[#allocation2] sm:$0x3] %vm227_vm14, %v225_v0 }
  0x1e   : > { %290 = vrot.lane.b32.xlu0 %v289_v51, %s990_s27  ;;  %v488_v57 = vrot.slane %v481_v52, %v1043_v6  ;;  %v974_v6 = vld [vmem:[%s1155_s1 + $0x70] sm:$0xff]   ;;  %v574_v20 = vsub.s32 %v571_v19, %v1031_v3  ;;  %v891_v3 = vld [vmem:[%s1156_s2] ss:$0 sm:$0xff] }
  0x1f   : > { %393 = vst.msk [vmem:[#allocation2 + $0x2] sm:$0x3] %vm227_vm14, %v391_v54  ;;  %926 = vmatprep.subr.bf16.mxu0 %v974_v6 }
  0x20   : > { %489 = vrot.lane.b32.xlu1 %v488_v57, %s992_s17  ;;  %927 = vmatpush3.bf16.msra.mxu0 %v976_v8 }
  0x21   : > { %928 = vmatprep.subr.bf16.mxu0 %v977_v9 }
  0x22   : > { %341 = vrot.lane.b32.xlu0 %v340_v58, %s992_s17 }
  0x24   : > { %929 = vmatpush3.bf16.msra.mxu0 %v979_v10 }
  0x88   : > { %v423_v11 = vpop.permute.xlu0 %422 }
  0x89   : > { %425 = vst.msk [vmem:[#allocation2 + $0x2] sm:$0x3] %vm293_vm1, %v423_v11  ;;  %v324_v12 = vpop.permute.xlu1 %323 }
  0x8d   : > { %v440_v13 = vpop.permute.xlu1 %439 }
  0x8e   : > { %442 = vst.msk [vmem:[#allocation2 + $0x2] sm:$0x3] %vm326_vm2, %v440_v13 }
  0x90   : > { %v291_v14 = vpop.permute.xlu0 %290 }
  0x91   : > { %294 = vst.msk [vmem:[#allocation2] sm:$0x3] %vm293_vm1, %v291_v14 }
  0x92   : > { %327 = vst.msk [vmem:[#allocation2] sm:$0x3] %vm326_vm2, %v324_v12  ;;  %v490_v17 = vpop.permute.xlu1 %489 }
  0x93   : > { %492 = vst.msk [vmem:[#allocation2 + $0x2] sm:$0x3] %vm344_vm3, %v490_v17 }
  0x94   : > { %v342_v18 = vpop.permute.xlu0 %341 }
  0x95   : > { %345 = vst.msk [vmem:[#allocation2] sm:$0x3] %vm344_vm3, %v342_v18 }
  0x9c   : > { %v523_v21 = vld [vmem:[#allocation2] sm:$0x3f] }
  0x9d   : > { %v568_v22 = vcombine.high %v523_v21, %v523_v21  ;;  %v575_v23 = vrot.slane %v523_v21, %v574_v20 }
  0x9f   : > { %v582_v24 = vrot.slane %v568_v22, %v574_v20  ;;  %v583_v25 = vcombine.high %v575_v23, %v575_v23 }
  0xa1   : > { %730 = vmatprep.mubr.bf16.mxu0 %v583_v25  ;;  %944 = vmatmul.mubr.msk.bf16.vlgmr.msra.gmra.mrb[0].mxu1 %vm694_vm4, %v582_v24 }
  0xa2   : > { %731 = vmatmul.mubr.bf16.vlgmr.msra.gmra.mrb[0].mxu0 %v575_v23 }
 0x174   : > { %v772_v26 = vpop.f32.mrb[0].mxu1 }
 0x175   : > { %v930_v27 = vpop.f32.mrb[0].mxu0  ;;  %v945_v28 = vpop.f32.mrb[1].mxu1 }
 0x176   : > { %v931_v29 = vpop.f32.mrb[1].mxu0  ;;  %v775_v31 = vpop.f32.mrb[2].mxu1 }
 0x177   : > { %v932_v32 = vadd.f32 %v931_v29, %v930_v27  ;;  %v933_v33 = vpop.f32.mrb[2].mxu0  ;;  %v946_v34 = vpop.f32.mrb[3].mxu1 }
 0x178   : > { %v934_v35 = vpop.f32.mrb[3].mxu0 }
 0x179   : > { %v733_v36 = vadd.f32 %v932_v32, %v891_v3 }
 0x17b   : > { %v773_v38 = vadd.f32 %v772_v26, %v733_v36 }
 0x17d   : > { %v780_v39 = vadd.f32 %v779_v37, %v773_v38 }
 0x17f   : > { %v781_v40 = vmax.f32 %v780_v39, 0.0 }
 0x181   : > { %v782_v41 = vpack.c.bf16 %v781_v40, %v781_v40 }
 0x183   : > { %783 = vst [vmem:[%s212_s19] sm:$0x3] %v782_v41 }
 0x184 PF: > { %s14_s15 = sadd.s32 1, %s987_s15  }
 0x185   : > { %p11_p4 = scmp.ge.s32.totalorder %s14_s15, 4  }
 0x187   :  { %13 = sbr.rel (!%p11_p4) target bundleno = 1 (0x1), region = 71 }

// kernel: _lambda_.27
= control target key start
LH: loop header
LB: loop body
LE: loop exit
PB: predicated region body
PF: predicated region fallthrough
CT: control target
= control target key end

     0   :  { %s1220_s12 = smov 0   ;;  %s1382_s0 = inlined_call_operand.vmem [shape: bf16[2,6,6,16], index: 0, kind: input, shape index: {}]   ;;  %s1383_s1 = inlined_call_operand.vmem [shape: bf16[144,128], index: 1, kind: input, shape index: {}]   ;;  %s1384_s2 = inlined_call_operand.vmem [shape: f32[1,128], index: 2, kind: input, shape index: {}]   ;;  %s1385_s3 = inlined_call_operand.vmem [shape: bf16[2,16,128], index: 3, kind: output, shape index: {}]  }
   0x1 LB: > { %s1053_s13 = sadd.s32 4294967295, %s1189_s12   ;;  %p1057_p0 = scmp.ge.s32.totalorder %s1189_s12, 1  ;;  %s1189_s12 = sphi %s1220_s12, %s13_s12  }
   0x2   : > { %p137_p1 = scmp.lt.s32.totalorder %s1189_s12, 3 }
   0x4   : > { %p138_p2 = pnand %p1057_p0, %p137_p1 }
   0x5   : > { %p161_p3 = scmp.lt.s32.totalorder (!%p138_p2), %s1053_s13, 1  ;;  %vm365_vm0 = vcmask (!%p138_p2), 1040384   ;;  %vm366_vm1 = vcmask (!%p138_p2), 1042434   ;;  %vm368_vm3 = vcmask (!%p138_p2), 1044484   ;;  %v1166_v0 = vld [vmem:[%s1383_s1] sm:$0xff] (!%p138_p2)   ;;  %v185_v3 = vlaneseq (!%p138_p2)  ;;  %v1167_v5 = vld [vmem:[%s1383_s1 + $0x8] sm:$0xff] (!%p138_p2)  }
   0x6   : > { %141 = sbr.rel (%p138_p2) target bundleno = 400 (0x190), region = 32  ;;  %vm367_vm2 = vmor (!%p138_p2), %vm365_vm0, %vm366_vm1  ;;  %v1191_v1 = vmov (!%p138_p2), 1983009808   ;;  %v1192_v4 = vmov (!%p138_p2), 0   ;;  %vm240_vm4 = vsmask.f32 (!%p138_p2), 1280 }
   0x7   : > { %v183_v2 = vunpack.c.l.s4 (!%p138_p2), %v1191_v1  ;;  %945 = vmatprep.subr.bf16.mxu0 (!%p138_p2), %v1192_v4  ;;  %vm369_vm5 = vmor (!%p138_p2), %vm367_vm2, %vm368_vm3  ;;  %vm370_vm6 = vcmask (!%p138_p2), 1046534   ;;  %vm241_vm7 = vsmask.f32 (!%p138_p2), 3336  ;;  %vm243_vm8 = vsmask.f32 (!%p138_p2), 5392  ;;  %v1168_v16 = vld [vmem:[%s1383_s1 + $0x10] sm:$0xff] (!%p138_p2)  }
   0x8   : > { %946 = vmatpush1.bf16.msra.mxu0 (!%p138_p2), %v1166_v0  ;;  %v186_v8 = vshrl.u32 (!%p138_p2), %v185_v3, 7  ;;  %vm1247_vm9 = vmor (!%p138_p2), %vm369_vm5, %vm370_vm6  ;;  %vm245_vm10 = vsmask.f32 (!%p138_p2), 7448  ;;  %v1169_v31 = vld [vmem:[%s1383_s1 + $0x18] sm:$0xff] (!%p138_p2)   ;;  %v1170_v45 = vld [vmem:[%s1383_s1 + $0x20] sm:$0xff] (!%p138_p2)   ;;  %s1193_s28 = smov (!%p138_p2), 48  }
   0x9   : > { %947 = vmatprep.subr.bf16.mxu0 (!%p138_p2), %v1192_v4  ;;  %v184_v7 = vunpack.c.0.s8 (!%p138_p2), %v183_v2  ;;  %vm1283_vm11 = vmor (!%p138_p2), %vm240_vm4, %vm241_vm7  ;;  %s1194_s29 = smov (!%p138_p2), 32   ;;  %v1173_v38 = vld [vmem:[%s1383_s1 + $0x28] sm:$0xff] (!%p138_p2)   ;;  %s1195_s9 = smov (!%p138_p2), 16   ;;  %vm198_vm14 = vcmask (!%p138_p2), 130048   ;;  %vm323_vm15 = vcmask (!%p138_p2), 261248   ;;  %vm408_vm0 = vcmask (!%p138_p2), 392448  }
   0xa   : > { %vm1301_vm12 = vmor (!%p138_p2), %vm1283_vm11, %vm243_vm8  ;;  %s1196_s14 = smov (!%p138_p2), 64   ;;  %s1197_s15 = smov (!%p138_p2), 80   ;;  %vm439_vm1 = vcmask (!%p138_p2), 523648   ;;  %vm557_vm2 = vcmask (!%p138_p2), 654848   ;;  %vm635_vm3 = vcmask (!%p138_p2), 786048   ;;  %vm666_vm4 = vcmask (!%p138_p2), 917248  }
   0xb   : > { %v1256_v24 = vsub.s32 (!%p138_p2), %v184_v7, %v186_v8  ;;  %vm1311_vm13 = vmor (!%p138_p2), %vm1301_vm12, %vm245_vm10  ;;  %s1199_s17 = smov (!%p138_p2), 112   ;;  %vm784_vm5 = vcmask (!%p138_p2), 1048448  }
   0xc   : > { %948 = vmatpush1.bf16.msra.mxu0 (!%p138_p2), %v1167_v5 }
   0xd   : > { %s1395_s13 = smov (!%p161_p3, %s1053_s13), 1  ;;  %949 = vmatprep.subr.bf16.mxu0 %v1192_v4 }
   0xe   : > { %s1144_s16 = smul.u32 24, %s1395_s13  ;;  %s1136_s20 = sshll.u32 %s1395_s13, 3 }
   0xf   : > { %s170_s23 = scalar_lea.vmem %s1385_s3, %s1136_s20 }
  0x10   : > { %s1238_s19 = scalar_lea.vmem %s1382_s0, %s1144_s16  ;;  %950 = vmatpush1.bf16.msra.mxu0 %v1168_v16  ;;  %s1198_s16 = smov 96  }
  0x11   : > { %v1065_v6 = vld.sshfl [vmem:[%s1238_s19] sm:$0x12 pattern:$0x76325410]  ;;  %951 = vmatprep.subr.bf16.mxu0 %v1192_v4 }
  0x12   : > { %v1066_v9 = vld.sshfl [vmem:[%s1238_s19 + $0x4] sm:$0x12 pattern:$0x76325410]  ;;  %v340_v10 = vcombine.high %v1065_v6, %v1065_v6  ;;  %v1069_v11 = vrot.slane %v1065_v6, 9 }
  0x13   : > { %v1067_v12 = vld.sshfl [vmem:[%s1238_s19 + $0x8] sm:$0x12 pattern:$0x76325410]  ;;  %v348_v13 = vcombine.high %v1066_v9, %v1066_v9  ;;  %v1070_v15 = vrot.slane %v1066_v9, 9 }
  0x14   : > { %v1068_v17 = vld.sshfl [vmem:[%s1238_s19 + $0xc] sm:$0x12 pattern:$0x76325410]  ;;  %v356_v18 = vcombine.high %v1067_v12, %v1067_v12  ;;  %v374_v19 = vrot.slane %v340_v10, 7  ;;  %v1071_v20 = vrot.slane %v1067_v12, 9  ;;  %952 = vmatpush1.bf16.msra.mxu0 %v1169_v31 }
  0x15   : > { %v364_v21 = vcombine.high %v1068_v17, %v1068_v17  ;;  %v378_v22 = vrot.slane %v348_v13, 7  ;;  %v1072_v23 = vrot.slane %v1068_v17, 9  ;;  %v1177_v27 = vld.sshfl [vmem:[%s1238_s19 + $0x4] sm:$0xf pattern:$0x76325410]  ;;  %953 = vmatprep.subr.bf16.mxu0 %v1192_v4 }
  0x16   : > { %v375_v25 = vsel %vm1247_vm9, %v1069_v11, %v374_v19  ;;  %v382_v26 = vrot.slane %v356_v18, 7  ;;  %v1178_v30 = vld.sshfl [vmem:[%s1238_s19 + $0xc] sm:$0xf pattern:$0x76325410] }
  0x17   : > { %v1263_v28 = vsel %vm1247_vm9, %v1070_v15, %v378_v22  ;;  %v386_v29 = vrot.slane %v364_v21, 7  ;;  %v1061_v34 = vld.sshfl [vmem:[%s1238_s19] sm:$0x13 pattern:$0x76325410]  ;;  %v435_v46 = vcombine.low %v1177_v27, %v1178_v30 }
  0x18   : > { %v1271_v32 = vsel %vm1247_vm9, %v1071_v20, %v382_v26  ;;  %v388_v33 = vcombine.low %v375_v25, %v1263_v28  ;;  %v1062_v36 = vld.sshfl [vmem:[%s1238_s19 + $0x4] sm:$0x13 pattern:$0x76325410]  ;;  %v215_v37 = vcombine.high %v1061_v34, %v1061_v34  ;;  %v248_v39 = vshrl.u32 %v1061_v34, 16  ;;  %954 = vmatpush1.bf16.msra.mxu0 %v1170_v45 }
  0x19   : > { %v1278_v35 = vsel %vm1247_vm9, %v1072_v23, %v386_v29  ;;  %v1063_v42 = vld.sshfl [vmem:[%s1238_s19 + $0x8] sm:$0x13 pattern:$0x76325410]  ;;  %v223_v43 = vcombine.high %v1062_v36, %v1062_v36  ;;  %v251_v44 = vshll.u32 %v1061_v34, 16  ;;  %v262_v55 = vshrl.u32 %v1062_v36, 16  ;;  %436 = vrot.lane.b32.xlu1 %v435_v46, %s1193_s28  ;;  %955 = vmatprep.subr.bf16.mxu0 %v1192_v4 }
  0x1a   : > { %v389_v40 = vcombine.low %v1271_v32, %v1278_v35  ;;  %v396_v41 = vrot.slane %v388_v33, %v1256_v24  ;;  %v1064_v47 = vld.sshfl [vmem:[%s1238_s19 + $0xc] sm:$0x13 pattern:$0x76325410]  ;;  %v231_v48 = vcombine.high %v1063_v42, %v1063_v42  ;;  %v250_v49 = vrot.slane %v248_v39, 6 }
  0x1b   : > { %v257_v50 = vshll.u32 %v215_v37, 16  ;;  %v239_v52 = vcombine.high %v1064_v47, %v1064_v47  ;;  %v253_v54 = vrot.slane %v251_v44, 7  ;;  %v265_v57 = vshll.u32 %v1062_v36, 16 }
  0x1c   : > { %v1296_v51 = vrot.slane %v389_v40, %v1256_v24  ;;  %v271_v58 = vshll.u32 %v223_v43, 16  ;;  %v276_v59 = vshrl.u32 %v1063_v42, 16  ;;  %v264_v62 = vrot.slane %v262_v55, 6  ;;  %956 = vmatpush1.bf16.msra.mxu0 %v1173_v38  ;;  %v1121_v38 = vld [vmem:[%s1384_s2] ss:$0 sm:$0xff] }
  0x1d   : > { %v259_v56 = vrot.slane %v257_v50, 7  ;;  %v254_v61 = vor.u32 %v253_v54, %v250_v49  ;;  %v279_v63 = vshll.u32 %v1063_v42, 16  ;;  %v1084_v0 = vld.sshfl [vmem:[%s1238_s19 + $0x10] sm:$0x13 pattern:$0x76325410]  ;;  %v615_v46 = vcombine.low %v1263_v28, %v1271_v32  ;;  %957 = vmatprep.subr.bf16.mxu0 %v1192_v4 }
  0x1e   : > { %v404_v60 = vcombine.low %v396_v41, %v1296_v51  ;;  %v267_v2 = vrot.slane %v265_v57, 7  ;;  %v273_v3 = vrot.slane %v271_v58, 7  ;;  %v278_v5 = vrot.slane %v276_v59, 6 }
  0x1f   : > { %v285_v6 = vshll.u32 %v231_v48, 16  ;;  %v1092_v7 = vld.sshfl [vmem:[%s1238_s19 + $0x10] sm:$0x12 pattern:$0x76325410]  ;;  %v255_v8 = vrot.slane %v254_v61, 2  ;;  %v480_v16 = vcombine.high %v1084_v0, %v1084_v0  ;;  %v623_v58 = vrot.slane %v615_v46, %v1256_v24 }
  0x20   : > { %405 = vrot.lane.b32.xlu0 %v404_v60, %s1194_s29  ;;  %v281_v9 = vrot.slane %v279_v63, 7  ;;  %v290_v10 = vshrl.u32 %v1064_v47, 16  ;;  %v293_v11 = vshll.u32 %v1064_v47, 16  ;;  %v268_v12 = vor.u32 %v267_v2, %v264_v62  ;;  %v1174_v47 = vld [vmem:[%s1383_s1 + $0x30] sm:$0xff]  }
  0x21   : > { %v287_v13 = vrot.slane %v285_v6, 7  ;;  %v299_v15 = vshll.u32 %v239_v52, 16  ;;  %v260_v17 = vsel %vm1311_vm13, %v255_v8, %v259_v56  ;;  %v524_v23 = vshrl.u32 %v1084_v0, 16  ;;  %958 = vmatpush1.bf16.msra.mxu0 %v1174_v47 }
  0x22   : > { %v282_v18 = vor.u32 %v281_v9, %v278_v5  ;;  %v292_v19 = vrot.slane %v290_v10, 6  ;;  %v295_v20 = vrot.slane %v293_v11, 7  ;;  %v269_v21 = vrot.slane %v268_v12, 2  ;;  %959 = vmatprep.subr.bf16.mxu0 %v1192_v4 }
  0x23   : > { %v301_v22 = vrot.slane %v299_v15, 7  ;;  %v527_v25 = vshll.u32 %v1084_v0, 16  ;;  %v533_v29 = vshll.u32 %v480_v16, 16  ;;  %v598_v30 = vcombine.high %v1092_v7, %v1092_v7  ;;  %v1176_v16 = vld [vmem:[%s1383_s1 + $0x40] sm:$0xff]  }
  0x24   : > { %v283_v26 = vrot.slane %v282_v18, 2  ;;  %v296_v27 = vor.u32 %v295_v20, %v292_v19  ;;  %v1320_v31 = vld.sshfl [vmem:[%s1238_s19 + $0x8] sm:$0xf pattern:$0x76325410]  ;;  %v274_v33 = vsel %vm1311_vm13, %v269_v21, %v273_v3  ;;  %v526_v34 = vrot.slane %v524_v23, 6 }
  0x25   : > { %v529_v36 = vrot.slane %v527_v25, 7  ;;  %v1096_v37 = vrot.slane %v1092_v7, 9  ;;  %v303_v41 = vcombine.low %v260_v17, %v274_v33  ;;  %v535_v42 = vrot.slane %v533_v29, 7 }
  0x26   : > { %v288_v39 = vsel %vm1311_vm13, %v283_v26, %v287_v13  ;;  %v297_v40 = vrot.slane %v296_v27, 2  ;;  %v1108_v43 = vld.sshfl [vmem:[%s1238_s19 + $0x14] sm:$0x13 pattern:$0x76325410]  ;;  %v613_v45 = vrot.slane %v598_v30, 7 }
  0x27   : > { %v530_v44 = vor.u32 %v529_v36, %v526_v34  ;;  %v537_v49 = vcombine.low %v274_v33, %v288_v39  ;;  %v1180_v50 = vld.sshfl [vmem:[%s1238_s19 + $0x10] sm:$0xf pattern:$0x76325410]  ;;  %v311_v53 = vrot.slane %v303_v41, %v1256_v24  ;;  %v707_v59 = vcombine.high %v1108_v43, %v1108_v43 }
  0x28   : > { %v302_v48 = vsel %vm1311_vm13, %v297_v40, %v301_v22  ;;  %v614_v55 = vsel %vm1247_vm9, %v1096_v37, %v613_v45  ;;  %v1116_v28 = vld.sshfl [vmem:[%s1238_s19 + $0x14] sm:$0x12 pattern:$0x76325410]  ;;  %v751_v62 = vshrl.u32 %v1108_v43, 16  ;;  %v754_v63 = vshll.u32 %v1108_v43, 16 }
  0x29   : > { %v304_v52 = vcombine.low %v288_v39, %v302_v48  ;;  %v531_v54 = vrot.slane %v530_v44, 2  ;;  %v1181_v32 = vld.sshfl [vmem:[%s1238_s19] sm:$0xf pattern:$0x76325410]  ;;  %v616_v57 = vcombine.low %v1278_v35, %v614_v55  ;;  %v545_v2 = vrot.slane %v537_v49, %v1256_v24  ;;  %v1175_v35 = vld [vmem:[%s1383_s1 + $0x38] sm:$0xff]  }
  0x2a   : > { %v1182_v56 = vld.sshfl [vmem:[%s1238_s19 + $0x8] sm:$0xf pattern:$0x76325410]  ;;  %v760_v5 = vshll.u32 %v707_v59, 16  ;;  %v753_v7 = vrot.slane %v751_v62, 6  ;;  %v825_v12 = vcombine.high %v1116_v28, %v1116_v28  ;;  %960 = vmatpush1.bf16.msra.mxu0 %v1175_v35  ;;  %v662_v21 = vcombine.low %v1320_v31, %v1180_v50 }
  0x2b   : > { %v318_v60 = vrot.slane %v304_v52, %v1256_v24  ;;  %v536_v61 = vsel %vm1311_vm13, %v531_v54, %v535_v42  ;;  %v630_v3 = vrot.slane %v616_v57, %v1256_v24  ;;  %v756_v8 = vrot.slane %v754_v63, 7  ;;  %961 = vmatprep.subr.bf16.mxu0 %v1192_v4 }
  0x2c   : > { %v538_v0 = vcombine.low %v302_v48, %v536_v61  ;;  %v762_v11 = vrot.slane %v760_v5, 7  ;;  %v1120_v15 = vrot.slane %v1116_v28, 9  ;;  %v840_v18 = vrot.slane %v825_v12, 7 }
  0x2d   : > { %v319_v6 = vcombine.low %v311_v53, %v318_v60  ;;  %v631_v10 = vcombine.low %v623_v58, %v630_v3  ;;  %v757_v13 = vor.u32 %v756_v8, %v753_v7  ;;  %v196_v20 = vcombine.low %v1181_v32, %v1182_v56 }
  0x2e   : > { %v552_v9 = vrot.slane %v538_v0, %v1256_v24  ;;  %v841_v22 = vsel %vm1247_vm9, %v1120_v15, %v840_v18  ;;  %962 = vmatpush1.bf16.msra.mxu0 %v1176_v16 }
  0x2f   : > { %320 = vrot.lane.b32.xlu0 %v319_v6, %s1195_s9  ;;  %v758_v19 = vrot.slane %v757_v13, 2  ;;  %v843_v25 = vcombine.low %v614_v55, %v841_v22  ;;  %199 = vst.msk [vmem:[#allocation2] sm:$0xff] %vm198_vm14, %v196_v20 }
  0x30   : > { %v553_v17 = vcombine.low %v545_v2, %v552_v9 }
  0x31   : > { %v763_v23 = vsel %vm1311_vm13, %v758_v19, %v762_v11  ;;  %v857_v4 = vrot.slane %v843_v25, %v1256_v24 }
  0x32   : > { %554 = vrot.lane.b32.xlu1 %v553_v17, %s1196_s14  ;;  %v765_v26 = vcombine.low %v536_v61, %v763_v23 }
  0x33   : > { %632 = vrot.lane.b32.xlu0 %v631_v10, %s1197_s15  ;;  %v858_v29 = vcombine.low %v1296_v51, %v857_v4 }
  0x34   : > { %v779_v27 = vrot.slane %v765_v26, %v1256_v24 }
  0x35   : > { %860 = vst.msk [vmem:[#allocation2 + $0x8] sm:$0xff] %vm198_vm14, %v858_v29 }
  0x36   : > { %663 = vrot.lane.b32.xlu1 %v662_v21, %s1198_s16  ;;  %v780_v14 = vcombine.low %v318_v60, %v779_v27 }
  0x38   : > { %781 = vrot.lane.b32.xlu0 %v780_v14, %s1199_s17 }
  0x3c   : > { %v862_v1 = vld [vmem:[#allocation2 + $0x8] sm:$0xff] }
  0x3d   : > { %1131 = vmatprep.mubr.msk.bf16.mxu0 %vm198_vm14, %v862_v1 }
  0x8b   : > { %v437_v31 = vpop.permute.xlu1 %436 }
  0x92   : > { %v406_v30 = vpop.permute.xlu0 %405 }
  0xa1   : > { %v321_v33 = vpop.permute.xlu0 %320 }
  0xa2   : > { %324 = vst.msk [vmem:[#allocation2] sm:$0xff] %vm323_vm15, %v321_v33 }
  0xa3   : > { %409 = vst.msk [vmem:[#allocation2] sm:$0xff] %vm408_vm0, %v406_v30 }
  0xa4   : > { %v555_v24 = vpop.permute.xlu1 %554  ;;  %440 = vst.msk [vmem:[#allocation2] sm:$0xff] %vm439_vm1, %v437_v31 }
  0xa5   : > { %558 = vst.msk [vmem:[#allocation2] sm:$0xff] %vm557_vm2, %v555_v24  ;;  %v633_v51 = vpop.permute.xlu0 %632 }
  0xa6   : > { %636 = vst.msk [vmem:[#allocation2] sm:$0xff] %vm635_vm3, %v633_v51 }
  0xa8   : > { %v664_v34 = vpop.permute.xlu1 %663 }
  0xa9   : > { %667 = vst.msk [vmem:[#allocation2] sm:$0xff] %vm666_vm4, %v664_v34 }
  0xaa   : > { %v782_v36 = vpop.permute.xlu0 %781 }
  0xab   : > { %785 = vst.msk [vmem:[#allocation2] sm:$0xff] %vm784_vm5, %v782_v36 }
  0xb2   : > { %v861_v37 = vld [vmem:[#allocation2] sm:$0xff] }
  0xb3   : > { %978 = vmatmul.mubr.bf16.vlgmr.msra.gmra.mrb[0].mxu0 %v861_v37 }
 0x186   : > { %v979_v39 = vpop.f32.mrb[0].mxu0 }
 0x187   : > { %v980_v40 = vadd.f32 %v1121_v38, %v979_v39  ;;  %v981_v41 = vpop.f32.mrb[1].mxu0 }
 0x188   : > { %v982_v42 = vpop.f32.mrb[2].mxu0 }
 0x189   : > { %v983_v43 = vadd.f32 %v1121_v38, %v982_v42  ;;  %v984_v44 = vpop.f32.mrb[3].mxu0  ;;  %v986_v45 = vmax.f32 %v980_v40, 0.0 }
 0x18b   : > { %v987_v46 = vmax.f32 %v983_v43, 0.0 }
 0x18d   : > { %v1142_v47 = vpack.c.bf16 %v987_v46, %v986_v45 }
 0x18f   : > { %1143 = vst [vmem:[%s170_s23] sm:$0xff] %v1142_v47  }
 0x190 PF: > { %s13_s12 = sadd.s32 1, %s1189_s12  }
 0x191   : > { %p10_p4 = scmp.ge.s32.totalorder %s13_s12, 4  }
 0x193   :  { %12 = sbr.rel (!%p10_p4) target bundleno = 1 (0x1), region = 64 }

// kernel: _lambda_.26
= control target key start
LH: loop header
LB: loop body
LE: loop exit
PB: predicated region body
PF: predicated region fallthrough
CT: control target
= control target key end

     0   :  { %s1469_s12 = smov 0   ;;  %s1699_s0 = inlined_call_operand.vmem [shape: bf16[2,6,6,48], index: 0, kind: input, shape index: {}]   ;;  %s1700_s1 = inlined_call_operand.vmem [shape: bf16[432,128], index: 1, kind: input, shape index: {}]   ;;  %s1701_s2 = inlined_call_operand.vmem [shape: f32[1,128], index: 2, kind: input, shape index: {}]   ;;  %s1702_s3 = inlined_call_operand.vmem [shape: bf16[2,16,128], index: 3, kind: output, shape index: {}]  }
   0x1 LB: > { %s1244_s13 = sadd.s32 4294967295, %s1438_s12   ;;  %p1248_p0 = scmp.ge.s32.totalorder %s1438_s12, 1  ;;  %s1438_s12 = sphi %s1469_s12, %s13_s12  }
   0x2   : > { %p137_p1 = scmp.lt.s32.totalorder %s1438_s12, 3 }
   0x4   : > { %p138_p2 = pnand %p1248_p0, %p137_p1 }
   0x5   : > { %p161_p3 = scmp.lt.s32.totalorder (!%p138_p2), %s1244_s13, 1  ;;  %v185_v0 = vlaneseq (!%p138_p2)  ;;  %vm365_vm0 = vcmask (!%p138_p2), 1040384   ;;  %vm366_vm1 = vcmask (!%p138_p2), 1042434   ;;  %v1440_v1 = vmov (!%p138_p2), 1983009808   ;;  %v1397_v5 = vld [vmem:[%s1700_s1 + $0x80] sm:$0xff] (!%p138_p2)  }
   0x6   : > { %141 = sbr.rel (%p138_p2) target bundleno = 403 (0x193), region = 32  ;;  %v183_v2 = vunpack.c.l.s4 (!%p138_p2), %v1440_v1  ;;  %vm367_vm2 = vmor (!%p138_p2), %vm365_vm0, %vm366_vm1  ;;  %vm368_vm3 = vcmask (!%p138_p2), 1044484   ;;  %vm240_vm4 = vsmask.f32 (!%p138_p2), 1280  ;;  %v1441_v6 = vmov (!%p138_p2), 0   ;;  %v1398_v9 = vld [vmem:[%s1700_s1 + $0x88] sm:$0xff] (!%p138_p2)  }
   0x7   : > { %v186_v3 = vshrl.u32 (!%p138_p2), %v185_v0, 7  ;;  %1136 = vmatprep.subr.bf16.mxu1 (!%p138_p2), %v1441_v6  ;;  %vm241_vm5 = vsmask.f32 (!%p138_p2), 3336  ;;  %vm1491_vm6 = vmor (!%p138_p2), %vm367_vm2, %vm368_vm3  ;;  %vm370_vm7 = vcmask (!%p138_p2), 1046534   ;;  %vm243_vm8 = vsmask.f32 (!%p138_p2), 5392 }
   0x8   : > { %v184_v4 = vunpack.c.0.s8 (!%p138_p2), %v183_v2  ;;  %1137 = vmatpush1.bf16.msra.mxu1 (!%p138_p2), %v1397_v5  ;;  %vm245_vm9 = vsmask.f32 (!%p138_p2), 7448  ;;  %v1399_v16 = vld [vmem:[%s1700_s1 + $0x40] sm:$0xff] (!%p138_p2)   ;;  %vm1511_vm10 = vmor (!%p138_p2), %vm1491_vm6, %vm370_vm7  ;;  %s1442_s26 = smov (!%p138_p2), 16   ;;  %v1401_v47 = vld [vmem:[%s1700_s1 + $0x90] sm:$0xff] (!%p138_p2)   ;;  %s1443_s8 = smov (!%p138_p2), 96  }
   0x9   : > { %1138 = vmatprep.subr.bf16.mxu1 (!%p138_p2), %v1441_v6  ;;  %v1400_v21 = vld [vmem:[%s1700_s1] sm:$0xff] (!%p138_p2)   ;;  %1353 = vmatprep.subr.bf16.mxu0 (!%p138_p2), %v1399_v16  ;;  %vm1524_vm11 = vmor (!%p138_p2), %vm240_vm4, %vm241_vm5  ;;  %v1402_v62 = vld [vmem:[%s1700_s1 + $0x48] sm:$0xff] (!%p138_p2)   ;;  %s1444_s22 = smov (!%p138_p2), 112   ;;  %s1445_s27 = smov (!%p138_p2), 64   ;;  %vm198_vm14 = vcmask (!%p138_p2), 392192   ;;  %vm410_vm15 = vcmask (!%p138_p2), 130048  }
   0xa   : > { %v1489_v7 = vsub.s32 (!%p138_p2), %v184_v4, %v186_v3  ;;  %1354 = vmatpush3.bf16.msra.mxu0 (!%p138_p2), %v1400_v21  ;;  %vm1550_vm12 = vmor (!%p138_p2), %vm1524_vm11, %vm243_vm8  ;;  %v1403_v4 = vld [vmem:[%s1700_s1 + $0x8] sm:$0xff] (!%p138_p2)   ;;  %s1446_s15 = smov (!%p138_p2), 48   ;;  %s1447_s21 = smov (!%p138_p2), 32   ;;  %vm441_vm0 = vcmask (!%p138_p2), 523392   ;;  %vm639_vm1 = vcmask (!%p138_p2), 261120   ;;  %vm559_vm2 = vcmask (!%p138_p2), 916992  }
   0xb   : > { %vm1568_vm13 = vmor (!%p138_p2), %vm1550_vm12, %vm245_vm9  ;;  %1355 = vmatprep.subr.bf16.mxu0 (!%p138_p2), %v1402_v62  ;;  %v1424_v19 = vld [vmem:[%s1700_s1 + $0xc8] sm:$0xff] (!%p138_p2)   ;;  %vm637_vm3 = vcmask (!%p138_p2), 1048448   ;;  %vm323_vm4 = vcmask (!%p138_p2), 785792   ;;  %vm408_vm5 = vcmask (!%p138_p2), 1048320   ;;  %vm670_vm6 = vcmask (!%p138_p2), 654592  }
   0xc   : > { %1139 = vmatpush1.bf16.msra.mxu1 (!%p138_p2), %v1398_v9  ;;  %vm788_vm7 = vcmask (!%p138_p2), 1048192  }
   0xd   : > { %s1714_s13 = smov (!%p161_p3, %s1244_s13), 1  ;;  %1140 = vmatprep.subr.bf16.mxu1 %v1441_v6 }
   0xe   : > { %s1375_s16 = smul.u32 24, %s1714_s13  ;;  %1356 = vmatpush3.bf16.msra.mxu0 %v1403_v4  ;;  %s1345_s5 = sshll.u32 %s1714_s13, 3 }
  0x10   : > { %s1487_s19 = scalar_lea.vmem %s1699_s0, %s1375_s16  ;;  %1141 = vmatpush1.bf16.msra.mxu1 %v1401_v47 }
  0x11   : > { %v1426_v10 = vld.sshfl [vmem:[%s1487_s19 + $0x4] sm:$0xf pattern:$0x76325410]  ;;  %1142 = vmatprep.subr.bf16.mxu1 %v1441_v6 }
  0x12   : > { %v1427_v11 = vld.sshfl [vmem:[%s1487_s19 + $0xc] sm:$0xf pattern:$0x76325410] }
  0x13   : > { %v1256_v12 = vld.sshfl [vmem:[%s1487_s19] sm:$0x12 pattern:$0x76325410]  ;;  %v437_v22 = vcombine.low %v1426_v10, %v1427_v11 }
  0x14   : > { %v1257_v13 = vld.sshfl [vmem:[%s1487_s19 + $0x4] sm:$0x12 pattern:$0x76325410]  ;;  %v340_v14 = vcombine.high %v1256_v12, %v1256_v12  ;;  %v1260_v15 = vrot.slane %v1256_v12, 9 }
  0x15   : > { %v1258_v17 = vld.sshfl [vmem:[%s1487_s19 + $0x8] sm:$0x12 pattern:$0x76325410]  ;;  %v348_v18 = vcombine.high %v1257_v13, %v1257_v13  ;;  %v1261_v20 = vrot.slane %v1257_v13, 9  ;;  %438 = vrot.lane.b32.xlu0 %v437_v22, %s1442_s26 }
  0x16   : > { %v1259_v23 = vld.sshfl [vmem:[%s1487_s19 + $0xc] sm:$0x12 pattern:$0x76325410]  ;;  %v356_v24 = vcombine.high %v1258_v17, %v1258_v17  ;;  %v374_v25 = vrot.slane %v340_v14, 7  ;;  %v1262_v26 = vrot.slane %v1258_v17, 9 }
  0x17   : > { %v364_v27 = vcombine.high %v1259_v23, %v1259_v23  ;;  %v378_v28 = vrot.slane %v348_v18, 7  ;;  %v1263_v29 = vrot.slane %v1259_v23, 9  ;;  %v1272_v30 = vld.sshfl [vmem:[%s1487_s19 + $0x4] sm:$0x13 pattern:$0x76325410] }
  0x18   : > { %v375_v31 = vsel %vm1511_vm10, %v1260_v15, %v374_v25  ;;  %v382_v32 = vrot.slane %v356_v24, 7  ;;  %v1273_v34 = vld.sshfl [vmem:[%s1487_s19 + $0x8] sm:$0x13 pattern:$0x76325410]  ;;  %v458_v35 = vcombine.high %v1272_v30, %v1272_v30  ;;  %v484_v36 = vshrl.u32 %v1272_v30, 16 }
  0x19   : > { %v1531_v37 = vsel %vm1511_vm10, %v1261_v20, %v378_v28  ;;  %v386_v38 = vrot.slane %v364_v27, 7  ;;  %v1274_v39 = vld.sshfl [vmem:[%s1487_s19 + $0xc] sm:$0x13 pattern:$0x76325410]  ;;  %v466_v40 = vcombine.high %v1273_v34, %v1273_v34  ;;  %v487_v41 = vshll.u32 %v1272_v30, 16 }
  0x1a   : > { %v1536_v42 = vsel %vm1511_vm10, %v1262_v26, %v382_v32  ;;  %v388_v43 = vcombine.low %v375_v31, %v1531_v37  ;;  %v1275_v44 = vld.sshfl [vmem:[%s1487_s19 + $0x10] sm:$0x13 pattern:$0x76325410]  ;;  %v474_v45 = vcombine.high %v1274_v39, %v1274_v39  ;;  %v486_v46 = vrot.slane %v484_v36, 6  ;;  %v1404_v20 = vld [vmem:[%s1700_s1 + $0x98] sm:$0xff]  }
  0x1b   : > { %v1545_v48 = vsel %vm1511_vm10, %v1263_v29, %v386_v38  ;;  %v482_v50 = vcombine.high %v1275_v44, %v1275_v44  ;;  %v489_v51 = vrot.slane %v487_v41, 7  ;;  %v493_v52 = vshll.u32 %v458_v35, 16  ;;  %v1283_v61 = vld.sshfl [vmem:[%s1487_s19 + $0x10] sm:$0x12 pattern:$0x76325410]  ;;  %1143 = vmatpush1.bf16.msra.mxu1 %v1404_v20 }
  0x1c   : > { %v389_v53 = vcombine.low %v1536_v42, %v1545_v48  ;;  %v396_v54 = vrot.slane %v388_v43, %v1489_v7  ;;  %v498_v55 = vshrl.u32 %v1273_v34, 16  ;;  %v501_v56 = vshll.u32 %v1273_v34, 16  ;;  %v1252_v25 = vld.sshfl [vmem:[%s1487_s19] sm:$0x13 pattern:$0x76325410]  ;;  %1144 = vmatprep.subr.bf16.mxu1 %v1441_v6 }
  0x1d   : > { %v490_v57 = vor.u32 %v489_v51, %v486_v46  ;;  %v495_v58 = vrot.slane %v493_v52, 7  ;;  %v507_v59 = vshll.u32 %v466_v40, 16  ;;  %v512_v60 = vshrl.u32 %v1274_v39, 16  ;;  %v1405_v30 = vld [vmem:[%s1700_s1 + $0x50] sm:$0xff]   ;;  %v1412_v20 = vld [vmem:[%s1700_s1 + $0x20] sm:$0xff]  }
  0x1e   : > { %v1563_v63 = vrot.slane %v389_v53, %v1489_v7  ;;  %v500_v1 = vrot.slane %v498_v55, 6  ;;  %v503_v2 = vrot.slane %v501_v56, 7  ;;  %v515_v3 = vshll.u32 %v1274_v39, 16  ;;  %1357 = vmatprep.subr.bf16.mxu0 %v1405_v30 }
  0x1f   : > { %v491_v5 = vrot.slane %v490_v57, 2  ;;  %v509_v8 = vrot.slane %v507_v59, 7  ;;  %v514_v9 = vrot.slane %v512_v60, 6  ;;  %v521_v10 = vshll.u32 %v474_v45, 16 }
  0x20   : > { %v404_v11 = vcombine.low %v396_v54, %v1563_v63  ;;  %v504_v12 = vor.u32 %v503_v2, %v500_v1  ;;  %v517_v13 = vrot.slane %v515_v3, 7  ;;  %v526_v14 = vshrl.u32 %v1275_v44, 16  ;;  %v1299_v39 = vld.sshfl [vmem:[%s1487_s19 + $0x14] sm:$0x13 pattern:$0x76325410] }
  0x21   : > { %v1578_v15 = vsel %vm1568_vm13, %v491_v5, %v495_v58  ;;  %v523_v16 = vrot.slane %v521_v10, 7  ;;  %v529_v17 = vshll.u32 %v1275_v44, 16  ;;  %v535_v18 = vshll.u32 %v482_v50, 16  ;;  %v1408_v5 = vld [vmem:[%s1700_s1 + $0x58] sm:$0xff]  }
  0x22   : > { %405 = vrot.lane.b32.xlu0 %v404_v11, %s1443_s8  ;;  %v505_v21 = vrot.slane %v504_v12, 2  ;;  %v518_v22 = vor.u32 %v517_v13, %v514_v9  ;;  %v528_v23 = vrot.slane %v526_v14, 6  ;;  %v600_v24 = vcombine.high %v1283_v61, %v1283_v61  ;;  %v1428_v60 = vld.sshfl [vmem:[%s1487_s19 + $0x8] sm:$0xf pattern:$0x76325410]  ;;  %s170_s8 = scalar_lea.vmem %s1702_s3, %s1345_s5 }
  0x23   : > { %v531_v26 = vrot.slane %v529_v17, 7  ;;  %v537_v27 = vrot.slane %v535_v18, 7  ;;  %v1287_v28 = vrot.slane %v1283_v61, 9  ;;  %v617_v29 = vcombine.low %v1531_v37, %v1536_v42  ;;  %v1406_v37 = vld [vmem:[%s1700_s1 + $0x10] sm:$0xff]   ;;  %v1410_v12 = vld [vmem:[%s1700_s1 + $0xa8] sm:$0xff]   ;;  %v1411_v18 = vld [vmem:[%s1700_s1 + $0x60] sm:$0xff]  }
  0x24   : > { %v510_v31 = vsel %vm1568_vm13, %v505_v21, %v509_v8  ;;  %v519_v32 = vrot.slane %v518_v22, 2  ;;  %v615_v33 = vrot.slane %v600_v24, 7  ;;  %v215_v34 = vcombine.high %v1252_v25, %v1252_v25  ;;  %1358 = vmatpush3.bf16.msra.mxu0 %v1406_v37  ;;  %v1429_v61 = vld.sshfl [vmem:[%s1487_s19 + $0x10] sm:$0xf pattern:$0x76325410] }
  0x25   : > { %v532_v35 = vor.u32 %v531_v26, %v528_v23  ;;  %v539_v36 = vcombine.low %v1578_v15, %v510_v31  ;;  %v248_v38 = vshrl.u32 %v1252_v25, 16  ;;  %v625_v41 = vrot.slane %v617_v29, %v1489_v7  ;;  %v1409_v8 = vld [vmem:[%s1700_s1 + $0x18] sm:$0xff]   ;;  %1359 = vmatprep.subr.bf16.mxu0 %v1408_v5  ;;  %v1414_v23 = vld [vmem:[%s1700_s1 + $0x68] sm:$0xff]   ;;  %v1419_v29 = vld [vmem:[%s1700_s1 + $0x70] sm:$0xff]  }
  0x26   : > { %v1599_v40 = vsel %vm1511_vm10, %v1287_v28, %v615_v33  ;;  %v251_v42 = vshll.u32 %v1252_v25, 16  ;;  %v257_v43 = vshll.u32 %v215_v34, 16  ;;  %v524_v44 = vsel %vm1568_vm13, %v519_v32, %v523_v16  ;;  %v1415_v26 = vld [vmem:[%s1700_s1 + $0x28] sm:$0xff]   ;;  %v1416_v28 = vld [vmem:[%s1700_s1 + $0xb8] sm:$0xff]   ;;  %v1420_v34 = vld [vmem:[%s1700_s1 + $0x30] sm:$0xff]  }
  0x27   : > { %v533_v45 = vrot.slane %v532_v35, 2  ;;  %v618_v46 = vcombine.low %v1545_v48, %v1599_v40  ;;  %v250_v47 = vrot.slane %v248_v38, 6  ;;  %v711_v53 = vcombine.high %v1299_v39, %v1299_v39  ;;  %v1407_v48 = vld [vmem:[%s1700_s1 + $0xa0] sm:$0xff]  }
  0x28   : > { %v253_v49 = vrot.slane %v251_v42, 7  ;;  %v259_v50 = vrot.slane %v257_v43, 7  ;;  %v547_v55 = vrot.slane %v539_v36, %v1489_v7  ;;  %v755_v57 = vshrl.u32 %v1299_v39, 16  ;;  %1145 = vmatpush1.bf16.msra.mxu1 %v1407_v48  ;;  %1360 = vmatpush3.bf16.msra.mxu0 %v1409_v8  ;;  %v1421_v37 = vld [vmem:[%s1700_s1 + $0xc0] sm:$0xff]  }
  0x29   : > { %v538_v51 = vsel %vm1568_vm13, %v533_v45, %v537_v27  ;;  %v632_v52 = vrot.slane %v618_v46, %v1489_v7  ;;  %v304_v59 = vcombine.low %v510_v31, %v524_v44  ;;  %v758_v62 = vshll.u32 %v1299_v39, 16  ;;  %1146 = vmatprep.subr.bf16.mxu1 %v1441_v6  ;;  %1361 = vmatprep.subr.bf16.mxu0 %v1411_v18  ;;  %v1307_v30 = vld.sshfl [vmem:[%s1487_s19 + $0x14] sm:$0x12 pattern:$0x76325410]  ;;  %v1423_v45 = vld [vmem:[%s1700_s1 + $0x38] sm:$0xff]  }
  0x2a   : > { %v540_v54 = vcombine.low %v524_v44, %v538_v51  ;;  %v254_v56 = vor.u32 %v253_v49, %v250_v47  ;;  %v764_v1 = vshll.u32 %v711_v53, 16  ;;  %v757_v4 = vrot.slane %v755_v57, 6  ;;  %v1430_v35 = vld.sshfl [vmem:[%s1487_s19] sm:$0xf pattern:$0x76325410] }
  0x2b   : > { %v633_v58 = vcombine.low %v625_v41, %v632_v52  ;;  %v760_v9 = vrot.slane %v758_v62, 7  ;;  %v318_v14 = vrot.slane %v304_v59, %v1489_v7  ;;  %v666_v0 = vcombine.low %v1428_v60, %v1429_v61  ;;  %v1431_v36 = vld.sshfl [vmem:[%s1487_s19 + $0x8] sm:$0xf pattern:$0x76325410]  ;;  %v1422_v44 = vld [vmem:[%s1700_s1 + $0x78] sm:$0xff]  }
  0x2c   : > { %v554_v2 = vrot.slane %v540_v54, %v1489_v7  ;;  %v255_v3 = vrot.slane %v254_v56, 2  ;;  %v766_v17 = vrot.slane %v764_v1, 7  ;;  %1147 = vmatpush1.bf16.msra.mxu1 %v1410_v12  ;;  %1362 = vmatpush3.bf16.msra.mxu0 %v1412_v20  ;;  %v829_v32 = vcombine.high %v1307_v30, %v1307_v30  ;;  %v1425_v47 = vld [vmem:[%s1700_s1 + $0xd0] sm:$0xff]  }
  0x2d   : > { %634 = vrot.lane.b32.xlu0 %v633_v58, %s1444_s22  ;;  %v761_v16 = vor.u32 %v760_v9, %v757_v4  ;;  %1148 = vmatprep.subr.bf16.mxu1 %v1441_v6  ;;  %v1311_v33 = vrot.slane %v1307_v30, 9  ;;  %s1448_s22 = smov 80   ;;  %v196_v43 = vcombine.low %v1430_v35, %v1431_v36  ;;  %v1312_v58 = vld [vmem:[%s1701_s2] ss:$0 sm:$0xff] }
  0x2e   : > { %v555_v10 = vcombine.low %v547_v55, %v554_v2  ;;  %v260_v11 = vsel %vm1568_vm13, %v255_v3, %v259_v50  ;;  %1363 = vmatprep.subr.bf16.mxu0 %v1414_v23  ;;  %v844_v39 = vrot.slane %v829_v32, 7 }
  0x2f   : > { %v303_v13 = vcombine.low %v260_v11, %v1578_v15  ;;  %v762_v22 = vrot.slane %v761_v16, 2  ;;  %v1413_v15 = vld [vmem:[%s1700_s1 + $0xb0] sm:$0xff]   ;;  %199 = vst.msk [vmem:[#allocation2] sm:$0xff] %vm198_vm14, %v196_v43 }
  0x30   : > { %556 = vrot.lane.b32.xlu1 %v555_v10, %s1445_s27  ;;  %1149 = vmatpush1.bf16.msra.mxu1 %v1413_v15  ;;  %v845_v41 = vsel %vm1511_vm10, %v1311_v33, %v844_v39 }
  0x31   : > { %v311_v21 = vrot.slane %v303_v13, %v1489_v7  ;;  %v767_v25 = vsel %vm1568_vm13, %v762_v22, %v766_v17  ;;  %1150 = vmatprep.subr.bf16.mxu1 %v1441_v6  ;;  %1364 = vmatpush3.bf16.msra.mxu0 %v1415_v26  ;;  %v847_v42 = vcombine.low %v1599_v40, %v845_v41 }
  0x32   : > { %v769_v27 = vcombine.low %v538_v51, %v767_v25  ;;  %1365 = vmatprep.subr.bf16.mxu0 %v1419_v29 }
  0x33   : > { %v319_v24 = vcombine.low %v311_v21, %v318_v14  ;;  %v861_v46 = vrot.slane %v847_v42, %v1489_v7 }
  0x34   : > { %v783_v31 = vrot.slane %v769_v27, %v1489_v7  ;;  %1151 = vmatpush1.bf16.msra.mxu1 %v1416_v28 }
  0x35   : > { %320 = vrot.lane.b32.xlu1 %v319_v24, %s1446_s15  ;;  %1152 = vmatprep.subr.bf16.mxu1 %v1441_v6  ;;  %v862_v40 = vcombine.low %v1563_v63, %v861_v46 }
  0x36   : > { %v784_v38 = vcombine.low %v318_v14, %v783_v31  ;;  %1366 = vmatpush3.bf16.msra.mxu0 %v1420_v34 }
  0x37   : > { %1367 = vmatprep.subr.bf16.mxu0 %v1422_v44  ;;  %864 = vst.msk [vmem:[#allocation2 + $0x18] sm:$0xff] %vm198_vm14, %v862_v40 }
  0x38   : > { %785 = vrot.lane.b32.xlu0 %v784_v38, %s1448_s22  ;;  %1153 = vmatpush1.bf16.msra.mxu1 %v1421_v37 }
  0x39   : > { %667 = vrot.lane.b32.xlu1 %v666_v0, %s1447_s21  ;;  %1154 = vmatprep.subr.bf16.mxu1 %v1441_v6 }
  0x3a   : > { %1368 = vmatpush3.bf16.msra.mxu0 %v1423_v45 }
  0x3c   : > { %1155 = vmatpush1.bf16.msra.mxu1 %v1424_v19 }
  0x3d   : > { %1156 = vmatprep.subr.bf16.mxu1 %v1441_v6 }
  0x3e   : > { %v868_v7 = vld [vmem:[#allocation2 + $0x18] sm:$0xff] }
  0x3f   : > { %1340 = vmatprep.mubr.msk.bf16.mxu1 %vm198_vm14, %v868_v7 }
  0x40   : > { %1157 = vmatpush1.bf16.msra.mxu1 %v1425_v47 }
  0x87   : > { %v439_v49 = vpop.permute.xlu0 %438 }
  0x94   : > { %v406_v50 = vpop.permute.xlu0 %405 }
  0x95   : > { %411 = vst.msk [vmem:[#allocation2 + $0x8] sm:$0xff] %vm410_vm15, %v406_v50 }
  0x96   : > { %442 = vst.msk [vmem:[#allocation2 + $0x8] sm:$0xff] %vm441_vm0, %v439_v49 }
  0x9f   : > { %v635_v63 = vpop.permute.xlu0 %634 }
  0xa0   : > { %640 = vst.msk [vmem:[#allocation2 + $0x10] sm:$0xff] %vm639_vm1, %v635_v63 }
  0xa2   : > { %v557_v51 = vpop.permute.xlu1 %556 }
  0xa3   : > { %560 = vst.msk [vmem:[#allocation2 + $0x8] sm:$0xff] %vm559_vm2, %v557_v51 }
  0xa4   : > { %638 = vst.msk [vmem:[#allocation2 + $0x8] sm:$0xff] %vm637_vm3, %v635_v63 }
  0xa7   : > { %v321_v6 = vpop.permute.xlu1 %320 }
  0xa8   : > { %324 = vst.msk [vmem:[#allocation2] sm:$0xff] %vm323_vm4, %v321_v6 }
  0xa9   : > { %409 = vst.msk [vmem:[#allocation2] sm:$0xff] %vm408_vm5, %v406_v50 }
  0xaa   : > { %v786_v54 = vpop.permute.xlu0 %785 }
  0xab   : > { %v668_v52 = vpop.permute.xlu1 %667  ;;  %v866_v53 = vld [vmem:[#allocation2 + $0x8] sm:$0xff] }
  0xac   : > { %671 = vst.msk [vmem:[#allocation2 + $0x10] sm:$0xff] %vm670_vm6, %v668_v52  ;;  %1127 = vmatprep.mubr.bf16.mxu0 %v866_v53 }
  0xad   : > { %789 = vst.msk [vmem:[#allocation2 + $0x10] sm:$0xff] %vm788_vm7, %v786_v54 }
  0xb0   : > { %v865_v55 = vld [vmem:[#allocation2] sm:$0xff] }
  0xb1   : > { %1128 = vmatmul.mubr.bf16.vlgmr.msra.gmra.mrb[0].mxu0 %v865_v55 }
  0xb4   : > { %v867_v56 = vld [vmem:[#allocation2 + $0x10] sm:$0xff] }
  0xb5   : > { %1169 = vmatmul.mubr.bf16.vlgmr.msra.gmra.mrb[0].mxu1 %v867_v56 }
 0x184   : > { %v1369_v57 = vpop.f32.mrb[0].mxu0 }
 0x185   : > { %v1370_v48 = vpop.f32.mrb[1].mxu0 }
 0x186   : > { %v1371_v59 = vadd.f32 %v1370_v48, %v1369_v57  ;;  %v1372_v60 = vpop.f32.mrb[2].mxu0 }
 0x187   : > { %v1373_v61 = vpop.f32.mrb[3].mxu0 }
 0x188   : > { %v1374_v62 = vadd.f32 %v1373_v61, %v1372_v60  ;;  %v1130_v1 = vadd.f32 %v1371_v59, %v1312_v58  ;;  %v1170_v2 = vpop.f32.mrb[0].mxu1 }
 0x189   : > { %v1172_v3 = vpop.f32.mrb[1].mxu1 }
 0x18a   : > { %v1171_v4 = vadd.f32 %v1170_v2, %v1130_v1  ;;  %v1133_v5 = vadd.f32 %v1374_v62, %v1312_v58  ;;  %v1173_v8 = vpop.f32.mrb[2].mxu1 }
 0x18b   : > { %v1175_v9 = vpop.f32.mrb[3].mxu1 }
 0x18c   : > { %v1174_v10 = vadd.f32 %v1173_v8, %v1133_v5  ;;  %v1177_v11 = vmax.f32 %v1171_v4, 0.0 }
 0x18e   : > { %v1178_v12 = vmax.f32 %v1174_v10, 0.0 }
 0x190   : > { %v1351_v13 = vpack.c.bf16 %v1178_v12, %v1177_v11 }
 0x192   : > { %1352 = vst [vmem:[%s170_s8] sm:$0xff] %v1351_v13  }
 0x193 PF: > { %s13_s12 = sadd.s32 1, %s1438_s12  }
 0x194   : > { %p10_p4 = scmp.ge.s32.totalorder %s13_s12, 4  }
 0x196   :  { %12 = sbr.rel (!%p10_p4) target bundleno = 1 (0x1), region = 64 }

// kernel: _lambda_.24
= control target key start
LH: loop header
LB: loop body
LE: loop exit
PB: predicated region body
PF: predicated region fallthrough
CT: control target
= control target key end

     0   :  { %s1688_s12 = smov 0   ;;  %s2074_s0 = inlined_call_operand.vmem [shape: bf16[2,10,10,24], index: 0, kind: input, shape index: {}]   ;;  %s2075_s1 = inlined_call_operand.vmem [shape: bf16[216,128], index: 1, kind: input, shape index: {}]   ;;  %s2076_s2 = inlined_call_operand.vmem [shape: f32[1,128], index: 2, kind: input, shape index: {}]   ;;  %s2077_s3 = inlined_call_operand.vmem [shape: bf16[2,64,128], index: 3, kind: output, shape index: {}]  }
   0x1 LB: > { %s1370_s13 = sadd.s32 4294967295, %s1657_s12   ;;  %p1374_p0 = scmp.ge.s32.totalorder %s1657_s12, 1  ;;  %s1657_s12 = sphi %s1688_s12, %s13_s12  }
   0x2   : > { %p137_p1 = scmp.lt.s32.totalorder %s1657_s12, 3 }
   0x4   : > { %p138_p2 = pnand %p1374_p0, %p137_p1 }
   0x5   : > { %p161_p3 = scmp.lt.s32.totalorder (!%p138_p2), %s1370_s13, 1  ;;  %vm401_vm0 = vcmask (!%p138_p2), 1042432   ;;  %v1633_v0 = vld [vmem:[%s2075_s1] sm:$0xff] (!%p138_p2)   ;;  %vm402_vm1 = vcmask (!%p138_p2), 1046532   ;;  %v1659_v1 = vmov (!%p138_p2), 0   ;;  %v1634_v2 = vld [vmem:[%s2075_s1 + $0x8] sm:$0xff] (!%p138_p2)  }
   0x6   : > { %141 = sbr.rel (%p138_p2) target bundleno = 451 (0x1c3), region = 32  ;;  %1202 = vmatprep.subr.bf16.mxu0 (!%p138_p2), %v1659_v1  ;;  %1579 = vmatprep.subr.bf16.mxu1 (!%p138_p2), %v1659_v1  ;;  %vm1709_vm2 = vmor (!%p138_p2), %vm401_vm0, %vm402_vm1  ;;  %v1635_v4 = vld [vmem:[%s2075_s1 + $0x10] sm:$0xff] (!%p138_p2)   ;;  %s1660_s24 = smov (!%p138_p2), 16   ;;  %v1636_v15 = vld [vmem:[%s2075_s1 + $0x18] sm:$0xff] (!%p138_p2)   ;;  %vm225_vm3 = vsmask.f32 (!%p138_p2), 3328 }
   0x7   : > { %1203 = vmatpush1.bf16.msra.mxu0 (!%p138_p2), %v1633_v0  ;;  %1593 = vmatpush1.bf16.msra.mxu1 (!%p138_p2), %v1633_v0  ;;  %vm226_vm4 = vsmask.f32 (!%p138_p2), 7440  ;;  %v1637_v25 = vld [vmem:[%s2075_s1 + $0x20] sm:$0xff] (!%p138_p2)   ;;  %s1661_s29 = smov (!%p138_p2), 72   ;;  %s1662_s30 = smov (!%p138_p2), 120   ;;  %v1638_v47 = vld [vmem:[%s2075_s1 + $0x28] sm:$0xff] (!%p138_p2)  }
   0x8   : > { %1204 = vmatprep.subr.bf16.mxu0 (!%p138_p2), %v1659_v1  ;;  %1580 = vmatprep.subr.bf16.mxu1 (!%p138_p2), %v1659_v1  ;;  %s1663_s6 = smov (!%p138_p2), 48   ;;  %vm1792_vm5 = vmor (!%p138_p2), %vm225_vm3, %vm226_vm4  ;;  %s1664_s15 = smov (!%p138_p2), 24   ;;  %vm204_vm6 = vcmask (!%p138_p2), 195584   ;;  %vm1198_vm7 = vcmask (!%p138_p2), 1043456   ;;  %v1650_v3 = vld [vmem:[%s2075_s1 + $0x68] ss:$0 sps:$4 sm:$0xff] (!%p138_p2)  }
   0x9   : > { %s1665_s20 = smov (!%p138_p2), 40   ;;  %s1666_s27 = smov (!%p138_p2), 96   ;;  %vm758_vm8 = vcmask (!%p138_p2), 130048   ;;  %vm807_vm9 = vcmask (!%p138_p2), 326784   ;;  %vm364_vm10 = vcmask (!%p138_p2), 392384   ;;  %vm460_vm11 = vcmask (!%p138_p2), 589184  }
   0xa   : > { %s1667_s28 = smov (!%p138_p2), 64   ;;  %vm506_vm12 = vcmask (!%p138_p2), 785984   ;;  %vm964_vm13 = vcmask (!%p138_p2), 523584   ;;  %vm663_vm14 = vcmask (!%p138_p2), 982784   ;;  %vm756_vm15 = vcmask (!%p138_p2), 1048512  }
   0xb   : > { %1205 = vmatpush1.bf16.msra.mxu0 (!%p138_p2), %v1634_v2  ;;  %1594 = vmatpush1.bf16.msra.mxu1 (!%p138_p2), %v1634_v2  ;;  %vm1057_vm0 = vcmask (!%p138_p2), 720384   ;;  %vm1185_vm1 = vcmask (!%p138_p2), 719872  }
   0xc   : > { %1206 = vmatprep.subr.bf16.mxu0 (!%p138_p2), %v1659_v1  ;;  %1581 = vmatprep.subr.bf16.mxu1 (!%p138_p2), %v1659_v1 }
   0xd   : > { %s2083_s13 = smov (!%p161_p3, %s1370_s13), 1 }
   0xe   : > { %s1607_s16 = smul.u32 80, %s2083_s13  ;;  %s1547_s4 = sshll.u32 %s2083_s13, 5 }
   0xf   : > { %1207 = vmatpush1.bf16.msra.mxu0 %v1635_v4  ;;  %1595 = vmatpush1.bf16.msra.mxu1 %v1635_v4  ;;  %s170_s7 = scalar_lea.vmem %s2077_s3, %s1547_s4 }
  0x10   : > { %s1716_s21 = scalar_lea.vmem %s2074_s0, %s1607_s16  ;;  %1208 = vmatprep.subr.bf16.mxu0 %v1659_v1  ;;  %1582 = vmatprep.subr.bf16.mxu1 %v1659_v1 }
  0x11   : > { %v1625_v5 = vld [vmem:[%s1716_s21 + $0x30] ss:$8 sps:$4 sm:$0xff]   ;;  %v1430_v7 = vld [vmem:[%s1716_s21 + $0x8] sm:$0xe]  ;;  %v1431_v8 = vld [vmem:[%s1716_s21 + $0xc] sm:$0x1] }
  0x12   : > { %v1626_v6 = vld [vmem:[%s1716_s21 + $0x10] ss:$8 sps:$4 sm:$0xff]   ;;  %799 = vrot.lane.b32.xlu1 %v1625_v5, %s1660_s24  ;;  %v1433_v10 = vld [vmem:[%s1716_s21 + $0x14] sm:$0x1]  ;;  %v1446_v11 = vrot.slane %v1430_v7, 9  ;;  %v702_v12 = vrot.slane %v1431_v8, 5 }
  0x13   : > { %v1432_v9 = vld [vmem:[%s1716_s21 + $0x10] sm:$0xe]  ;;  %795 = vrot.lane.b32.xlu0 %v1626_v6, %s1660_s24  ;;  %v706_v14 = vrot.slane %v1433_v10, 5  ;;  %v1438_v18 = vld [vmem:[%s1716_s21 + $0x28] sm:$0xe]  ;;  %1209 = vmatpush1.bf16.msra.mxu0 %v1636_v15 }
  0x14   : > { %v1447_v13 = vrot.slane %v1432_v9, 9  ;;  %v703_v16 = vsel %vm1709_vm2, %v1446_v11, %v702_v12  ;;  %v1627_v17 = vld [vmem:[%s1716_s21 + $0x8] ss:$8 sps:$4 sm:$0xff]   ;;  %v1439_v19 = vld [vmem:[%s1716_s21 + $0x2c] sm:$0x1]  ;;  %v1450_v23 = vrot.slane %v1438_v18, 9  ;;  %1596 = vmatpush1.bf16.msra.mxu1 %v1636_v15  ;;  %1210 = vmatprep.subr.bf16.mxu0 %v1659_v1 }
  0x15   : > { %v1440_v21 = vld [vmem:[%s1716_s21 + $0x30] sm:$0xe]  ;;  %v1441_v22 = vld [vmem:[%s1716_s21 + $0x34] sm:$0x1]  ;;  %v718_v24 = vrot.slane %v1439_v19, 5  ;;  %1583 = vmatprep.subr.bf16.mxu1 %v1659_v1 }
  0x16   : > { %v707_v20 = vsel %vm1709_vm2, %v1447_v13, %v706_v14  ;;  %v1451_v27 = vrot.slane %v1440_v21, 9  ;;  %v722_v28 = vrot.slane %v1441_v22, 5  ;;  %v369_v29 = vld [vmem:[%s1716_s21] sm:$0xe]  ;;  %v370_v30 = vld [vmem:[%s1716_s21 + $0x4] sm:$0x1] }
  0x17   : > { %v1454_v26 = vcombine.low %v703_v16, %v707_v20  ;;  %494 = vrot.lane.b32.xlu0 %v1627_v17, %s1661_s29  ;;  %v719_v31 = vsel %vm1709_vm2, %v1450_v23, %v718_v24  ;;  %v371_v32 = vld [vmem:[%s1716_s21 + $0x8] sm:$0xe]  ;;  %v372_v33 = vld [vmem:[%s1716_s21 + $0xc] sm:$0x1]  ;;  %v1386_v34 = vrot.slane %v369_v29, 9  ;;  %v406_v35 = vrot.slane %v370_v30, 5  ;;  %1211 = vmatpush1.bf16.msra.mxu0 %v1637_v25 }
  0x18   : > { %v723_v36 = vsel %vm1709_vm2, %v1451_v27, %v722_v28  ;;  %v1387_v37 = vrot.slane %v371_v32, 9  ;;  %v410_v38 = vrot.slane %v372_v33, 5  ;;  %v377_v39 = vld [vmem:[%s1716_s21 + $0x20] sm:$0xe]  ;;  %v378_v40 = vld [vmem:[%s1716_s21 + $0x24] sm:$0x1]  ;;  %1597 = vmatpush1.bf16.msra.mxu1 %v1637_v25  ;;  %1212 = vmatprep.subr.bf16.mxu0 %v1659_v1 }
  0x19   : > { %744 = vrot.lane.b32.xlu1 %v1454_v26, %s1662_s30  ;;  %v1456_v41 = vcombine.low %v719_v31, %v723_v36  ;;  %v407_v42 = vsel %vm1709_vm2, %v1386_v34, %v406_v35  ;;  %v379_v43 = vld [vmem:[%s1716_s21 + $0x28] sm:$0xe]  ;;  %v380_v44 = vld [vmem:[%s1716_s21 + $0x2c] sm:$0x1]  ;;  %v1390_v45 = vrot.slane %v377_v39, 9  ;;  %v422_v46 = vrot.slane %v378_v40, 5  ;;  %1584 = vmatprep.subr.bf16.mxu1 %v1659_v1 }
  0x1a   : > { %v411_v48 = vsel %vm1709_vm2, %v1387_v37, %v410_v38  ;;  %v1391_v49 = vrot.slane %v379_v43, 9  ;;  %v426_v50 = vrot.slane %v380_v44, 5  ;;  %v209_v51 = vld [vmem:[%s1716_s21] sm:$0xf]  ;;  %v210_v52 = vld [vmem:[%s1716_s21 + $0x4] sm:$0x1] }
  0x1b   : > { %v1394_v53 = vcombine.low %v407_v42, %v411_v48  ;;  %v423_v54 = vsel %vm1709_vm2, %v1390_v45, %v422_v46  ;;  %v211_v55 = vld [vmem:[%s1716_s21 + $0x8] sm:$0xf]  ;;  %v212_v56 = vld [vmem:[%s1716_s21 + $0xc] sm:$0x1]  ;;  %v229_v57 = vshrl.u32 %v209_v51, 16  ;;  %v232_v58 = vshll.u32 %v209_v51, 16  ;;  %1213 = vmatpush1.bf16.msra.mxu0 %v1638_v47 }
  0x1c   : > { %v427_v59 = vsel %vm1709_vm2, %v1391_v49, %v426_v50  ;;  %v238_v60 = vshll.u32 %v210_v52, 16  ;;  %v243_v61 = vshrl.u32 %v211_v55, 16  ;;  %v246_v62 = vshll.u32 %v211_v55, 16  ;;  %v1628_v7 = vld [vmem:[%s1716_s21 + $0x28] ss:$8 sps:$4 sm:$0xff]   ;;  %1598 = vmatpush1.bf16.msra.mxu1 %v1638_v47  ;;  %1214 = vmatprep.subr.bf16.mxu0 %v1659_v1  ;;  %v1640_v35 = vld [vmem:[%s2075_s1 + $0x38] sm:$0xff]  }
  0x1d   : > { %748 = vrot.lane.b32.xlu1 %v1456_v41, %s1662_s30  ;;  %448 = vrot.lane.b32.xlu0 %v1394_v53, %s1663_s6  ;;  %v1396_v63 = vcombine.low %v423_v54, %v427_v59  ;;  %v231_v0 = vrot.slane %v229_v57, 4  ;;  %v234_v2 = vrot.slane %v232_v58, 5  ;;  %v252_v4 = vshll.u32 %v212_v56, 16  ;;  %v1639_v8 = vld [vmem:[%s2075_s1 + $0x30] sm:$0xff]   ;;  %v217_v12 = vld [vmem:[%s1716_s21 + $0x20] sm:$0xf] }
  0x1e   : > { %v245_v5 = vrot.slane %v243_v61, 4  ;;  %v248_v6 = vrot.slane %v246_v62, 5  ;;  %v240_v10 = vrot.slane %v238_v60, 5  ;;  %v218_v13 = vld [vmem:[%s1716_s21 + $0x24] sm:$0x1]  ;;  %v285_v18 = vshrl.u32 %v217_v12, 16  ;;  %1585 = vmatprep.subr.bf16.mxu1 %v1659_v1 }
  0x1f   : > { %v235_v9 = vor.u32 %v234_v2, %v231_v0  ;;  %v254_v11 = vrot.slane %v252_v4, 5  ;;  %v219_v16 = vld [vmem:[%s1716_s21 + $0x28] sm:$0xf]  ;;  %v220_v17 = vld [vmem:[%s1716_s21 + $0x2c] sm:$0x1]  ;;  %v288_v19 = vshll.u32 %v217_v12, 16  ;;  %1215 = vmatpush1.bf16.msra.mxu0 %v1639_v8 }
  0x20   : > { %v249_v15 = vor.u32 %v248_v6, %v245_v5  ;;  %v294_v21 = vshll.u32 %v218_v13, 16  ;;  %v299_v22 = vshrl.u32 %v219_v16, 16  ;;  %v302_v23 = vshll.u32 %v219_v16, 16  ;;  %v1478_v24 = vld [vmem:[%s1716_s21 + $0x30] sm:$0xf]  ;;  %1599 = vmatpush1.bf16.msra.mxu1 %v1639_v8  ;;  %1216 = vmatprep.subr.bf16.mxu0 %v1659_v1  ;;  %v1642_v50 = vld [vmem:[%s2075_s1 + $0x40] sm:$0xff]  }
  0x21   : > { %452 = vrot.lane.b32.xlu1 %v1396_v63, %s1663_s6  ;;  %v236_v20 = vrot.slane %v235_v9, 4  ;;  %v287_v26 = vrot.slane %v285_v18, 4  ;;  %v290_v27 = vrot.slane %v288_v19, 5  ;;  %v308_v28 = vshll.u32 %v220_v17, 16  ;;  %v1479_v29 = vld [vmem:[%s1716_s21 + $0x34] sm:$0x1]  ;;  %1586 = vmatprep.subr.bf16.mxu1 %v1659_v1 }
  0x22   : > { %v250_v25 = vrot.slane %v249_v15, 4  ;;  %v296_v31 = vrot.slane %v294_v21, 5  ;;  %v301_v32 = vrot.slane %v299_v22, 4  ;;  %v304_v33 = vrot.slane %v302_v23, 5  ;;  %v1480_v34 = vld [vmem:[%s1716_s21 + $0x38] sm:$0xf] }
  0x23   : > { %v241_v30 = vsel %vm1792_vm5, %v236_v20, %v240_v10  ;;  %v291_v37 = vor.u32 %v290_v27, %v287_v26  ;;  %v310_v38 = vrot.slane %v308_v28, 5  ;;  %v1481_v39 = vld [vmem:[%s1716_s21 + $0x3c] sm:$0x1]  ;;  %v885_v40 = vshrl.u32 %v1478_v24, 16  ;;  %v1470_v45 = vld [vmem:[%s1716_s21 + $0x10] sm:$0xf]  ;;  %1217 = vmatpush1.bf16.msra.mxu0 %v1640_v35 }
  0x24   : > { %v255_v36 = vsel %vm1792_vm5, %v250_v25, %v254_v11  ;;  %v305_v42 = vor.u32 %v304_v33, %v301_v32  ;;  %v888_v43 = vshll.u32 %v1478_v24, 16  ;;  %v894_v44 = vshll.u32 %v1479_v29, 16  ;;  %v1471_v55 = vld [vmem:[%s1716_s21 + $0x14] sm:$0x1]  ;;  %v1472_v59 = vld [vmem:[%s1716_s21 + $0x18] sm:$0xf]  ;;  %1600 = vmatpush1.bf16.msra.mxu1 %v1640_v35  ;;  %1218 = vmatprep.subr.bf16.mxu0 %v1659_v1 }
  0x25   : > { %498 = vrot.lane.b32.xlu1 %v1628_v7, %s1661_s29  ;;  %v1382_v41 = vcombine.low %v241_v30, %v255_v36  ;;  %v292_v46 = vrot.slane %v291_v37, 4  ;;  %v887_v47 = vrot.slane %v885_v40, 4  ;;  %v899_v48 = vshrl.u32 %v1480_v34, 16  ;;  %v1473_v0 = vld [vmem:[%s1716_s21 + $0x1c] sm:$0x1]  ;;  %1587 = vmatprep.subr.bf16.mxu1 %v1659_v1  ;;  %v1644_v15 = vld [vmem:[%s2075_s1 + $0x48] sm:$0xff]  }
  0x26   : > { %v902_v49 = vshll.u32 %v1480_v34, 16  ;;  %v306_v51 = vrot.slane %v305_v42, 4  ;;  %v890_v52 = vrot.slane %v888_v43, 5  ;;  %v896_v53 = vrot.slane %v894_v44, 5  ;;  %v1418_v4 = vld [vmem:[%s1716_s21 + $0x28] sm:$0xf] }
  0x27   : > { %352 = vrot.lane.b32.xlu0 %v1382_v41, %s1664_s15  ;;  %v908_v54 = vshll.u32 %v1481_v39, 16  ;;  %v297_v56 = vsel %vm1792_vm5, %v292_v46, %v296_v31  ;;  %v901_v57 = vrot.slane %v899_v48, 4  ;;  %v829_v60 = vshrl.u32 %v1470_v45, 16  ;;  %v1419_v9 = vld [vmem:[%s1716_s21 + $0x2c] sm:$0x1]  ;;  %1219 = vmatpush1.bf16.msra.mxu0 %v1642_v50  ;;  %v1645_v37 = vld [vmem:[%s2075_s1 + $0x50] sm:$0xff]  }
  0x28   : > { %v904_v58 = vrot.slane %v902_v49, 5  ;;  %v311_v61 = vsel %vm1792_vm5, %v306_v51, %v310_v38  ;;  %v891_v62 = vor.u32 %v890_v52, %v887_v47  ;;  %v832_v2 = vshll.u32 %v1470_v45, 16  ;;  %v1420_v19 = vld [vmem:[%s1716_s21 + $0x30] sm:$0xf]  ;;  %1601 = vmatpush1.bf16.msra.mxu1 %v1642_v50  ;;  %v1421_v25 = vld [vmem:[%s1716_s21 + $0x34] sm:$0x1]  ;;  %1220 = vmatprep.subr.bf16.mxu0 %v1659_v1 }
  0x29   : > { %v910_v63 = vrot.slane %v908_v54, 5  ;;  %v1384_v5 = vcombine.low %v297_v56, %v311_v61  ;;  %v831_v7 = vrot.slane %v829_v60, 4  ;;  %v838_v8 = vshll.u32 %v1471_v55, 16  ;;  %v1410_v26 = vld [vmem:[%s1716_s21 + $0x8] sm:$0xf]  ;;  %1588 = vmatprep.subr.bf16.mxu1 %v1659_v1 }
  0x2a   : > { %v905_v6 = vor.u32 %v904_v58, %v901_v57  ;;  %v892_v10 = vrot.slane %v891_v62, 4  ;;  %v834_v11 = vrot.slane %v832_v2, 5  ;;  %v843_v12 = vshrl.u32 %v1472_v59, 16  ;;  %v1411_v31 = vld [vmem:[%s1716_s21 + $0xc] sm:$0x1] }
  0x2b   : > { %v846_v13 = vshll.u32 %v1472_v59, 16  ;;  %356 = vrot.lane.b32.xlu0 %v1384_v5, %s1664_s15  ;;  %v840_v17 = vrot.slane %v838_v8, 5  ;;  %v852_v18 = vshll.u32 %v1473_v0, 16  ;;  %v584_v20 = vshrl.u32 %v1418_v4, 16  ;;  %v1412_v36 = vld [vmem:[%s1716_s21 + $0x10] sm:$0xf]  ;;  %1221 = vmatpush1.bf16.msra.mxu0 %v1644_v15 }
  0x2c   : > { %v906_v16 = vrot.slane %v905_v6, 4  ;;  %v897_v21 = vsel %vm1792_vm5, %v892_v10, %v896_v53  ;;  %v835_v22 = vor.u32 %v834_v11, %v831_v7  ;;  %v845_v23 = vrot.slane %v843_v12, 4  ;;  %v1413_v42 = vld [vmem:[%s1716_s21 + $0x14] sm:$0x1]  ;;  %1602 = vmatpush1.bf16.msra.mxu1 %v1644_v15  ;;  %1222 = vmatprep.subr.bf16.mxu0 %v1659_v1  ;;  %v1498_v47 = vld [vmem:[%s1716_s21 + $0x30] sm:$0xe] }
  0x2d   : > { %v848_v24 = vrot.slane %v846_v13, 5  ;;  %v854_v28 = vrot.slane %v852_v18, 5  ;;  %v586_v29 = vrot.slane %v584_v20, 4  ;;  %v587_v30 = vshll.u32 %v1418_v4, 16  ;;  %1589 = vmatprep.subr.bf16.mxu1 %v1659_v1  ;;  %v1499_v52 = vld [vmem:[%s1716_s21 + $0x34] sm:$0x1] }
  0x2e   : > { %v911_v27 = vsel %vm1792_vm5, %v906_v16, %v910_v63  ;;  %v836_v33 = vrot.slane %v835_v22, 4  ;;  %v593_v35 = vshll.u32 %v1419_v9, 16  ;;  %v598_v39 = vshrl.u32 %v1420_v19, 16  ;;  %v1500_v57 = vld [vmem:[%s1716_s21 + $0x38] sm:$0xe] }
  0x2f   : > { %v1488_v32 = vcombine.low %v897_v21, %v911_v27  ;;  %v849_v34 = vor.u32 %v848_v24, %v845_v23  ;;  %v589_v38 = vrot.slane %v587_v30, 5  ;;  %v601_v40 = vshll.u32 %v1420_v19, 16  ;;  %1223 = vmatpush1.bf16.msra.mxu0 %v1645_v37  ;;  %v1501_v62 = vld [vmem:[%s1716_s21 + $0x3c] sm:$0x1]  ;;  %v1490_v63 = vld [vmem:[%s1716_s21 + $0x10] sm:$0xe] }
  0x30   : > { %v607_v41 = vshll.u32 %v1421_v25, 16  ;;  %v841_v43 = vsel %vm1792_vm5, %v836_v33, %v840_v17  ;;  %v595_v45 = vrot.slane %v593_v35, 5  ;;  %v528_v46 = vshrl.u32 %v1410_v26, 16  ;;  %1603 = vmatpush1.bf16.msra.mxu1 %v1645_v37  ;;  %1224 = vmatprep.subr.bf16.mxu0 %v1659_v1  ;;  %v1491_v6 = vld [vmem:[%s1716_s21 + $0x14] sm:$0x1]  ;;  %v1646_v12 = vld [vmem:[%s2075_s1 + $0x58] sm:$0xff]  }
  0x31   : > { %956 = vrot.lane.b32.xlu1 %v1488_v32, %s1665_s20  ;;  %v850_v44 = vrot.slane %v849_v34, 4  ;;  %v590_v48 = vor.u32 %v589_v38, %v586_v29  ;;  %v600_v49 = vrot.slane %v598_v39, 4  ;;  %v603_v50 = vrot.slane %v601_v40, 5  ;;  %1590 = vmatprep.subr.bf16.mxu1 %v1659_v1  ;;  %v1492_v11 = vld [vmem:[%s1716_s21 + $0x18] sm:$0xe]  ;;  %v1647_v24 = vld [vmem:[%s2075_s1 + $0x60] sm:$0xff]  }
  0x32   : > { %v609_v51 = vrot.slane %v607_v41, 5  ;;  %v530_v54 = vrot.slane %v528_v46, 4  ;;  %v531_v55 = vshll.u32 %v1410_v26, 16  ;;  %v537_v56 = vshll.u32 %v1411_v31, 16  ;;  %v1493_v18 = vld [vmem:[%s1716_s21 + $0x1c] sm:$0x1] }
  0x33   : > { %v855_v53 = vsel %vm1792_vm5, %v850_v44, %v854_v28  ;;  %v591_v59 = vrot.slane %v590_v48, 4  ;;  %v604_v60 = vor.u32 %v603_v50, %v600_v49  ;;  %v542_v61 = vshrl.u32 %v1412_v36, 16  ;;  %v221_v23 = vld [vmem:[%s1716_s21 + $0x30] sm:$0xf]  ;;  %1225 = vmatpush1.bf16.msra.mxu0 %v1646_v12  ;;  %v222_v29 = vld [vmem:[%s1716_s21 + $0x34] sm:$0x1] }
  0x34   : > { %v1486_v58 = vcombine.low %v841_v43, %v855_v53  ;;  %v533_v0 = vrot.slane %v531_v55, 5  ;;  %v539_v2 = vrot.slane %v537_v56, 5  ;;  %v545_v4 = vshll.u32 %v1412_v36, 16  ;;  %1604 = vmatpush1.bf16.msra.mxu1 %v1646_v12  ;;  %1226 = vmatprep.subr.bf16.mxu0 %v1659_v1  ;;  %v223_v34 = vld [vmem:[%s1716_s21 + $0x38] sm:$0xf] }
  0x35   : > { %v551_v5 = vshll.u32 %v1413_v42, 16  ;;  %v596_v7 = vsel %vm1792_vm5, %v591_v59, %v595_v45  ;;  %v605_v8 = vrot.slane %v604_v60, 4  ;;  %v544_v9 = vrot.slane %v542_v61, 4  ;;  %1591 = vmatprep.subr.bf16.mxu1 %v1659_v1  ;;  %v224_v41 = vld [vmem:[%s1716_s21 + $0x3c] sm:$0x1] }
  0x36   : > { %952 = vrot.lane.b32.xlu0 %v1486_v58, %s1665_s20  ;;  %v1510_v10 = vrot.slane %v1498_v47, 9  ;;  %v534_v13 = vor.u32 %v533_v0, %v530_v54  ;;  %v547_v15 = vrot.slane %v545_v4, 5  ;;  %v1019_v17 = vrot.slane %v1499_v52, 5  ;;  %v213_v44 = vld [vmem:[%s1716_s21 + $0x10] sm:$0xf] }
  0x37   : > { %v553_v16 = vrot.slane %v551_v5, 5  ;;  %v610_v19 = vsel %vm1792_vm5, %v605_v8, %v609_v51  ;;  %v1511_v20 = vrot.slane %v1500_v57, 9  ;;  %v1023_v21 = vrot.slane %v1501_v62, 5  ;;  %1227 = vmatpush1.bf16.msra.mxu0 %v1647_v24  ;;  %v214_v49 = vld [vmem:[%s1716_s21 + $0x14] sm:$0x1] }
  0x38   : > { %v1506_v22 = vrot.slane %v1490_v63, 9  ;;  %v1428_v25 = vcombine.low %v596_v7, %v610_v19  ;;  %v535_v26 = vrot.slane %v534_v13, 4  ;;  %v548_v27 = vor.u32 %v547_v15, %v544_v9  ;;  %1605 = vmatpush1.bf16.msra.mxu1 %v1647_v24  ;;  %v215_v50 = vld [vmem:[%s1716_s21 + $0x18] sm:$0xf]  ;;  %1228 = vmatprep.subr.bf16.mxu0 %v1659_v1  ;;  %v216_v55 = vld [vmem:[%s1716_s21 + $0x1c] sm:$0x1] }
  0x39   : > { %v1020_v28 = vsel %vm1709_vm2, %v1510_v10, %v1019_v17  ;;  %v1024_v30 = vsel %vm1709_vm2, %v1511_v20, %v1023_v21  ;;  %v1003_v31 = vrot.slane %v1491_v6, 5  ;;  %v1507_v32 = vrot.slane %v1492_v11, 9  ;;  %1592 = vmatprep.subr.bf16.mxu1 %v1659_v1  ;;  %v1442_v56 = vld [vmem:[%s1716_s21 + $0x38] sm:$0xe]  ;;  %v1443_v61 = vld [vmem:[%s1716_s21 + $0x3c] sm:$0x1] }
  0x3a   : > { %v1007_v33 = vrot.slane %v1493_v18, 5  ;;  %655 = vrot.lane.b32.xlu1 %v1428_v25, %s1666_s27  ;;  %v540_v35 = vsel %vm1792_vm5, %v535_v26, %v539_v2  ;;  %v549_v36 = vrot.slane %v548_v27, 4  ;;  %v1516_v37 = vcombine.low %v1020_v28, %v1024_v30  ;;  %v1444_v62 = vld [vmem:[%s1716_s21 + $0x40] sm:$0xe]  ;;  %v1445_v4 = vld [vmem:[%s1716_s21 + $0x44] sm:$0x1] }
  0x3b   : > { %v313_v38 = vshrl.u32 %v221_v23, 16  ;;  %v1004_v39 = vsel %vm1709_vm2, %v1506_v22, %v1003_v31  ;;  %v316_v42 = vshll.u32 %v221_v23, 16  ;;  %v322_v43 = vshll.u32 %v222_v29, 16  ;;  %v1434_v9 = vld [vmem:[%s1716_s21 + $0x18] sm:$0xe] }
  0x3c   : > { %v1008_v40 = vsel %vm1709_vm2, %v1507_v32, %v1007_v33  ;;  %v554_v45 = vsel %vm1792_vm5, %v549_v36, %v553_v16  ;;  %v327_v48 = vshrl.u32 %v223_v34, 16  ;;  %v330_v54 = vshll.u32 %v223_v34, 16  ;;  %v1435_v15 = vld [vmem:[%s1716_s21 + $0x1c] sm:$0x1]  ;;  %v1436_v20 = vld [vmem:[%s1716_s21 + $0x20] sm:$0xe] }
  0x3d   : > { %v1514_v46 = vcombine.low %v1004_v39, %v1008_v40  ;;  %v315_v47 = vrot.slane %v313_v38, 4  ;;  %v1426_v51 = vcombine.low %v540_v35, %v554_v45  ;;  %v318_v52 = vrot.slane %v316_v42, 5  ;;  %v1437_v21 = vld [vmem:[%s1716_s21 + $0x24] sm:$0x1]  ;;  %v381_v26 = vld [vmem:[%s1716_s21 + $0x30] sm:$0xe] }
  0x3e   : > { %v324_v53 = vrot.slane %v322_v43, 5  ;;  %1049 = vrot.lane.b32.xlu1 %v1516_v37, %s1667_s28  ;;  %v329_v57 = vrot.slane %v327_v48, 4  ;;  %v336_v58 = vshll.u32 %v224_v41, 16  ;;  %v257_v59 = vshrl.u32 %v213_v44, 16  ;;  %v382_v27 = vld [vmem:[%s1716_s21 + $0x34] sm:$0x1] }
  0x3f   : > { %v260_v60 = vshll.u32 %v213_v44, 16  ;;  %651 = vrot.lane.b32.xlu0 %v1426_v51, %s1666_s27  ;;  %v319_v1 = vor.u32 %v318_v52, %v315_v47  ;;  %v332_v63 = vrot.slane %v330_v54, 5  ;;  %v266_v0 = vshll.u32 %v214_v49, 16  ;;  %v383_v28 = vld [vmem:[%s1716_s21 + $0x38] sm:$0xe] }
  0x40   : > { %v271_v2 = vshrl.u32 %v215_v50, 16  ;;  %v338_v5 = vrot.slane %v336_v58, 5  ;;  %v259_v6 = vrot.slane %v257_v59, 4  ;;  %v274_v8 = vshll.u32 %v215_v50, 16  ;;  %v384_v33 = vld [vmem:[%s1716_s21 + $0x3c] sm:$0x1] }
  0x41   : > { %v262_v7 = vrot.slane %v260_v60, 5  ;;  %v320_v10 = vrot.slane %v319_v1, 4  ;;  %v333_v11 = vor.u32 %v332_v63, %v329_v57  ;;  %v268_v12 = vrot.slane %v266_v0, 5  ;;  %v373_v34 = vld [vmem:[%s1716_s21 + $0x10] sm:$0xe] }
  0x42   : > { %v273_v13 = vrot.slane %v271_v2, 4  ;;  %v276_v17 = vrot.slane %v274_v8, 5  ;;  %v280_v18 = vshll.u32 %v216_v55, 16  ;;  %v1452_v19 = vrot.slane %v1442_v56, 9  ;;  %v374_v39 = vld [vmem:[%s1716_s21 + $0x14] sm:$0x1] }
  0x43   : > { %v263_v16 = vor.u32 %v262_v7, %v259_v6  ;;  %1045 = vrot.lane.b32.xlu0 %v1514_v46, %s1667_s28  ;;  %v325_v22 = vsel %vm1792_vm5, %v320_v10, %v324_v53  ;;  %v334_v23 = vrot.slane %v333_v11, 4  ;;  %v726_v24 = vrot.slane %v1443_v61, 5  ;;  %v375_v44 = vld [vmem:[%s1716_s21 + $0x18] sm:$0xe]  ;;  %v376_v49 = vld [vmem:[%s1716_s21 + $0x1c] sm:$0x1] }
  0x44   : > { %v1453_v25 = vrot.slane %v1444_v62, 9  ;;  %v277_v30 = vor.u32 %v276_v17, %v273_v13  ;;  %v282_v31 = vrot.slane %v280_v18, 5  ;;  %v730_v32 = vrot.slane %v1445_v4, 5  ;;  %v1482_v63 = vld [vmem:[%s1716_s21 + $0x40] sm:$0xf] }
  0x45   : > { %v264_v29 = vrot.slane %v263_v16, 4  ;;  %v339_v35 = vsel %vm1792_vm5, %v334_v23, %v338_v5  ;;  %v727_v36 = vsel %vm1709_vm2, %v1452_v19, %v726_v24  ;;  %v1448_v37 = vrot.slane %v1434_v9, 9  ;;  %v1483_v4 = vld [vmem:[%s1716_s21 + $0x44] sm:$0x1]  ;;  %v1484_v5 = vld [vmem:[%s1716_s21 + $0x48] sm:$0xf] }
  0x46   : > { %v710_v38 = vrot.slane %v1435_v15, 5  ;;  %v1385_v40 = vcombine.low %v325_v22, %v339_v35  ;;  %v278_v42 = vrot.slane %v277_v30, 4  ;;  %v731_v43 = vsel %vm1709_vm2, %v1453_v25, %v730_v32  ;;  %v1485_v6 = vld [vmem:[%s1716_s21 + $0x4c] sm:$0x1]  ;;  %v1474_v11 = vld [vmem:[%s1716_s21 + $0x20] sm:$0xf] }
  0x47   : > { %v269_v41 = vsel %vm1792_vm5, %v264_v29, %v268_v12  ;;  %v1457_v45 = vcombine.low %v727_v36, %v731_v43  ;;  %v1449_v47 = vrot.slane %v1436_v20, 9  ;;  %v714_v48 = vrot.slane %v1437_v21, 5  ;;  %v1629_v13 = vld [vmem:[%s1716_s21 + $0x40] ss:$8 sps:$4 sm:$0xff]   ;;  %v1475_v18 = vld [vmem:[%s1716_s21 + $0x24] sm:$0x1] }
  0x48   : > { %v711_v46 = vsel %vm1709_vm2, %v1448_v37, %v710_v38  ;;  %358 = vrot.lane.b32.xlu1 %v1385_v40, %s1664_s15  ;;  %v283_v50 = vsel %vm1792_vm5, %v278_v42, %v282_v31  ;;  %v1392_v51 = vrot.slane %v381_v26, 9  ;;  %v430_v52 = vrot.slane %v382_v27, 5  ;;  %v1476_v22 = vld [vmem:[%s1716_s21 + $0x28] sm:$0xf]  ;;  %v1477_v27 = vld [vmem:[%s1716_s21 + $0x2c] sm:$0x1] }
  0x49   : > { %v1393_v53 = vrot.slane %v383_v28, 9  ;;  %v1383_v54 = vcombine.low %v269_v41, %v283_v50  ;;  %v715_v55 = vsel %vm1709_vm2, %v1449_v47, %v714_v48  ;;  %v434_v56 = vrot.slane %v384_v33, 5  ;;  %v1630_v29 = vld [vmem:[%s1716_s21 + $0x20] ss:$8 sps:$4 sm:$0xff]   ;;  %v1648_v14 = vld [vmem:[%s1716_s21 + $0x30] ss:$8 sps:$4 sm:$0xff]  }
  0x4a   : > { %v1388_v57 = vrot.slane %v373_v34, 9  ;;  %v431_v58 = vsel %vm1709_vm2, %v1392_v51, %v430_v52  ;;  %v414_v59 = vrot.slane %v374_v39, 5  ;;  %v1389_v60 = vrot.slane %v375_v44, 9  ;;  %v1422_v34 = vld [vmem:[%s1716_s21 + $0x38] sm:$0xf]  ;;  %208 = vst.msk [vmem:[#allocation2 + $0x30] sm:$0xff] %vm204_vm6, %v1648_v14 }
  0x4b   : > { %354 = vrot.lane.b32.xlu0 %v1383_v54, %s1664_s15  ;;  %v1455_v61 = vcombine.low %v711_v46, %v715_v55  ;;  %v435_v62 = vsel %vm1709_vm2, %v1393_v53, %v434_v56  ;;  %v418_v1 = vrot.slane %v376_v49, 5  ;;  %v913_v8 = vshrl.u32 %v1482_v63, 16  ;;  %v1423_v39 = vld [vmem:[%s1716_s21 + $0x3c] sm:$0x1]  ;;  %v1424_v43 = vld [vmem:[%s1716_s21 + $0x40] sm:$0xf] }
  0x4c   : > { %750 = vrot.lane.b32.xlu1 %v1457_v45, %s1662_s30  ;;  %v1397_v0 = vcombine.low %v431_v58, %v435_v62  ;;  %v415_v2 = vsel %vm1709_vm2, %v1388_v57, %v414_v59  ;;  %v916_v9 = vshll.u32 %v1482_v63, 16  ;;  %v922_v10 = vshll.u32 %v1483_v4, 16  ;;  %v1631_v45 = vld [vmem:[%s1716_s21 + $0x38] ss:$8 sps:$4 sm:$0xff]   ;;  %v1425_v52 = vld [vmem:[%s1716_s21 + $0x44] sm:$0x1] }
  0x4d   : > { %v419_v7 = vsel %vm1709_vm2, %v1389_v60, %v418_v1  ;;  %v927_v15 = vshrl.u32 %v1484_v5, 16  ;;  %v930_v16 = vshll.u32 %v1484_v5, 16  ;;  %v936_v17 = vshll.u32 %v1485_v6, 16  ;;  %v1632_v50 = vld [vmem:[%s1716_s21 + $0x18] ss:$8 sps:$4 sm:$0xff]  }
  0x4e   : > { %v1395_v12 = vcombine.low %v415_v2, %v419_v7  ;;  %v915_v19 = vrot.slane %v913_v8, 4  ;;  %v918_v20 = vrot.slane %v916_v9, 5  ;;  %v924_v21 = vrot.slane %v922_v10, 5  ;;  %v1414_v60 = vld [vmem:[%s1716_s21 + $0x18] sm:$0xf] }
  0x4f   : > { %746 = vrot.lane.b32.xlu0 %v1455_v61, %s1662_s30  ;;  %v857_v23 = vshrl.u32 %v1474_v11, 16  ;;  %v929_v24 = vrot.slane %v927_v15, 4  ;;  %v932_v25 = vrot.slane %v930_v16, 5  ;;  %v938_v26 = vrot.slane %v936_v17, 5  ;;  %v1415_v61 = vld [vmem:[%s1716_s21 + $0x1c] sm:$0x1] }
  0x50   : > { %454 = vrot.lane.b32.xlu1 %v1397_v0, %s1663_s6  ;;  %v860_v28 = vshll.u32 %v1474_v11, 16  ;;  %v919_v30 = vor.u32 %v918_v20, %v915_v19  ;;  %v866_v32 = vshll.u32 %v1475_v18, 16  ;;  %v871_v33 = vshrl.u32 %v1476_v22, 16  ;;  %v1416_v2 = vld [vmem:[%s1716_s21 + $0x20] sm:$0xf] }
  0x51   : > { %v859_v31 = vrot.slane %v857_v23, 4  ;;  %v933_v35 = vor.u32 %v932_v25, %v929_v24  ;;  %v874_v37 = vshll.u32 %v1476_v22, 16  ;;  %v880_v38 = vshll.u32 %v1477_v27, 16  ;;  %v1417_v8 = vld [vmem:[%s1716_s21 + $0x24] sm:$0x1] }
  0x52   : > { %v862_v36 = vrot.slane %v860_v28, 5  ;;  %v920_v40 = vrot.slane %v919_v30, 4  ;;  %v868_v41 = vrot.slane %v866_v32, 5  ;;  %v873_v42 = vrot.slane %v871_v33, 4  ;;  %v1502_v9 = vld [vmem:[%s1716_s21 + $0x40] sm:$0xe] }
  0x53   : > { %450 = vrot.lane.b32.xlu0 %v1395_v12, %s1663_s6  ;;  %v612_v44 = vshrl.u32 %v1422_v34, 16  ;;  %v934_v46 = vrot.slane %v933_v35, 4  ;;  %v876_v48 = vrot.slane %v874_v37, 5  ;;  %v882_v49 = vrot.slane %v880_v38, 5  ;;  %v1503_v15 = vld [vmem:[%s1716_s21 + $0x44] sm:$0x1] }
  0x54   : > { %801 = vrot.lane.b32.xlu1 %v1629_v13, %s1660_s24  ;;  %v863_v47 = vor.u32 %v862_v36, %v859_v31  ;;  %v925_v51 = vsel %vm1792_vm5, %v920_v40, %v924_v21  ;;  %v615_v54 = vshll.u32 %v1422_v34, 16  ;;  %v621_v55 = vshll.u32 %v1423_v39, 16  ;;  %v1504_v20 = vld [vmem:[%s1716_s21 + $0x48] sm:$0xe]  ;;  %v1505_v25 = vld [vmem:[%s1716_s21 + $0x4c] sm:$0x1] }
  0x55   : > { %v614_v53 = vrot.slane %v612_v44, 4  ;;  %v939_v56 = vsel %vm1792_vm5, %v934_v46, %v938_v26  ;;  %v877_v58 = vor.u32 %v876_v48, %v873_v42  ;;  %v626_v59 = vshrl.u32 %v1424_v43, 16  ;;  %v1494_v26 = vld [vmem:[%s1716_s21 + $0x20] sm:$0xe]  ;;  %v1495_v31 = vld [vmem:[%s1716_s21 + $0x24] sm:$0x1] }
  0x56   : > { %v864_v57 = vrot.slane %v863_v47, 4  ;;  %v1489_v62 = vcombine.low %v925_v51, %v939_v56  ;;  %v617_v1 = vrot.slane %v615_v54, 5  ;;  %v623_v63 = vrot.slane %v621_v55, 5  ;;  %v1496_v36 = vld [vmem:[%s1716_s21 + $0x28] sm:$0xe] }
  0x57   : > { %797 = vrot.lane.b32.xlu0 %v1630_v29, %s1660_s24  ;;  %v629_v0 = vshll.u32 %v1424_v43, 16  ;;  %v878_v5 = vrot.slane %v877_v58, 4  ;;  %v628_v6 = vrot.slane %v626_v59, 4  ;;  %v635_v7 = vshll.u32 %v1425_v52, 16 }
  0x58   : > { %500 = vrot.lane.b32.xlu1 %v1631_v45, %s1661_s29  ;;  %v869_v4 = vsel %vm1792_vm5, %v864_v57, %v868_v41  ;;  %v618_v10 = vor.u32 %v617_v1, %v614_v53  ;;  %v556_v12 = vshrl.u32 %v1414_v60, 16  ;;  %v559_v13 = vshll.u32 %v1414_v60, 16  ;;  %v1497_v41 = vld [vmem:[%s1716_s21 + $0x2c] sm:$0x1]  ;;  %v1641_v60 = vld [vmem:[%s1716_s21] ss:$8 sps:$4 sm:$0xff]  }
  0x59   : > { %v631_v11 = vrot.slane %v629_v0, 5  ;;  %v883_v16 = vsel %vm1792_vm5, %v878_v5, %v882_v49  ;;  %v637_v17 = vrot.slane %v635_v7, 5  ;;  %v565_v18 = vshll.u32 %v1415_v61, 16  ;;  %205 = vst.msk [vmem:[#allocation2] sm:$0xff] %vm204_vm6, %v1641_v60 }
  0x5a   : > { %v570_v19 = vshrl.u32 %v1416_v2, 16  ;;  %v1487_v21 = vcombine.low %v869_v4, %v883_v16  ;;  %v619_v22 = vrot.slane %v618_v10, 4  ;;  %v558_v24 = vrot.slane %v556_v12, 4 }
  0x5b   : > { %496 = vrot.lane.b32.xlu0 %v1632_v50, %s1661_s29  ;;  %v632_v23 = vor.u32 %v631_v11, %v628_v6  ;;  %v561_v27 = vrot.slane %v559_v13, 5  ;;  %v567_v28 = vrot.slane %v565_v18, 5  ;;  %v573_v30 = vshll.u32 %v1416_v2, 16 }
  0x5c   : > { %958 = vrot.lane.b32.xlu1 %v1489_v62, %s1665_s20  ;;  %v572_v29 = vrot.slane %v570_v19, 4  ;;  %v624_v32 = vsel %vm1792_vm5, %v619_v22, %v623_v63  ;;  %v579_v34 = vshll.u32 %v1417_v8, 16  ;;  %v1512_v35 = vrot.slane %v1502_v9, 9  ;;  %v1643_v62 = vld [vmem:[%s1716_s21 + $0x20] ss:$8 sps:$4 sm:$0xff]  }
  0x5d   : > { %v633_v33 = vrot.slane %v632_v23, 4  ;;  %v562_v37 = vor.u32 %v561_v27, %v558_v24  ;;  %v575_v38 = vrot.slane %v573_v30, 5  ;;  %v1027_v39 = vrot.slane %v1503_v15, 5  ;;  %207 = vst.msk [vmem:[#allocation2 + $0x20] sm:$0xff] %vm204_vm6, %v1643_v62  ;;  %v1649_v63 = vld [vmem:[%s1716_s21 + $0x10] ss:$8 sps:$4 sm:$0xff]  }
  0x5e   : > { %v1513_v40 = vrot.slane %v1504_v20, 9  ;;  %v581_v43 = vrot.slane %v579_v34, 5  ;;  %v1031_v44 = vrot.slane %v1505_v25, 5  ;;  %v1508_v45 = vrot.slane %v1494_v26, 9  ;;  %206 = vst.msk [vmem:[#allocation2 + $0x10] sm:$0xff] %vm204_vm6, %v1649_v63 }
  0x5f   : > { %954 = vrot.lane.b32.xlu0 %v1487_v21, %s1665_s20  ;;  %v638_v42 = vsel %vm1792_vm5, %v633_v33, %v637_v17  ;;  %v563_v47 = vrot.slane %v562_v37, 4  ;;  %v576_v48 = vor.u32 %v575_v38, %v572_v29  ;;  %v1028_v49 = vsel %vm1709_vm2, %v1512_v35, %v1027_v39 }
  0x60   : > { %v1429_v46 = vcombine.low %v624_v32, %v638_v42  ;;  %v1032_v50 = vsel %vm1709_vm2, %v1513_v40, %v1031_v44  ;;  %v1011_v51 = vrot.slane %v1495_v31, 5  ;;  %v1509_v52 = vrot.slane %v1496_v36, 9  ;;  %v1518_v44 = vld [vmem:[%s2076_s2] ss:$0 sm:$0xff] }
  0x61   : > { %v1015_v53 = vrot.slane %v1497_v41, 5  ;;  %v568_v54 = vsel %vm1792_vm5, %v563_v47, %v567_v28  ;;  %v577_v55 = vrot.slane %v576_v48, 4  ;;  %v1517_v56 = vcombine.low %v1028_v49, %v1032_v50 }
  0x62   : > { %657 = vrot.lane.b32.xlu1 %v1429_v46, %s1666_s27  ;;  %v1012_v58 = vsel %vm1709_vm2, %v1508_v45, %v1011_v51  ;;  %v1200_v0 = vsel %vm1198_vm7, %v1650_v3, 0 }
  0x63   : > { %v582_v57 = vsel %vm1792_vm5, %v577_v55, %v581_v43  ;;  %v1016_v59 = vsel %vm1709_vm2, %v1509_v52, %v1015_v53  ;;  %1229 = vmatpush1.bf16.msra.mxu0 %v1200_v0  ;;  %1606 = vmatpush1.bf16.msra.mxu1 %v1200_v0 }
  0x64   : > { %v1427_v61 = vcombine.low %v568_v54, %v582_v57  ;;  %v1515_v1 = vcombine.low %v1012_v58, %v1016_v59 }
  0x66   : > { %1051 = vrot.lane.b32.xlu1 %v1517_v56, %s1667_s28  ;;  %653 = vrot.lane.b32.xlu0 %v1427_v61, %s1666_s27 }
  0x6a   : > { %1047 = vrot.lane.b32.xlu0 %v1515_v1, %s1667_s28 }
  0x84   : > { %v800_v2 = vpop.permute.xlu1 %799 }
  0x85   : > { %v796_v4 = vpop.permute.xlu0 %795 }
  0x89   : > { %v495_v6 = vpop.permute.xlu0 %494 }
  0x8b   : > { %v745_v5 = vpop.permute.xlu1 %744 }
  0x8c   : > { %759 = vst.msk [vmem:[#allocation2 + $0x8] sm:$0xff] %vm758_vm8, %v745_v5 }
  0x8d   : > { %808 = vst.msk [vmem:[#allocation2 + $0x8] sm:$0xff] %vm807_vm9, %v796_v4 }
  0x8f   : > { %v749_v7 = vpop.permute.xlu1 %748  ;;  %v449_v8 = vpop.permute.xlu0 %448 }
  0x90   : > { %763 = vst.msk [vmem:[#allocation2 + $0x28] sm:$0xff] %vm758_vm8, %v749_v7 }
  0x91   : > { %810 = vst.msk [vmem:[#allocation2 + $0x28] sm:$0xff] %vm807_vm9, %v800_v2 }
  0x93   : > { %v453_v9 = vpop.permute.xlu1 %452 }
  0x97   : > { %v499_v11 = vpop.permute.xlu1 %498 }
  0x99   : > { %v353_v10 = vpop.permute.xlu0 %352 }
  0x9a   : > { %365 = vst.msk [vmem:[#allocation2] sm:$0xff] %vm364_vm10, %v353_v10 }
  0x9b   : > { %461 = vst.msk [vmem:[#allocation2] sm:$0xff] %vm460_vm11, %v449_v8 }
  0x9c   : > { %507 = vst.msk [vmem:[#allocation2] sm:$0xff] %vm506_vm12, %v495_v6 }
  0x9d   : > { %v357_v12 = vpop.permute.xlu0 %356 }
  0x9e   : > { %367 = vst.msk [vmem:[#allocation2 + $0x20] sm:$0xff] %vm364_vm10, %v357_v12 }
  0x9f   : > { %463 = vst.msk [vmem:[#allocation2 + $0x20] sm:$0xff] %vm460_vm11, %v453_v9 }
  0xa0   : > { %509 = vst.msk [vmem:[#allocation2 + $0x20] sm:$0xff] %vm506_vm12, %v499_v11 }
  0xa3   : > { %v957_v13 = vpop.permute.xlu1 %956 }
  0xa4   : > { %967 = vst.msk [vmem:[#allocation2 + $0x28] sm:$0xff] %vm964_vm13, %v957_v13 }
  0xa8   : > { %v953_v15 = vpop.permute.xlu0 %952 }
  0xa9   : > { %965 = vst.msk [vmem:[#allocation2 + $0x8] sm:$0xff] %vm964_vm13, %v953_v15 }
  0xac   : > { %v656_v16 = vpop.permute.xlu1 %655 }
  0xad   : > { %666 = vst.msk [vmem:[#allocation2 + $0x20] sm:$0xff] %vm663_vm14, %v656_v16 }
  0xae   : > { %762 = vst.msk [vmem:[#allocation2 + $0x20] sm:$0xff] %vm756_vm15, %v749_v7 }
  0xb0   : > { %v1050_v17 = vpop.permute.xlu1 %1049 }
  0xb1   : > { %v652_v18 = vpop.permute.xlu0 %651  ;;  %1060 = vst.msk [vmem:[#allocation2 + $0x28] sm:$0xff] %vm1057_vm0, %v1050_v17 }
  0xb2   : > { %664 = vst.msk [vmem:[#allocation2] sm:$0xff] %vm663_vm14, %v652_v18 }
  0xb3   : > { %757 = vst.msk [vmem:[#allocation2] sm:$0xff] %vm756_vm15, %v745_v5 }
  0xb5   : > { %v1046_v19 = vpop.permute.xlu0 %1045  ;;  %v1066_v21 = vld [vmem:[#allocation2 + $0x20] sm:$0xff] }
  0xb6   : > { %1058 = vst.msk [vmem:[#allocation2 + $0x8] sm:$0xff] %vm1057_vm0, %v1046_v19 }
  0xb8   : > { %v1067_v20 = vld [vmem:[#allocation2 + $0x28] sm:$0xff] }
  0xb9   : > { %1535 = vmatprep.mubr.msk.bf16.mxu1 %vm1185_vm1, %v1067_v20 }
  0xba   : > { %v359_v22 = vpop.permute.xlu1 %358  ;;  %1251 = vmatmul.mubr.bf16.vlgmr.msra.gmra.mrb[0].mxu1 %v1066_v21  ;;  %v1062_v26 = vld [vmem:[#allocation2] sm:$0xff] }
  0xbb   : > { %368 = vst.msk [vmem:[#allocation2 + $0x30] sm:$0xff] %vm364_vm10, %v359_v22 }
  0xbd   : > { %v355_v23 = vpop.permute.xlu0 %354  ;;  %v1063_v24 = vld [vmem:[#allocation2 + $0x8] sm:$0xff] }
  0xbe   : > { %366 = vst.msk [vmem:[#allocation2 + $0x10] sm:$0xff] %vm364_vm10, %v355_v23  ;;  %v751_v25 = vpop.permute.xlu1 %750  ;;  %1533 = vmatprep.mubr.msk.bf16.mxu0 %vm1185_vm1, %v1063_v24 }
  0xbf   : > { %765 = vst.msk [vmem:[#allocation2 + $0x38] sm:$0xff] %vm758_vm8, %v751_v25  ;;  %1235 = vmatmul.mubr.bf16.vlgmr.msra.gmra.mrb[0].mxu0 %v1062_v26 }
  0xc1   : > { %v747_v27 = vpop.permute.xlu0 %746 }
  0xc2   : > { %761 = vst.msk [vmem:[#allocation2 + $0x18] sm:$0xff] %vm758_vm8, %v747_v27  ;;  %v455_v28 = vpop.permute.xlu1 %454 }
  0xc3   : > { %464 = vst.msk [vmem:[#allocation2 + $0x30] sm:$0xff] %vm460_vm11, %v455_v28 }
  0xc5   : > { %v451_v29 = vpop.permute.xlu0 %450 }
  0xc6   : > { %462 = vst.msk [vmem:[#allocation2 + $0x10] sm:$0xff] %vm460_vm11, %v451_v29  ;;  %v802_v30 = vpop.permute.xlu1 %801 }
  0xc7   : > { %811 = vst.msk [vmem:[#allocation2 + $0x38] sm:$0xff] %vm807_vm9, %v802_v30 }
  0xc9   : > { %v798_v31 = vpop.permute.xlu0 %797 }
  0xca   : > { %809 = vst.msk [vmem:[#allocation2 + $0x18] sm:$0xff] %vm807_vm9, %v798_v31  ;;  %v501_v32 = vpop.permute.xlu1 %500 }
  0xcb   : > { %510 = vst.msk [vmem:[#allocation2 + $0x30] sm:$0xff] %vm506_vm12, %v501_v32 }
  0xcd   : > { %v497_v33 = vpop.permute.xlu0 %496 }
  0xce   : > { %508 = vst.msk [vmem:[#allocation2 + $0x10] sm:$0xff] %vm506_vm12, %v497_v33  ;;  %v959_v34 = vpop.permute.xlu1 %958 }
  0xcf   : > { %968 = vst.msk [vmem:[#allocation2 + $0x38] sm:$0xff] %vm964_vm13, %v959_v34 }
  0xd1   : > { %v955_v35 = vpop.permute.xlu0 %954 }
  0xd2   : > { %966 = vst.msk [vmem:[#allocation2 + $0x18] sm:$0xff] %vm964_vm13, %v955_v35 }
  0xd4   : > { %v658_v36 = vpop.permute.xlu1 %657 }
  0xd5   : > { %667 = vst.msk [vmem:[#allocation2 + $0x30] sm:$0xff] %vm663_vm14, %v658_v36 }
  0xd6   : > { %764 = vst.msk [vmem:[#allocation2 + $0x30] sm:$0xff] %vm756_vm15, %v751_v25 }
  0xd8   : > { %v1052_v37 = vpop.permute.xlu1 %1051  ;;  %v654_v38 = vpop.permute.xlu0 %653 }
  0xd9   : > { %1061 = vst.msk [vmem:[#allocation2 + $0x38] sm:$0xff] %vm1057_vm0, %v1052_v37 }
  0xda   : > { %665 = vst.msk [vmem:[#allocation2 + $0x10] sm:$0xff] %vm663_vm14, %v654_v38 }
  0xdb   : > { %760 = vst.msk [vmem:[#allocation2 + $0x10] sm:$0xff] %vm756_vm15, %v747_v27 }
  0xdc   : > { %v1048_v39 = vpop.permute.xlu0 %1047 }
  0xdd   : > { %1059 = vst.msk [vmem:[#allocation2 + $0x18] sm:$0xff] %vm1057_vm0, %v1048_v39  ;;  %v1068_v41 = vld [vmem:[#allocation2 + $0x30] sm:$0xff] }
  0xe0   : > { %v1069_v40 = vld [vmem:[#allocation2 + $0x38] sm:$0xff] }
  0xe1   : > { %1536 = vmatprep.mubr.msk.bf16.mxu1 %vm1185_vm1, %v1069_v40 }
  0xe2   : > { %1259 = vmatmul.mubr.bf16.gmra.mrb[4].mxu1 %v1068_v41  ;;  %v1064_v43 = vld [vmem:[#allocation2 + $0x10] sm:$0xff] }
  0xe4   : > { %v1065_v42 = vld [vmem:[#allocation2 + $0x18] sm:$0xff] }
  0xe5   : > { %1534 = vmatprep.mubr.msk.bf16.mxu0 %vm1185_vm1, %v1065_v42 }
  0xe6   : > { %1243 = vmatmul.mubr.bf16.gmra.mrb[4].mxu0 %v1064_v43 }
 0x18d   : > { %v1252_v45 = vpop.f32.mrb[0].mxu1 }
 0x18e   : > { %v1253_v46 = vadd.f32 %v1518_v44, %v1252_v45  ;;  %v1254_v47 = vpop.f32.mrb[1].mxu1 }
 0x18f   : > { %v1255_v48 = vpop.f32.mrb[2].mxu1 }
 0x190   : > { %v1256_v49 = vadd.f32 %v1518_v44, %v1255_v48  ;;  %v1257_v50 = vpop.f32.mrb[3].mxu1  ;;  %v1271_v52 = vmax.f32 %v1253_v46, 0.0 }
 0x192   : > { %v1236_v51 = vpop.f32.mrb[0].mxu0  ;;  %v1272_v53 = vmax.f32 %v1256_v49, 0.0 }
 0x193   : > { %v1237_v54 = vadd.f32 %v1518_v44, %v1236_v51  ;;  %v1238_v55 = vpop.f32.mrb[1].mxu0 }
 0x194   : > { %v1239_v56 = vpop.f32.mrb[2].mxu0  ;;  %v1569_v57 = vpack.c.bf16 %v1272_v53, %v1271_v52 }
 0x195   : > { %v1240_v58 = vadd.f32 %v1518_v44, %v1239_v56  ;;  %v1241_v59 = vpop.f32.mrb[3].mxu0  ;;  %v1267_v60 = vmax.f32 %v1237_v54, 0.0 }
 0x196   : > { %1577 = vst [vmem:[%s170_s7 + $0x10] sm:$0xff] %v1569_v57  }
 0x197   : > { %v1268_v61 = vmax.f32 %v1240_v58, 0.0 }
 0x199   : > { %v1559_v62 = vpack.c.bf16 %v1268_v61, %v1267_v60 }
 0x19b   : > { %1560 = vst [vmem:[%s170_s7] sm:$0xff] %v1559_v62  }
 0x1b5   : > { %v1260_v1 = vpop.f32.mrb[4].mxu1 }
 0x1b6   : > { %v1261_v14 = vadd.f32 %v1518_v44, %v1260_v1  ;;  %v1262_v63 = vpop.f32.mrb[5].mxu1 }
 0x1b7   : > { %v1263_v3 = vpop.f32.mrb[6].mxu1 }
 0x1b8   : > { %v1264_v0 = vadd.f32 %v1518_v44, %v1263_v3  ;;  %v1265_v2 = vpop.f32.mrb[7].mxu1  ;;  %v1273_v5 = vmax.f32 %v1261_v14, 0.0 }
 0x1b9   : > { %v1244_v4 = vpop.f32.mrb[4].mxu0 }
 0x1ba   : > { %v1274_v6 = vmax.f32 %v1264_v0, 0.0  ;;  %v1245_v7 = vadd.f32 %v1518_v44, %v1244_v4  ;;  %v1246_v8 = vpop.f32.mrb[5].mxu0 }
 0x1bb   : > { %v1247_v9 = vpop.f32.mrb[6].mxu0 }
 0x1bc   : > { %v1574_v10 = vpack.c.bf16 %v1274_v6, %v1273_v5  ;;  %v1248_v11 = vadd.f32 %v1518_v44, %v1247_v9  ;;  %v1249_v12 = vpop.f32.mrb[7].mxu0  ;;  %v1269_v13 = vmax.f32 %v1245_v7, 0.0 }
 0x1be   : > { %1578 = vst [vmem:[%s170_s7 + $0x18] sm:$0xff] %v1574_v10   ;;  %v1270_v15 = vmax.f32 %v1248_v11, 0.0 }
 0x1c0   : > { %v1564_v16 = vpack.c.bf16 %v1270_v15, %v1269_v13 }
 0x1c2   : > { %1576 = vst [vmem:[%s170_s7 + $0x8] sm:$0xff] %v1564_v16  }
 0x1c3 PF: > { %s13_s12 = sadd.s32 1, %s1657_s12  }
 0x1c4   : > { %p10_p4 = scmp.ge.s32.totalorder %s13_s12, 4  }
 0x1c6   :  { %12 = sbr.rel (!%p10_p4) target bundleno = 1 (0x1), region = 64 }

// kernel: _lambda_.25
= control target key start
LH: loop header
LB: loop body
LE: loop exit
PB: predicated region body
PF: predicated region fallthrough
CT: control target
= control target key end

     0   :  { %s1598_s12 = smov 0   ;;  %s1892_s0 = inlined_call_operand.vmem [shape: bf16[2,10,10,8], index: 0, kind: input, shape index: {}]   ;;  %s1893_s1 = inlined_call_operand.vmem [shape: bf16[72,128], index: 1, kind: input, shape index: {}]   ;;  %s1894_s2 = inlined_call_operand.vmem [shape: f32[1,128], index: 2, kind: input, shape index: {}]   ;;  %s1895_s3 = inlined_call_operand.vmem [shape: bf16[2,64,128], index: 3, kind: output, shape index: {}]  }
   0x1 LB: > { %s1289_s13 = sadd.s32 4294967295, %s1568_s12   ;;  %p1293_p0 = scmp.ge.s32.totalorder %s1568_s12, 1  ;;  %s1568_s12 = sphi %s1598_s12, %s13_s12  }
   0x2   : > { %p137_p1 = scmp.lt.s32.totalorder %s1568_s12, 3 }
   0x4   : > { %p138_p2 = pnand %p1293_p0, %p137_p1 }
   0x5   : > { %p161_p3 = scmp.lt.s32.totalorder (!%p138_p2), %s1289_s13, 1  ;;  %vm401_vm0 = vcmask (!%p138_p2), 1042432   ;;  %vm402_vm1 = vcmask (!%p138_p2), 1046532   ;;  %s1570_s18 = smov (!%p138_p2), 24   ;;  %vm225_vm3 = vsmask.f32 (!%p138_p2), 3328 }
   0x6   : > { %141 = sbr.rel (%p138_p2) target bundleno = 451 (0x1c3), region = 32  ;;  %vm1614_vm2 = vmor (!%p138_p2), %vm401_vm0, %vm402_vm1  ;;  %vm226_vm4 = vsmask.f32 (!%p138_p2), 7440  ;;  %s1571_s19 = smov (!%p138_p2), 16   ;;  %vm204_vm6 = vcmask (!%p138_p2), 64512   ;;  %vm1117_vm7 = vcmask (!%p138_p2), 1043456  }
   0x7   : > { %vm1668_vm5 = vmor (!%p138_p2), %vm225_vm3, %vm226_vm4  ;;  %s1572_s20 = smov (!%p138_p2), 8   ;;  %s1573_s21 = smov (!%p138_p2), 32   ;;  %vm364_vm8 = vcmask (!%p138_p2), 130112   ;;  %vm460_vm9 = vcmask (!%p138_p2), 195712   ;;  %vm506_vm10 = vcmask (!%p138_p2), 261312   ;;  %vm663_vm11 = vcmask (!%p138_p2), 326912  }
   0x8   : > { %s1574_s22 = smov (!%p138_p2), 40   ;;  %s1575_s23 = smov (!%p138_p2), 48   ;;  %vm756_vm12 = vcmask (!%p138_p2), 392512   ;;  %vm802_vm13 = vcmask (!%p138_p2), 458112   ;;  %vm959_vm14 = vcmask (!%p138_p2), 523712   ;;  %vm1052_vm15 = vcmask (!%p138_p2), 589312  }
   0x9   : > { %s1576_s28 = smov (!%p138_p2), 56   ;;  %s1577_s6 = smov (!%p138_p2), 64   ;;  %vm1104_vm0 = vcmask (!%p138_p2), 588800  }
   0xd   : > { %s1901_s13 = smov (!%p161_p3, %s1289_s13), 1 }
   0xe   : > { %s1528_s14 = smul.u32 80, %s1901_s13  ;;  %s1457_s11 = sshll.u32 %s1901_s13, 5 }
   0xf   : > { %s170_s16 = scalar_lea.vmem %s1895_s3, %s1457_s11 }
  0x10   : > { %s1612_s17 = scalar_lea.vmem %s1892_s0, %s1528_s14 }
  0x11   : > { %v1545_v1 = vld [vmem:[%s1612_s17 + $0x28] ss:$8 sps:$4 sm:$0xff]   ;;  %v377_v3 = vld [vmem:[%s1612_s17 + $0x20] sm:$0xe]  ;;  %v378_v4 = vld [vmem:[%s1612_s17 + $0x24] sm:$0x1] }
  0x12   : > { %v1546_v2 = vld [vmem:[%s1612_s17 + $0x8] ss:$8 sps:$4 sm:$0xff]   ;;  %498 = vrot.lane.b32.xlu1 %v1545_v1, %s1570_s18  ;;  %v380_v6 = vld [vmem:[%s1612_s17 + $0x2c] sm:$0x1]  ;;  %v1309_v7 = vrot.slane %v377_v3, 9  ;;  %v422_v8 = vrot.slane %v378_v4, 5 }
  0x13   : > { %v379_v5 = vld [vmem:[%s1612_s17 + $0x28] sm:$0xe]  ;;  %494 = vrot.lane.b32.xlu0 %v1546_v2, %s1570_s18  ;;  %v426_v10 = vrot.slane %v380_v6, 5  ;;  %v369_v11 = vld [vmem:[%s1612_s17] sm:$0xe] }
  0x14   : > { %v1310_v9 = vrot.slane %v379_v5, 9  ;;  %v370_v12 = vld [vmem:[%s1612_s17 + $0x4] sm:$0x1]  ;;  %v423_v13 = vsel %vm1614_vm2, %v1309_v7, %v422_v8  ;;  %v371_v14 = vld [vmem:[%s1612_s17 + $0x8] sm:$0xe]  ;;  %v1305_v16 = vrot.slane %v369_v11, 9 }
  0x15   : > { %v372_v15 = vld [vmem:[%s1612_s17 + $0xc] sm:$0x1]  ;;  %v406_v17 = vrot.slane %v370_v12, 5  ;;  %v1306_v19 = vrot.slane %v371_v14, 9  ;;  %v381_v21 = vld [vmem:[%s1612_s17 + $0x30] sm:$0xe] }
  0x16   : > { %v427_v18 = vsel %vm1614_vm2, %v1310_v9, %v426_v10  ;;  %v410_v20 = vrot.slane %v372_v15, 5  ;;  %v382_v22 = vld [vmem:[%s1612_s17 + $0x34] sm:$0x1]  ;;  %v383_v25 = vld [vmem:[%s1612_s17 + $0x38] sm:$0xe]  ;;  %v1311_v27 = vrot.slane %v381_v21, 9 }
  0x17   : > { %v1315_v23 = vcombine.low %v423_v13, %v427_v18  ;;  %v407_v24 = vsel %vm1614_vm2, %v1305_v16, %v406_v17  ;;  %v384_v26 = vld [vmem:[%s1612_s17 + $0x3c] sm:$0x1]  ;;  %v430_v28 = vrot.slane %v382_v22, 5  ;;  %v1312_v30 = vrot.slane %v383_v25, 9  ;;  %v373_v32 = vld [vmem:[%s1612_s17 + $0x10] sm:$0xe] }
  0x18   : > { %v411_v29 = vsel %vm1614_vm2, %v1306_v19, %v410_v20  ;;  %v434_v31 = vrot.slane %v384_v26, 5  ;;  %v374_v33 = vld [vmem:[%s1612_s17 + $0x14] sm:$0x1]  ;;  %v375_v36 = vld [vmem:[%s1612_s17 + $0x18] sm:$0xe]  ;;  %v1307_v38 = vrot.slane %v373_v32, 9 }
  0x19   : > { %452 = vrot.lane.b32.xlu1 %v1315_v23, %s1571_s19  ;;  %v1313_v34 = vcombine.low %v407_v24, %v411_v29  ;;  %v431_v35 = vsel %vm1614_vm2, %v1311_v27, %v430_v28  ;;  %v376_v37 = vld [vmem:[%s1612_s17 + $0x1c] sm:$0x1]  ;;  %v414_v39 = vrot.slane %v374_v33, 5  ;;  %v1308_v41 = vrot.slane %v375_v36, 9  ;;  %v213_v43 = vld [vmem:[%s1612_s17 + $0x10] sm:$0xf] }
  0x1a   : > { %v435_v40 = vsel %vm1614_vm2, %v1312_v30, %v434_v31  ;;  %v418_v42 = vrot.slane %v376_v37, 5  ;;  %v214_v44 = vld [vmem:[%s1612_s17 + $0x14] sm:$0x1]  ;;  %v215_v47 = vld [vmem:[%s1612_s17 + $0x18] sm:$0xf]  ;;  %v257_v49 = vshrl.u32 %v213_v43, 16 }
  0x1b   : > { %448 = vrot.lane.b32.xlu0 %v1313_v34, %s1571_s19  ;;  %v1316_v45 = vcombine.low %v431_v35, %v435_v40  ;;  %v415_v46 = vsel %vm1614_vm2, %v1307_v38, %v414_v39  ;;  %v216_v48 = vld [vmem:[%s1612_s17 + $0x1c] sm:$0x1]  ;;  %v260_v50 = vshll.u32 %v213_v43, 16  ;;  %v266_v52 = vshll.u32 %v214_v44, 16  ;;  %v209_v55 = vld [vmem:[%s1612_s17] sm:$0xf] }
  0x1c   : > { %v419_v51 = vsel %vm1614_vm2, %v1308_v41, %v418_v42  ;;  %v271_v53 = vshrl.u32 %v215_v47, 16  ;;  %v274_v54 = vshll.u32 %v215_v47, 16  ;;  %v259_v57 = vrot.slane %v257_v49, 4  ;;  %v210_v60 = vld [vmem:[%s1612_s17 + $0x4] sm:$0x1] }
  0x1d   : > { %454 = vrot.lane.b32.xlu1 %v1316_v45, %s1571_s19  ;;  %v1314_v56 = vcombine.low %v415_v46, %v419_v51  ;;  %v262_v58 = vrot.slane %v260_v50, 5  ;;  %v280_v59 = vshll.u32 %v216_v48, 16  ;;  %v268_v61 = vrot.slane %v266_v52, 5  ;;  %v211_v1 = vld [vmem:[%s1612_s17 + $0x8] sm:$0xf] }
  0x1e   : > { %v273_v62 = vrot.slane %v271_v53, 4  ;;  %v276_v63 = vrot.slane %v274_v54, 5  ;;  %v229_v2 = vshrl.u32 %v209_v55, 16  ;;  %v212_v5 = vld [vmem:[%s1612_s17 + $0xc] sm:$0x1]  ;;  %v232_v6 = vshll.u32 %v209_v55, 16 }
  0x1f   : > { %450 = vrot.lane.b32.xlu0 %v1314_v56, %s1571_s19  ;;  %v263_v3 = vor.u32 %v262_v58, %v259_v57  ;;  %v282_v4 = vrot.slane %v280_v59, 5  ;;  %v238_v7 = vshll.u32 %v210_v60, 16  ;;  %v243_v11 = vshrl.u32 %v211_v1, 16  ;;  %v221_v13 = vld [vmem:[%s1612_s17 + $0x30] sm:$0xf] }
  0x20   : > { %v277_v9 = vor.u32 %v276_v63, %v273_v62  ;;  %v231_v10 = vrot.slane %v229_v2, 4  ;;  %v246_v12 = vshll.u32 %v211_v1, 16  ;;  %v234_v15 = vrot.slane %v232_v6, 5  ;;  %v222_v18 = vld [vmem:[%s1612_s17 + $0x34] sm:$0x1] }
  0x21   : > { %v264_v14 = vrot.slane %v263_v3, 4  ;;  %v240_v16 = vrot.slane %v238_v7, 5  ;;  %v252_v17 = vshll.u32 %v212_v5, 16  ;;  %v245_v20 = vrot.slane %v243_v11, 4  ;;  %v223_v22 = vld [vmem:[%s1612_s17 + $0x38] sm:$0xf] }
  0x22   : > { %v278_v19 = vrot.slane %v277_v9, 4  ;;  %v248_v21 = vrot.slane %v246_v12, 5  ;;  %v313_v23 = vshrl.u32 %v221_v13, 16  ;;  %v235_v25 = vor.u32 %v234_v15, %v231_v10  ;;  %v224_v27 = vld [vmem:[%s1612_s17 + $0x3c] sm:$0x1] }
  0x23   : > { %v269_v24 = vsel %vm1668_vm5, %v264_v14, %v268_v61  ;;  %v254_v26 = vrot.slane %v252_v17, 5  ;;  %v316_v28 = vshll.u32 %v221_v13, 16  ;;  %v322_v32 = vshll.u32 %v222_v18, 16  ;;  %v217_v33 = vld [vmem:[%s1612_s17 + $0x20] sm:$0xf] }
  0x24   : > { %v283_v29 = vsel %vm1668_vm5, %v278_v19, %v282_v4  ;;  %v249_v30 = vor.u32 %v248_v21, %v245_v20  ;;  %v315_v31 = vrot.slane %v313_v23, 4  ;;  %v218_v34 = vld [vmem:[%s1612_s17 + $0x24] sm:$0x1]  ;;  %v236_v36 = vrot.slane %v235_v25, 4  ;;  %v219_v39 = vld [vmem:[%s1612_s17 + $0x28] sm:$0xf] }
  0x25   : > { %v1302_v35 = vcombine.low %v269_v24, %v283_v29  ;;  %v318_v37 = vrot.slane %v316_v28, 5  ;;  %v327_v38 = vshrl.u32 %v223_v22, 16  ;;  %v324_v41 = vrot.slane %v322_v32, 5  ;;  %v220_v47 = vld [vmem:[%s1612_s17 + $0x2c] sm:$0x1] }
  0x26   : > { %v250_v40 = vrot.slane %v249_v30, 4  ;;  %v330_v42 = vshll.u32 %v223_v22, 16  ;;  %v336_v43 = vshll.u32 %v224_v27, 16  ;;  %v241_v44 = vsel %vm1668_vm5, %v236_v36, %v240_v16  ;;  %v1337_v1 = vld [vmem:[%s1612_s17 + $0x28] sm:$0xf] }
  0x27   : > { %354 = vrot.lane.b32.xlu1 %v1302_v35, %s1572_s20  ;;  %v319_v45 = vor.u32 %v318_v37, %v315_v31  ;;  %v329_v46 = vrot.slane %v327_v38, 4  ;;  %v285_v48 = vshrl.u32 %v217_v33, 16  ;;  %v288_v52 = vshll.u32 %v217_v33, 16  ;;  %v1338_v2 = vld [vmem:[%s1612_s17 + $0x2c] sm:$0x1] }
  0x28   : > { %v255_v49 = vsel %vm1668_vm5, %v250_v40, %v254_v26  ;;  %v332_v50 = vrot.slane %v330_v42, 5  ;;  %v338_v51 = vrot.slane %v336_v43, 5  ;;  %v294_v56 = vshll.u32 %v218_v34, 16  ;;  %v1339_v7 = vld [vmem:[%s1612_s17 + $0x30] sm:$0xf] }
  0x29   : > { %v1301_v53 = vcombine.low %v241_v44, %v255_v49  ;;  %v320_v54 = vrot.slane %v319_v45, 4  ;;  %v287_v55 = vrot.slane %v285_v48, 4  ;;  %v290_v58 = vrot.slane %v288_v52, 5  ;;  %v1340_v10 = vld [vmem:[%s1612_s17 + $0x34] sm:$0x1] }
  0x2a   : > { %v333_v57 = vor.u32 %v332_v50, %v329_v46  ;;  %v299_v59 = vshrl.u32 %v219_v39, 16  ;;  %v302_v60 = vshll.u32 %v219_v39, 16  ;;  %v296_v62 = vrot.slane %v294_v56, 5  ;;  %v1329_v18 = vld [vmem:[%s1612_s17 + $0x8] sm:$0xf] }
  0x2b   : > { %352 = vrot.lane.b32.xlu0 %v1301_v53, %s1572_s20  ;;  %v325_v61 = vsel %vm1668_vm5, %v320_v54, %v324_v41  ;;  %v308_v63 = vshll.u32 %v220_v47, 16  ;;  %v291_v4 = vor.u32 %v290_v58, %v287_v55  ;;  %v584_v11 = vshrl.u32 %v1337_v1, 16  ;;  %v1330_v19 = vld [vmem:[%s1612_s17 + $0xc] sm:$0x1]  ;;  %v1331_v24 = vld [vmem:[%s1612_s17 + $0x10] sm:$0xf] }
  0x2c   : > { %v334_v3 = vrot.slane %v333_v57, 4  ;;  %v301_v5 = vrot.slane %v299_v59, 4  ;;  %v304_v6 = vrot.slane %v302_v60, 5  ;;  %v587_v12 = vshll.u32 %v1337_v1, 16  ;;  %v1547_v27 = vld [vmem:[%s1612_s17 + $0x38] ss:$8 sps:$4 sm:$0xff]  }
  0x2d   : > { %v310_v9 = vrot.slane %v308_v63, 5  ;;  %v593_v13 = vshll.u32 %v1338_v2, 16  ;;  %v292_v15 = vrot.slane %v291_v4, 4  ;;  %v598_v17 = vshrl.u32 %v1339_v7, 16  ;;  %v1332_v32 = vld [vmem:[%s1612_s17 + $0x14] sm:$0x1] }
  0x2e   : > { %v339_v14 = vsel %vm1668_vm5, %v334_v3, %v338_v51  ;;  %v305_v16 = vor.u32 %v304_v6, %v301_v5  ;;  %v586_v21 = vrot.slane %v584_v11, 4  ;;  %v589_v22 = vrot.slane %v587_v12, 5  ;;  %v1341_v39 = vld [vmem:[%s1612_s17 + $0x38] sm:$0xf]  ;;  %v1342_v44 = vld [vmem:[%s1612_s17 + $0x3c] sm:$0x1] }
  0x2f   : > { %v1304_v20 = vcombine.low %v325_v61, %v339_v14  ;;  %v595_v23 = vrot.slane %v593_v13, 5  ;;  %v297_v25 = vsel %vm1668_vm5, %v292_v15, %v296_v62  ;;  %v600_v28 = vrot.slane %v598_v17, 4  ;;  %v1343_v49 = vld [vmem:[%s1612_s17 + $0x40] sm:$0xf]  ;;  %v1344_v57 = vld [vmem:[%s1612_s17 + $0x44] sm:$0x1] }
  0x30   : > { %v306_v26 = vrot.slane %v305_v16, 4  ;;  %v601_v29 = vshll.u32 %v1339_v7, 16  ;;  %v590_v30 = vor.u32 %v589_v22, %v586_v21  ;;  %v607_v31 = vshll.u32 %v1340_v10, 16  ;;  %v1548_v50 = vld [vmem:[%s1612_s17 + $0x18] ss:$8 sps:$4 sm:$0xff]  }
  0x31   : > { %358 = vrot.lane.b32.xlu1 %v1304_v20, %s1572_s20  ;;  %v528_v33 = vshrl.u32 %v1329_v18, 16  ;;  %v531_v34 = vshll.u32 %v1329_v18, 16  ;;  %v537_v37 = vshll.u32 %v1330_v19, 16  ;;  %v542_v38 = vshrl.u32 %v1331_v24, 16  ;;  %v1333_v1 = vld [vmem:[%s1612_s17 + $0x18] sm:$0xf] }
  0x32   : > { %v311_v35 = vsel %vm1668_vm5, %v306_v26, %v310_v9  ;;  %v603_v36 = vrot.slane %v601_v29, 5  ;;  %v591_v41 = vrot.slane %v590_v30, 4  ;;  %v609_v42 = vrot.slane %v607_v31, 5  ;;  %v1334_v6 = vld [vmem:[%s1612_s17 + $0x1c] sm:$0x1] }
  0x33   : > { %v1303_v40 = vcombine.low %v297_v25, %v311_v35  ;;  %v530_v43 = vrot.slane %v528_v33, 4  ;;  %v533_v46 = vrot.slane %v531_v34, 5  ;;  %v539_v47 = vrot.slane %v537_v37, 5  ;;  %v1335_v12 = vld [vmem:[%s1612_s17 + $0x20] sm:$0xf] }
  0x34   : > { %v604_v45 = vor.u32 %v603_v36, %v600_v28  ;;  %v544_v48 = vrot.slane %v542_v38, 4  ;;  %v596_v51 = vsel %vm1668_vm5, %v591_v41, %v595_v23  ;;  %v545_v52 = vshll.u32 %v1331_v24, 16  ;;  %v1336_v16 = vld [vmem:[%s1612_s17 + $0x24] sm:$0x1]  ;;  %v1357_v18 = vld [vmem:[%s1612_s17 + $0x28] sm:$0xe] }
  0x35   : > { %356 = vrot.lane.b32.xlu0 %v1303_v40, %s1572_s20  ;;  %500 = vrot.lane.b32.xlu1 %v1547_v27, %s1570_s18  ;;  %v551_v53 = vshll.u32 %v1332_v32, 16  ;;  %v612_v54 = vshrl.u32 %v1341_v39, 16  ;;  %v534_v56 = vor.u32 %v533_v46, %v530_v43  ;;  %v615_v58 = vshll.u32 %v1341_v39, 16  ;;  %v1358_v23 = vld [vmem:[%s1612_s17 + $0x2c] sm:$0x1] }
  0x36   : > { %v605_v55 = vrot.slane %v604_v45, 4  ;;  %v621_v59 = vshll.u32 %v1342_v44, 16  ;;  %v547_v60 = vrot.slane %v545_v52, 5  ;;  %v626_v63 = vshrl.u32 %v1343_v49, 16  ;;  %v1359_v28 = vld [vmem:[%s1612_s17 + $0x30] sm:$0xe] }
  0x37   : > { %v553_v61 = vrot.slane %v551_v53, 5  ;;  %v614_v62 = vrot.slane %v612_v54, 4  ;;  %v535_v3 = vrot.slane %v534_v56, 4  ;;  %v617_v4 = vrot.slane %v615_v58, 5  ;;  %v1360_v33 = vld [vmem:[%s1612_s17 + $0x34] sm:$0x1] }
  0x38   : > { %v610_v2 = vsel %vm1668_vm5, %v605_v55, %v609_v42  ;;  %v623_v5 = vrot.slane %v621_v59, 5  ;;  %v548_v9 = vor.u32 %v547_v60, %v544_v48  ;;  %v628_v10 = vrot.slane %v626_v63, 4  ;;  %v1349_v34 = vld [vmem:[%s1612_s17 + $0x8] sm:$0xe]  ;;  %v1350_v39 = vld [vmem:[%s1612_s17 + $0xc] sm:$0x1] }
  0x39   : > { %496 = vrot.lane.b32.xlu0 %v1548_v50, %s1570_s18  ;;  %v1347_v7 = vcombine.low %v596_v51, %v610_v2  ;;  %v629_v11 = vshll.u32 %v1343_v49, 16  ;;  %v540_v13 = vsel %vm1668_vm5, %v535_v3, %v539_v47  ;;  %v618_v14 = vor.u32 %v617_v4, %v614_v62  ;;  %v1351_v40 = vld [vmem:[%s1612_s17 + $0x10] sm:$0xe]  ;;  %v1352_v45 = vld [vmem:[%s1612_s17 + $0x14] sm:$0x1] }
  0x3a   : > { %v635_v15 = vshll.u32 %v1344_v57, 16  ;;  %v556_v17 = vshrl.u32 %v1333_v1, 16  ;;  %v549_v19 = vrot.slane %v548_v9, 4  ;;  %v559_v21 = vshll.u32 %v1333_v1, 16  ;;  %v1361_v46 = vld [vmem:[%s1612_s17 + $0x38] sm:$0xe] }
  0x3b   : > { %655 = vrot.lane.b32.xlu1 %v1347_v7, %s1573_s21  ;;  %v631_v20 = vrot.slane %v629_v11, 5  ;;  %v565_v22 = vshll.u32 %v1334_v6, 16  ;;  %v619_v24 = vrot.slane %v618_v14, 4  ;;  %v570_v27 = vshrl.u32 %v1335_v12, 16  ;;  %v1362_v47 = vld [vmem:[%s1612_s17 + $0x3c] sm:$0x1] }
  0x3c   : > { %v637_v25 = vrot.slane %v635_v15, 5  ;;  %v558_v26 = vrot.slane %v556_v17, 4  ;;  %v554_v29 = vsel %vm1668_vm5, %v549_v19, %v553_v61  ;;  %v561_v31 = vrot.slane %v559_v21, 5  ;;  %v1363_v52 = vld [vmem:[%s1612_s17 + $0x40] sm:$0xe] }
  0x3d   : > { %v632_v30 = vor.u32 %v631_v20, %v628_v10  ;;  %v567_v32 = vrot.slane %v565_v22, 5  ;;  %v1345_v35 = vcombine.low %v540_v13, %v554_v29  ;;  %v624_v36 = vsel %vm1668_vm5, %v619_v24, %v623_v5  ;;  %v1364_v57 = vld [vmem:[%s1612_s17 + $0x44] sm:$0x1]  ;;  %v1353_v62 = vld [vmem:[%s1612_s17 + $0x18] sm:$0xe] }
  0x3e   : > { %v572_v37 = vrot.slane %v570_v27, 4  ;;  %v573_v38 = vshll.u32 %v1335_v12, 16  ;;  %v562_v42 = vor.u32 %v561_v31, %v558_v26  ;;  %v579_v43 = vshll.u32 %v1336_v16, 16  ;;  %v1354_v63 = vld [vmem:[%s1612_s17 + $0x1c] sm:$0x1] }
  0x3f   : > { %v633_v41 = vrot.slane %v632_v30, 4  ;;  %v1369_v44 = vrot.slane %v1357_v18, 9  ;;  %651 = vrot.lane.b32.xlu0 %v1345_v35, %s1573_s21  ;;  %v718_v49 = vrot.slane %v1358_v23, 5  ;;  %v1370_v50 = vrot.slane %v1359_v28, 9  ;;  %v1355_v1 = vld [vmem:[%s1612_s17 + $0x20] sm:$0xe] }
  0x40   : > { %v575_v48 = vrot.slane %v573_v38, 5  ;;  %v722_v51 = vrot.slane %v1360_v33, 5  ;;  %v563_v54 = vrot.slane %v562_v42, 4  ;;  %v581_v55 = vrot.slane %v579_v43, 5  ;;  %v1356_v11 = vld [vmem:[%s1612_s17 + $0x24] sm:$0x1] }
  0x41   : > { %v638_v53 = vsel %vm1668_vm5, %v633_v41, %v637_v25  ;;  %v1365_v56 = vrot.slane %v1349_v34, 9  ;;  %v719_v60 = vsel %vm1614_vm2, %v1369_v44, %v718_v49  ;;  %v702_v4 = vrot.slane %v1350_v39, 5  ;;  %v1397_v26 = vld [vmem:[%s1612_s17 + $0x30] sm:$0xf]  ;;  %v1398_v30 = vld [vmem:[%s1612_s17 + $0x34] sm:$0x1] }
  0x42   : > { %v1348_v58 = vcombine.low %v624_v36, %v638_v53  ;;  %v576_v59 = vor.u32 %v575_v48, %v572_v37  ;;  %v723_v61 = vsel %vm1614_vm2, %v1370_v50, %v722_v51  ;;  %v568_v2 = vsel %vm1668_vm5, %v563_v54, %v567_v32  ;;  %v1549_v29 = vld [vmem:[%s1612_s17 + $0x30] ss:$8 sps:$4 sm:$0xff]   ;;  %v1400_v32 = vld [vmem:[%s1612_s17 + $0x3c] sm:$0x1] }
  0x43   : > { %v1375_v3 = vcombine.low %v719_v60, %v723_v61  ;;  %v1366_v5 = vrot.slane %v1351_v40, 9  ;;  %v706_v7 = vrot.slane %v1352_v45, 5  ;;  %v1371_v9 = vrot.slane %v1361_v46, 9  ;;  %v1399_v31 = vld [vmem:[%s1612_s17 + $0x38] sm:$0xf] }
  0x44   : > { %657 = vrot.lane.b32.xlu1 %v1348_v58, %s1573_s21  ;;  %v577_v6 = vrot.slane %v576_v59, 4  ;;  %v726_v10 = vrot.slane %v1362_v47, 5  ;;  %v703_v12 = vsel %vm1614_vm2, %v1365_v56, %v702_v4  ;;  %v1372_v13 = vrot.slane %v1363_v52, 9  ;;  %v1389_v36 = vld [vmem:[%s1612_s17 + $0x10] sm:$0xf] }
  0x45   : > { %v730_v14 = vrot.slane %v1364_v57, 5  ;;  %v1367_v15 = vrot.slane %v1353_v62, 9  ;;  %v707_v17 = vsel %vm1614_vm2, %v1366_v5, %v706_v7  ;;  %v710_v19 = vrot.slane %v1354_v63, 5  ;;  %v1390_v40 = vld [vmem:[%s1612_s17 + $0x14] sm:$0x1] }
  0x46   : > { %v582_v16 = vsel %vm1668_vm5, %v577_v6, %v581_v55  ;;  %v727_v18 = vsel %vm1614_vm2, %v1371_v9, %v726_v10  ;;  %v1368_v22 = vrot.slane %v1355_v1, 9  ;;  %v714_v24 = vrot.slane %v1356_v11, 5  ;;  %v1391_v45 = vld [vmem:[%s1612_s17 + $0x18] sm:$0xf]  ;;  %v1551_v47 = vld [vmem:[%s1612_s17 + $0x40] ss:$8 sps:$4 sm:$0xff]  }
  0x47   : > { %v1346_v20 = vcombine.low %v568_v2, %v582_v16  ;;  %v731_v21 = vsel %vm1614_vm2, %v1372_v13, %v730_v14  ;;  %v1373_v25 = vcombine.low %v703_v12, %v707_v17  ;;  %v711_v27 = vsel %vm1614_vm2, %v1367_v15, %v710_v19  ;;  %v1392_v51 = vld [vmem:[%s1612_s17 + $0x1c] sm:$0x1]  ;;  %v1550_v53 = vld [vmem:[%s1612_s17 + $0x10] ss:$8 sps:$4 sm:$0xff]   ;;  %v1401_v58 = vld [vmem:[%s1612_s17 + $0x40] sm:$0xf] }
  0x48   : > { %748 = vrot.lane.b32.xlu1 %v1375_v3, %s1574_s22  ;;  %v1376_v23 = vcombine.low %v727_v18, %v731_v21  ;;  %v715_v28 = vsel %vm1614_vm2, %v1368_v22, %v714_v24  ;;  %v880_v33 = vshrl.u32 %v1397_v26, 16  ;;  %v883_v34 = vshll.u32 %v1397_v26, 16  ;;  %v1402_v63 = vld [vmem:[%s1612_s17 + $0x44] sm:$0x1]  ;;  %v1403_v5 = vld [vmem:[%s1612_s17 + $0x48] sm:$0xf] }
  0x49   : > { %653 = vrot.lane.b32.xlu0 %v1346_v20, %s1573_s21  ;;  %v889_v35 = vshll.u32 %v1398_v30, 16  ;;  %v894_v37 = vshrl.u32 %v1399_v31, 16  ;;  %v897_v38 = vshll.u32 %v1399_v31, 16  ;;  %v903_v39 = vshll.u32 %v1400_v32, 16  ;;  %v1557_v6 = vld [vmem:[%s1893_s1] sm:$0xff]  }
  0x4a   : > { %v824_v41 = vshrl.u32 %v1389_v36, 16  ;;  %v1374_v42 = vcombine.low %v711_v27, %v715_v28  ;;  %v882_v43 = vrot.slane %v880_v33, 4  ;;  %v885_v44 = vrot.slane %v883_v34, 5  ;;  %v1404_v14 = vld [vmem:[%s1612_s17 + $0x4c] sm:$0x1]  ;;  %1498 = vmatprep.subr.bf16.mxu0 %v1557_v6  ;;  %1516 = vmatprep.subr.bf16.mxu1 %v1557_v6 }
  0x4b   : > { %v827_v46 = vshll.u32 %v1389_v36, 16  ;;  %v891_v48 = vrot.slane %v889_v35, 5  ;;  %v896_v49 = vrot.slane %v894_v37, 4  ;;  %v899_v50 = vrot.slane %v897_v38, 5  ;;  %v1393_v21 = vld [vmem:[%s1612_s17 + $0x20] sm:$0xf]  ;;  %1499 = vmatpush3.bf16.msra.mxu0 %v1557_v6  ;;  %1521 = vmatpush3.bf16.msra.mxu1 %v1557_v6 }
  0x4c   : > { %750 = vrot.lane.b32.xlu1 %v1376_v23, %s1574_s22  ;;  %v826_v52 = vrot.slane %v824_v41, 4  ;;  %v886_v54 = vor.u32 %v885_v44, %v882_v43  ;;  %v833_v56 = vshll.u32 %v1390_v40, 16  ;;  %v838_v57 = vshrl.u32 %v1391_v45, 16  ;;  %v1394_v22 = vld [vmem:[%s1612_s17 + $0x24] sm:$0x1]  ;;  %v1558_v41 = vld [vmem:[%s1893_s1 + $0x8] sm:$0xff]  }
  0x4d   : > { %744 = vrot.lane.b32.xlu0 %v1373_v25, %s1574_s22  ;;  %v829_v55 = vrot.slane %v827_v46, 5  ;;  %v900_v59 = vor.u32 %v899_v50, %v896_v49  ;;  %v905_v60 = vrot.slane %v903_v39, 5  ;;  %v841_v61 = vshll.u32 %v1391_v45, 16  ;;  %v1552_v23 = vld [vmem:[%s1612_s17 + $0x20] ss:$8 sps:$4 sm:$0xff]   ;;  %1500 = vmatprep.subr.bf16.mxu0 %v1558_v41 }
  0x4e   : > { %v847_v62 = vshll.u32 %v1392_v51, 16  ;;  %v887_v1 = vrot.slane %v886_v54, 4  ;;  %v835_v3 = vrot.slane %v833_v56, 5  ;;  %v840_v4 = vrot.slane %v838_v57, 4  ;;  %v1395_v28 = vld [vmem:[%s1612_s17 + $0x28] sm:$0xf]  ;;  %1517 = vmatprep.subr.bf16.mxu1 %v1558_v41 }
  0x4f   : > { %v830_v2 = vor.u32 %v829_v55, %v826_v52  ;;  %v901_v7 = vrot.slane %v900_v59, 4  ;;  %v843_v9 = vrot.slane %v841_v61, 5  ;;  %v908_v11 = vshrl.u32 %v1401_v58, 16  ;;  %v1396_v33 = vld [vmem:[%s1612_s17 + $0x2c] sm:$0x1]  ;;  %1501 = vmatpush3.bf16.msra.mxu0 %v1558_v41  ;;  %v1559_v57 = vld [vmem:[%s1893_s1 + $0x10] sm:$0xff]   ;;  %1522 = vmatpush3.bf16.msra.mxu1 %v1558_v41 }
  0x50   : > { %794 = vrot.lane.b32.xlu1 %v1549_v29, %s1575_s23  ;;  %v849_v10 = vrot.slane %v847_v62, 5  ;;  %v892_v12 = vsel %vm1668_vm5, %v887_v1, %v891_v48  ;;  %v911_v15 = vshll.u32 %v1401_v58, 16  ;;  %v917_v16 = vshll.u32 %v1402_v63, 16  ;;  %v1417_v34 = vld [vmem:[%s1612_s17 + $0x30] sm:$0xe]  ;;  %1502 = vmatprep.subr.bf16.mxu0 %v1559_v57 }
  0x51   : > { %746 = vrot.lane.b32.xlu0 %v1374_v42, %s1574_s22  ;;  %v831_v13 = vrot.slane %v830_v2, 4  ;;  %v906_v17 = vsel %vm1668_vm5, %v901_v7, %v905_v60  ;;  %v844_v18 = vor.u32 %v843_v9, %v840_v4  ;;  %v910_v19 = vrot.slane %v908_v11, 4  ;;  %v1418_v39 = vld [vmem:[%s1612_s17 + $0x34] sm:$0x1]  ;;  %v1419_v40 = vld [vmem:[%s1612_s17 + $0x38] sm:$0xe]  ;;  %1518 = vmatprep.subr.bf16.mxu1 %v1559_v57 }
  0x52   : > { %v922_v20 = vshrl.u32 %v1403_v5, 16  ;;  %v1407_v24 = vcombine.low %v892_v12, %v906_v17  ;;  %v913_v26 = vrot.slane %v911_v15, 5  ;;  %v1806_v27 = vrot.slane %v917_v16, 5  ;;  %v1420_v46 = vld [vmem:[%s1612_s17 + $0x3c] sm:$0x1] }
  0x53   : > { %v836_v25 = vsel %vm1668_vm5, %v831_v13, %v835_v3  ;;  %v845_v29 = vrot.slane %v844_v18, 4  ;;  %v925_v31 = vshll.u32 %v1403_v5, 16  ;;  %v931_v32 = vshll.u32 %v1404_v14, 16  ;;  %v1409_v51 = vld [vmem:[%s1612_s17 + $0x10] sm:$0xe]  ;;  %1503 = vmatpush3.bf16.msra.mxu0 %v1559_v57  ;;  %1523 = vmatpush3.bf16.msra.mxu1 %v1559_v57 }
  0x54   : > { %796 = vrot.lane.b32.xlu1 %v1551_v47, %s1575_s23  ;;  %v924_v30 = vrot.slane %v922_v20, 4  ;;  %v914_v35 = vor.u32 %v913_v26, %v910_v19  ;;  %v852_v36 = vshrl.u32 %v1393_v21, 16  ;;  %v855_v37 = vshll.u32 %v1393_v21, 16  ;;  %v1410_v56 = vld [vmem:[%s1612_s17 + $0x14] sm:$0x1]  ;;  %v1560_v19 = vld [vmem:[%s1893_s1 + $0x18] sm:$0xff]  }
  0x55   : > { %790 = vrot.lane.b32.xlu0 %v1550_v53, %s1575_s23  ;;  %v861_v38 = vshll.u32 %v1394_v22, 16  ;;  %v850_v42 = vsel %vm1668_vm5, %v845_v29, %v849_v10  ;;  %v927_v43 = vrot.slane %v925_v31, 5  ;;  %v933_v44 = vrot.slane %v931_v32, 5  ;;  %v1411_v62 = vld [vmem:[%s1612_s17 + $0x18] sm:$0xe]  ;;  %1504 = vmatprep.subr.bf16.mxu0 %v1560_v19 }
  0x56   : > { %v866_v45 = vshrl.u32 %v1395_v28, 16  ;;  %v1405_v47 = vcombine.low %v836_v25, %v850_v42  ;;  %v915_v48 = vrot.slane %v914_v35, 4  ;;  %v854_v49 = vrot.slane %v852_v36, 4  ;;  %v1412_v63 = vld [vmem:[%s1612_s17 + $0x1c] sm:$0x1]  ;;  %1519 = vmatprep.subr.bf16.mxu1 %v1560_v19 }
  0x57   : > { %v857_v50 = vrot.slane %v855_v37, 5  ;;  %v928_v52 = vor.u32 %v927_v43, %v924_v30  ;;  %v863_v53 = vrot.slane %v861_v38, 5  ;;  %v869_v55 = vshll.u32 %v1395_v28, 16  ;;  %v1421_v5 = vld [vmem:[%s1612_s17 + $0x40] sm:$0xe]  ;;  %1505 = vmatpush3.bf16.msra.mxu0 %v1560_v19  ;;  %1524 = vmatpush3.bf16.msra.mxu1 %v1560_v19 }
  0x58   : > { %951 = vrot.lane.b32.xlu1 %v1407_v24, %s1576_s28  ;;  %v868_v54 = vrot.slane %v866_v45, 4  ;;  %v920_v58 = vsel %vm1668_vm5, %v915_v48, %v1806_v27  ;;  %v875_v60 = vshll.u32 %v1396_v33, 16  ;;  %v1429_v61 = vrot.slane %v1417_v34, 9  ;;  %v1422_v6 = vld [vmem:[%s1612_s17 + $0x44] sm:$0x1] }
  0x59   : > { %792 = vrot.lane.b32.xlu0 %v1552_v23, %s1575_s23  ;;  %v858_v59 = vor.u32 %v857_v50, %v854_v49  ;;  %v929_v1 = vrot.slane %v928_v52, 4  ;;  %v871_v2 = vrot.slane %v869_v55, 5  ;;  %v1014_v3 = vrot.slane %v1418_v39, 5  ;;  %v1423_v12 = vld [vmem:[%s1612_s17 + $0x48] sm:$0xe] }
  0x5a   : > { %v1430_v4 = vrot.slane %v1419_v40, 9  ;;  %v877_v9 = vrot.slane %v875_v60, 5  ;;  %v1018_v10 = vrot.slane %v1420_v46, 5  ;;  %v1425_v11 = vrot.slane %v1409_v51, 9  ;;  %v1424_v17 = vld [vmem:[%s1612_s17 + $0x4c] sm:$0x1] }
  0x5b   : > { %v859_v7 = vrot.slane %v858_v59, 4  ;;  %v934_v13 = vsel %vm1668_vm5, %v929_v1, %v933_v44  ;;  %v872_v14 = vor.u32 %v871_v2, %v868_v54  ;;  %v1015_v15 = vsel %vm1614_vm2, %v1429_v61, %v1014_v3  ;;  %v1413_v18 = vld [vmem:[%s1612_s17 + $0x20] sm:$0xe]  ;;  %v1414_v24 = vld [vmem:[%s1612_s17 + $0x24] sm:$0x1] }
  0x5c   : > { %v998_v16 = vrot.slane %v1410_v56, 5  ;;  %v1408_v20 = vcombine.low %v920_v58, %v934_v13  ;;  %v1019_v22 = vsel %vm1614_vm2, %v1430_v4, %v1018_v10  ;;  %v1426_v23 = vrot.slane %v1411_v62, 9  ;;  %v1415_v25 = vld [vmem:[%s1612_s17 + $0x28] sm:$0xe]  ;;  %v1416_v30 = vld [vmem:[%s1612_s17 + $0x2c] sm:$0x1] }
  0x5d   : > { %947 = vrot.lane.b32.xlu0 %v1405_v47, %s1576_s28  ;;  %v864_v21 = vsel %vm1668_vm5, %v859_v7, %v863_v53  ;;  %v873_v26 = vrot.slane %v872_v14, 4  ;;  %v1435_v27 = vcombine.low %v1015_v15, %v1019_v22  ;;  %v1002_v29 = vrot.slane %v1412_v63, 5  ;;  %v1553_v39 = vld [vmem:[%s1612_s17 + $0x10] ss:$8 sps:$4 sm:$0xff]   ;;  %v1554_v43 = vld [vmem:[%s1612_s17] ss:$8 sps:$4 sm:$0xff]  }
  0x5e   : > { %v999_v28 = vsel %vm1614_vm2, %v1425_v11, %v998_v16  ;;  %953 = vrot.lane.b32.xlu1 %v1408_v20, %s1576_s28  ;;  %v1431_v31 = vrot.slane %v1421_v5, 9  ;;  %v1022_v32 = vrot.slane %v1422_v6, 5  ;;  %v1432_v33 = vrot.slane %v1423_v12, 9  ;;  %206 = vst.msk [vmem:[#allocation2 + $0x8] sm:$0xff] %vm204_vm6, %v1553_v39  ;;  %v1555_v45 = vld [vmem:[%s1612_s17 + $0x30] ss:$8 sps:$4 sm:$0xff]  }
  0x5f   : > { %v1026_v34 = vrot.slane %v1424_v17, 5  ;;  %v878_v35 = vsel %vm1668_vm5, %v873_v26, %v877_v9  ;;  %v1003_v36 = vsel %vm1614_vm2, %v1426_v23, %v1002_v29  ;;  %v1427_v37 = vrot.slane %v1413_v18, 9  ;;  %205 = vst.msk [vmem:[#allocation2] sm:$0xff] %vm204_vm6, %v1554_v43  ;;  %208 = vst.msk [vmem:[#allocation2 + $0x18] sm:$0xff] %vm204_vm6, %v1555_v45  ;;  %v1556_v50 = vld [vmem:[%s1612_s17 + $0x20] ss:$8 sps:$4 sm:$0xff]  }
  0x60   : > { %v1006_v38 = vrot.slane %v1414_v24, 5  ;;  %v1406_v40 = vcombine.low %v864_v21, %v878_v35  ;;  %v1023_v41 = vsel %vm1614_vm2, %v1431_v31, %v1022_v32  ;;  %v1428_v44 = vrot.slane %v1415_v25, 9  ;;  %v1561_v51 = vld [vmem:[%s1893_s1 + $0x20] ss:$0 sps:$4 sm:$0xff]   ;;  %207 = vst.msk [vmem:[#allocation2 + $0x10] sm:$0xff] %vm204_vm6, %v1556_v50 }
  0x61   : > { %v1027_v42 = vsel %vm1614_vm2, %v1432_v33, %v1026_v34  ;;  %v1010_v8 = vrot.slane %v1416_v30, 5  ;;  %v1433_v46 = vcombine.low %v999_v28, %v1003_v36  ;;  %v1119_v53 = vsel %vm1117_vm7, %v1561_v51, 0  ;;  %1526 = vmatprep.subr.msk.bf16.mxu0 %vm1117_vm7, %v1561_v51  ;;  %1527 = vmatprep.subr.msk.bf16.mxu1 %vm1117_vm7, %v1561_v51 }
  0x62   : > { %949 = vrot.lane.b32.xlu0 %v1406_v40, %s1576_s28  ;;  %1044 = vrot.lane.b32.xlu1 %v1435_v27, %s1577_s6  ;;  %v1436_v47 = vcombine.low %v1023_v41, %v1027_v42  ;;  %v1007_v48 = vsel %vm1614_vm2, %v1427_v37, %v1006_v38  ;;  %v1437_v27 = vld [vmem:[%s1894_s2] ss:$0 sm:$0xff] }
  0x63   : > { %v1011_v49 = vsel %vm1614_vm2, %v1428_v44, %v1010_v8  ;;  %1507 = vmatpush3.bf16.msra.mxu0 %v1119_v53  ;;  %1525 = vmatpush3.bf16.msra.mxu1 %v1119_v53 }
  0x64   : > { %v1434_v52 = vcombine.low %v1007_v48, %v1011_v49 }
  0x66   : > { %1040 = vrot.lane.b32.xlu0 %v1433_v46, %s1577_s6  ;;  %1046 = vrot.lane.b32.xlu1 %v1436_v47, %s1577_s6 }
  0x6a   : > { %1042 = vrot.lane.b32.xlu0 %v1434_v52, %s1577_s6 }
  0x84   : > { %v499_v0 = vpop.permute.xlu1 %498 }
  0x85   : > { %v495_v54 = vpop.permute.xlu0 %494 }
  0x8b   : > { %v453_v55 = vpop.permute.xlu1 %452 }
  0x8d   : > { %v449_v56 = vpop.permute.xlu0 %448 }
  0x8f   : > { %v455_v57 = vpop.permute.xlu1 %454 }
  0x91   : > { %v451_v58 = vpop.permute.xlu0 %450 }
  0x99   : > { %v355_v59 = vpop.permute.xlu1 %354 }
  0x9a   : > { %366 = vst.msk [vmem:[#allocation2 + $0x8] sm:$0xff] %vm364_vm8, %v355_v59 }
  0x9b   : > { %462 = vst.msk [vmem:[#allocation2 + $0x8] sm:$0xff] %vm460_vm9, %v451_v58 }
  0x9d   : > { %v353_v60 = vpop.permute.xlu0 %352 }
  0x9e   : > { %365 = vst.msk [vmem:[#allocation2] sm:$0xff] %vm364_vm8, %v353_v60 }
  0x9f   : > { %461 = vst.msk [vmem:[#allocation2] sm:$0xff] %vm460_vm9, %v449_v56 }
  0xa0   : > { %507 = vst.msk [vmem:[#allocation2] sm:$0xff] %vm506_vm10, %v495_v54 }
  0xa3   : > { %v359_v61 = vpop.permute.xlu1 %358 }
  0xa4   : > { %368 = vst.msk [vmem:[#allocation2 + $0x18] sm:$0xff] %vm364_vm8, %v359_v61 }
  0xa5   : > { %464 = vst.msk [vmem:[#allocation2 + $0x18] sm:$0xff] %vm460_vm9, %v455_v57 }
  0xa7   : > { %v357_v62 = vpop.permute.xlu0 %356  ;;  %v501_v63 = vpop.permute.xlu1 %500 }
  0xa8   : > { %367 = vst.msk [vmem:[#allocation2 + $0x10] sm:$0xff] %vm364_vm8, %v357_v62 }
  0xa9   : > { %510 = vst.msk [vmem:[#allocation2 + $0x18] sm:$0xff] %vm506_vm10, %v501_v63 }
  0xaa   : > { %463 = vst.msk [vmem:[#allocation2 + $0x10] sm:$0xff] %vm460_vm9, %v453_v55 }
  0xab   : > { %509 = vst.msk [vmem:[#allocation2 + $0x10] sm:$0xff] %vm506_vm10, %v499_v0  ;;  %v497_v1 = vpop.permute.xlu0 %496 }
  0xac   : > { %508 = vst.msk [vmem:[#allocation2 + $0x8] sm:$0xff] %vm506_vm10, %v497_v1 }
  0xad   : > { %v656_v2 = vpop.permute.xlu1 %655 }
  0xae   : > { %666 = vst.msk [vmem:[#allocation2 + $0x10] sm:$0xff] %vm663_vm11, %v656_v2 }
  0xb1   : > { %v652_v3 = vpop.permute.xlu0 %651 }
  0xb2   : > { %664 = vst.msk [vmem:[#allocation2] sm:$0xff] %vm663_vm11, %v652_v3 }
  0xb6   : > { %v658_v4 = vpop.permute.xlu1 %657 }
  0xb7   : > { %667 = vst.msk [vmem:[#allocation2 + $0x18] sm:$0xff] %vm663_vm11, %v658_v4 }
  0xba   : > { %v749_v5 = vpop.permute.xlu1 %748 }
  0xbb   : > { %v654_v6 = vpop.permute.xlu0 %653  ;;  %759 = vst.msk [vmem:[#allocation2 + $0x10] sm:$0xff] %vm756_vm12, %v749_v5 }
  0xbc   : > { %665 = vst.msk [vmem:[#allocation2 + $0x8] sm:$0xff] %vm663_vm11, %v654_v6 }
  0xbe   : > { %v751_v7 = vpop.permute.xlu1 %750 }
  0xbf   : > { %v745_v9 = vpop.permute.xlu0 %744  ;;  %760 = vst.msk [vmem:[#allocation2 + $0x18] sm:$0xff] %vm756_vm12, %v751_v7 }
  0xc0   : > { %757 = vst.msk [vmem:[#allocation2] sm:$0xff] %vm756_vm12, %v745_v9 }
  0xc2   : > { %v795_v10 = vpop.permute.xlu1 %794 }
  0xc3   : > { %v747_v11 = vpop.permute.xlu0 %746  ;;  %805 = vst.msk [vmem:[#allocation2 + $0x10] sm:$0xff] %vm802_vm13, %v795_v10 }
  0xc4   : > { %758 = vst.msk [vmem:[#allocation2 + $0x8] sm:$0xff] %vm756_vm12, %v747_v11 }
  0xc6   : > { %v797_v12 = vpop.permute.xlu1 %796 }
  0xc7   : > { %v791_v13 = vpop.permute.xlu0 %790  ;;  %806 = vst.msk [vmem:[#allocation2 + $0x18] sm:$0xff] %vm802_vm13, %v797_v12 }
  0xc8   : > { %803 = vst.msk [vmem:[#allocation2] sm:$0xff] %vm802_vm13, %v791_v13 }
  0xca   : > { %v952_v14 = vpop.permute.xlu1 %951 }
  0xcb   : > { %v793_v15 = vpop.permute.xlu0 %792  ;;  %962 = vst.msk [vmem:[#allocation2 + $0x10] sm:$0xff] %vm959_vm14, %v952_v14 }
  0xcc   : > { %804 = vst.msk [vmem:[#allocation2 + $0x8] sm:$0xff] %vm802_vm13, %v793_v15 }
  0xcf   : > { %v948_v16 = vpop.permute.xlu0 %947 }
  0xd0   : > { %960 = vst.msk [vmem:[#allocation2] sm:$0xff] %vm959_vm14, %v948_v16  ;;  %v954_v17 = vpop.permute.xlu1 %953 }
  0xd1   : > { %963 = vst.msk [vmem:[#allocation2 + $0x18] sm:$0xff] %vm959_vm14, %v954_v17 }
  0xd4   : > { %v950_v18 = vpop.permute.xlu0 %949  ;;  %v1045_v19 = vpop.permute.xlu1 %1044 }
  0xd5   : > { %961 = vst.msk [vmem:[#allocation2 + $0x8] sm:$0xff] %vm959_vm14, %v950_v18 }
  0xd6   : > { %1055 = vst.msk [vmem:[#allocation2 + $0x10] sm:$0xff] %vm1052_vm15, %v1045_v19 }
  0xd8   : > { %v1041_v20 = vpop.permute.xlu0 %1040  ;;  %v1047_v21 = vpop.permute.xlu1 %1046 }
  0xd9   : > { %1053 = vst.msk [vmem:[#allocation2] sm:$0xff] %vm1052_vm15, %v1041_v20  ;;  %1056 = vst.msk [vmem:[#allocation2 + $0x18] sm:$0xff] %vm1052_vm15, %v1047_v21 }
  0xdc   : > { %v1043_v22 = vpop.permute.xlu0 %1042 }
  0xdd   : > { %v1059_v23 = vld [vmem:[#allocation2 + $0x10] sm:$0xff]  ;;  %1054 = vst.msk [vmem:[#allocation2 + $0x8] sm:$0xff] %vm1052_vm15, %v1043_v22 }
  0xde   : > { %1512 = vmatprep.mubr.msk.bf16.mxu1 %vm1104_vm0, %v1059_v23 }
  0xe0   : > { %v1057_v24 = vld [vmem:[#allocation2] sm:$0xff]  ;;  %v1060_v25 = vld [vmem:[#allocation2 + $0x18] sm:$0xff] }
  0xe1   : > { %1508 = vmatprep.mubr.msk.bf16.mxu0 %vm1104_vm0, %v1057_v24  ;;  %1513 = vmatmul.mubr.msk.bf16.vlgmr.msra.gmra.mrb[0].mxu1 %vm1104_vm0, %v1060_v25 }
  0xe4   : > { %v1058_v26 = vld [vmem:[#allocation2 + $0x8] sm:$0xff] }
  0xe5   : > { %1509 = vmatmul.mubr.msk.bf16.vlgmr.msra.gmra.mrb[0].mxu0 %vm1104_vm0, %v1058_v26 }
 0x1b4   : > { %v1514_v28 = vpop.f32.mrb[0].mxu1 }
 0x1b5   : > { %v1180_v29 = vadd.f32 %v1514_v28, %v1437_v27  ;;  %v1171_v30 = vpop.f32.mrb[1].mxu1 }
 0x1b6   : > { %v1172_v31 = vadd.f32 %v1437_v27, %v1171_v30  ;;  %v1515_v32 = vpop.f32.mrb[2].mxu1 }
 0x1b7   : > { %v1183_v33 = vadd.f32 %v1515_v32, %v1437_v27  ;;  %v1174_v34 = vpop.f32.mrb[3].mxu1  ;;  %v1192_v38 = vmax.f32 %v1180_v29, 0.0 }
 0x1b8   : > { %v1510_v35 = vpop.f32.mrb[0].mxu0  ;;  %v1175_v36 = vadd.f32 %v1437_v27, %v1174_v34  ;;  %v1190_v42 = vmax.f32 %v1172_v31, 0.0 }
 0x1b9   : > { %v1164_v37 = vadd.f32 %v1510_v35, %v1437_v27  ;;  %v1155_v39 = vpop.f32.mrb[1].mxu0  ;;  %v1193_v40 = vmax.f32 %v1183_v33, 0.0 }
 0x1ba   : > { %v1156_v41 = vadd.f32 %v1437_v27, %v1155_v39  ;;  %v1511_v43 = vpop.f32.mrb[2].mxu0  ;;  %v1191_v44 = vmax.f32 %v1175_v36, 0.0 }
 0x1bb   : > { %v1167_v8 = vadd.f32 %v1511_v43, %v1437_v27  ;;  %v1484_v45 = vpack.c.bf16 %v1193_v40, %v1192_v38  ;;  %v1158_v46 = vpop.f32.mrb[3].mxu0  ;;  %v1188_v49 = vmax.f32 %v1164_v37, 0.0 }
 0x1bc   : > { %v1159_v47 = vadd.f32 %v1437_v27, %v1158_v46  ;;  %v1479_v48 = vpack.c.bf16 %v1191_v44, %v1190_v42  ;;  %v1186_v51 = vmax.f32 %v1156_v41, 0.0 }
 0x1bd   : > { %v1189_v50 = vmax.f32 %v1167_v8, 0.0  ;;  %1488 = vst [vmem:[%s170_s16 + $0x18] sm:$0xff] %v1484_v45  }
 0x1be   : > { %v1187_v52 = vmax.f32 %v1159_v47, 0.0  ;;  %1487 = vst [vmem:[%s170_s16 + $0x10] sm:$0xff] %v1479_v48  }
 0x1bf   : > { %v1474_v53 = vpack.c.bf16 %v1189_v50, %v1188_v49 }
 0x1c0   : > { %v1469_v0 = vpack.c.bf16 %v1187_v52, %v1186_v51 }
 0x1c1   : > { %1486 = vst [vmem:[%s170_s16 + $0x8] sm:$0xff] %v1474_v53  }
 0x1c2   : > { %1470 = vst [vmem:[%s170_s16] sm:$0xff] %v1469_v0  }
 0x1c3 PF: > { %s13_s12 = sadd.s32 1, %s1568_s12  }
 0x1c4   : > { %p10_p4 = scmp.ge.s32.totalorder %s13_s12, 4  }
 0x1c6   :  { %12 = sbr.rel (!%p10_p4) target bundleno = 1 (0x1), region = 64 }

// kernel: _lambda_.28
= control target key start
LH: loop header
LB: loop body
LE: loop exit
PB: predicated region body
PF: predicated region fallthrough
CT: control target
= control target key end

     0   :  { %s1804_s12 = smov 0   ;;  %s2172_s0 = inlined_call_operand.vmem [shape: bf16[2,10,10,32], index: 0, kind: input, shape index: {}]   ;;  %s2173_s1 = inlined_call_operand.vmem [shape: bf16[288,128], index: 1, kind: input, shape index: {}]   ;;  %s2174_s2 = inlined_call_operand.vmem [shape: f32[1,128], index: 2, kind: input, shape index: {}]   ;;  %s2175_s3 = inlined_call_operand.vmem [shape: bf16[2,64,128], index: 3, kind: output, shape index: {}]  }
   0x1 LB: > { %s1444_s13 = sadd.s32 4294967295, %s1779_s12   ;;  %p1448_p0 = scmp.ge.s32.totalorder %s1779_s12, 1  ;;  %s1779_s12 = sphi %s1804_s12, %s13_s12  }
   0x2   : > { %p137_p1 = scmp.lt.s32.totalorder %s1779_s12, 3 }
   0x4   : > { %p138_p2 = pnand %p1448_p0, %p137_p1 }
   0x5   : > { %p161_p3 = scmp.lt.s32.totalorder (!%p138_p2), %s1444_s13, 1  ;;  %vm401_vm0 = vcmask (!%p138_p2), 1042432   ;;  %vm402_vm1 = vcmask (!%p138_p2), 1046532   ;;  %v1751_v1 = vld [vmem:[%s2173_s1 + $0x40] sm:$0xff] (!%p138_p2)   ;;  %v1753_v3 = vld [vmem:[%s2173_s1 + $0x48] sm:$0xff] (!%p138_p2)   ;;  %v1755_v5 = vld [vmem:[%s2173_s1 + $0x50] sm:$0xff] (!%p138_p2)  }
   0x6   : > { %141 = sbr.rel (%p138_p2) target bundleno = 429 (0x1ad), region = 32  ;;  %vm1814_vm2 = vmor (!%p138_p2), %vm401_vm0, %vm402_vm1  ;;  %v1752_v2 = vld [vmem:[%s2173_s1] sm:$0xff] (!%p138_p2)   ;;  %1657 = vmatprep.subr.bf16.mxu0 (!%p138_p2), %v1751_v1  ;;  %1715 = vmatprep.subr.bf16.mxu1 (!%p138_p2), %v1751_v1  ;;  %v1754_v4 = vld [vmem:[%s2173_s1 + $0x8] sm:$0xff] (!%p138_p2)   ;;  %s1781_s28 = smov (!%p138_p2), 64   ;;  %vm225_vm3 = vsmask.f32 (!%p138_p2), 3328 }
   0x7   : > { %1658 = vmatpush3.bf16.msra.mxu0 (!%p138_p2), %v1752_v2  ;;  %1723 = vmatpush3.bf16.msra.mxu1 (!%p138_p2), %v1752_v2  ;;  %v1756_v15 = vld [vmem:[%s2173_s1 + $0x10] sm:$0xff] (!%p138_p2)   ;;  %v1757_v17 = vld [vmem:[%s2173_s1 + $0x58] sm:$0xff] (!%p138_p2)   ;;  %vm226_vm4 = vsmask.f32 (!%p138_p2), 7440  ;;  %s1782_s6 = smov (!%p138_p2), 96   ;;  %s1783_s7 = smov (!%p138_p2), 32  }
   0x8   : > { %1659 = vmatprep.subr.bf16.mxu0 (!%p138_p2), %v1753_v3  ;;  %1716 = vmatprep.subr.bf16.mxu1 (!%p138_p2), %v1753_v3  ;;  %v1758_v1 = vld [vmem:[%s2173_s1 + $0x18] sm:$0xff] (!%p138_p2)   ;;  %vm1905_vm5 = vmor (!%p138_p2), %vm225_vm3, %vm226_vm4  ;;  %vm204_vm6 = vcmask (!%p138_p2), 261120   ;;  %vm364_vm7 = vcmask (!%p138_p2), 523520   ;;  %vm460_vm8 = vcmask (!%p138_p2), 785920   ;;  %vm506_vm9 = vcmask (!%p138_p2), 1048320  }
   0xb   : > { %1660 = vmatpush3.bf16.msra.mxu0 (!%p138_p2), %v1754_v4  ;;  %1724 = vmatpush3.bf16.msra.mxu1 (!%p138_p2), %v1754_v4 }
   0xc   : > { %1661 = vmatprep.subr.bf16.mxu0 (!%p138_p2), %v1755_v5  ;;  %1717 = vmatprep.subr.bf16.mxu1 (!%p138_p2), %v1755_v5 }
   0xd   : > { %s2181_s13 = smov (!%p161_p3, %s1444_s13), 1 }
   0xe   : > { %s1731_s18 = smul.u32 80, %s2181_s13 }
   0xf   : > { %1662 = vmatpush3.bf16.msra.mxu0 %v1756_v15  ;;  %1725 = vmatpush3.bf16.msra.mxu1 %v1756_v15 }
  0x10   : > { %s1834_s25 = scalar_lea.vmem %s2172_s0, %s1731_s18  ;;  %1663 = vmatprep.subr.bf16.mxu0 %v1757_v17  ;;  %1718 = vmatprep.subr.bf16.mxu1 %v1757_v17 }
  0x11   : > { %v1743_v6 = vld [vmem:[%s1834_s25 + $0x40] ss:$8 sps:$4 sm:$0xff]   ;;  %v1744_v7 = vld [vmem:[%s1834_s25 + $0x10] ss:$8 sps:$4 sm:$0xff]   ;;  %v1505_v9 = vld [vmem:[%s1834_s25 + $0xc] sm:$0x1] }
  0x12   : > { %786 = vrot.lane.b32.xlu0 %v1743_v6, %s1781_s28  ;;  %v1504_v8 = vld [vmem:[%s1834_s25 + $0x8] sm:$0xe]  ;;  %v1506_v10 = vld [vmem:[%s1834_s25 + $0x10] sm:$0xe]  ;;  %780 = vrot.lane.b32.xlu1 %v1744_v7, %s1781_s28  ;;  %v693_v13 = vrot.slane %v1505_v9, 5 }
  0x13   : > { %v1507_v11 = vld [vmem:[%s1834_s25 + $0x14] sm:$0x1]  ;;  %v1520_v12 = vrot.slane %v1504_v8, 9  ;;  %v1521_v14 = vrot.slane %v1506_v10, 9  ;;  %v1745_v19 = vld [vmem:[%s1834_s25 + $0x8] ss:$8 sps:$4 sm:$0xff]   ;;  %1664 = vmatpush3.bf16.msra.mxu0 %v1758_v1  ;;  %1726 = vmatpush3.bf16.msra.mxu1 %v1758_v1 }
  0x14   : > { %v697_v16 = vrot.slane %v1507_v11, 5  ;;  %v1516_v20 = vld [vmem:[%s1834_s25 + $0x38] sm:$0xe]  ;;  %v1517_v21 = vld [vmem:[%s1834_s25 + $0x3c] sm:$0x1]  ;;  %v1759_v7 = vld [vmem:[%s2173_s1 + $0x60] sm:$0xff]  }
  0x15   : > { %v694_v18 = vsel %vm1814_vm2, %v1520_v12, %v693_v13  ;;  %v1518_v23 = vld [vmem:[%s1834_s25 + $0x40] sm:$0xe]  ;;  %v1519_v24 = vld [vmem:[%s1834_s25 + $0x44] sm:$0x1]  ;;  %v1526_v25 = vrot.slane %v1516_v20, 9  ;;  %v717_v26 = vrot.slane %v1517_v21, 5  ;;  %1665 = vmatprep.subr.bf16.mxu0 %v1759_v7  ;;  %1719 = vmatprep.subr.bf16.mxu1 %v1759_v7 }
  0x16   : > { %v698_v22 = vsel %vm1814_vm2, %v1521_v14, %v697_v16  ;;  %494 = vrot.lane.b32.xlu1 %v1745_v19, %s1782_s6  ;;  %v1527_v28 = vrot.slane %v1518_v23, 9  ;;  %v721_v29 = vrot.slane %v1519_v24, 5  ;;  %v369_v30 = vld [vmem:[%s1834_s25] sm:$0xe]  ;;  %v370_v31 = vld [vmem:[%s1834_s25 + $0x4] sm:$0x1] }
  0x17   : > { %v1528_v27 = vcombine.low %v694_v18, %v698_v22  ;;  %v718_v32 = vsel %vm1814_vm2, %v1526_v25, %v717_v26  ;;  %v371_v33 = vld [vmem:[%s1834_s25 + $0x8] sm:$0xe]  ;;  %v372_v34 = vld [vmem:[%s1834_s25 + $0xc] sm:$0x1]  ;;  %v1460_v35 = vrot.slane %v369_v30, 9  ;;  %v406_v36 = vrot.slane %v370_v31, 5 }
  0x18   : > { %v722_v37 = vsel %vm1814_vm2, %v1527_v28, %v721_v29  ;;  %v1461_v38 = vrot.slane %v371_v33, 9  ;;  %v410_v39 = vrot.slane %v372_v34, 5  ;;  %v381_v40 = vld [vmem:[%s1834_s25 + $0x30] sm:$0xe]  ;;  %v382_v41 = vld [vmem:[%s1834_s25 + $0x34] sm:$0x1] }
  0x19   : > { %735 = vrot.lane.b32.xlu0 %v1528_v27, %s1783_s7  ;;  %v1531_v42 = vcombine.low %v718_v32, %v722_v37  ;;  %v407_v43 = vsel %vm1814_vm2, %v1460_v35, %v406_v36  ;;  %v383_v44 = vld [vmem:[%s1834_s25 + $0x38] sm:$0xe]  ;;  %v384_v45 = vld [vmem:[%s1834_s25 + $0x3c] sm:$0x1]  ;;  %v1466_v46 = vrot.slane %v381_v40, 9  ;;  %v430_v47 = vrot.slane %v382_v41, 5 }
  0x1a   : > { %v411_v48 = vsel %vm1814_vm2, %v1461_v38, %v410_v39  ;;  %v1467_v49 = vrot.slane %v383_v44, 9  ;;  %v434_v50 = vrot.slane %v384_v45, 5  ;;  %v209_v51 = vld [vmem:[%s1834_s25] sm:$0xf]  ;;  %v210_v52 = vld [vmem:[%s1834_s25 + $0x4] sm:$0x1] }
  0x1b   : > { %v1468_v53 = vcombine.low %v407_v43, %v411_v48  ;;  %v431_v54 = vsel %vm1814_vm2, %v1466_v46, %v430_v47  ;;  %v211_v55 = vld [vmem:[%s1834_s25 + $0x8] sm:$0xf]  ;;  %v212_v56 = vld [vmem:[%s1834_s25 + $0xc] sm:$0x1]  ;;  %v229_v57 = vshrl.u32 %v209_v51, 16  ;;  %v232_v58 = vshll.u32 %v209_v51, 16 }
  0x1c   : > { %v435_v59 = vsel %vm1814_vm2, %v1467_v49, %v434_v50  ;;  %v238_v60 = vshll.u32 %v210_v52, 16  ;;  %v243_v61 = vshrl.u32 %v211_v55, 16  ;;  %v246_v62 = vshll.u32 %v211_v55, 16  ;;  %v221_v63 = vld [vmem:[%s1834_s25 + $0x30] sm:$0xf]  ;;  %v1760_v18 = vld [vmem:[%s2173_s1 + $0x20] sm:$0xff]  }
  0x1d   : > { %741 = vrot.lane.b32.xlu0 %v1531_v42, %s1783_s7  ;;  %448 = vrot.lane.b32.xlu1 %v1468_v53, %s1781_s28  ;;  %v1471_v2 = vcombine.low %v431_v54, %v435_v59  ;;  %v231_v3 = vrot.slane %v229_v57, 4  ;;  %v234_v4 = vrot.slane %v232_v58, 5  ;;  %v252_v5 = vshll.u32 %v212_v56, 16  ;;  %v222_v6 = vld [vmem:[%s1834_s25 + $0x34] sm:$0x1]  ;;  %v1762_v25 = vld [vmem:[%s2173_s1 + $0x68] sm:$0xff]  }
  0x1e   : > { %v240_v8 = vrot.slane %v238_v60, 5  ;;  %v245_v9 = vrot.slane %v243_v61, 4  ;;  %v248_v10 = vrot.slane %v246_v62, 5  ;;  %v223_v11 = vld [vmem:[%s1834_s25 + $0x38] sm:$0xf]  ;;  %v313_v12 = vshrl.u32 %v221_v63, 16  ;;  %1666 = vmatpush3.bf16.msra.mxu0 %v1760_v18  ;;  %1727 = vmatpush3.bf16.msra.mxu1 %v1760_v18 }
  0x1f   : > { %v235_v13 = vor.u32 %v234_v4, %v231_v3  ;;  %v254_v14 = vrot.slane %v252_v5, 5  ;;  %v224_v15 = vld [vmem:[%s1834_s25 + $0x3c] sm:$0x1]  ;;  %v316_v16 = vshll.u32 %v221_v63, 16  ;;  %v322_v17 = vshll.u32 %v222_v6, 16  ;;  %1667 = vmatprep.subr.bf16.mxu0 %v1762_v25  ;;  %1720 = vmatprep.subr.bf16.mxu1 %v1762_v25  ;;  %v1763_v52 = vld [vmem:[%s2173_s1 + $0x28] sm:$0xff]  }
  0x20   : > { %v249_v20 = vor.u32 %v248_v10, %v245_v9  ;;  %v315_v21 = vrot.slane %v313_v12, 4  ;;  %v327_v22 = vshrl.u32 %v223_v11, 16  ;;  %v330_v23 = vshll.u32 %v223_v11, 16  ;;  %v1544_v24 = vld [vmem:[%s1834_s25 + $0x10] sm:$0xf] }
  0x21   : > { %454 = vrot.lane.b32.xlu1 %v1471_v2, %s1781_s28  ;;  %v236_v26 = vrot.slane %v235_v13, 4  ;;  %v318_v27 = vrot.slane %v316_v16, 5  ;;  %v324_v28 = vrot.slane %v322_v17, 5  ;;  %v336_v29 = vshll.u32 %v224_v15, 16  ;;  %v1545_v30 = vld [vmem:[%s1834_s25 + $0x14] sm:$0x1] }
  0x22   : > { %v250_v31 = vrot.slane %v249_v20, 4  ;;  %v329_v32 = vrot.slane %v327_v22, 4  ;;  %v332_v33 = vrot.slane %v330_v23, 5  ;;  %v1546_v34 = vld [vmem:[%s1834_s25 + $0x18] sm:$0xf]  ;;  %v813_v35 = vshrl.u32 %v1544_v24, 16  ;;  %1668 = vmatpush3.bf16.msra.mxu0 %v1763_v52  ;;  %1728 = vmatpush3.bf16.msra.mxu1 %v1763_v52 }
  0x23   : > { %v241_v36 = vsel %vm1905_vm5, %v236_v26, %v240_v8  ;;  %v319_v37 = vor.u32 %v318_v27, %v315_v21  ;;  %v338_v38 = vrot.slane %v336_v29, 5  ;;  %v1547_v39 = vld [vmem:[%s1834_s25 + $0x1c] sm:$0x1]  ;;  %v816_v40 = vshll.u32 %v1544_v24, 16  ;;  %v1556_v45 = vld [vmem:[%s1834_s25 + $0x40] sm:$0xf] }
  0x24   : > { %v255_v41 = vsel %vm1905_vm5, %v250_v31, %v254_v14  ;;  %v333_v42 = vor.u32 %v332_v33, %v329_v32  ;;  %v815_v43 = vrot.slane %v813_v35, 4  ;;  %v822_v44 = vshll.u32 %v1545_v30, 16  ;;  %v1557_v46 = vld [vmem:[%s1834_s25 + $0x44] sm:$0x1]  ;;  %v1558_v51 = vld [vmem:[%s1834_s25 + $0x48] sm:$0xf] }
  0x25   : > { %v1456_v47 = vcombine.low %v241_v36, %v255_v41  ;;  %v320_v48 = vrot.slane %v319_v37, 4  ;;  %v818_v49 = vrot.slane %v816_v40, 5  ;;  %v827_v50 = vshrl.u32 %v1546_v34, 16  ;;  %v1559_v60 = vld [vmem:[%s1834_s25 + $0x4c] sm:$0x1]  ;;  %v1765_v4 = vld [vmem:[%s2173_s1 + $0x70] sm:$0xff]  }
  0x26   : > { %v334_v53 = vrot.slane %v333_v42, 4  ;;  %v824_v54 = vrot.slane %v822_v44, 5  ;;  %v830_v55 = vshll.u32 %v1546_v34, 16  ;;  %v836_v56 = vshll.u32 %v1547_v39, 16  ;;  %v1508_v3 = vld [vmem:[%s1834_s25 + $0x18] sm:$0xe]  ;;  %1669 = vmatprep.subr.bf16.mxu0 %v1765_v4  ;;  %1721 = vmatprep.subr.bf16.mxu1 %v1765_v4 }
  0x27   : > { %352 = vrot.lane.b32.xlu0 %v1456_v47, %s1783_s7  ;;  %v325_v57 = vsel %vm1905_vm5, %v320_v48, %v324_v28  ;;  %v819_v58 = vor.u32 %v818_v49, %v815_v43  ;;  %v829_v59 = vrot.slane %v827_v50, 4  ;;  %v897_v61 = vshrl.u32 %v1556_v45, 16  ;;  %v1746_v9 = vld [vmem:[%s1834_s25 + $0x38] ss:$8 sps:$4 sm:$0xff]   ;;  %v1509_v10 = vld [vmem:[%s1834_s25 + $0x1c] sm:$0x1] }
  0x28   : > { %v339_v62 = vsel %vm1905_vm5, %v334_v53, %v338_v38  ;;  %v832_v63 = vrot.slane %v830_v55, 5  ;;  %v838_v1 = vrot.slane %v836_v56, 5  ;;  %v900_v2 = vshll.u32 %v1556_v45, 16  ;;  %v1766_v11 = vld [vmem:[%s2173_s1 + $0x30] sm:$0xff]   ;;  %v1510_v16 = vld [vmem:[%s1834_s25 + $0x20] sm:$0xe] }
  0x29   : > { %v1459_v5 = vcombine.low %v325_v57, %v339_v62  ;;  %v820_v6 = vrot.slane %v819_v58, 4  ;;  %v899_v7 = vrot.slane %v897_v61, 4  ;;  %v906_v8 = vshll.u32 %v1557_v46, 16  ;;  %v1767_v17 = vld [vmem:[%s2173_s1 + $0x78] sm:$0xff]   ;;  %v1511_v22 = vld [vmem:[%s1834_s25 + $0x24] sm:$0x1]  ;;  %1670 = vmatpush3.bf16.msra.mxu0 %v1766_v11  ;;  %1729 = vmatpush3.bf16.msra.mxu1 %v1766_v11 }
  0x2a   : > { %v833_v12 = vor.u32 %v832_v63, %v829_v59  ;;  %v902_v13 = vrot.slane %v900_v2, 5  ;;  %v911_v14 = vshrl.u32 %v1558_v51, 16  ;;  %v914_v15 = vshll.u32 %v1558_v51, 16  ;;  %v1768_v24 = vld [vmem:[%s2173_s1 + $0x38] sm:$0xff]   ;;  %v213_v29 = vld [vmem:[%s1834_s25 + $0x10] sm:$0xf]  ;;  %1671 = vmatprep.subr.bf16.mxu0 %v1767_v17  ;;  %1722 = vmatprep.subr.bf16.mxu1 %v1767_v17 }
  0x2b   : > { %358 = vrot.lane.b32.xlu1 %v1459_v5, %s1783_s7  ;;  %v825_v18 = vsel %vm1905_vm5, %v820_v6, %v824_v54  ;;  %v908_v20 = vrot.slane %v906_v8, 5  ;;  %v920_v21 = vshll.u32 %v1559_v60, 16  ;;  %v1522_v23 = vrot.slane %v1508_v3, 9  ;;  %v214_v34 = vld [vmem:[%s1834_s25 + $0x14] sm:$0x1] }
  0x2c   : > { %v834_v25 = vrot.slane %v833_v12, 4  ;;  %v903_v26 = vor.u32 %v902_v13, %v899_v7  ;;  %v913_v27 = vrot.slane %v911_v14, 4  ;;  %v916_v28 = vrot.slane %v914_v15, 5  ;;  %v215_v38 = vld [vmem:[%s1834_s25 + $0x18] sm:$0xf] }
  0x2d   : > { %v922_v30 = vrot.slane %v920_v21, 5  ;;  %v701_v31 = vrot.slane %v1509_v10, 5  ;;  %v1523_v32 = vrot.slane %v1510_v16, 9  ;;  %v705_v33 = vrot.slane %v1511_v22, 5  ;;  %v216_v39 = vld [vmem:[%s1834_s25 + $0x1c] sm:$0x1]  ;;  %1672 = vmatpush3.bf16.msra.mxu0 %v1768_v24  ;;  %1730 = vmatpush3.bf16.msra.mxu1 %v1768_v24 }
  0x2e   : > { %v839_v35 = vsel %vm1905_vm5, %v834_v25, %v838_v1  ;;  %v904_v36 = vrot.slane %v903_v26, 4  ;;  %v917_v37 = vor.u32 %v916_v28, %v913_v27  ;;  %v257_v40 = vshrl.u32 %v213_v29, 16  ;;  %v373_v48 = vld [vmem:[%s1834_s25 + $0x10] sm:$0xe]  ;;  %v374_v53 = vld [vmem:[%s1834_s25 + $0x14] sm:$0x1] }
  0x2f   : > { %v1560_v41 = vcombine.low %v825_v18, %v839_v35  ;;  %500 = vrot.lane.b32.xlu1 %v1746_v9, %s1782_s6  ;;  %v702_v42 = vsel %vm1814_vm2, %v1522_v23, %v701_v31  ;;  %v706_v43 = vsel %vm1814_vm2, %v1523_v32, %v705_v33  ;;  %v260_v44 = vshll.u32 %v213_v29, 16  ;;  %v375_v57 = vld [vmem:[%s1834_s25 + $0x18] sm:$0xe]  ;;  %v376_v58 = vld [vmem:[%s1834_s25 + $0x1c] sm:$0x1]  ;;  %v1988_v27 = vld [vmem:[%s2173_s1 + $0x80] sm:$0xff]  }
  0x30   : > { %v909_v45 = vsel %vm1905_vm5, %v904_v36, %v908_v20  ;;  %v918_v46 = vrot.slane %v917_v37, 4  ;;  %v259_v47 = vrot.slane %v257_v40, 4  ;;  %v266_v50 = vshll.u32 %v214_v34, 16  ;;  %v1548_v1 = vld [vmem:[%s1834_s25 + $0x20] sm:$0xf]  ;;  %1703 = vmatprep.subr.bf16.mxu1 %v1988_v27 }
  0x31   : > { %936 = vrot.lane.b32.xlu0 %v1560_v41, %s1782_s6  ;;  %v262_v49 = vrot.slane %v260_v44, 5  ;;  %v271_v51 = vshrl.u32 %v215_v38, 16  ;;  %v274_v52 = vshll.u32 %v215_v38, 16  ;;  %v1529_v55 = vcombine.low %v702_v42, %v706_v43  ;;  %v1549_v2 = vld [vmem:[%s1834_s25 + $0x24] sm:$0x1] }
  0x32   : > { %v923_v54 = vsel %vm1905_vm5, %v918_v46, %v922_v30  ;;  %v280_v56 = vshll.u32 %v216_v39, 16  ;;  %v1462_v59 = vrot.slane %v373_v48, 9  ;;  %v268_v62 = vrot.slane %v266_v50, 5  ;;  %v1550_v7 = vld [vmem:[%s1834_s25 + $0x28] sm:$0xf] }
  0x33   : > { %v1563_v60 = vcombine.low %v909_v45, %v923_v54  ;;  %v263_v61 = vor.u32 %v262_v49, %v259_v47  ;;  %v273_v63 = vrot.slane %v271_v51, 4  ;;  %v276_v3 = vrot.slane %v274_v52, 5  ;;  %v1551_v10 = vld [vmem:[%s1834_s25 + $0x2c] sm:$0x1]  ;;  %v1747_v16 = vld [vmem:[%s1834_s25 + $0x20] ss:$8 sps:$4 sm:$0xff]  }
  0x34   : > { %v282_v4 = vrot.slane %v280_v56, 5  ;;  %v414_v5 = vrot.slane %v374_v53, 5  ;;  %v1463_v6 = vrot.slane %v375_v57, 9  ;;  %v418_v9 = vrot.slane %v376_v58, 5  ;;  %v1512_v21 = vld [vmem:[%s1834_s25 + $0x28] sm:$0xe] }
  0x35   : > { %942 = vrot.lane.b32.xlu0 %v1563_v60, %s1782_s6  ;;  %v264_v8 = vrot.slane %v263_v61, 4  ;;  %v841_v11 = vshrl.u32 %v1548_v1, 16  ;;  %v844_v12 = vshll.u32 %v1548_v1, 16  ;;  %v277_v13 = vor.u32 %v276_v3, %v273_v63  ;;  %v1513_v26 = vld [vmem:[%s1834_s25 + $0x2c] sm:$0x1] }
  0x36   : > { %v850_v14 = vshll.u32 %v1549_v2, 16  ;;  %v855_v15 = vshrl.u32 %v1550_v7, 16  ;;  %v415_v17 = vsel %vm1814_vm2, %v1462_v59, %v414_v5  ;;  %v419_v28 = vsel %vm1814_vm2, %v1463_v6, %v418_v9  ;;  %v1514_v32 = vld [vmem:[%s1834_s25 + $0x30] sm:$0xe]  ;;  %v1515_v33 = vld [vmem:[%s1834_s25 + $0x34] sm:$0x1] }
  0x37   : > { %v843_v18 = vrot.slane %v841_v11, 4  ;;  %v846_v20 = vrot.slane %v844_v12, 5  ;;  %v269_v22 = vsel %vm1905_vm5, %v264_v8, %v268_v62  ;;  %v278_v23 = vrot.slane %v277_v13, 4  ;;  %v217_v38 = vld [vmem:[%s1834_s25 + $0x20] sm:$0xf] }
  0x38   : > { %v852_v24 = vrot.slane %v850_v14, 5  ;;  %v857_v25 = vrot.slane %v855_v15, 4  ;;  %v858_v30 = vshll.u32 %v1550_v7, 16  ;;  %v864_v31 = vshll.u32 %v1551_v10, 16  ;;  %v218_v43 = vld [vmem:[%s1834_s25 + $0x24] sm:$0x1] }
  0x39   : > { %737 = vrot.lane.b32.xlu0 %v1529_v55, %s1783_s7  ;;  %v847_v29 = vor.u32 %v846_v20, %v843_v18  ;;  %v283_v34 = vsel %vm1905_vm5, %v278_v23, %v282_v4  ;;  %v1524_v35 = vrot.slane %v1512_v21, 9  ;;  %v709_v36 = vrot.slane %v1513_v26, 5  ;;  %v219_v45 = vld [vmem:[%s1834_s25 + $0x28] sm:$0xf]  ;;  %v220_v46 = vld [vmem:[%s1834_s25 + $0x2c] sm:$0x1] }
  0x3a   : > { %v1525_v37 = vrot.slane %v1514_v32, 9  ;;  %v1457_v39 = vcombine.low %v269_v22, %v283_v34  ;;  %v860_v41 = vrot.slane %v858_v30, 5  ;;  %v866_v42 = vrot.slane %v864_v31, 5  ;;  %v1748_v58 = vld [vmem:[%s1834_s25 + $0x18] ss:$8 sps:$4 sm:$0xff]  }
  0x3b   : > { %v848_v40 = vrot.slane %v847_v29, 4  ;;  %v713_v44 = vrot.slane %v1515_v33, 5  ;;  %v285_v47 = vshrl.u32 %v217_v38, 16  ;;  %v1469_v48 = vcombine.low %v415_v17, %v419_v28  ;;  %v377_v61 = vld [vmem:[%s1834_s25 + $0x20] sm:$0xe] }
  0x3c   : > { %354 = vrot.lane.b32.xlu1 %v1457_v39, %s1783_s7  ;;  %v861_v49 = vor.u32 %v860_v41, %v857_v25  ;;  %v288_v50 = vshll.u32 %v217_v38, 16  ;;  %v294_v51 = vshll.u32 %v218_v43, 16  ;;  %v710_v52 = vsel %vm1814_vm2, %v1524_v35, %v709_v36  ;;  %v378_v2 = vld [vmem:[%s1834_s25 + $0x24] sm:$0x1]  ;;  %v379_v7 = vld [vmem:[%s1834_s25 + $0x28] sm:$0xe] }
  0x3d   : > { %782 = vrot.lane.b32.xlu0 %v1747_v16, %s1781_s28  ;;  %v287_v53 = vrot.slane %v285_v47, 4  ;;  %v299_v54 = vshrl.u32 %v219_v45, 16  ;;  %v302_v55 = vshll.u32 %v219_v45, 16  ;;  %v853_v56 = vsel %vm1905_vm5, %v848_v40, %v852_v24  ;;  %v380_v8 = vld [vmem:[%s1834_s25 + $0x2c] sm:$0x1] }
  0x3e   : > { %v862_v57 = vrot.slane %v861_v49, 4  ;;  %v714_v59 = vsel %vm1814_vm2, %v1525_v37, %v713_v44  ;;  %v290_v60 = vrot.slane %v288_v50, 5  ;;  %v308_v1 = vshll.u32 %v220_v46, 16  ;;  %v1552_v14 = vld [vmem:[%s1834_s25 + $0x30] sm:$0xf] }
  0x3f   : > { %v301_v62 = vrot.slane %v299_v54, 4  ;;  %v304_v63 = vrot.slane %v302_v55, 5  ;;  %v1464_v3 = vrot.slane %v377_v61, 9  ;;  %v296_v6 = vrot.slane %v294_v51, 5  ;;  %v1553_v15 = vld [vmem:[%s1834_s25 + $0x34] sm:$0x1] }
  0x40   : > { %450 = vrot.lane.b32.xlu1 %v1469_v48, %s1781_s28  ;;  %v867_v4 = vsel %vm1905_vm5, %v862_v57, %v866_v42  ;;  %v291_v5 = vor.u32 %v290_v60, %v287_v53  ;;  %v422_v9 = vrot.slane %v378_v2, 5  ;;  %v310_v12 = vrot.slane %v308_v1, 5  ;;  %v1554_v21 = vld [vmem:[%s1834_s25 + $0x38] sm:$0xf]  ;;  %v1555_v29 = vld [vmem:[%s1834_s25 + $0x3c] sm:$0x1] }
  0x41   : > { %v1561_v10 = vcombine.low %v853_v56, %v867_v4  ;;  %v305_v11 = vor.u32 %v304_v63, %v301_v62  ;;  %v1465_v13 = vrot.slane %v379_v7, 9  ;;  %v1530_v16 = vcombine.low %v710_v52, %v714_v59  ;;  %v1749_v33 = vld [vmem:[%s1834_s25 + $0x30] ss:$8 sps:$4 sm:$0xff]   ;;  %v1484_v40 = vld [vmem:[%s1834_s25 + $0x8] sm:$0xf] }
  0x42   : > { %v292_v17 = vrot.slane %v291_v5, 4  ;;  %v423_v18 = vsel %vm1814_vm2, %v1464_v3, %v422_v9  ;;  %v426_v20 = vrot.slane %v380_v8, 5  ;;  %v869_v23 = vshrl.u32 %v1552_v14, 16  ;;  %v1485_v44 = vld [vmem:[%s1834_s25 + $0xc] sm:$0x1] }
  0x43   : > { %938 = vrot.lane.b32.xlu0 %v1561_v10, %s1782_s6  ;;  %v306_v22 = vrot.slane %v305_v11, 4  ;;  %v872_v24 = vshll.u32 %v1552_v14, 16  ;;  %v878_v25 = vshll.u32 %v1553_v15, 16  ;;  %v883_v30 = vshrl.u32 %v1554_v21, 16  ;;  %v1486_v45 = vld [vmem:[%s1834_s25 + $0x10] sm:$0xf] }
  0x44   : > { %496 = vrot.lane.b32.xlu1 %v1748_v58, %s1782_s6  ;;  %v297_v26 = vsel %vm1905_vm5, %v292_v17, %v296_v6  ;;  %v427_v28 = vsel %vm1814_vm2, %v1465_v13, %v426_v20  ;;  %v886_v31 = vshll.u32 %v1554_v21, 16  ;;  %v871_v34 = vrot.slane %v869_v23, 4  ;;  %v1487_v48 = vld [vmem:[%s1834_s25 + $0x14] sm:$0x1]  ;;  %v1750_v57 = vld [vmem:[%s1834_s25 + $0x28] ss:$8 sps:$4 sm:$0xff]  }
  0x45   : > { %v311_v32 = vsel %vm1905_vm5, %v306_v22, %v310_v12  ;;  %v874_v35 = vrot.slane %v872_v24, 5  ;;  %v880_v37 = vrot.slane %v878_v25, 5  ;;  %v885_v38 = vrot.slane %v883_v30, 4  ;;  %v1496_v3 = vld [vmem:[%s1834_s25 + $0x38] sm:$0xf] }
  0x46   : > { %v1458_v36 = vcombine.low %v297_v26, %v311_v32  ;;  %v888_v39 = vrot.slane %v886_v31, 5  ;;  %v1470_v41 = vcombine.low %v423_v18, %v427_v28  ;;  %v892_v43 = vshll.u32 %v1555_v29, 16  ;;  %v1497_v4 = vld [vmem:[%s1834_s25 + $0x3c] sm:$0x1]  ;;  %v1498_v5 = vld [vmem:[%s1834_s25 + $0x40] sm:$0xf] }
  0x47   : > { %739 = vrot.lane.b32.xlu0 %v1530_v16, %s1783_s7  ;;  %v875_v42 = vor.u32 %v874_v35, %v871_v34  ;;  %v528_v46 = vshrl.u32 %v1484_v40, 16  ;;  %v531_v49 = vshll.u32 %v1484_v40, 16  ;;  %v537_v50 = vshll.u32 %v1485_v44, 16  ;;  %v1499_v9 = vld [vmem:[%s1834_s25 + $0x44] sm:$0x1] }
  0x48   : > { %356 = vrot.lane.b32.xlu1 %v1458_v36, %s1783_s7  ;;  %v889_v47 = vor.u32 %v888_v39, %v885_v38  ;;  %v542_v51 = vshrl.u32 %v1486_v45, 16  ;;  %v894_v53 = vrot.slane %v892_v43, 5  ;;  %v545_v55 = vshll.u32 %v1486_v45, 16  ;;  %v1761_v30 = vld [vmem:[%s1834_s25] ss:$8 sps:$4 sm:$0xff]   ;;  %s1625_s7 = sshll.u32 %s2181_s13, 5 }
  0x49   : > { %v876_v52 = vrot.slane %v875_v42, 4  ;;  %v530_v54 = vrot.slane %v528_v46, 4  ;;  %v533_v58 = vrot.slane %v531_v49, 5  ;;  %v539_v59 = vrot.slane %v537_v50, 5  ;;  %205 = vst.msk [vmem:[#allocation2] sm:$0xff] %vm204_vm6, %v1761_v30  ;;  %s2163_s10 = scalar_lea.vmem %s2175_s3, %s1625_s7 }
  0x4a   : > { %v890_v56 = vrot.slane %v889_v47, 4  ;;  %v544_v60 = vrot.slane %v542_v51, 4  ;;  %v547_v62 = vrot.slane %v545_v55, 5  ;;  %v551_v63 = vshll.u32 %v1487_v48, 16  ;;  %v1764_v34 = vld [vmem:[%s1834_s25 + $0x30] ss:$8 sps:$4 sm:$0xff]  }
  0x4b   : > { %784 = vrot.lane.b32.xlu0 %v1749_v33, %s1781_s28  ;;  %v881_v61 = vsel %vm1905_vm5, %v876_v52, %v880_v37  ;;  %v534_v2 = vor.u32 %v533_v58, %v530_v54  ;;  %v612_v10 = vshrl.u32 %v1496_v3, 16  ;;  %v615_v12 = vshll.u32 %v1496_v3, 16  ;;  %208 = vst.msk [vmem:[#allocation2 + $0x48] sm:$0xff] %vm204_vm6, %v1764_v34  ;;  %v1488_v38 = vld [vmem:[%s1834_s25 + $0x18] sm:$0xf] }
  0x4c   : > { %452 = vrot.lane.b32.xlu1 %v1470_v41, %s1781_s28  ;;  %v895_v1 = vsel %vm1905_vm5, %v890_v56, %v894_v53  ;;  %v548_v7 = vor.u32 %v547_v62, %v544_v60  ;;  %v553_v8 = vrot.slane %v551_v63, 5  ;;  %v621_v13 = vshll.u32 %v1497_v4, 16  ;;  %v1489_v39 = vld [vmem:[%s1834_s25 + $0x1c] sm:$0x1]  ;;  %v1490_v40 = vld [vmem:[%s1834_s25 + $0x20] sm:$0xf] }
  0x4d   : > { %v1562_v6 = vcombine.low %v881_v61, %v895_v1  ;;  %v535_v11 = vrot.slane %v534_v2, 4  ;;  %v626_v14 = vshrl.u32 %v1498_v5, 16  ;;  %v614_v16 = vrot.slane %v612_v10, 4  ;;  %v1491_v41 = vld [vmem:[%s1834_s25 + $0x24] sm:$0x1] }
  0x4e   : > { %v549_v15 = vrot.slane %v548_v7, 4  ;;  %v629_v17 = vshll.u32 %v1498_v5, 16  ;;  %v635_v18 = vshll.u32 %v1499_v9, 16  ;;  %v617_v21 = vrot.slane %v615_v12, 5  ;;  %v1769_v50 = vld [vmem:[%s1834_s25 + $0x10] ss:$8 sps:$4 sm:$0xff]  }
  0x4f   : > { %940 = vrot.lane.b32.xlu0 %v1562_v6, %s1782_s6  ;;  %v540_v20 = vsel %vm1905_vm5, %v535_v11, %v539_v59  ;;  %v628_v22 = vrot.slane %v626_v14, 4  ;;  %v623_v24 = vrot.slane %v621_v13, 5  ;;  %v556_v42 = vshrl.u32 %v1488_v38, 16  ;;  %206 = vst.msk [vmem:[#allocation2 + $0x18] sm:$0xff] %vm204_vm6, %v1769_v50  ;;  %v1493_v58 = vld [vmem:[%s1834_s25 + $0x2c] sm:$0x1] }
  0x50   : > { %498 = vrot.lane.b32.xlu1 %v1750_v57, %s1782_s6  ;;  %v554_v23 = vsel %vm1905_vm5, %v549_v15, %v553_v8  ;;  %v631_v25 = vrot.slane %v629_v17, 5  ;;  %v637_v26 = vrot.slane %v635_v18, 5  ;;  %v618_v29 = vor.u32 %v617_v21, %v614_v16  ;;  %v1492_v57 = vld [vmem:[%s1834_s25 + $0x28] sm:$0xf]  ;;  %v1494_v59 = vld [vmem:[%s1834_s25 + $0x30] sm:$0xf] }
  0x51   : > { %v1500_v28 = vcombine.low %v540_v20, %v554_v23  ;;  %v559_v43 = vshll.u32 %v1488_v38, 16  ;;  %v565_v44 = vshll.u32 %v1489_v39, 16  ;;  %v570_v45 = vshrl.u32 %v1490_v40, 16  ;;  %v1495_v61 = vld [vmem:[%s1834_s25 + $0x34] sm:$0x1] }
  0x52   : > { %v632_v31 = vor.u32 %v631_v25, %v628_v22  ;;  %v619_v32 = vrot.slane %v618_v29, 4  ;;  %v573_v46 = vshll.u32 %v1490_v40, 16  ;;  %v579_v47 = vshll.u32 %v1491_v41, 16  ;;  %v1772_v14 = vld [vmem:[%s1834_s25 + $0x20] ss:$8 sps:$4 sm:$0xff]  }
  0x53   : > { %655 = vst.msk [vmem:[#allocation2 + $0x8] sm:$0xff] %vm204_vm6, %v1500_v28  ;;  %v558_v48 = vrot.slane %v556_v42, 4  ;;  %v561_v49 = vrot.slane %v559_v43, 5  ;;  %v567_v51 = vrot.slane %v565_v44, 5  ;;  %v572_v52 = vrot.slane %v570_v45, 4  ;;  %207 = vst.msk [vmem:[#allocation2 + $0x30] sm:$0xff] %vm204_vm6, %v1772_v14 }
  0x54   : > { %v633_v33 = vrot.slane %v632_v31, 4  ;;  %v624_v35 = vsel %vm1905_vm5, %v619_v32, %v623_v24  ;;  %v575_v53 = vrot.slane %v573_v46, 5  ;;  %v581_v54 = vrot.slane %v579_v47, 5  ;;  %v1564_v17 = vld [vmem:[%s1834_s25 + $0x10] sm:$0xe] }
  0x55   : > { %v562_v55 = vor.u32 %v561_v49, %v558_v48  ;;  %v584_v62 = vshrl.u32 %v1492_v57, 16  ;;  %v587_v63 = vshll.u32 %v1492_v57, 16  ;;  %v593_v1 = vshll.u32 %v1493_v58, 16  ;;  %v1565_v18 = vld [vmem:[%s1834_s25 + $0x14] sm:$0x1] }
  0x56   : > { %v638_v36 = vsel %vm1905_vm5, %v633_v33, %v637_v26  ;;  %v576_v56 = vor.u32 %v575_v53, %v572_v52  ;;  %v598_v3 = vshrl.u32 %v1494_v59, 16  ;;  %v601_v4 = vshll.u32 %v1494_v59, 16  ;;  %v1566_v20 = vld [vmem:[%s1834_s25 + $0x18] sm:$0xe]  ;;  %v1567_v22 = vld [vmem:[%s1834_s25 + $0x1c] sm:$0x1] }
  0x57   : > { %v1503_v37 = vcombine.low %v624_v35, %v638_v36  ;;  %v563_v60 = vrot.slane %v562_v55, 4  ;;  %v607_v5 = vshll.u32 %v1495_v61, 16  ;;  %v586_v7 = vrot.slane %v584_v62, 4  ;;  %v1568_v29 = vld [vmem:[%s1834_s25 + $0x20] sm:$0xe] }
  0x58   : > { %v577_v2 = vrot.slane %v576_v56, 4  ;;  %v589_v8 = vrot.slane %v587_v63, 5  ;;  %v595_v9 = vrot.slane %v593_v1, 5  ;;  %v600_v11 = vrot.slane %v598_v3, 4  ;;  %v1569_v30 = vld [vmem:[%s1834_s25 + $0x24] sm:$0x1] }
  0x59   : > { %658 = vst.msk [vmem:[#allocation2 + $0x50] sm:$0xff] %vm204_vm6, %v1503_v37  ;;  %v568_v6 = vsel %vm1905_vm5, %v563_v60, %v567_v51  ;;  %v603_v12 = vrot.slane %v601_v4, 5  ;;  %v609_v13 = vrot.slane %v607_v5, 5  ;;  %v1580_v23 = vrot.slane %v1564_v17, 9  ;;  %v1570_v33 = vld [vmem:[%s1834_s25 + $0x28] sm:$0xe] }
  0x5a   : > { %v582_v10 = vsel %vm1905_vm5, %v577_v2, %v581_v54  ;;  %v590_v16 = vor.u32 %v589_v8, %v586_v7  ;;  %v986_v24 = vrot.slane %v1565_v18, 5  ;;  %v1581_v25 = vrot.slane %v1566_v20, 9  ;;  %v1571_v34 = vld [vmem:[%s1834_s25 + $0x2c] sm:$0x1]  ;;  %v1572_v40 = vld [vmem:[%s1834_s25 + $0x30] sm:$0xe] }
  0x5b   : > { %v1501_v15 = vcombine.low %v568_v6, %v582_v10  ;;  %v604_v21 = vor.u32 %v603_v12, %v600_v11  ;;  %v990_v28 = vrot.slane %v1567_v22, 5  ;;  %v1582_v35 = vrot.slane %v1568_v29, 9  ;;  %v1573_v41 = vld [vmem:[%s1834_s25 + $0x34] sm:$0x1]  ;;  %v1574_v45 = vld [vmem:[%s1834_s25 + $0x38] sm:$0xe] }
  0x5c   : > { %v591_v26 = vrot.slane %v590_v16, 4  ;;  %v987_v32 = vsel %vm1814_vm2, %v1580_v23, %v986_v24  ;;  %v994_v38 = vrot.slane %v1569_v30, 5  ;;  %v1583_v39 = vrot.slane %v1570_v33, 9  ;;  %v1575_v46 = vld [vmem:[%s1834_s25 + $0x3c] sm:$0x1]  ;;  %v1771_v24 = vld [vmem:[%s2173_s1 + $0x88] sm:$0xff]  }
  0x5d   : > { %656 = vst.msk [vmem:[#allocation2 + $0x20] sm:$0xff] %vm204_vm6, %v1501_v15  ;;  %v605_v31 = vrot.slane %v604_v21, 4  ;;  %v991_v37 = vsel %vm1814_vm2, %v1581_v25, %v990_v28  ;;  %v998_v44 = vrot.slane %v1571_v34, 5  ;;  %v1584_v47 = vrot.slane %v1572_v40, 9  ;;  %v1576_v52 = vld [vmem:[%s1834_s25 + $0x40] sm:$0xe] }
  0x5e   : > { %v596_v36 = vsel %vm1905_vm5, %v591_v26, %v595_v9  ;;  %v1588_v43 = vcombine.low %v987_v32, %v991_v37  ;;  %v995_v49 = vsel %vm1814_vm2, %v1582_v35, %v994_v38  ;;  %v1002_v50 = vrot.slane %v1573_v41, 5  ;;  %v1577_v53 = vld [vmem:[%s1834_s25 + $0x44] sm:$0x1]  ;;  %v1578_v55 = vld [vmem:[%s1834_s25 + $0x48] sm:$0xe] }
  0x5f   : > { %v610_v42 = vsel %vm1905_vm5, %v605_v31, %v609_v13  ;;  %v1585_v51 = vrot.slane %v1574_v45, 9  ;;  %v999_v19 = vsel %vm1814_vm2, %v1583_v39, %v998_v44  ;;  %v1006_v54 = vrot.slane %v1575_v46, 5  ;;  %v1579_v56 = vld [vmem:[%s1834_s25 + $0x4c] sm:$0x1] }
  0x60   : > { %v1502_v48 = vcombine.low %v596_v36, %v610_v42  ;;  %1032 = vst.msk [vmem:[#allocation2 + $0x10] sm:$0xff] %vm204_vm6, %v1588_v43  ;;  %v1586_v57 = vrot.slane %v1576_v52, 9  ;;  %v1589_v58 = vcombine.low %v995_v49, %v999_v19  ;;  %v1003_v59 = vsel %vm1814_vm2, %v1584_v47, %v1002_v50  ;;  %v1592_v19 = vld [vmem:[%s2174_s2] ss:$0 sm:$0xff] }
  0x61   : > { %v1010_v60 = vrot.slane %v1577_v53, 5  ;;  %v1587_v61 = vrot.slane %v1578_v55, 9  ;;  %v1007_v62 = vsel %vm1814_vm2, %v1585_v51, %v1006_v54  ;;  %v1014_v63 = vrot.slane %v1579_v56, 5 }
  0x62   : > { %657 = vst.msk [vmem:[#allocation2 + $0x38] sm:$0xff] %vm204_vm6, %v1502_v48  ;;  %1033 = vst.msk [vmem:[#allocation2 + $0x28] sm:$0xff] %vm204_vm6, %v1589_v58  ;;  %v1590_v1 = vcombine.low %v1003_v59, %v1007_v62 }
  0x63   : > { %v1011_v2 = vsel %vm1814_vm2, %v1586_v57, %v1010_v60  ;;  %v1015_v3 = vsel %vm1814_vm2, %v1587_v61, %v1014_v63 }
  0x64   : > { %1034 = vst.msk [vmem:[#allocation2 + $0x40] sm:$0xff] %vm204_vm6, %v1590_v1  ;;  %v1591_v4 = vcombine.low %v1011_v2, %v1015_v3 }
  0x66   : > { %1035 = vst.msk [vmem:[#allocation2 + $0x58] sm:$0xff] %vm204_vm6, %v1591_v4 }
  0x67   : > { %v1038_v25 = vld [vmem:[#allocation2 + $0x10] sm:$0xff] }
  0x69   : > { %v1041_v29 = vld [vmem:[#allocation2 + $0x28] sm:$0xff] }
  0x6b   : > { %v1044_v31 = vld [vmem:[#allocation2 + $0x40] sm:$0xff] }
  0x6d   : > { %v1047_v35 = vld [vmem:[#allocation2 + $0x58] sm:$0xff] }
  0x84   : > { %v787_v5 = vpop.permute.xlu0 %786  ;;  %v781_v6 = vpop.permute.xlu1 %780 }
  0x88   : > { %v495_v8 = vpop.permute.xlu1 %494 }
  0x8b   : > { %v736_v7 = vpop.permute.xlu0 %735 }
  0x8c   : > { %747 = vst.msk [vmem:[#allocation2 + $0x8] sm:$0xff] %vm364_vm7, %v736_v7 }
  0x8d   : > { %792 = vst.msk [vmem:[#allocation2 + $0x8] sm:$0xff] %vm460_vm8, %v781_v6 }
  0x8f   : > { %v742_v9 = vpop.permute.xlu0 %741  ;;  %v449_v0 = vpop.permute.xlu1 %448 }
  0x90   : > { %750 = vst.msk [vmem:[#allocation2 + $0x50] sm:$0xff] %vm364_vm7, %v742_v9 }
  0x91   : > { %795 = vst.msk [vmem:[#allocation2 + $0x50] sm:$0xff] %vm460_vm8, %v787_v5 }
  0x93   : > { %v455_v10 = vpop.permute.xlu1 %454 }
  0x99   : > { %v353_v11 = vpop.permute.xlu0 %352 }
  0x9a   : > { %365 = vst.msk [vmem:[#allocation2] sm:$0xff] %vm364_vm7, %v353_v11 }
  0x9b   : > { %461 = vst.msk [vmem:[#allocation2] sm:$0xff] %vm460_vm8, %v449_v0 }
  0x9c   : > { %507 = vst.msk [vmem:[#allocation2] sm:$0xff] %vm506_vm9, %v495_v8 }
  0x9d   : > { %v359_v12 = vpop.permute.xlu1 %358 }
  0x9e   : > { %368 = vst.msk [vmem:[#allocation2 + $0x48] sm:$0xff] %vm364_vm7, %v359_v12 }
  0x9f   : > { %464 = vst.msk [vmem:[#allocation2 + $0x48] sm:$0xff] %vm460_vm8, %v455_v10 }
  0xa1   : > { %v501_v13 = vpop.permute.xlu1 %500 }
  0xa2   : > { %510 = vst.msk [vmem:[#allocation2 + $0x48] sm:$0xff] %vm506_vm9, %v501_v13 }
  0xa3   : > { %v937_v14 = vpop.permute.xlu0 %936  ;;  %v1036_v18 = vld [vmem:[#allocation2] sm:$0xff] }
  0xa4   : > { %948 = vst.msk [vmem:[#allocation2 + $0x8] sm:$0xff] %vm506_vm9, %v937_v14 }
  0xa7   : > { %v943_v15 = vpop.permute.xlu0 %942 }
  0xa8   : > { %951 = vst.msk [vmem:[#allocation2 + $0x50] sm:$0xff] %vm506_vm9, %v943_v15 }
  0xa9   : > { %v1045_v20 = vld [vmem:[#allocation2 + $0x48] sm:$0xff] }
  0xab   : > { %v738_v16 = vpop.permute.xlu0 %737  ;;  %v1037_v17 = vld [vmem:[#allocation2 + $0x8] sm:$0xff] }
  0xac   : > { %748 = vst.msk [vmem:[#allocation2 + $0x20] sm:$0xff] %vm364_vm7, %v738_v16  ;;  %1243 = vmatprep.mubr.bf16.mxu0 %v1037_v17 }
  0xad   : > { %1244 = vmatmul.mubr.bf16.vlgmr.msra.gmra.mrb[0].mxu0 %v1036_v18 }
  0xae   : > { %v355_v21 = vpop.permute.xlu1 %354 }
  0xaf   : > { %v783_v22 = vpop.permute.xlu0 %782  ;;  %v1046_v23 = vld [vmem:[#allocation2 + $0x50] sm:$0xff]  ;;  %366 = vst.msk [vmem:[#allocation2 + $0x18] sm:$0xff] %vm364_vm7, %v355_v21 }
  0xb0   : > { %793 = vst.msk [vmem:[#allocation2 + $0x20] sm:$0xff] %vm460_vm8, %v783_v22  ;;  %1267 = vmatprep.mubr.bf16.mxu1 %v1046_v23 }
  0xb1   : > { %1268 = vmatmul.mubr.bf16.vlgmr.msra.gmra.mrb[0].mxu1 %v1045_v20 }
  0xb2   : > { %1704 = vmatpush3.bf16.msra.mxu1 %v1988_v27  ;;  %1707 = vmatprep.mubr.msk.bf16.mxu1 %vm204_vm6, %v1038_v25  ;;  %v451_v26 = vpop.permute.xlu1 %450 }
  0xb3   : > { %1705 = vmatprep.subr.bf16.mxu1 %v1771_v24  ;;  %462 = vst.msk [vmem:[#allocation2 + $0x18] sm:$0xff] %vm460_vm8, %v451_v26 }
  0xb5   : > { %v939_v28 = vpop.permute.xlu0 %938 }
  0xb6   : > { %1706 = vmatpush3.bf16.msra.mxu1 %v1771_v24  ;;  %949 = vst.msk [vmem:[#allocation2 + $0x20] sm:$0xff] %vm506_vm9, %v939_v28  ;;  %v497_v30 = vpop.permute.xlu1 %496 }
  0xb7   : > { %508 = vst.msk [vmem:[#allocation2 + $0x18] sm:$0xff] %vm506_vm9, %v497_v30 }
  0xb9   : > { %1708 = vmatmul.mubr.msk.bf16.vlgmr.msra.gmra.mrb[4].mxu1 %vm204_vm6, %v1041_v29  ;;  %v740_v32 = vpop.permute.xlu0 %739 }
  0xba   : > { %1711 = vmatprep.mubr.msk.bf16.mxu1 %vm204_vm6, %v1044_v31  ;;  %749 = vst.msk [vmem:[#allocation2 + $0x38] sm:$0xff] %vm364_vm7, %v740_v32  ;;  %v357_v27 = vpop.permute.xlu1 %356 }
  0xbb   : > { %367 = vst.msk [vmem:[#allocation2 + $0x30] sm:$0xff] %vm364_vm7, %v357_v27 }
  0xbd   : > { %v785_v33 = vpop.permute.xlu0 %784  ;;  %v1040_v34 = vld [vmem:[#allocation2 + $0x20] sm:$0xff] }
  0xbe   : > { %794 = vst.msk [vmem:[#allocation2 + $0x38] sm:$0xff] %vm460_vm8, %v785_v33  ;;  %v453_v36 = vpop.permute.xlu1 %452  ;;  %1251 = vmatprep.mubr.bf16.mxu0 %v1040_v34  ;;  %v1039_v37 = vld [vmem:[#allocation2 + $0x18] sm:$0xff] }
  0xbf   : > { %463 = vst.msk [vmem:[#allocation2 + $0x30] sm:$0xff] %vm460_vm8, %v453_v36  ;;  %1252 = vmatmul.mubr.bf16.gmra.mrb[4].mxu0 %v1039_v37 }
  0xc1   : > { %1712 = vmatmul.mubr.msk.bf16.gmra.mrb[8].mxu1 %vm204_vm6, %v1047_v35  ;;  %v941_v38 = vpop.permute.xlu0 %940 }
  0xc2   : > { %950 = vst.msk [vmem:[#allocation2 + $0x38] sm:$0xff] %vm506_vm9, %v941_v38  ;;  %v499_v39 = vpop.permute.xlu1 %498 }
  0xc3   : > { %509 = vst.msk [vmem:[#allocation2 + $0x30] sm:$0xff] %vm506_vm9, %v499_v39 }
  0xc9   : > { %v1043_v40 = vld [vmem:[#allocation2 + $0x38] sm:$0xff] }
  0xca   : > { %1259 = vmatprep.mubr.bf16.mxu0 %v1043_v40  ;;  %v1042_v41 = vld [vmem:[#allocation2 + $0x30] sm:$0xff] }
  0xcb   : > { %1260 = vmatmul.mubr.bf16.gmra.mrb[8].mxu0 %v1042_v41 }
 0x180   : > { %v1673_v42 = vpop.f32.mrb[0].mxu0 }
 0x181   : > { %v1674_v43 = vpop.f32.mrb[1].mxu0 }
 0x182   : > { %v1675_v44 = vadd.f32 %v1674_v43, %v1673_v42  ;;  %v1676_v45 = vpop.f32.mrb[2].mxu0 }
 0x183   : > { %v1677_v46 = vpop.f32.mrb[3].mxu0 }
 0x184   : > { %v1678_v47 = vadd.f32 %v1677_v46, %v1676_v45  ;;  %v1691_v48 = vpop.f32.mrb[0].mxu1  ;;  %v1246_v55 = vadd.f32 %v1675_v44, %v1592_v19 }
 0x185   : > { %v1692_v49 = vpop.f32.mrb[1].mxu1 }
 0x186   : > { %v1693_v50 = vadd.f32 %v1692_v49, %v1691_v48  ;;  %v1694_v51 = vpop.f32.mrb[2].mxu1  ;;  %v1249_v59 = vadd.f32 %v1678_v47, %v1592_v19 }
 0x187   : > { %v1695_v52 = vpop.f32.mrb[3].mxu1 }
 0x188   : > { %v1696_v53 = vadd.f32 %v1695_v52, %v1694_v51  ;;  %v1270_v2 = vadd.f32 %v1693_v50, %v1592_v19 }
 0x18a   : > { %v1273_v0 = vadd.f32 %v1696_v53, %v1592_v19 }
 0x18c   : > { %v1709_v54 = vpop.f32.mrb[4].mxu1 }
 0x18d   : > { %v1310_v56 = vpop.f32.mrb[5].mxu1 }
 0x18e   : > { %v1311_v57 = vadd.f32 %v1310_v56, %v1246_v55  ;;  %v1710_v58 = vpop.f32.mrb[6].mxu1 }
 0x18f   : > { %v1313_v60 = vpop.f32.mrb[7].mxu1 }
 0x190   : > { %v1314_v61 = vadd.f32 %v1313_v60, %v1249_v59  ;;  %v1341_v62 = vmax.f32 %v1311_v57, 0.0 }
 0x192   : > { %v1342_v63 = vmax.f32 %v1314_v61, 0.0  ;;  %v1679_v1 = vpop.f32.mrb[4].mxu0 }
 0x193   : > { %v1680_v4 = vpop.f32.mrb[5].mxu0 }
 0x194   : > { %v1637_v3 = vpack.c.bf16 %v1342_v63, %v1341_v62  ;;  %v1713_v5 = vpop.f32.mrb[8].mxu1  ;;  %v1681_v6 = vadd.f32 %v1680_v4, %v1679_v1  ;;  %v1682_v7 = vpop.f32.mrb[6].mxu0 }
 0x195   : > { %v1335_v8 = vadd.f32 %v1713_v5, %v1270_v2  ;;  %v1326_v9 = vpop.f32.mrb[9].mxu1  ;;  %v1683_v10 = vpop.f32.mrb[7].mxu0 }
 0x196   : > { %1638 = vst [vmem:[%s2163_s10] sm:$0xff] %v1637_v3   ;;  %v1714_v11 = vpop.f32.mrb[10].mxu1  ;;  %v1254_v12 = vadd.f32 %v1681_v6, %v1592_v19  ;;  %v1684_v13 = vadd.f32 %v1683_v10, %v1682_v7 }
 0x197   : > { %v1338_v14 = vadd.f32 %v1714_v11, %v1273_v0  ;;  %v1329_v15 = vpop.f32.mrb[11].mxu1  ;;  %v1347_v18 = vmax.f32 %v1335_v8, 0.0 }
 0x198   : > { %v1319_v16 = vadd.f32 %v1709_v54, %v1254_v12  ;;  %v1257_v17 = vadd.f32 %v1684_v13, %v1592_v19 }
 0x199   : > { %v1348_v20 = vmax.f32 %v1338_v14, 0.0 }
 0x19a   : > { %v1322_v21 = vadd.f32 %v1710_v58, %v1257_v17  ;;  %v1343_v23 = vmax.f32 %v1319_v16, 0.0 }
 0x19b   : > { %v1652_v22 = vpack.c.bf16 %v1348_v20, %v1347_v18 }
 0x19c   : > { %v1344_v24 = vmax.f32 %v1322_v21, 0.0 }
 0x19d   : > { %1656 = vst [vmem:[%s2163_s10 + $0x18] sm:$0xff] %v1652_v22  }
 0x19e   : > { %v1642_v25 = vpack.c.bf16 %v1344_v24, %v1343_v23  ;;  %v1685_v26 = vpop.f32.mrb[8].mxu0 }
 0x19f   : > { %v1686_v28 = vpop.f32.mrb[9].mxu0 }
 0x1a0   : > { %1654 = vst [vmem:[%s2163_s10 + $0x8] sm:$0xff] %v1642_v25   ;;  %v1687_v29 = vadd.f32 %v1686_v28, %v1685_v26  ;;  %v1688_v30 = vpop.f32.mrb[10].mxu0 }
 0x1a1   : > { %v1689_v31 = vpop.f32.mrb[11].mxu0 }
 0x1a2   : > { %v1262_v32 = vadd.f32 %v1687_v29, %v1592_v19  ;;  %v1690_v27 = vadd.f32 %v1689_v31, %v1688_v30 }
 0x1a4   : > { %v1327_v33 = vadd.f32 %v1326_v9, %v1262_v32  ;;  %v1265_v34 = vadd.f32 %v1690_v27, %v1592_v19 }
 0x1a6   : > { %v1330_v35 = vadd.f32 %v1329_v15, %v1265_v34  ;;  %v1345_v36 = vmax.f32 %v1327_v33, 0.0 }
 0x1a8   : > { %v1346_v37 = vmax.f32 %v1330_v35, 0.0 }
 0x1aa   : > { %v1647_v38 = vpack.c.bf16 %v1346_v37, %v1345_v36 }
 0x1ac   : > { %1655 = vst [vmem:[%s2163_s10 + $0x10] sm:$0xff] %v1647_v38  }
 0x1ad PF: > { %s13_s12 = sadd.s32 1, %s1779_s12  }
 0x1ae   : > { %p10_p4 = scmp.ge.s32.totalorder %s13_s12, 4  }
 0x1b0   :  { %12 = sbr.rel (!%p10_p4) target bundleno = 1 (0x1), region = 64 }

// kernel: _lambda_.30
= control target key start
LH: loop header
LB: loop body
LE: loop exit
PB: predicated region body
PF: predicated region fallthrough
CT: control target
= control target key end

     0   :  { %s4618_s12 = smov 0   ;;  %s5799_s0 = inlined_call_operand.vmem [shape: bf16[2,18,18,8], index: 0, kind: input, shape index: {}]   ;;  %s5800_s1 = inlined_call_operand.vmem [shape: bf16[72,128], index: 1, kind: input, shape index: {}]   ;;  %s5801_s2 = inlined_call_operand.vmem [shape: f32[1,128], index: 2, kind: input, shape index: {}]   ;;  %s5802_s3 = inlined_call_operand.vmem [shape: bf16[2,256,128], index: 3, kind: output, shape index: {}]  }
   0x1 LB: > { %s3797_s13 = sadd.s32 4294967295, %s4588_s12   ;;  %p3801_p0 = scmp.ge.s32.totalorder %s4588_s12, 1  ;;  %s4588_s12 = sphi %s4618_s12, %s13_s12  }
   0x2   : > { %p137_p1 = scmp.lt.s32.totalorder %s4588_s12, 3 }
   0x4   : > { %p138_p2 = pnand %p3801_p0, %p137_p1 }
   0x5   : > { %p161_p3 = scmp.lt.s32.totalorder (!%p138_p2), %s3797_s13, 1  ;;  %vm961_vm0 = vcmask (!%p138_p2), 1042432   ;;  %vm962_vm1 = vcmask (!%p138_p2), 1046532   ;;  %s4590_s18 = smov (!%p138_p2), 24   ;;  %vm365_vm3 = vsmask.f32 (!%p138_p2), 3328 }
   0x6   : > { %141 = sbr.rel (%p138_p2) target bundleno = 662 (0x296), region = 32  ;;  %vm4634_vm2 = vmor (!%p138_p2), %vm961_vm0, %vm962_vm1  ;;  %vm366_vm4 = vsmask.f32 (!%p138_p2), 7440  ;;  %s4591_s19 = smov (!%p138_p2), 16   ;;  %vm300_vm6 = vcmask (!%p138_p2), 64512   ;;  %vm848_vm7 = vcmask (!%p138_p2), 130112  }
   0x7   : > { %vm4684_vm5 = vmor (!%p138_p2), %vm365_vm3, %vm366_vm4  ;;  %s4592_s20 = smov (!%p138_p2), 8   ;;  %s4593_s21 = smov (!%p138_p2), 32   ;;  %vm1172_vm8 = vcmask (!%p138_p2), 195712   ;;  %vm1350_vm9 = vcmask (!%p138_p2), 261312   ;;  %vm1895_vm10 = vcmask (!%p138_p2), 326912   ;;  %vm2216_vm11 = vcmask (!%p138_p2), 392512  }
   0x8   : > { %s4594_s22 = smov (!%p138_p2), 40   ;;  %s4595_s23 = smov (!%p138_p2), 48   ;;  %vm2394_vm12 = vcmask (!%p138_p2), 458112   ;;  %vm2939_vm13 = vcmask (!%p138_p2), 523712   ;;  %vm3260_vm14 = vcmask (!%p138_p2), 589312   ;;  %vm3336_vm15 = vcmask (!%p138_p2), 588800  }
   0x9   : > { %s4596_s24 = smov (!%p138_p2), 56   ;;  %s4597_s25 = smov (!%p138_p2), 64   ;;  %vm3385_vm0 = vcmask (!%p138_p2), 1043456  }
   0xd   : > { %s5808_s13 = smov (!%p161_p3, %s3797_s13), 1 }
   0xe   : > { %s4512_s14 = smul.u32 216, %s5808_s13  ;;  %s4309_s11 = sshll.u32 %s5808_s13, 7 }
   0xf   : > { %s5754_s13 = scalar_lea.vmem %s5802_s3, %s4309_s11 }
  0x10   : > { %s4632_s17 = scalar_lea.vmem %s5799_s0, %s4512_s14 }
  0x11   : > { %v4529_v1 = vld [vmem:[%s4632_s17 + $0x6c] sm:$0xff]   ;;  %v889_v3 = vld [vmem:[%s4632_s17 + $0x60] sm:$0xe]  ;;  %v890_v4 = vld [vmem:[%s4632_s17 + $0x64] sm:$0xf] }
  0x12   : > { %v4530_v2 = vld [vmem:[%s4632_s17 + $0xc] sm:$0xff]   ;;  %1318 = vrot.lane.b32.xlu1 %v4529_v1, %s4590_s18  ;;  %v891_v5 = vld [vmem:[%s4632_s17 + $0x68] sm:$0x1]  ;;  %v3845_v6 = vrot.slane %v889_v3, 9  ;;  %v1022_v7 = vrot.slane %v890_v4, 5 }
  0x13   : > { %1302 = vrot.lane.b32.xlu0 %v4530_v2, %s4590_s18  ;;  %v1025_v8 = vrot.slane %v891_v5, 5  ;;  %v865_v9 = vld [vmem:[%s4632_s17] sm:$0xe]  ;;  %v866_v10 = vld [vmem:[%s4632_s17 + $0x4] sm:$0xf] }
  0x14   : > { %v867_v11 = vld [vmem:[%s4632_s17 + $0x8] sm:$0x1]  ;;  %v3837_v12 = vrot.slane %v865_v9, 9  ;;  %v1023_v13 = vsel %vm4634_vm2, %v3845_v6, %v1022_v7  ;;  %v1024_v14 = vrot.slane %v1022_v7, 4  ;;  %v966_v15 = vrot.slane %v866_v10, 5 }
  0x15   : > { %v969_v16 = vrot.slane %v867_v11, 5  ;;  %v892_v17 = vld [vmem:[%s4632_s17 + $0x6c] sm:$0xe]  ;;  %v893_v18 = vld [vmem:[%s4632_s17 + $0x70] sm:$0xf] }
  0x16   : > { %v894_v19 = vld [vmem:[%s4632_s17 + $0x74] sm:$0x1]  ;;  %v3846_v20 = vrot.slane %v892_v17, 9  ;;  %v1026_v21 = vsel %vm4634_vm2, %v1024_v14, %v1025_v8  ;;  %v967_v22 = vsel %vm4634_vm2, %v3837_v12, %v966_v15  ;;  %v968_v23 = vrot.slane %v966_v15, 4  ;;  %v868_v25 = vld [vmem:[%s4632_s17 + $0xc] sm:$0xe] }
  0x17   : > { %v1029_v24 = vrot.slane %v893_v18, 5  ;;  %v869_v26 = vld [vmem:[%s4632_s17 + $0x10] sm:$0xf]  ;;  %v3861_v27 = vcombine.low %v1023_v13, %v1026_v21  ;;  %v1032_v28 = vrot.slane %v894_v19, 5  ;;  %v870_v29 = vld [vmem:[%s4632_s17 + $0x14] sm:$0x1] }
  0x18   : > { %v3838_v30 = vrot.slane %v868_v25, 9  ;;  %v973_v31 = vrot.slane %v869_v26, 5  ;;  %v970_v32 = vsel %vm4634_vm2, %v968_v23, %v969_v16  ;;  %v976_v35 = vrot.slane %v870_v29, 5  ;;  %v320_v36 = vld [vmem:[%s4632_s17 + $0xc] sm:$0xf] }
  0x19   : > { %v1030_v33 = vsel %vm4634_vm2, %v3846_v20, %v1029_v24  ;;  %v1031_v34 = vrot.slane %v1029_v24, 4  ;;  %v321_v37 = vld [vmem:[%s4632_s17 + $0x10] sm:$0xf]  ;;  %1140 = vrot.lane.b32.xlu1 %v3861_v27, %s4591_s19  ;;  %v3853_v38 = vcombine.low %v967_v22, %v970_v32  ;;  %v322_v41 = vld [vmem:[%s4632_s17 + $0x14] sm:$0x1]  ;;  %v393_v42 = vshrl.u32 %v320_v36, 16 }
  0x1a   : > { %v974_v39 = vsel %vm4634_vm2, %v3838_v30, %v973_v31  ;;  %v975_v40 = vrot.slane %v973_v31, 4  ;;  %v317_v43 = vld [vmem:[%s4632_s17] sm:$0xf]  ;;  %v396_v45 = vshll.u32 %v320_v36, 16  ;;  %v402_v46 = vshll.u32 %v321_v37, 16 }
  0x1b   : > { %v1033_v44 = vsel %vm4634_vm2, %v1031_v34, %v1032_v28  ;;  %v406_v47 = vshrl.u32 %v321_v37, 16  ;;  %v318_v48 = vld [vmem:[%s4632_s17 + $0x4] sm:$0xf]  ;;  %1124 = vrot.lane.b32.xlu0 %v3853_v38, %s4591_s19  ;;  %v395_v51 = vrot.slane %v393_v42, 4  ;;  %v412_v52 = vshll.u32 %v322_v41, 16 }
  0x1c   : > { %v3862_v49 = vcombine.low %v1030_v33, %v1033_v44  ;;  %v977_v50 = vsel %vm4634_vm2, %v975_v40, %v976_v35  ;;  %v319_v53 = vld [vmem:[%s4632_s17 + $0x8] sm:$0x1]  ;;  %v398_v55 = vrot.slane %v396_v45, 5  ;;  %v404_v56 = vrot.slane %v402_v46, 5  ;;  %v344_v58 = vld [vmem:[%s4632_s17 + $0x6c] sm:$0xf] }
  0x1d   : > { %v3854_v54 = vcombine.low %v974_v39, %v977_v50  ;;  %v408_v57 = vrot.slane %v406_v47, 4  ;;  %v414_v59 = vrot.slane %v412_v52, 5  ;;  %v369_v60 = vshrl.u32 %v317_v43, 16  ;;  %v345_v4 = vld [vmem:[%s4632_s17 + $0x70] sm:$0xf] }
  0x1e   : > { %1142 = vrot.lane.b32.xlu1 %v3862_v49, %s4591_s19  ;;  %v372_v61 = vshll.u32 %v317_v43, 16  ;;  %v378_v62 = vshll.u32 %v318_v48, 16  ;;  %v399_v63 = vor.u32 %v398_v55, %v395_v51  ;;  %v382_v2 = vshrl.u32 %v318_v48, 16  ;;  %v346_v9 = vld [vmem:[%s4632_s17 + $0x74] sm:$0x1] }
  0x1f   : > { %v409_v1 = vor.u32 %v408_v57, %v404_v56  ;;  %v388_v3 = vshll.u32 %v319_v53, 16  ;;  %1126 = vrot.lane.b32.xlu0 %v3854_v54, %s4591_s19  ;;  %v371_v6 = vrot.slane %v369_v60, 4  ;;  %v585_v10 = vshrl.u32 %v344_v58, 16  ;;  %v341_v11 = vld [vmem:[%s4632_s17 + $0x60] sm:$0xf] }
  0x20   : > { %v374_v7 = vrot.slane %v372_v61, 5  ;;  %v380_v8 = vrot.slane %v378_v62, 5  ;;  %v400_v12 = vrot.slane %v399_v63, 4  ;;  %v384_v14 = vrot.slane %v382_v2, 4  ;;  %v342_v16 = vld [vmem:[%s4632_s17 + $0x64] sm:$0xf] }
  0x21   : > { %v410_v13 = vrot.slane %v409_v1, 4  ;;  %v390_v15 = vrot.slane %v388_v3, 5  ;;  %v587_v18 = vrot.slane %v585_v10, 4  ;;  %v588_v19 = vshll.u32 %v344_v58, 16  ;;  %v343_v35 = vld [vmem:[%s4632_s17 + $0x68] sm:$0x1] }
  0x22   : > { %v375_v17 = vor.u32 %v374_v7, %v371_v6  ;;  %v594_v20 = vshll.u32 %v345_v4, 16  ;;  %v405_v21 = vsel %vm4684_vm5, %v400_v12, %v404_v56  ;;  %v385_v23 = vor.u32 %v384_v14, %v380_v8  ;;  %v3941_v38 = vld [vmem:[%s4632_s17 + $0x6c] sm:$0xf]  ;;  %v3942_v43 = vld [vmem:[%s4632_s17 + $0x70] sm:$0xf]  ;;  %v4531_v6 = vld [vmem:[%s4632_s17 + $0x78] sm:$0xff]  }
  0x23   : > { %v415_v22 = vsel %vm4684_vm5, %v410_v13, %v414_v59  ;;  %v598_v24 = vshrl.u32 %v345_v4, 16  ;;  %v590_v27 = vrot.slane %v588_v19, 5  ;;  %v604_v31 = vshll.u32 %v346_v9, 16  ;;  %v3943_v54 = vld [vmem:[%s4632_s17 + $0x74] sm:$0x1] }
  0x24   : > { %v3822_v25 = vcombine.low %v405_v21, %v415_v22  ;;  %v376_v26 = vrot.slane %v375_v17, 4  ;;  %v596_v28 = vrot.slane %v594_v20, 5  ;;  %v386_v29 = vrot.slane %v385_v23, 4  ;;  %v3917_v57 = vld [vmem:[%s4632_s17 + $0xc] sm:$0xf] }
  0x25   : > { %v600_v30 = vrot.slane %v598_v24, 4  ;;  %v561_v32 = vshrl.u32 %v341_v11, 16  ;;  %v591_v34 = vor.u32 %v590_v27, %v587_v18  ;;  %v564_v36 = vshll.u32 %v341_v11, 16  ;;  %v3918_v62 = vld [vmem:[%s4632_s17 + $0x10] sm:$0xf] }
  0x26   : > { %802 = vrot.lane.b32.xlu1 %v3822_v25, %s4592_s20  ;;  %v381_v33 = vsel %vm4684_vm5, %v376_v26, %v380_v8  ;;  %v570_v37 = vshll.u32 %v342_v16, 16  ;;  %v391_v39 = vsel %vm4684_vm5, %v386_v29, %v390_v15  ;;  %v606_v41 = vrot.slane %v604_v31, 5  ;;  %v3919_v12 = vld [vmem:[%s4632_s17 + $0x14] sm:$0x1]  ;;  %v3944_v15 = vld [vmem:[%s4632_s17 + $0x78] sm:$0xf] }
  0x27   : > { %v601_v40 = vor.u32 %v600_v30, %v596_v28  ;;  %v563_v42 = vrot.slane %v561_v32, 4  ;;  %v3821_v44 = vcombine.low %v381_v33, %v391_v39  ;;  %v592_v45 = vrot.slane %v591_v34, 4  ;;  %v3945_v27 = vld [vmem:[%s4632_s17 + $0x7c] sm:$0xf]  ;;  %v3946_v33 = vld [vmem:[%s4632_s17 + $0x80] sm:$0x1] }
  0x28   : > { %v566_v46 = vrot.slane %v564_v36, 5  ;;  %v572_v47 = vrot.slane %v570_v37, 5  ;;  %v574_v49 = vshrl.u32 %v342_v16, 16  ;;  %v580_v50 = vshll.u32 %v343_v35, 16  ;;  %v3920_v34 = vld [vmem:[%s4632_s17 + $0x18] sm:$0xf] }
  0x29   : > { %v602_v48 = vrot.slane %v601_v40, 4  ;;  %v1608_v51 = vshrl.u32 %v3941_v38, 16  ;;  %800 = vrot.lane.b32.xlu0 %v3821_v44, %s4592_s20  ;;  %v597_v52 = vsel %vm4684_vm5, %v592_v45, %v596_v28  ;;  %v1611_v55 = vshll.u32 %v3941_v38, 16  ;;  %v3921_v39 = vld [vmem:[%s4632_s17 + $0x1c] sm:$0xf] }
  0x2a   : > { %v567_v53 = vor.u32 %v566_v46, %v563_v42  ;;  %v1617_v56 = vshll.u32 %v3942_v43, 16  ;;  %v576_v59 = vrot.slane %v574_v49, 4  ;;  %v582_v60 = vrot.slane %v580_v50, 5  ;;  %v4532_v40 = vld [vmem:[%s4632_s17 + $0x18] sm:$0xff]   ;;  %v3922_v45 = vld [vmem:[%s4632_s17 + $0x20] sm:$0x1] }
  0x2b   : > { %v607_v58 = vsel %vm4684_vm5, %v602_v48, %v606_v41  ;;  %v1610_v61 = vrot.slane %v1608_v51, 4  ;;  %v1613_v2 = vrot.slane %v1611_v55, 5  ;;  %v1621_v7 = vshrl.u32 %v3942_v43, 16  ;;  %v4005_v50 = vld [vmem:[%s4632_s17 + $0x6c] sm:$0xe] }
  0x2c   : > { %v3830_v63 = vcombine.low %v597_v52, %v607_v58  ;;  %v568_v1 = vrot.slane %v567_v53, 4  ;;  %v1619_v3 = vrot.slane %v1617_v56, 5  ;;  %v577_v4 = vor.u32 %v576_v59, %v572_v47  ;;  %v4006_v55 = vld [vmem:[%s4632_s17 + $0x70] sm:$0xf] }
  0x2d   : > { %v1627_v8 = vshll.u32 %v3943_v54, 16  ;;  %v1416_v9 = vshrl.u32 %v3917_v57, 16  ;;  %v1614_v11 = vor.u32 %v1613_v2, %v1610_v61  ;;  %v1419_v13 = vshll.u32 %v3917_v57, 16  ;;  %v3981_v61 = vld [vmem:[%s4632_s17 + $0xc] sm:$0xe] }
  0x2e   : > { %818 = vrot.lane.b32.xlu1 %v3830_v63, %s4592_s20  ;;  %v573_v10 = vsel %vm4684_vm5, %v568_v1, %v572_v47  ;;  %v1425_v14 = vshll.u32 %v3918_v62, 16  ;;  %v578_v16 = vrot.slane %v577_v4, 4  ;;  %v1623_v17 = vrot.slane %v1621_v7, 4 }
  0x2f   : > { %v1629_v18 = vrot.slane %v1627_v8, 5  ;;  %v1418_v19 = vrot.slane %v1416_v9, 4  ;;  %v1615_v20 = vrot.slane %v1614_v11, 4  ;;  %v1421_v21 = vrot.slane %v1419_v13, 5  ;;  %v3983_v9 = vld [vmem:[%s4632_s17 + $0x14] sm:$0x1] }
  0x30   : > { %v1427_v22 = vrot.slane %v1425_v14, 5  ;;  %v1429_v23 = vshrl.u32 %v3918_v62, 16  ;;  %v583_v24 = vsel %vm4684_vm5, %v578_v16, %v582_v60  ;;  %v1624_v25 = vor.u32 %v1623_v17, %v1619_v3  ;;  %v4007_v60 = vld [vmem:[%s4632_s17 + $0x74] sm:$0x1] }
  0x31   : > { %v1435_v26 = vshll.u32 %v3919_v12, 16  ;;  %v1632_v28 = vshrl.u32 %v3944_v15, 16  ;;  %v3829_v29 = vcombine.low %v573_v10, %v583_v24  ;;  %v1620_v30 = vsel %vm4684_vm5, %v1615_v20, %v1619_v3  ;;  %v3982_v3 = vld [vmem:[%s4632_s17 + $0x10] sm:$0xf] }
  0x32   : > { %1320 = vrot.lane.b32.xlu1 %v4531_v6, %s4590_s18  ;;  %v1422_v31 = vor.u32 %v1421_v21, %v1418_v19  ;;  %v1431_v32 = vrot.slane %v1429_v23, 4  ;;  %v1625_v35 = vrot.slane %v1624_v25, 4  ;;  %v1635_v38 = vshll.u32 %v3944_v15, 16 }
  0x33   : > { %v1437_v36 = vrot.slane %v1435_v26, 5  ;;  %v1634_v37 = vrot.slane %v1632_v28, 4  ;;  %816 = vrot.lane.b32.xlu0 %v3829_v29, %s4592_s20  ;;  %v1641_v43 = vshll.u32 %v3945_v27, 16  ;;  %v1645_v44 = vshrl.u32 %v3945_v27, 16  ;;  %v4009_v27 = vld [vmem:[%s4632_s17 + $0x7c] sm:$0xf] }
  0x34   : > { %v1423_v41 = vrot.slane %v1422_v31, 4  ;;  %v1432_v42 = vor.u32 %v1431_v32, %v1427_v22  ;;  %v1630_v46 = vsel %vm4684_vm5, %v1625_v35, %v1629_v18  ;;  %v1637_v47 = vrot.slane %v1635_v38, 5  ;;  %v4010_v28 = vld [vmem:[%s4632_s17 + $0x80] sm:$0x1]  ;;  %v3985_v38 = vld [vmem:[%s4632_s17 + $0x1c] sm:$0xf] }
  0x35   : > { %v1651_v48 = vshll.u32 %v3946_v33, 16  ;;  %v1440_v49 = vshrl.u32 %v3920_v34, 16  ;;  %v3973_v51 = vcombine.low %v1620_v30, %v1630_v46  ;;  %v1643_v54 = vrot.slane %v1641_v43, 5  ;;  %v3984_v33 = vld [vmem:[%s4632_s17 + $0x18] sm:$0xe] }
  0x36   : > { %v1428_v52 = vsel %vm4684_vm5, %v1423_v41, %v1427_v22  ;;  %v1433_v53 = vrot.slane %v1432_v42, 4  ;;  %v1638_v56 = vor.u32 %v1637_v47, %v1634_v37  ;;  %v1647_v57 = vrot.slane %v1645_v44, 4  ;;  %v4008_v22 = vld [vmem:[%s4632_s17 + $0x78] sm:$0xe] }
  0x37   : > { %v1653_v58 = vrot.slane %v1651_v48, 5  ;;  %v1442_v59 = vrot.slane %v1440_v49, 4  ;;  %1304 = vrot.lane.b32.xlu0 %v4532_v40, %s4590_s18  ;;  %1863 = vrot.lane.b32.xlu1 %v3973_v51, %s4593_s21  ;;  %v1443_v63 = vshll.u32 %v3920_v34, 16  ;;  %v1449_v1 = vshll.u32 %v3921_v39, 16  ;;  %v4133_v44 = vld [vmem:[%s4632_s17 + $0x78] sm:$0xf] }
  0x38   : > { %v1438_v62 = vsel %vm4684_vm5, %v1433_v53, %v1437_v36  ;;  %v1453_v2 = vshrl.u32 %v3921_v39, 16  ;;  %v1639_v6 = vrot.slane %v1638_v56, 4  ;;  %v1648_v7 = vor.u32 %v1647_v57, %v1643_v54  ;;  %v3986_v39 = vld [vmem:[%s4632_s17 + $0x20] sm:$0x1] }
  0x39   : > { %v3965_v4 = vcombine.low %v1428_v52, %v1438_v62  ;;  %v1459_v8 = vshll.u32 %v3922_v45, 16  ;;  %v1445_v10 = vrot.slane %v1443_v63, 5  ;;  %v1451_v11 = vrot.slane %v1449_v1, 5  ;;  %v4134_v45 = vld [vmem:[%s4632_s17 + $0x7c] sm:$0xf] }
  0x3a   : > { %v1455_v12 = vrot.slane %v1453_v2, 4  ;;  %v4037_v13 = vrot.slane %v4005_v50, 9  ;;  %v1644_v14 = vsel %vm4684_vm5, %v1639_v6, %v1643_v54  ;;  %v1649_v15 = vrot.slane %v1648_v7, 4  ;;  %v4135_v54 = vld [vmem:[%s4632_s17 + $0x80] sm:$0x1] }
  0x3b   : > { %v1461_v16 = vrot.slane %v1459_v8, 5  ;;  %v2066_v17 = vrot.slane %v4006_v55, 5  ;;  %1847 = vrot.lane.b32.xlu0 %v3965_v4, %s4593_s21  ;;  %v1446_v18 = vor.u32 %v1445_v10, %v1442_v59  ;;  %v2069_v20 = vrot.slane %v4007_v60, 5  ;;  %v4109_v59 = vld [vmem:[%s4632_s17 + $0x18] sm:$0xf] }
  0x3c   : > { %v1456_v19 = vor.u32 %v1455_v12, %v1451_v11  ;;  %v4029_v21 = vrot.slane %v3981_v61, 9  ;;  %v1654_v23 = vsel %vm4684_vm5, %v1649_v15, %v1653_v58  ;;  %v2010_v26 = vrot.slane %v3982_v3, 5  ;;  %v4110_v1 = vld [vmem:[%s4632_s17 + $0x1c] sm:$0xf]  ;;  %v4111_v10 = vld [vmem:[%s4632_s17 + $0x20] sm:$0x1] }
  0x3d   : > { %v2067_v24 = vsel %vm4634_vm2, %v4037_v13, %v2066_v17  ;;  %v2068_v25 = vrot.slane %v2066_v17, 4  ;;  %v3974_v29 = vcombine.low %v1644_v14, %v1654_v23  ;;  %v1447_v30 = vrot.slane %v1446_v18, 4  ;;  %v4533_v17 = vld [vmem:[%s4632_s17 + $0x78] sm:$0xff]  }
  0x3e   : > { %v1457_v31 = vrot.slane %v1456_v19, 4  ;;  %v2013_v32 = vrot.slane %v3983_v9, 5  ;;  %v2011_v35 = vsel %vm4634_vm2, %v4029_v21, %v2010_v26  ;;  %v2012_v36 = vrot.slane %v2010_v26, 4 }
  0x3f   : > { %v2070_v34 = vsel %vm4634_vm2, %v2068_v25, %v2069_v20  ;;  %v4038_v37 = vrot.slane %v4008_v22, 9  ;;  %1865 = vrot.lane.b32.xlu1 %v3974_v29, %s4593_s21  ;;  %v1452_v40 = vsel %vm4684_vm5, %v1447_v30, %v1451_v11  ;;  %v2073_v43 = vrot.slane %v4009_v27, 5  ;;  %v4137_v22 = vld [vmem:[%s4632_s17 + $0x88] sm:$0xf]  ;;  %v4534_v27 = vld [vmem:[%s4632_s17 + $0x18] sm:$0xff]  }
  0x40   : > { %v1462_v41 = vsel %vm4684_vm5, %v1457_v31, %v1461_v16  ;;  %v4053_v42 = vcombine.low %v2067_v24, %v2070_v34  ;;  %v2014_v47 = vsel %vm4634_vm2, %v2012_v36, %v2013_v32  ;;  %v2076_v48 = vrot.slane %v4010_v28, 5  ;;  %v4136_v16 = vld [vmem:[%s4632_s17 + $0x84] sm:$0xf] }
  0x41   : > { %v3966_v46 = vcombine.low %v1452_v40, %v1462_v41  ;;  %v4030_v49 = vrot.slane %v3984_v33, 9  ;;  %v4045_v50 = vcombine.low %v2011_v35, %v2014_v47  ;;  %v2074_v51 = vsel %vm4634_vm2, %v4038_v37, %v2073_v43  ;;  %v4138_v35 = vld [vmem:[%s4632_s17 + $0x8c] sm:$0x1]  ;;  %v4112_v37 = vld [vmem:[%s4632_s17 + $0x24] sm:$0xf] }
  0x42   : > { %v2075_v52 = vrot.slane %v2073_v43, 4  ;;  %v2017_v53 = vrot.slane %v3985_v38, 5  ;;  %v2020_v55 = vrot.slane %v3986_v39, 5  ;;  %v2652_v56 = vshrl.u32 %v4133_v44, 16  ;;  %v4535_v38 = vld [vmem:[%s4632_s17 + $0x84] sm:$0xff]  }
  0x43   : > { %1849 = vrot.lane.b32.xlu0 %v3966_v46, %s4593_s21  ;;  %v2655_v57 = vshll.u32 %v4133_v44, 16  ;;  %v2661_v58 = vshll.u32 %v4134_v45, 16  ;;  %2184 = vrot.lane.b32.xlu1 %v4053_v42, %s4594_s22  ;;  %v2665_v63 = vshrl.u32 %v4134_v45, 16  ;;  %v2671_v9 = vshll.u32 %v4135_v54, 16  ;;  %v4113_v43 = vld [vmem:[%s4632_s17 + $0x28] sm:$0xf] }
  0x44   : > { %v2077_v60 = vsel %vm4634_vm2, %v2075_v52, %v2076_v48  ;;  %v2018_v61 = vsel %vm4634_vm2, %v4030_v49, %v2017_v53  ;;  %v2019_v62 = vrot.slane %v2017_v53, 4  ;;  %v2654_v3 = vrot.slane %v2652_v56, 4  ;;  %v4114_v48 = vld [vmem:[%s4632_s17 + $0x2c] sm:$0x1]  ;;  %v4197_v53 = vld [vmem:[%s4632_s17 + $0x78] sm:$0xe] }
  0x45   : > { %v4054_v2 = vcombine.low %v2074_v51, %v2077_v60  ;;  %v2657_v4 = vrot.slane %v2655_v57, 5  ;;  %v2663_v6 = vrot.slane %v2661_v58, 5  ;;  %v2667_v8 = vrot.slane %v2665_v63, 4  ;;  %v4536_v54 = vld [vmem:[%s4632_s17 + $0x24] sm:$0xff]  }
  0x46   : > { %v2021_v7 = vsel %vm4634_vm2, %v2019_v62, %v2020_v55  ;;  %v2460_v11 = vshrl.u32 %v4109_v59, 16  ;;  %v2463_v14 = vshll.u32 %v4109_v59, 16  ;;  %v2469_v15 = vshll.u32 %v4110_v1, 16  ;;  %v4198_v59 = vld [vmem:[%s4632_s17 + $0x7c] sm:$0xf] }
  0x47   : > { %2168 = vrot.lane.b32.xlu0 %v4045_v50, %s4594_s22  ;;  %v4046_v12 = vcombine.low %v2018_v61, %v2021_v7  ;;  %v2658_v13 = vor.u32 %v2657_v4, %v2654_v3  ;;  %2186 = vrot.lane.b32.xlu1 %v4054_v2, %s4594_s22  ;;  %v2668_v18 = vor.u32 %v2667_v8, %v2663_v6  ;;  %v2673_v19 = vrot.slane %v2671_v9, 5  ;;  %v4173_v7 = vld [vmem:[%s4632_s17 + $0x18] sm:$0xe]  ;;  %v4174_v8 = vld [vmem:[%s4632_s17 + $0x1c] sm:$0xf] }
  0x48   : > { %v2462_v20 = vrot.slane %v2460_v11, 4  ;;  %v2473_v21 = vshrl.u32 %v4110_v1, 16  ;;  %v2465_v24 = vrot.slane %v2463_v14, 5  ;;  %v2471_v25 = vrot.slane %v2469_v15, 5  ;;  %v4199_v1 = vld [vmem:[%s4632_s17 + $0x80] sm:$0x1] }
  0x49   : > { %v2659_v23 = vrot.slane %v2658_v13, 4  ;;  %v2479_v26 = vshll.u32 %v4111_v10, 16  ;;  %v2669_v28 = vrot.slane %v2668_v18, 4  ;;  %v2676_v30 = vshrl.u32 %v4136_v16, 16 }
  0x4a   : > { %v2475_v29 = vrot.slane %v2473_v21, 4  ;;  %v2679_v31 = vshll.u32 %v4136_v16, 16  ;;  %v2466_v33 = vor.u32 %v2465_v24, %v2462_v20  ;;  %v2685_v36 = vshll.u32 %v4137_v22, 16 }
  0x4b   : > { %2170 = vrot.lane.b32.xlu0 %v4046_v12, %s4594_s22  ;;  %v2664_v32 = vsel %vm4684_vm5, %v2659_v23, %v2663_v6  ;;  %v2481_v34 = vrot.slane %v2479_v26, 5  ;;  %2362 = vrot.lane.b32.xlu1 %v4533_v17, %s4595_s23  ;;  %v2674_v39 = vsel %vm4684_vm5, %v2669_v28, %v2673_v19  ;;  %v2678_v41 = vrot.slane %v2676_v30, 4  ;;  %v4175_v17 = vld [vmem:[%s4632_s17 + $0x20] sm:$0x1] }
  0x4c   : > { %v2476_v40 = vor.u32 %v2475_v29, %v2471_v25  ;;  %v2681_v42 = vrot.slane %v2679_v31, 5  ;;  %v4165_v44 = vcombine.low %v2664_v32, %v2674_v39  ;;  %v2467_v45 = vrot.slane %v2466_v33, 4  ;;  %v349_v32 = vld [vmem:[%s4632_s17 + $0x80] sm:$0x1] }
  0x4d   : > { %v2687_v46 = vrot.slane %v2685_v36, 5  ;;  %v2689_v47 = vshrl.u32 %v4137_v22, 16  ;;  %v2695_v51 = vshll.u32 %v4138_v35, 16  ;;  %v2484_v52 = vshrl.u32 %v4112_v37, 16  ;;  %v347_v22 = vld [vmem:[%s4632_s17 + $0x78] sm:$0xf] }
  0x4e   : > { %v2477_v49 = vrot.slane %v2476_v40, 4  ;;  %v2682_v50 = vor.u32 %v2681_v42, %v2678_v41  ;;  %v2472_v55 = vsel %vm4684_vm5, %v2467_v45, %v2471_v25  ;;  %v2487_v57 = vshll.u32 %v4112_v37, 16  ;;  %v323_v37 = vld [vmem:[%s4632_s17 + $0x18] sm:$0xf] }
  0x4f   : > { %2346 = vrot.lane.b32.xlu0 %v4534_v27, %s4595_s23  ;;  %v2691_v56 = vrot.slane %v2689_v47, 4  ;;  %v2493_v58 = vshll.u32 %v4113_v43, 16  ;;  %2364 = vrot.lane.b32.xlu1 %v4535_v38, %s4595_s23  ;;  %v2697_v62 = vrot.slane %v2695_v51, 5  ;;  %v2486_v63 = vrot.slane %v2484_v52, 4  ;;  %v348_v27 = vld [vmem:[%s4632_s17 + $0x7c] sm:$0xf] }
  0x50   : > { %v2482_v60 = vsel %vm4684_vm5, %v2477_v49, %v2481_v34  ;;  %v2683_v61 = vrot.slane %v2682_v50, 4  ;;  %v2489_v4 = vrot.slane %v2487_v57, 5  ;;  %v2497_v10 = vshrl.u32 %v4113_v43, 16  ;;  %v324_v38 = vld [vmem:[%s4632_s17 + $0x1c] sm:$0xf] }
  0x51   : > { %v4157_v2 = vcombine.low %v2472_v55, %v2482_v60  ;;  %v2692_v3 = vor.u32 %v2691_v56, %v2687_v46  ;;  %v2495_v6 = vrot.slane %v2493_v58, 5  ;;  %v2503_v11 = vshll.u32 %v4114_v48, 16  ;;  %v325_v43 = vld [vmem:[%s4632_s17 + $0x20] sm:$0x1]  ;;  %v4200_v48 = vld [vmem:[%s4632_s17 + $0x84] sm:$0xe] }
  0x52   : > { %v2688_v9 = vsel %vm4684_vm5, %v2683_v61, %v2687_v46  ;;  %v4229_v12 = vrot.slane %v4197_v53, 9  ;;  %v2490_v14 = vor.u32 %v2489_v4, %v2486_v63  ;;  %v3110_v15 = vrot.slane %v4198_v59, 5  ;;  %v4201_v53 = vld [vmem:[%s4632_s17 + $0x88] sm:$0xf]  ;;  %v4176_v59 = vld [vmem:[%s4632_s17 + $0x24] sm:$0xe] }
  0x53   : > { %2348 = vrot.lane.b32.xlu0 %v4536_v54, %s4595_s23  ;;  %v2693_v13 = vrot.slane %v2692_v3, 4  ;;  %v3113_v16 = vrot.slane %v4199_v1, 5  ;;  %2907 = vrot.lane.b32.xlu1 %v4165_v44, %s4596_s24  ;;  %v2499_v18 = vrot.slane %v2497_v10, 4  ;;  %v2505_v19 = vrot.slane %v2503_v11, 5  ;;  %v4202_v54 = vld [vmem:[%s4632_s17 + $0x8c] sm:$0x1] }
  0x54   : > { %v4221_v20 = vrot.slane %v4173_v7, 9  ;;  %v3054_v21 = vrot.slane %v4174_v8, 5  ;;  %v2491_v24 = vrot.slane %v2490_v14, 4  ;;  %v3111_v25 = vsel %vm4634_vm2, %v4229_v12, %v3110_v15  ;;  %v4177_v1 = vld [vmem:[%s4632_s17 + $0x28] sm:$0xf] }
  0x55   : > { %v2698_v23 = vsel %vm4684_vm5, %v2693_v13, %v2697_v62  ;;  %v3112_v26 = vrot.slane %v3110_v15, 4  ;;  %v2500_v29 = vor.u32 %v2499_v18, %v2495_v6  ;;  %v3057_v35 = vrot.slane %v4175_v17, 5  ;;  %v4178_v7 = vld [vmem:[%s4632_s17 + $0x2c] sm:$0x1]  ;;  %v350_v12 = vld [vmem:[%s4632_s17 + $0x84] sm:$0xf] }
  0x56   : > { %v4166_v28 = vcombine.low %v2688_v9, %v2698_v23  ;;  %v3055_v30 = vsel %vm4634_vm2, %v4221_v20, %v3054_v21  ;;  %v3056_v31 = vrot.slane %v3054_v21, 4  ;;  %v2496_v33 = vsel %vm4684_vm5, %v2491_v24, %v2495_v6  ;;  %v351_v21 = vld [vmem:[%s4632_s17 + $0x88] sm:$0xf] }
  0x57   : > { %2891 = vrot.lane.b32.xlu0 %v4157_v2, %s4596_s24  ;;  %v3114_v34 = vsel %vm4634_vm2, %v3112_v26, %v3113_v16  ;;  %v609_v36 = vshrl.u32 %v347_v22, 16  ;;  %v2501_v39 = vrot.slane %v2500_v29, 4  ;;  %v612_v41 = vshll.u32 %v347_v22, 16  ;;  %v4553_v22 = vld [vmem:[%s5800_s1] sm:$0xff]  }
  0x58   : > { %2909 = vrot.lane.b32.xlu1 %v4166_v28, %s4596_s24  ;;  %v4245_v40 = vcombine.low %v3111_v25, %v3114_v34  ;;  %v618_v42 = vshll.u32 %v348_v27, 16  ;;  %v3058_v44 = vsel %vm4634_vm2, %v3056_v31, %v3057_v35  ;;  %v622_v46 = vshrl.u32 %v348_v27, 16  ;;  %4458 = vmatprep.subr.bf16.mxu0 %v4553_v22  ;;  %v352_v34 = vld [vmem:[%s4632_s17 + $0x8c] sm:$0x1] }
  0x59   : > { %v611_v45 = vrot.slane %v609_v36, 4  ;;  %v628_v47 = vshll.u32 %v349_v32, 16  ;;  %v2506_v49 = vsel %vm4684_vm5, %v2501_v39, %v2505_v19  ;;  %v4237_v50 = vcombine.low %v3055_v30, %v3058_v44  ;;  %4500 = vmatprep.subr.bf16.mxu1 %v4553_v22  ;;  %4459 = vmatpush3.bf16.msra.mxu0 %v4553_v22 }
  0x5a   : > { %v614_v51 = vrot.slane %v612_v41, 5  ;;  %v620_v52 = vrot.slane %v618_v42, 5  ;;  %v4158_v55 = vcombine.low %v2496_v33, %v2506_v49  ;;  %v624_v56 = vrot.slane %v622_v46, 4  ;;  %4505 = vmatpush3.bf16.msra.mxu1 %v4553_v22  ;;  %v327_v41 = vld [vmem:[%s4632_s17 + $0x28] sm:$0xf] }
  0x5b   : > { %v630_v57 = vrot.slane %v628_v47, 5  ;;  %v417_v58 = vshrl.u32 %v323_v37, 16  ;;  %v420_v61 = vshll.u32 %v323_v37, 16  ;;  %v426_v62 = vshll.u32 %v324_v38, 16  ;;  %v328_v46 = vld [vmem:[%s4632_s17 + $0x2c] sm:$0x1] }
  0x5c   : > { %3228 = vrot.lane.b32.xlu1 %v4245_v40, %s4597_s25  ;;  %v615_v60 = vor.u32 %v614_v51, %v611_v45  ;;  %v430_v63 = vshrl.u32 %v324_v38, 16  ;;  %2893 = vrot.lane.b32.xlu0 %v4158_v55, %s4596_s24  ;;  %v625_v2 = vor.u32 %v624_v56, %v620_v52  ;;  %v436_v4 = vshll.u32 %v325_v43, 16  ;;  %v326_v40 = vld [vmem:[%s4632_s17 + $0x24] sm:$0xf]  ;;  %v895_v47 = vld [vmem:[%s4632_s17 + $0x78] sm:$0xe] }
  0x5d   : > { %v419_v3 = vrot.slane %v417_v58, 4  ;;  %v4230_v6 = vrot.slane %v4200_v48, 9  ;;  %v422_v9 = vrot.slane %v420_v61, 5  ;;  %v428_v10 = vrot.slane %v426_v62, 5  ;;  %v897_v58 = vld [vmem:[%s4632_s17 + $0x80] sm:$0x1] }
  0x5e   : > { %v616_v8 = vrot.slane %v615_v60, 4  ;;  %v432_v11 = vrot.slane %v430_v63, 4  ;;  %v626_v13 = vrot.slane %v625_v2, 4  ;;  %v438_v14 = vrot.slane %v436_v4, 5  ;;  %v871_v63 = vld [vmem:[%s4632_s17 + $0x18] sm:$0xe] }
  0x5f   : > { %v3117_v15 = vrot.slane %v4201_v53, 5  ;;  %v3120_v16 = vrot.slane %v4202_v54, 5  ;;  %v423_v18 = vor.u32 %v422_v9, %v419_v3  ;;  %v4222_v20 = vrot.slane %v4176_v59, 9  ;;  %v4556_v53 = vld [vmem:[%s5800_s1 + $0x8] sm:$0xff]  }
  0x60   : > { %v621_v17 = vsel %vm4684_vm5, %v616_v8, %v620_v52  ;;  %v433_v19 = vor.u32 %v432_v11, %v428_v10  ;;  %3212 = vrot.lane.b32.xlu0 %v4237_v50, %s4597_s25  ;;  %v631_v23 = vsel %vm4684_vm5, %v626_v13, %v630_v57  ;;  %v3061_v26 = vrot.slane %v4177_v1, 5  ;;  %v896_v52 = vld [vmem:[%s4632_s17 + $0x7c] sm:$0xf]  ;;  %4460 = vmatprep.subr.bf16.mxu0 %v4556_v53  ;;  %v873_v11 = vld [vmem:[%s4632_s17 + $0x20] sm:$0x1] }
  0x61   : > { %v3118_v24 = vsel %vm4634_vm2, %v4230_v6, %v3117_v15  ;;  %v3119_v25 = vrot.slane %v3117_v15, 4  ;;  %v3831_v27 = vcombine.low %v621_v17, %v631_v23  ;;  %v424_v28 = vrot.slane %v423_v18, 4  ;;  %v872_v6 = vld [vmem:[%s4632_s17 + $0x1c] sm:$0xf]  ;;  %4501 = vmatprep.subr.bf16.mxu1 %v4556_v53  ;;  %4461 = vmatpush3.bf16.msra.mxu0 %v4556_v53  ;;  %v900_v22 = vld [vmem:[%s4632_s17 + $0x8c] sm:$0x1] }
  0x62   : > { %v434_v29 = vrot.slane %v433_v19, 4  ;;  %v3064_v30 = vrot.slane %v4178_v7, 5  ;;  %v3062_v32 = vsel %vm4634_vm2, %v4222_v20, %v3061_v26  ;;  %v3063_v33 = vrot.slane %v3061_v26, 4  ;;  %4506 = vmatpush3.bf16.msra.mxu1 %v4556_v53 }
  0x63   : > { %v3121_v31 = vsel %vm4634_vm2, %v3119_v25, %v3120_v16  ;;  %v633_v35 = vshrl.u32 %v350_v12, 16  ;;  %820 = vrot.lane.b32.xlu1 %v3831_v27, %s4592_s20  ;;  %v429_v36 = vsel %vm4684_vm5, %v424_v28, %v428_v10  ;;  %v636_v39 = vshll.u32 %v350_v12, 16  ;;  %v898_v16 = vld [vmem:[%s4632_s17 + $0x84] sm:$0xe] }
  0x64   : > { %v439_v37 = vsel %vm4684_vm5, %v434_v29, %v438_v14  ;;  %v4246_v38 = vcombine.low %v3118_v24, %v3121_v31  ;;  %v3065_v43 = vsel %vm4634_vm2, %v3063_v33, %v3064_v30  ;;  %v642_v45 = vshll.u32 %v351_v21, 16  ;;  %v874_v27 = vld [vmem:[%s4632_s17 + $0x24] sm:$0xe]  ;;  %v4561_v33 = vld [vmem:[%s5800_s1 + $0x10] sm:$0xff]  }
  0x65   : > { %v3823_v42 = vcombine.low %v429_v36, %v439_v37  ;;  %v635_v44 = vrot.slane %v633_v35, 4  ;;  %v4238_v48 = vcombine.low %v3062_v32, %v3065_v43  ;;  %v638_v49 = vrot.slane %v636_v39, 5  ;;  %v875_v32 = vld [vmem:[%s4632_s17 + $0x28] sm:$0xf]  ;;  %v3947_v43 = vld [vmem:[%s4632_s17 + $0x84] sm:$0xf]  ;;  %4462 = vmatprep.subr.bf16.mxu0 %v4561_v33  ;;  %4502 = vmatprep.subr.bf16.mxu1 %v4561_v33 }
  0x66   : > { %v646_v50 = vshrl.u32 %v351_v21, 16  ;;  %v652_v51 = vshll.u32 %v352_v34, 16  ;;  %v644_v54 = vrot.slane %v642_v45, 5  ;;  %v441_v55 = vshrl.u32 %v326_v40, 16  ;;  %v899_v21 = vld [vmem:[%s4632_s17 + $0x88] sm:$0xf]  ;;  %4463 = vmatpush3.bf16.msra.mxu0 %v4561_v33  ;;  %4507 = vmatpush3.bf16.msra.mxu1 %v4561_v33 }
  0x67   : > { %804 = vrot.lane.b32.xlu0 %v3823_v42, %s4592_s20  ;;  %v444_v56 = vshll.u32 %v326_v40, 16  ;;  %v450_v57 = vshll.u32 %v327_v41, 16  ;;  %3230 = vrot.lane.b32.xlu1 %v4246_v38, %s4597_s25  ;;  %v639_v59 = vor.u32 %v638_v49, %v635_v44  ;;  %v454_v62 = vshrl.u32 %v327_v41, 16  ;;  %v876_v38 = vld [vmem:[%s4632_s17 + $0x2c] sm:$0x1] }
  0x68   : > { %v648_v60 = vrot.slane %v646_v50, 4  ;;  %v654_v61 = vrot.slane %v652_v51, 5  ;;  %v443_v1 = vrot.slane %v441_v55, 4  ;;  %v460_v4 = vshll.u32 %v328_v46, 16  ;;  %v3948_v44 = vld [vmem:[%s4632_s17 + $0x88] sm:$0xf] }
  0x69   : > { %v446_v2 = vrot.slane %v444_v56, 5  ;;  %v452_v3 = vrot.slane %v450_v57, 5  ;;  %v640_v7 = vrot.slane %v639_v59, 4  ;;  %v456_v9 = vrot.slane %v454_v62, 4  ;;  %v3949_v49 = vld [vmem:[%s4632_s17 + $0x8c] sm:$0x1] }
  0x6a   : > { %v649_v8 = vor.u32 %v648_v60, %v644_v54  ;;  %v3847_v10 = vrot.slane %v895_v47, 9  ;;  %v462_v13 = vrot.slane %v460_v4, 5  ;;  %v1036_v14 = vrot.slane %v896_v52, 5  ;;  %v4562_v50 = vld [vmem:[%s5800_s1 + $0x18] sm:$0xff]   ;;  %v3923_v55 = vld [vmem:[%s4632_s17 + $0x24] sm:$0xf] }
  0x6b   : > { %3214 = vrot.lane.b32.xlu0 %v4238_v48, %s4597_s25  ;;  %v447_v12 = vor.u32 %v446_v2, %v443_v1  ;;  %v1039_v15 = vrot.slane %v897_v58, 5  ;;  %v645_v17 = vsel %vm4684_vm5, %v640_v7, %v644_v54  ;;  %v457_v19 = vor.u32 %v456_v9, %v452_v3  ;;  %v3924_v56 = vld [vmem:[%s4632_s17 + $0x28] sm:$0xf]  ;;  %4464 = vmatprep.subr.bf16.mxu0 %v4562_v50 }
  0x6c   : > { %v650_v18 = vrot.slane %v649_v8, 4  ;;  %v3839_v20 = vrot.slane %v871_v63, 9  ;;  %v1037_v24 = vsel %vm4634_vm2, %v3847_v10, %v1036_v14  ;;  %v1038_v25 = vrot.slane %v1036_v14, 4  ;;  %4503 = vmatprep.subr.bf16.mxu1 %v4562_v50  ;;  %4465 = vmatpush3.bf16.msra.mxu0 %v4562_v50 }
  0x6d   : > { %v448_v23 = vrot.slane %v447_v12, 4  ;;  %v980_v26 = vrot.slane %v872_v6, 5  ;;  %v458_v29 = vrot.slane %v457_v19, 4  ;;  %v983_v30 = vrot.slane %v873_v11, 5  ;;  %4508 = vmatpush3.bf16.msra.mxu1 %v4562_v50 }
  0x6e   : > { %v655_v28 = vsel %vm4684_vm5, %v650_v18, %v654_v61  ;;  %v3848_v31 = vrot.slane %v898_v16, 9  ;;  %v1040_v36 = vsel %vm4634_vm2, %v1038_v25, %v1039_v15  ;;  %v1043_v42 = vrot.slane %v899_v21, 5  ;;  %v3925_v61 = vld [vmem:[%s4632_s17 + $0x2c] sm:$0x1]  ;;  %v3951_v21 = vld [vmem:[%s4632_s17 + $0x94] sm:$0xf] }
  0x6f   : > { %v3832_v34 = vcombine.low %v645_v17, %v655_v28  ;;  %v453_v35 = vsel %vm4684_vm5, %v448_v23, %v452_v3  ;;  %v981_v37 = vsel %vm4634_vm2, %v3839_v20, %v980_v26  ;;  %v463_v39 = vsel %vm4684_vm5, %v458_v29, %v462_v13  ;;  %v3950_v3 = vld [vmem:[%s4632_s17 + $0x90] sm:$0xf] }
  0x70   : > { %v3863_v40 = vcombine.low %v1037_v24, %v1040_v36  ;;  %v982_v41 = vrot.slane %v980_v26, 4  ;;  %v3824_v45 = vcombine.low %v453_v35, %v463_v39  ;;  %v1046_v46 = vrot.slane %v900_v22, 5  ;;  %v4537_v22 = vld [vmem:[%s4632_s17 + $0x84] sm:$0xff]  }
  0x71   : > { %822 = vrot.lane.b32.xlu1 %v3832_v34, %s4592_s20  ;;  %v3840_v47 = vrot.slane %v874_v27, 9  ;;  %v987_v48 = vrot.slane %v875_v32, 5  ;;  %v1044_v52 = vsel %vm4634_vm2, %v3848_v31, %v1043_v42  ;;  %v1045_v53 = vrot.slane %v1043_v42, 4  ;;  %v3952_v31 = vld [vmem:[%s4632_s17 + $0x98] sm:$0x1]  ;;  %v4538_v32 = vld [vmem:[%s4632_s17 + $0x24] sm:$0xff]  }
  0x72   : > { %v984_v51 = vsel %vm4634_vm2, %v982_v41, %v983_v30  ;;  %v990_v54 = vrot.slane %v876_v38, 5  ;;  %806 = vrot.lane.b32.xlu0 %v3824_v45, %s4592_s20  ;;  %v1656_v60 = vshrl.u32 %v3947_v43, 16  ;;  %v1659_v63 = vshll.u32 %v3947_v43, 16  ;;  %v3927_v42 = vld [vmem:[%s4632_s17 + $0x34] sm:$0xf] }
  0x73   : > { %v3855_v57 = vcombine.low %v981_v37, %v984_v51  ;;  %v988_v58 = vsel %vm4634_vm2, %v3840_v47, %v987_v48  ;;  %v989_v59 = vrot.slane %v987_v48, 4  ;;  %v1047_v62 = vsel %vm4634_vm2, %v1045_v53, %v1046_v46  ;;  %v3926_v37 = vld [vmem:[%s4632_s17 + $0x30] sm:$0xf] }
  0x74   : > { %v1665_v1 = vshll.u32 %v3948_v44, 16  ;;  %v1669_v2 = vshrl.u32 %v3948_v44, 16  ;;  %v3864_v4 = vcombine.low %v1044_v52, %v1047_v62  ;;  %v1658_v7 = vrot.slane %v1656_v60, 4  ;;  %v4539_v43 = vld [vmem:[%s4632_s17 + $0x90] sm:$0xff]   ;;  %v3928_v52 = vld [vmem:[%s4632_s17 + $0x38] sm:$0x1] }
  0x75   : > { %1144 = vrot.lane.b32.xlu1 %v3863_v40, %s4591_s19  ;;  %v991_v6 = vsel %vm4634_vm2, %v989_v59, %v990_v54  ;;  %v1675_v8 = vshll.u32 %v3949_v49, 16  ;;  %v1661_v10 = vrot.slane %v1659_v63, 5  ;;  %v1464_v14 = vshrl.u32 %v3923_v55, 16  ;;  %v4540_v44 = vld [vmem:[%s4632_s17 + $0x30] sm:$0xff]   ;;  %v4012_v59 = vld [vmem:[%s4632_s17 + $0x88] sm:$0xf] }
  0x76   : > { %v3856_v9 = vcombine.low %v988_v58, %v991_v6  ;;  %v1667_v11 = vrot.slane %v1665_v1, 5  ;;  %v1671_v12 = vrot.slane %v1669_v2, 4  ;;  %1128 = vrot.lane.b32.xlu0 %v3855_v57, %s4591_s19  ;;  %v1467_v15 = vshll.u32 %v3923_v55, 16  ;;  %v4011_v58 = vld [vmem:[%s4632_s17 + $0x84] sm:$0xe] }
  0x77   : > { %v1677_v13 = vrot.slane %v1675_v8, 5  ;;  %v1473_v16 = vshll.u32 %v3924_v56, 16  ;;  %v1662_v17 = vor.u32 %v1661_v10, %v1658_v7  ;;  %v1477_v19 = vshrl.u32 %v3924_v56, 16  ;;  %v4013_v1 = vld [vmem:[%s4632_s17 + $0x8c] sm:$0x1] }
  0x78   : > { %v1672_v18 = vor.u32 %v1671_v12, %v1667_v11  ;;  %v1483_v20 = vshll.u32 %v3925_v61, 16  ;;  %v1466_v23 = vrot.slane %v1464_v14, 4  ;;  %v1469_v24 = vrot.slane %v1467_v15, 5  ;;  %v3987_v2 = vld [vmem:[%s4632_s17 + $0x24] sm:$0xe] }
  0x79   : > { %1146 = vrot.lane.b32.xlu1 %v3864_v4, %s4591_s19  ;;  %v1475_v25 = vrot.slane %v1473_v16, 5  ;;  %v1680_v26 = vshrl.u32 %v3950_v3, 16  ;;  %v1663_v27 = vrot.slane %v1662_v17, 4  ;;  %v1479_v29 = vrot.slane %v1477_v19, 4  ;;  %v3988_v8 = vld [vmem:[%s4632_s17 + $0x28] sm:$0xf] }
  0x7a   : > { %v1673_v28 = vrot.slane %v1672_v18, 4  ;;  %v1485_v30 = vrot.slane %v1483_v20, 5  ;;  %1130 = vrot.lane.b32.xlu0 %v3856_v9, %s4591_s19  ;;  %v1470_v33 = vor.u32 %v1469_v24, %v1466_v23  ;;  %v1683_v35 = vshll.u32 %v3950_v3, 16  ;;  %v4014_v18 = vld [vmem:[%s4632_s17 + $0x90] sm:$0xe] }
  0x7b   : > { %v1682_v34 = vrot.slane %v1680_v26, 4  ;;  %v1689_v36 = vshll.u32 %v3951_v21, 16  ;;  %v1668_v38 = vsel %vm4684_vm5, %v1663_v27, %v1667_v11  ;;  %v1480_v40 = vor.u32 %v1479_v29, %v1475_v25  ;;  %v4015_v19 = vld [vmem:[%s4632_s17 + $0x94] sm:$0xf]  ;;  %v4016_v24 = vld [vmem:[%s4632_s17 + $0x98] sm:$0x1] }
  0x7c   : > { %v1678_v39 = vsel %vm4684_vm5, %v1673_v28, %v1677_v13  ;;  %v1693_v41 = vshrl.u32 %v3951_v21, 16  ;;  %v1471_v46 = vrot.slane %v1470_v33, 4  ;;  %v1685_v47 = vrot.slane %v1683_v35, 5  ;;  %v3989_v13 = vld [vmem:[%s4632_s17 + $0x2c] sm:$0x1] }
  0x7d   : > { %1322 = vrot.lane.b32.xlu1 %v4537_v22, %s4590_s18  ;;  %v3975_v45 = vcombine.low %v1668_v38, %v1678_v39  ;;  %v1691_v48 = vrot.slane %v1689_v36, 5  ;;  %v1481_v49 = vrot.slane %v1480_v40, 4  ;;  %v1699_v51 = vshll.u32 %v3952_v31, 16  ;;  %v3990_v29 = vld [vmem:[%s4632_s17 + $0x30] sm:$0xe] }
  0x7e   : > { %v1695_v50 = vrot.slane %v1693_v41, 4  ;;  %v1488_v53 = vshrl.u32 %v3926_v37, 16  ;;  %1306 = vrot.lane.b32.xlu0 %v4538_v32, %s4590_s18  ;;  %v1476_v54 = vsel %vm4684_vm5, %v1471_v46, %v1475_v25  ;;  %v1686_v55 = vor.u32 %v1685_v47, %v1682_v34  ;;  %v3991_v34 = vld [vmem:[%s4632_s17 + $0x34] sm:$0xf]  ;;  %v3992_v39 = vld [vmem:[%s4632_s17 + $0x38] sm:$0x1] }
  0x7f   : > { %v1491_v56 = vshll.u32 %v3926_v37, 16  ;;  %v1497_v57 = vshll.u32 %v3927_v42, 16  ;;  %v1486_v60 = vsel %vm4684_vm5, %v1481_v49, %v1485_v30  ;;  %v1701_v62 = vrot.slane %v1699_v51, 5  ;;  %v4139_v40 = vld [vmem:[%s4632_s17 + $0x90] sm:$0xf] }
  0x80   : > { %v1696_v61 = vor.u32 %v1695_v50, %v1691_v48  ;;  %v1490_v63 = vrot.slane %v1488_v53, 4  ;;  %v3967_v3 = vcombine.low %v1476_v54, %v1486_v60  ;;  %v1687_v4 = vrot.slane %v1686_v55, 4  ;;  %v4141_v46 = vld [vmem:[%s4632_s17 + $0x98] sm:$0x1]  ;;  %v4115_v47 = vld [vmem:[%s4632_s17 + $0x30] sm:$0xf] }
  0x81   : > { %1324 = vrot.lane.b32.xlu1 %v4539_v43, %s4590_s18  ;;  %v1493_v6 = vrot.slane %v1491_v56, 5  ;;  %v1499_v7 = vrot.slane %v1497_v57, 5  ;;  %v1501_v10 = vshrl.u32 %v3927_v42, 16  ;;  %v1507_v11 = vshll.u32 %v3928_v52, 16 }
  0x82   : > { %v1697_v9 = vrot.slane %v1696_v61, 4  ;;  %v4039_v12 = vrot.slane %v4011_v58, 9  ;;  %1308 = vrot.lane.b32.xlu0 %v4540_v44, %s4590_s18  ;;  %v1692_v14 = vsel %vm4684_vm5, %v1687_v4, %v1691_v48  ;;  %v2080_v16 = vrot.slane %v4012_v59, 5  ;;  %v4116_v61 = vld [vmem:[%s4632_s17 + $0x34] sm:$0xf] }
  0x83   : > { %v1494_v15 = vor.u32 %v1493_v6, %v1490_v63  ;;  %v2083_v17 = vrot.slane %v4013_v1, 5  ;;  %v1503_v21 = vrot.slane %v1501_v10, 4  ;;  %v1509_v22 = vrot.slane %v1507_v11, 5 }
  0x84   : > { %v1702_v20 = vsel %vm4684_vm5, %v1697_v9, %v1701_v62  ;;  %v4031_v23 = vrot.slane %v3987_v2, 9  ;;  %v2081_v27 = vsel %vm4634_vm2, %v4039_v12, %v2080_v16  ;;  %v2082_v28 = vrot.slane %v2080_v16, 4  ;;  %v4986_v48 = vpop.permute.xlu1 %1318 }
  0x85   : > { %1867 = vrot.lane.b32.xlu1 %v3975_v45, %s4593_s21  ;;  %v3976_v25 = vcombine.low %v1692_v14, %v1702_v20  ;;  %v1495_v26 = vrot.slane %v1494_v15, 4  ;;  %v1504_v30 = vor.u32 %v1503_v21, %v1499_v7  ;;  %v2024_v31 = vrot.slane %v3988_v8, 5  ;;  %v4140_v45 = vld [vmem:[%s4632_s17 + $0x94] sm:$0xf]  ;;  %v4142_v14 = vld [vmem:[%s4632_s17 + $0x9c] sm:$0xf] }
  0x86   : > { %v2027_v32 = vrot.slane %v3989_v13, 5  ;;  %v4040_v33 = vrot.slane %v4014_v18, 9  ;;  %1851 = vrot.lane.b32.xlu0 %v3967_v3, %s4593_s21  ;;  %v2084_v36 = vsel %vm4634_vm2, %v2082_v28, %v2083_v17  ;;  %v2087_v37 = vrot.slane %v4015_v19, 5  ;;  %v5005_v13 = vpop.permute.xlu0 %1302  ;;  %v4143_v20 = vld [vmem:[%s4632_s17 + $0xa0] sm:$0xf] }
  0x87   : > { %v1500_v35 = vsel %vm4684_vm5, %v1495_v26, %v1499_v7  ;;  %v2090_v38 = vrot.slane %v4016_v24, 5  ;;  %v1505_v41 = vrot.slane %v1504_v30, 4  ;;  %v4055_v42 = vcombine.low %v2081_v27, %v2084_v36  ;;  %v4117_v7 = vld [vmem:[%s4632_s17 + $0x38] sm:$0x1]  ;;  %v4541_v26 = vld [vmem:[%s4632_s17 + $0x90] sm:$0xff]  }
  0x88   : > { %v2025_v43 = vsel %vm4634_vm2, %v4031_v23, %v2024_v31  ;;  %v2026_v44 = vrot.slane %v2024_v31, 4  ;;  %v2088_v49 = vsel %vm4634_vm2, %v4040_v33, %v2087_v37  ;;  %v2089_v50 = vrot.slane %v2087_v37, 4  ;;  %v4118_v31 = vld [vmem:[%s4632_s17 + $0x3c] sm:$0xf] }
  0x89   : > { %1869 = vrot.lane.b32.xlu1 %v3976_v25, %s4593_s21  ;;  %v4032_v51 = vrot.slane %v3990_v29, 9  ;;  %v2031_v52 = vrot.slane %v3991_v34, 5  ;;  %v1510_v53 = vsel %vm4684_vm5, %v1505_v41, %v1509_v22  ;;  %v2034_v55 = vrot.slane %v3992_v39, 5  ;;  %v4144_v25 = vld [vmem:[%s4632_s17 + $0xa4] sm:$0x1] }
  0x8a   : > { %v2028_v54 = vsel %vm4634_vm2, %v2026_v44, %v2027_v32  ;;  %v2700_v56 = vshrl.u32 %v4139_v40, 16  ;;  %v3968_v57 = vcombine.low %v1500_v35, %v1510_v53  ;;  %v2091_v59 = vsel %vm4634_vm2, %v2089_v50, %v2090_v38  ;;  %v4119_v53 = vld [vmem:[%s4632_s17 + $0x40] sm:$0xf] }
  0x8b   : > { %v4047_v58 = vcombine.low %v2025_v43, %v2028_v54  ;;  %v2032_v60 = vsel %vm4634_vm2, %v4032_v51, %v2031_v52  ;;  %v4056_v62 = vcombine.low %v2088_v49, %v2091_v59  ;;  %v2033_v63 = vrot.slane %v2031_v52, 4  ;;  %v5008_v15 = vpop.permute.xlu1 %1140  ;;  %v4544_v59 = vld [vmem:[%s4632_s17 + $0x3c] sm:$0xff]  }
  0x8c   : > { %v2702_v1 = vrot.slane %v2700_v56, 4  ;;  %v2703_v2 = vshll.u32 %v4139_v40, 16  ;;  %1853 = vrot.lane.b32.xlu0 %v3968_v57, %s4593_s21  ;;  %v2709_v3 = vshll.u32 %v4140_v45, 16  ;;  %v2713_v4 = vshrl.u32 %v4140_v45, 16  ;;  %v4542_v40 = vld [vmem:[%s4632_s17 + $0x30] sm:$0xff]  }
  0x8d   : > { %2188 = vrot.lane.b32.xlu1 %v4055_v42, %s4594_s22  ;;  %v2719_v6 = vshll.u32 %v4141_v46, 16  ;;  %v2508_v8 = vshrl.u32 %v4115_v47, 16  ;;  %v2035_v9 = vsel %vm4634_vm2, %v2033_v63, %v2034_v55  ;;  %v2511_v11 = vshll.u32 %v4115_v47, 16  ;;  %v5019_v45 = vpop.permute.xlu0 %1124  ;;  %v4543_v47 = vld [vmem:[%s4632_s17 + $0x9c] sm:$0xff]   ;;  %v4120_v57 = vld [vmem:[%s4632_s17 + $0x44] sm:$0x1] }
  0x8e   : > { %v2705_v10 = vrot.slane %v2703_v2, 5  ;;  %v2517_v12 = vshll.u32 %v4116_v61, 16  ;;  %v4048_v16 = vcombine.low %v2032_v60, %v2035_v9  ;;  %v2711_v17 = vrot.slane %v2709_v3, 5 }
  0x8f   : > { %v2715_v18 = vrot.slane %v2713_v4, 4  ;;  %v2721_v19 = vrot.slane %v2719_v6, 5  ;;  %v2510_v22 = vrot.slane %v2508_v8, 4  ;;  %v2513_v23 = vrot.slane %v2511_v11, 5 }
  0x90   : > { %v2706_v21 = vor.u32 %v2705_v10, %v2702_v1  ;;  %v2519_v24 = vrot.slane %v2517_v12, 5  ;;  %2172 = vrot.lane.b32.xlu0 %v4047_v58, %s4594_s22  ;;  %v2521_v28 = vshrl.u32 %v4116_v61, 16  ;;  %v2527_v29 = vshll.u32 %v4117_v7, 16  ;;  %v5021_v46 = vpop.permute.xlu1 %1142  ;;  %v4203_v1 = vld [vmem:[%s4632_s17 + $0x90] sm:$0xe] }
  0x91   : > { %2190 = vrot.lane.b32.xlu1 %v4056_v62, %s4594_s22  ;;  %v2716_v27 = vor.u32 %v2715_v18, %v2711_v17  ;;  %v2724_v30 = vshrl.u32 %v4142_v14, 16  ;;  %v2514_v33 = vor.u32 %v2513_v23, %v2510_v22  ;;  %v2727_v34 = vshll.u32 %v4142_v14, 16  ;;  %v4204_v7 = vld [vmem:[%s4632_s17 + $0x94] sm:$0xf]  ;;  %v4205_v12 = vld [vmem:[%s4632_s17 + $0x98] sm:$0x1]  ;;  %v5045_v22 = vpop.permute.xlu0 %1126 }
  0x92   : > { %v2707_v32 = vrot.slane %v2706_v21, 4  ;;  %v2733_v35 = vshll.u32 %v4143_v20, 16  ;;  %v2523_v37 = vrot.slane %v2521_v28, 4  ;;  %v2529_v38 = vrot.slane %v2527_v29, 5  ;;  %v4179_v14 = vld [vmem:[%s4632_s17 + $0x30] sm:$0xe] }
  0x93   : > { %v2717_v36 = vrot.slane %v2716_v27, 4  ;;  %v2726_v39 = vrot.slane %v2724_v30, 4  ;;  %v2515_v42 = vrot.slane %v2514_v33, 4  ;;  %v2729_v43 = vrot.slane %v2727_v34, 5  ;;  %v4181_v21 = vld [vmem:[%s4632_s17 + $0x38] sm:$0x1] }
  0x94   : > { %v2712_v41 = vsel %vm4684_vm5, %v2707_v32, %v2711_v17  ;;  %v2735_v44 = vrot.slane %v2733_v35, 5  ;;  %2174 = vrot.lane.b32.xlu0 %v4048_v16, %s4594_s22  ;;  %v2524_v50 = vor.u32 %v2523_v37, %v2519_v24  ;;  %v2737_v51 = vshrl.u32 %v4143_v20, 16  ;;  %v4180_v20 = vld [vmem:[%s4632_s17 + $0x34] sm:$0xf]  ;;  %v353_v32 = vld [vmem:[%s4632_s17 + $0x90] sm:$0xf] }
  0x95   : > { %2366 = vrot.lane.b32.xlu1 %v4541_v26, %s4595_s23  ;;  %v2722_v49 = vsel %vm4684_vm5, %v2717_v36, %v2721_v19  ;;  %v2743_v52 = vshll.u32 %v4144_v25, 16  ;;  %v2520_v55 = vsel %vm4684_vm5, %v2515_v42, %v2519_v24  ;;  %v2730_v56 = vor.u32 %v2729_v43, %v2726_v39  ;;  %v354_v37 = vld [vmem:[%s4632_s17 + $0x94] sm:$0xf]  ;;  %v355_v42 = vld [vmem:[%s4632_s17 + $0x98] sm:$0x1] }
  0x96   : > { %v4167_v54 = vcombine.low %v2712_v41, %v2722_v49  ;;  %v2532_v58 = vshrl.u32 %v4118_v31, 16  ;;  %v2525_v60 = vrot.slane %v2524_v50, 4  ;;  %v2739_v61 = vrot.slane %v2737_v51, 4  ;;  %v329_v43 = vld [vmem:[%s4632_s17 + $0x30] sm:$0xf] }
  0x97   : > { %v2745_v62 = vrot.slane %v2743_v52, 5  ;;  %v2535_v63 = vshll.u32 %v4118_v31, 16  ;;  %v2731_v2 = vrot.slane %v2730_v56, 4  ;;  %v2541_v4 = vshll.u32 %v4119_v53, 16  ;;  %v330_v51 = vld [vmem:[%s4632_s17 + $0x34] sm:$0xf] }
  0x98   : > { %v2534_v3 = vrot.slane %v2532_v58, 4  ;;  %v2545_v6 = vshrl.u32 %v4119_v53, 16  ;;  %2350 = vrot.lane.b32.xlu0 %v4542_v40, %s4595_s23  ;;  %v2530_v8 = vsel %vm4684_vm5, %v2525_v60, %v2529_v38  ;;  %v2740_v9 = vor.u32 %v2739_v61, %v2735_v44  ;;  %v5047_v23 = vpop.permute.xlu1 %802  ;;  %v331_v52 = vld [vmem:[%s4632_s17 + $0x38] sm:$0x1] }
  0x99   : > { %2368 = vrot.lane.b32.xlu1 %v4543_v47, %s4595_s23  ;;  %v2537_v10 = vrot.slane %v2535_v63, 5  ;;  %v2551_v11 = vshll.u32 %v4120_v57, 16  ;;  %v4159_v16 = vcombine.low %v2520_v55, %v2530_v8  ;;  %v2736_v17 = vsel %vm4684_vm5, %v2731_v2, %v2735_v44  ;;  %v4548_v8 = vld [vmem:[%s4632_s17 + $0x60] sm:$0xff]  }
  0x9a   : > { %v2543_v18 = vrot.slane %v2541_v4, 5  ;;  %v2547_v19 = vrot.slane %v2545_v6, 4  ;;  %v2741_v24 = vrot.slane %v2740_v9, 4  ;;  %v4231_v27 = vrot.slane %v4203_v1, 9  ;;  %v4545_v4 = vld [vmem:[%s4632_s17 + $0xc] sm:$0xff]   ;;  %v4546_v6 = vld [vmem:[%s4632_s17] sm:$0xff]  }
  0x9b   : > { %v2538_v25 = vor.u32 %v2537_v10, %v2534_v3  ;;  %v2553_v26 = vrot.slane %v2551_v11, 5  ;;  %v3124_v29 = vrot.slane %v4204_v7, 5  ;;  %v3127_v30 = vrot.slane %v4205_v12, 5  ;;  %v5071_v57 = vpop.permute.xlu0 %800  ;;  %v4547_v7 = vld [vmem:[%s4632_s17 + $0x6c] sm:$0xff]   ;;  %v4559_v9 = vld [vmem:[%s4632_s17 + $0x78] sm:$0xff]   ;;  %v4563_v11 = vld [vmem:[%s4632_s17 + $0x84] sm:$0xff]  }
  0x9c   : > { %v2548_v28 = vor.u32 %v2547_v19, %v2543_v18  ;;  %v4223_v31 = vrot.slane %v4179_v14, 9  ;;  %2352 = vrot.lane.b32.xlu0 %v4544_v59, %s4595_s23  ;;  %v2746_v33 = vsel %vm4684_vm5, %v2741_v24, %v2745_v62  ;;  %v3068_v35 = vrot.slane %v4180_v20, 5  ;;  %v4560_v10 = vld [vmem:[%s4632_s17 + $0x18] sm:$0xff]   ;;  %302 = vst.msk [vmem:[#allocation2 + $0x8] sm:$0xff] %vm300_vm6, %v4545_v4  ;;  %301 = vst.msk [vmem:[#allocation2] sm:$0xff] %vm300_vm6, %v4546_v6 }
  0x9d   : > { %2911 = vrot.lane.b32.xlu1 %v4167_v54, %s4596_s24  ;;  %v2539_v34 = vrot.slane %v2538_v25, 4  ;;  %v3071_v36 = vrot.slane %v4181_v21, 5  ;;  %v4168_v38 = vcombine.low %v2736_v17, %v2746_v33  ;;  %v3125_v40 = vsel %vm4634_vm2, %v4231_v27, %v3124_v29  ;;  %v4207_v25 = vld [vmem:[%s4632_s17 + $0xa0] sm:$0xf]  ;;  %v4182_v27 = vld [vmem:[%s4632_s17 + $0x3c] sm:$0xe] }
  0x9e   : > { %v2549_v39 = vrot.slane %v2548_v28, 4  ;;  %v3126_v41 = vrot.slane %v3124_v29, 4  ;;  %v5063_v47 = vsel %vm4634_vm2, %v4223_v31, %v3068_v35  ;;  %v3070_v49 = vrot.slane %v3068_v35, 4  ;;  %v4564_v28 = vld [vmem:[%s4632_s17 + $0x24] sm:$0xff]   ;;  %310 = vst.msk [vmem:[#allocation2 + $0x48] sm:$0xff] %vm300_vm6, %v4547_v7  ;;  %309 = vst.msk [vmem:[#allocation2 + $0x40] sm:$0xff] %vm300_vm6, %v4548_v8 }
  0x9f   : > { %v2544_v44 = vsel %vm4684_vm5, %v2539_v34, %v2543_v18  ;;  %v657_v50 = vshrl.u32 %v353_v32, 16  ;;  %v660_v55 = vshll.u32 %v353_v32, 16  ;;  %v666_v56 = vshll.u32 %v354_v37, 16  ;;  %v5090_v18 = vld [vmem:[%s4632_s17 + $0x9c] sm:$0xe]  ;;  %311 = vst.msk [vmem:[#allocation2 + $0x50] sm:$0xff] %vm300_vm6, %v4559_v9 }
  0xa0   : > { %v2554_v53 = vsel %vm4684_vm5, %v2549_v39, %v2553_v26  ;;  %v3128_v54 = vsel %vm4634_vm2, %v3126_v41, %v3127_v30  ;;  %v5073_v58 = vpop.permute.xlu1 %818  ;;  %2895 = vrot.lane.b32.xlu0 %v4159_v16, %s4596_s24  ;;  %v3072_v61 = vsel %vm4634_vm2, %v3070_v49, %v3071_v36  ;;  %v670_v3 = vshrl.u32 %v354_v37, 16  ;;  %v5094_v26 = vld [vmem:[%s4632_s17 + $0xa4] sm:$0x1]  ;;  %v4183_v37 = vld [vmem:[%s4632_s17 + $0x40] sm:$0xf]  ;;  %303 = vst.msk [vmem:[#allocation2 + $0x10] sm:$0xff] %vm300_vm6, %v4560_v10 }
  0xa1   : > { %2913 = vrot.lane.b32.xlu1 %v4168_v38, %s4596_s24  ;;  %v4160_v59 = vcombine.low %v2544_v44, %v2554_v53  ;;  %v4247_v60 = vcombine.low %v3125_v40, %v3128_v54  ;;  %v659_v62 = vrot.slane %v657_v50, 4  ;;  %v4239_v63 = vcombine.low %v5063_v47, %v3072_v61  ;;  %v4184_v41 = vld [vmem:[%s4632_s17 + $0x44] sm:$0x1]  ;;  %312 = vst.msk [vmem:[#allocation2 + $0x58] sm:$0xff] %vm300_vm6, %v4563_v11  ;;  %v356_v53 = vld [vmem:[%s4632_s17 + $0x9c] sm:$0xf] }
  0xa2   : > { %v662_v1 = vrot.slane %v660_v55, 5  ;;  %v5080_v2 = vrot.slane %v666_v56, 5  ;;  %v676_v12 = vshll.u32 %v355_v42, 16  ;;  %v465_v14 = vshrl.u32 %v329_v43, 16  ;;  %304 = vst.msk [vmem:[#allocation2 + $0x18] sm:$0xff] %vm300_vm6, %v4564_v28 }
  0xa3   : > { %v468_v16 = vshll.u32 %v329_v43, 16  ;;  %v474_v17 = vshll.u32 %v330_v51, 16  ;;  %v672_v20 = vrot.slane %v670_v3, 4  ;;  %v478_v21 = vshrl.u32 %v330_v51, 16  ;;  %850 = vst.msk [vmem:[#allocation2 + $0x8] sm:$0xff] %vm848_vm7, %v5047_v23  ;;  %849 = vst.msk [vmem:[#allocation2] sm:$0xff] %vm848_vm7, %v5071_v57 }
  0xa4   : > { %v663_v19 = vor.u32 %v662_v1, %v659_v62  ;;  %v484_v24 = vshll.u32 %v331_v52, 16  ;;  %2897 = vrot.lane.b32.xlu0 %v4160_v59, %s4596_s24  ;;  %v678_v29 = vrot.slane %v676_v12, 5  ;;  %v467_v30 = vrot.slane %v465_v14, 4  ;;  %v5102_v39 = vpop.permute.xlu1 %1320  ;;  %858 = vst.msk [vmem:[#allocation2 + $0x48] sm:$0xff] %vm848_vm7, %v5073_v58  ;;  %v357_v57 = vld [vmem:[%s4632_s17 + $0xa0] sm:$0xf] }
  0xa5   : > { %3232 = vrot.lane.b32.xlu1 %v4247_v60, %s4597_s25  ;;  %v470_v31 = vrot.slane %v468_v16, 5  ;;  %v476_v32 = vrot.slane %v474_v17, 5  ;;  %v673_v34 = vor.u32 %v672_v20, %v5080_v2  ;;  %v480_v35 = vrot.slane %v478_v21, 4  ;;  %v817_v38 = vpop.permute.xlu0 %816  ;;  %1173 = vst.msk [vmem:[#allocation2] sm:$0xff] %vm1172_vm8, %v5019_v45  ;;  %1174 = vst.msk [vmem:[#allocation2 + $0x8] sm:$0xff] %vm1172_vm8, %v5045_v22 }
  0xa6   : > { %v664_v33 = vrot.slane %v663_v19, 4  ;;  %v486_v36 = vrot.slane %v484_v24, 5  ;;  %v4232_v47 = vrot.slane %v5090_v18, 9  ;;  %v3131_v50 = vrot.slane %v4207_v25, 5  ;;  %857 = vst.msk [vmem:[#allocation2 + $0x40] sm:$0xff] %vm848_vm7, %v817_v38 }
  0xa7   : > { %v471_v40 = vor.u32 %v470_v31, %v467_v30  ;;  %v674_v43 = vrot.slane %v673_v34, 4  ;;  %v481_v44 = vor.u32 %v480_v35, %v476_v32  ;;  %v3134_v51 = vrot.slane %v5094_v26, 5  ;;  %1182 = vst.msk [vmem:[#allocation2 + $0x48] sm:$0xff] %vm1172_vm8, %v5021_v46  ;;  %1181 = vst.msk [vmem:[#allocation2 + $0x40] sm:$0xff] %vm1172_vm8, %v5008_v15  ;;  %v358_v62 = vld [vmem:[%s4632_s17 + $0xa4] sm:$0x1] }
  0xa8   : > { %v669_v42 = vsel %vm4684_vm5, %v664_v33, %v5080_v2  ;;  %3216 = vrot.lane.b32.xlu0 %v4239_v63, %s4597_s25  ;;  %v4224_v52 = vrot.slane %v4182_v27, 9  ;;  %v3075_v23 = vrot.slane %v4183_v37, 5  ;;  %v3078_v56 = vrot.slane %v4184_v41, 5  ;;  %v332_v7 = vld [vmem:[%s4632_s17 + $0x3c] sm:$0xf]  ;;  %1360 = vst.msk [vmem:[#allocation2 + $0x48] sm:$0xff] %vm1350_vm9, %v5102_v39 }
  0xa9   : > { %v472_v49 = vrot.slane %v471_v40, 4  ;;  %v679_v54 = vsel %vm4684_vm5, %v674_v43, %v678_v29  ;;  %v482_v55 = vrot.slane %v481_v44, 4  ;;  %v1305_v58 = vpop.permute.xlu0 %1304  ;;  %v3132_v45 = vsel %vm4634_vm2, %v4232_v47, %v3131_v50  ;;  %v5147_v1 = vpop.permute.xlu1 %1863  ;;  %v333_v8 = vld [vmem:[%s4632_s17 + $0x40] sm:$0xf]  ;;  %v334_v14 = vld [vmem:[%s4632_s17 + $0x44] sm:$0x1] }
  0xaa   : > { %v3833_v59 = vcombine.low %v669_v42, %v679_v54  ;;  %v3133_v22 = vrot.slane %v3131_v50, 4  ;;  %v3076_v46 = vsel %vm4634_vm2, %v4224_v52, %v3075_v23  ;;  %v3077_v15 = vrot.slane %v3075_v23, 4  ;;  %v901_v20 = vld [vmem:[%s4632_s17 + $0x90] sm:$0xe]  ;;  %v902_v21 = vld [vmem:[%s4632_s17 + $0x94] sm:$0xf] }
  0xab   : > { %v477_v60 = vsel %vm4684_vm5, %v472_v49, %v476_v32  ;;  %v487_v61 = vsel %vm4684_vm5, %v482_v55, %v486_v36  ;;  %v681_v63 = vshrl.u32 %v356_v53, 16  ;;  %v684_v4 = vshll.u32 %v356_v53, 16  ;;  %v903_v29 = vld [vmem:[%s4632_s17 + $0x98] sm:$0x1]  ;;  %v877_v34 = vld [vmem:[%s4632_s17 + $0x30] sm:$0xe] }
  0xac   : > { %824 = vrot.lane.b32.xlu1 %v3833_v59, %s4592_s20  ;;  %v3825_v2 = vcombine.low %v477_v60, %v487_v61  ;;  %v3135_v3 = vsel %vm4634_vm2, %v3133_v22, %v3134_v51  ;;  %v690_v6 = vshll.u32 %v357_v57, 16  ;;  %v3079_v10 = vsel %vm4634_vm2, %v3077_v15, %v3078_v56  ;;  %v878_v40 = vld [vmem:[%s4632_s17 + $0x34] sm:$0xf]  ;;  %v879_v49 = vld [vmem:[%s4632_s17 + $0x38] sm:$0x1]  ;;  %1351 = vst.msk [vmem:[#allocation2] sm:$0xff] %vm1350_vm9, %v5005_v13 }
  0xad   : > { %v4248_v9 = vcombine.low %v3132_v45, %v3135_v3  ;;  %v683_v11 = vrot.slane %v681_v63, 4  ;;  %v694_v12 = vshrl.u32 %v357_v57, 16  ;;  %v4240_v16 = vcombine.low %v3076_v46, %v3079_v10  ;;  %v5160_v24 = vpop.permute.xlu0 %1847  ;;  %v4574_v42 = vld [vmem:[%s4632_s17 + $0x90] sm:$0xff]   ;;  %1359 = vst.msk [vmem:[#allocation2 + $0x40] sm:$0xff] %vm1350_vm9, %v4986_v48  ;;  %1352 = vst.msk [vmem:[#allocation2 + $0x8] sm:$0xff] %vm1350_vm9, %v1305_v58 }
  0xae   : > { %808 = vrot.lane.b32.xlu0 %v3825_v2, %s4592_s20  ;;  %v686_v17 = vrot.slane %v684_v4, 5  ;;  %v692_v18 = vrot.slane %v690_v6, 5  ;;  %v700_v19 = vshll.u32 %v358_v62, 16  ;;  %v489_v26 = vshrl.u32 %v332_v7, 16  ;;  %v904_v54 = vld [vmem:[%s4632_s17 + $0x9c] sm:$0xe] }
  0xaf   : > { %v696_v25 = vrot.slane %v694_v12, 4  ;;  %v492_v27 = vshll.u32 %v332_v7, 16  ;;  %v498_v28 = vshll.u32 %v333_v8, 16  ;;  %v502_v32 = vshrl.u32 %v333_v8, 16  ;;  %313 = vst.msk [vmem:[#allocation2 + $0x60] sm:$0xff] %vm300_vm6, %v4574_v42  ;;  %v4575_v55 = vld [vmem:[%s4632_s17 + $0x30] sm:$0xff]  }
  0xb0   : > { %3234 = vrot.lane.b32.xlu1 %v4248_v9, %s4597_s25  ;;  %v687_v30 = vor.u32 %v686_v17, %v683_v11  ;;  %v702_v31 = vrot.slane %v700_v19, 5  ;;  %v508_v33 = vshll.u32 %v334_v14, 16  ;;  %v491_v36 = vrot.slane %v489_v26, 4  ;;  %v905_v13 = vld [vmem:[%s4632_s17 + $0xa0] sm:$0xf]  ;;  %305 = vst.msk [vmem:[#allocation2 + $0x20] sm:$0xff] %vm300_vm6, %v4575_v55 }
  0xb1   : > { %v697_v35 = vor.u32 %v696_v25, %v692_v18  ;;  %v494_v37 = vrot.slane %v492_v27, 5  ;;  %v500_v38 = vrot.slane %v498_v28, 5  ;;  %v1866_v41 = vpop.permute.xlu1 %1865  ;;  %v504_v44 = vrot.slane %v502_v32, 4  ;;  %v5183_v59 = vld [vmem:[%s4632_s17 + $0xa4] sm:$0x1]  ;;  %1904 = vst.msk [vmem:[#allocation2 + $0x40] sm:$0xff] %vm1895_vm10, %v5147_v1 }
  0xb2   : > { %3218 = vrot.lane.b32.xlu0 %v4240_v16, %s4597_s25  ;;  %v688_v43 = vrot.slane %v687_v30, 4  ;;  %v510_v47 = vrot.slane %v508_v33, 5  ;;  %v3849_v52 = vrot.slane %v901_v20, 9  ;;  %v1050_v53 = vrot.slane %v902_v21, 5  ;;  %v880_v48 = vld [vmem:[%s4632_s17 + $0x3c] sm:$0xe] }
  0xb3   : > { %v698_v50 = vrot.slane %v697_v35, 4  ;;  %v495_v51 = vor.u32 %v494_v37, %v491_v36  ;;  %v505_v39 = vor.u32 %v504_v44, %v500_v38  ;;  %v1053_v56 = vrot.slane %v903_v29, 5  ;;  %v881_v46 = vld [vmem:[%s4632_s17 + $0x40] sm:$0xf]  ;;  %v882_v15 = vld [vmem:[%s4632_s17 + $0x44] sm:$0x1] }
  0xb4   : > { %v693_v23 = vsel %vm4684_vm5, %v688_v43, %v692_v18  ;;  %v3841_v57 = vrot.slane %v877_v34, 9  ;;  %v1051_v22 = vsel %vm4634_vm2, %v3849_v52, %v1050_v53  ;;  %v1052_v61 = vrot.slane %v1050_v53, 4  ;;  %v3953_v6 = vld [vmem:[%s4632_s17 + $0x9c] sm:$0xf]  ;;  %v3954_v10 = vld [vmem:[%s4632_s17 + $0xa0] sm:$0xf] }
  0xb5   : > { %v1850_v58 = vpop.permute.xlu0 %1849  ;;  %v703_v60 = vsel %vm4684_vm5, %v698_v50, %v702_v31  ;;  %v496_v45 = vrot.slane %v495_v51, 4  ;;  %v2185_v62 = vpop.permute.xlu1 %2184  ;;  %v506_v2 = vrot.slane %v505_v39, 4  ;;  %v994_v3 = vrot.slane %v878_v40, 5  ;;  %1896 = vst.msk [vmem:[#allocation2] sm:$0xff] %vm1895_vm10, %v5160_v24  ;;  %1905 = vst.msk [vmem:[#allocation2 + $0x48] sm:$0xff] %vm1895_vm10, %v1866_v41  ;;  %v4576_v19 = vld [vmem:[%s4632_s17 + $0x9c] sm:$0xff]  }
  0xb6   : > { %v3834_v63 = vcombine.low %v693_v23, %v703_v60  ;;  %v997_v4 = vrot.slane %v879_v49, 5  ;;  %v1054_v8 = vsel %vm4634_vm2, %v1052_v61, %v1053_v56  ;;  %v3850_v9 = vrot.slane %v904_v54, 9  ;;  %1897 = vst.msk [vmem:[#allocation2 + $0x8] sm:$0xff] %vm1895_vm10, %v1850_v58  ;;  %v3955_v18 = vld [vmem:[%s4632_s17 + $0xa4] sm:$0x1]  ;;  %v4577_v28 = vld [vmem:[%s4632_s17 + $0x3c] sm:$0xff]  }
  0xb7   : > { %v501_v7 = vsel %vm4684_vm5, %v496_v45, %v500_v38  ;;  %v511_v11 = vsel %vm4684_vm5, %v506_v2, %v510_v47  ;;  %v3865_v12 = vcombine.low %v1051_v22, %v1054_v8  ;;  %v995_v14 = vsel %vm4634_vm2, %v3841_v57, %v994_v3  ;;  %v3929_v30 = vld [vmem:[%s4632_s17 + $0x3c] sm:$0xf]  ;;  %314 = vst.msk [vmem:[#allocation2 + $0x68] sm:$0xff] %vm300_vm6, %v4576_v19  ;;  %v3930_v35 = vld [vmem:[%s4632_s17 + $0x40] sm:$0xf] }
  0xb8   : > { %826 = vrot.lane.b32.xlu1 %v3834_v63, %s4592_s20  ;;  %v996_v16 = vrot.slane %v994_v3, 4  ;;  %v3826_v20 = vcombine.low %v501_v7, %v511_v11  ;;  %v1057_v21 = vrot.slane %v905_v13, 5  ;;  %v1060_v25 = vrot.slane %v5183_v59, 5  ;;  %2225 = vst.msk [vmem:[#allocation2 + $0x40] sm:$0xff] %vm2216_vm11, %v2185_v62  ;;  %v3931_v54 = vld [vmem:[%s4632_s17 + $0x44] sm:$0x1] }
  0xb9   : > { %v2169_v17 = vpop.permute.xlu0 %2168  ;;  %v3842_v26 = vrot.slane %v880_v48, 9  ;;  %v2187_v27 = vpop.permute.xlu1 %2186  ;;  %v1001_v24 = vrot.slane %v881_v46, 5  ;;  %v1004_v29 = vrot.slane %v882_v15, 5  ;;  %v1704_v34 = vshrl.u32 %v3953_v6, 16  ;;  %306 = vst.msk [vmem:[#allocation2 + $0x28] sm:$0xff] %vm300_vm6, %v4577_v28  ;;  %v4549_v57 = vld [vmem:[%s4632_s17 + $0x9c] sm:$0xff]  }
  0xba   : > { %v998_v1 = vsel %vm4634_vm2, %v996_v16, %v997_v4  ;;  %810 = vrot.lane.b32.xlu0 %v3826_v20, %s4592_s20  ;;  %v1058_v32 = vsel %vm4634_vm2, %v3850_v9, %v1057_v21  ;;  %v1059_v33 = vrot.slane %v1057_v21, 4  ;;  %2217 = vst.msk [vmem:[#allocation2] sm:$0xff] %vm2216_vm11, %v2169_v17  ;;  %2226 = vst.msk [vmem:[#allocation2 + $0x48] sm:$0xff] %vm2216_vm11, %v2187_v27  ;;  %v1707_v40 = vshll.u32 %v3953_v6, 16  ;;  %v3956_v45 = vld [vmem:[%s4632_s17 + $0xa8] sm:$0xf] }
  0xbb   : > { %v3857_v31 = vcombine.low %v995_v14, %v998_v1  ;;  %v1002_v36 = vsel %vm4634_vm2, %v3842_v26, %v1001_v24  ;;  %v1003_v37 = vrot.slane %v1001_v24, 4  ;;  %v1713_v41 = vshll.u32 %v3954_v10, 16  ;;  %v3957_v15 = vld [vmem:[%s4632_s17 + $0xac] sm:$0xf]  ;;  %v4550_v6 = vld [vmem:[%s4632_s17 + $0x3c] sm:$0xff]  }
  0xbc   : > { %1148 = vrot.lane.b32.xlu1 %v3865_v12, %s4591_s19  ;;  %v1061_v42 = vsel %vm4634_vm2, %v1059_v33, %v1060_v25  ;;  %v1706_v43 = vrot.slane %v1704_v34, 4  ;;  %v1717_v44 = vshrl.u32 %v3954_v10, 16  ;;  %v1723_v47 = vshll.u32 %v3955_v18, 16  ;;  %v4551_v11 = vld [vmem:[%s4632_s17 + $0xa8] sm:$0xff]   ;;  %v3958_v17 = vld [vmem:[%s4632_s17 + $0xb0] sm:$0x1] }
  0xbd   : > { %v2171_v38 = vpop.permute.xlu0 %2170  ;;  %v2363_v49 = vpop.permute.xlu1 %2362  ;;  %v3866_v50 = vcombine.low %v1058_v32, %v1061_v42  ;;  %v1005_v51 = vsel %vm4634_vm2, %v1003_v37, %v1004_v29  ;;  %v1709_v52 = vrot.slane %v1707_v40, 5  ;;  %v1715_v53 = vrot.slane %v1713_v41, 5  ;;  %v3932_v19 = vld [vmem:[%s4632_s17 + $0x48] sm:$0xf]  ;;  %v3933_v28 = vld [vmem:[%s4632_s17 + $0x4c] sm:$0xf] }
  0xbe   : > { %2218 = vst.msk [vmem:[#allocation2 + $0x8] sm:$0xff] %vm2216_vm11, %v2171_v38  ;;  %1132 = vrot.lane.b32.xlu0 %v3857_v31, %s4591_s19  ;;  %v3858_v55 = vcombine.low %v1002_v36, %v1005_v51  ;;  %v1719_v23 = vrot.slane %v1717_v44, 4  ;;  %v1725_v39 = vrot.slane %v1723_v47, 5  ;;  %v1512_v56 = vshrl.u32 %v3929_v30, 16  ;;  %v3934_v32 = vld [vmem:[%s4632_s17 + $0x50] sm:$0x1] }
  0xbf   : > { %v1710_v13 = vor.u32 %v1709_v52, %v1706_v43  ;;  %v1515_v59 = vshll.u32 %v3929_v30, 16  ;;  %v1521_v48 = vshll.u32 %v3930_v35, 16  ;;  %v1525_v58 = vshrl.u32 %v3930_v35, 16  ;;  %2403 = vst.msk [vmem:[#allocation2 + $0x40] sm:$0xff] %vm2394_vm12, %v2363_v49  ;;  %v4017_v33 = vld [vmem:[%s4632_s17 + $0x9c] sm:$0xe] }
  0xc0   : > { %1150 = vrot.lane.b32.xlu1 %v3866_v50, %s4591_s19  ;;  %v1720_v22 = vor.u32 %v1719_v23, %v1715_v53  ;;  %v1514_v61 = vrot.slane %v1512_v56, 4  ;;  %v1531_v46 = vshll.u32 %v3931_v54, 16  ;;  %v1728_v9 = vshrl.u32 %v3956_v45, 16  ;;  %v4552_v34 = vld [vmem:[%s4632_s17 + $0x48] sm:$0xff]   ;;  %v4018_v40 = vld [vmem:[%s4632_s17 + $0xa0] sm:$0xf] }
  0xc1   : > { %v2347_v60 = vpop.permute.xlu0 %2346  ;;  %v2365_v62 = vpop.permute.xlu1 %2364  ;;  %v1711_v63 = vrot.slane %v1710_v13, 4  ;;  %v1517_v2 = vrot.slane %v1515_v59, 5  ;;  %v1523_v3 = vrot.slane %v1521_v48, 5  ;;  %v1527_v4 = vrot.slane %v1525_v58, 4  ;;  %v4019_v41 = vld [vmem:[%s4632_s17 + $0xa4] sm:$0x1] }
  0xc2   : > { %2395 = vst.msk [vmem:[#allocation2] sm:$0xff] %vm2394_vm12, %v2347_v60  ;;  %2404 = vst.msk [vmem:[#allocation2 + $0x48] sm:$0xff] %vm2394_vm12, %v2365_v62  ;;  %1134 = vrot.lane.b32.xlu0 %v3858_v55, %s4591_s19  ;;  %v1721_v7 = vrot.slane %v1720_v22, 4  ;;  %v1533_v8 = vrot.slane %v1531_v46, 5  ;;  %v1731_v10 = vshll.u32 %v3956_v45, 16  ;;  %v1737_v18 = vshll.u32 %v3957_v15, 16 }
  0xc3   : > { %v1716_v12 = vsel %vm4684_vm5, %v1711_v63, %v1715_v53  ;;  %v1518_v14 = vor.u32 %v1517_v2, %v1514_v61  ;;  %v1528_v16 = vor.u32 %v1527_v4, %v1523_v3  ;;  %v1730_v25 = vrot.slane %v1728_v9, 4  ;;  %v3993_v49 = vld [vmem:[%s4632_s17 + $0x3c] sm:$0xe]  ;;  %v3994_v50 = vld [vmem:[%s4632_s17 + $0x40] sm:$0xf] }
  0xc4   : > { %1326 = vrot.lane.b32.xlu1 %v4549_v57, %s4590_s18  ;;  %v1726_v21 = vsel %vm4684_vm5, %v1721_v7, %v1725_v39  ;;  %v1733_v26 = vrot.slane %v1731_v10, 5  ;;  %v1741_v27 = vshrl.u32 %v3957_v15, 16  ;;  %v1739_v31 = vrot.slane %v1737_v18, 5  ;;  %v3995_v15 = vld [vmem:[%s4632_s17 + $0x44] sm:$0x1] }
  0xc5   : > { %v2349_v20 = vpop.permute.xlu0 %2348  ;;  %v5255_v1 = vpop.permute.xlu1 %2907  ;;  %v3977_v24 = vcombine.low %v1716_v12, %v1726_v21  ;;  %v1519_v29 = vrot.slane %v1518_v14, 4  ;;  %v1529_v30 = vrot.slane %v1528_v16, 4  ;;  %v1747_v37 = vshll.u32 %v3958_v17, 16  ;;  %v4020_v4 = vld [vmem:[%s4632_s17 + $0xa8] sm:$0xe] }
  0xc6   : > { %2396 = vst.msk [vmem:[#allocation2 + $0x8] sm:$0xff] %vm2394_vm12, %v2349_v20  ;;  %1310 = vrot.lane.b32.xlu0 %v4550_v6, %s4590_s18  ;;  %v1734_v35 = vor.u32 %v1733_v26, %v1730_v25  ;;  %v1743_v36 = vrot.slane %v1741_v27, 4  ;;  %v1536_v38 = vshrl.u32 %v3932_v19, 16  ;;  %v1539_v44 = vshll.u32 %v3932_v19, 16  ;;  %v4021_v10 = vld [vmem:[%s4632_s17 + $0xac] sm:$0xf] }
  0xc7   : > { %v1524_v42 = vsel %vm4684_vm5, %v1519_v29, %v1523_v3  ;;  %v1534_v43 = vsel %vm4684_vm5, %v1529_v30, %v1533_v8  ;;  %v1545_v47 = vshll.u32 %v3933_v28, 16  ;;  %v1749_v55 = vrot.slane %v1747_v37, 5  ;;  %v3996_v19 = vld [vmem:[%s4632_s17 + $0x48] sm:$0xe]  ;;  %v3997_v27 = vld [vmem:[%s4632_s17 + $0x4c] sm:$0xf] }
  0xc8   : > { %1328 = vrot.lane.b32.xlu1 %v4551_v11, %s4590_s18  ;;  %v3969_v52 = vcombine.low %v1524_v42, %v1534_v43  ;;  %v1735_v53 = vrot.slane %v1734_v35, 4  ;;  %v1744_v54 = vor.u32 %v1743_v36, %v1739_v31  ;;  %v1538_v39 = vrot.slane %v1536_v38, 4  ;;  %v4022_v11 = vld [vmem:[%s4632_s17 + $0xb0] sm:$0x1]  ;;  %2948 = vst.msk [vmem:[#allocation2 + $0x40] sm:$0xff] %vm2939_vm13, %v5255_v1 }
  0xc9   : > { %v2892_v51 = vpop.permute.xlu0 %2891  ;;  %v1541_v56 = vrot.slane %v1539_v44, 5  ;;  %v1547_v57 = vrot.slane %v1545_v47, 5  ;;  %v1549_v13 = vshrl.u32 %v3933_v28, 16  ;;  %v1555_v58 = vshll.u32 %v3934_v32, 16  ;;  %v4145_v32 = vld [vmem:[%s4632_s17 + $0xa8] sm:$0xf] }
  0xca   : > { %v2910_v23 = vpop.permute.xlu1 %2909  ;;  %1312 = vrot.lane.b32.xlu0 %v4552_v34, %s4590_s18  ;;  %v1740_v59 = vsel %vm4684_vm5, %v1735_v53, %v1739_v31  ;;  %v1745_v48 = vrot.slane %v1744_v54, 4  ;;  %v4041_v60 = vrot.slane %v4017_v33, 9  ;;  %v2094_v61 = vrot.slane %v4018_v40, 5  ;;  %2940 = vst.msk [vmem:[#allocation2] sm:$0xff] %vm2939_vm13, %v2892_v51  ;;  %v3998_v31 = vld [vmem:[%s4632_s17 + $0x50] sm:$0x1] }
  0xcb   : > { %v1542_v45 = vor.u32 %v1541_v56, %v1538_v39  ;;  %v1551_v22 = vrot.slane %v1549_v13, 4  ;;  %v2097_v46 = vrot.slane %v4019_v41, 5  ;;  %v1557_v63 = vrot.slane %v1555_v58, 5  ;;  %2949 = vst.msk [vmem:[#allocation2 + $0x48] sm:$0xff] %vm2939_vm13, %v2910_v23  ;;  %v4146_v37 = vld [vmem:[%s4632_s17 + $0xac] sm:$0xf] }
  0xcc   : > { %1871 = vrot.lane.b32.xlu1 %v3977_v24, %s4593_s21  ;;  %v1750_v62 = vsel %vm4684_vm5, %v1745_v48, %v1749_v55  ;;  %v4033_v2 = vrot.slane %v3993_v49, 9  ;;  %v2038_v3 = vrot.slane %v3994_v50, 5  ;;  %v2095_v9 = vsel %vm4634_vm2, %v4041_v60, %v2094_v61  ;;  %v4147_v43 = vld [vmem:[%s4632_s17 + $0xb0] sm:$0x1]  ;;  %v4121_v50 = vld [vmem:[%s4632_s17 + $0x48] sm:$0xf] }
  0xcd   : > { %v3978_v6 = vcombine.low %v1740_v59, %v1750_v62  ;;  %v1543_v7 = vrot.slane %v1542_v45, 4  ;;  %v1552_v8 = vor.u32 %v1551_v22, %v1547_v57  ;;  %v2096_v14 = vrot.slane %v2094_v61, 4  ;;  %v4122_v13 = vld [vmem:[%s4632_s17 + $0x4c] sm:$0xf]  ;;  %v4123_v60 = vld [vmem:[%s4632_s17 + $0x50] sm:$0x1] }
  0xce   : > { %v2894_v12 = vpop.permute.xlu0 %2893  ;;  %1855 = vrot.lane.b32.xlu0 %v3969_v52, %s4593_s21  ;;  %v5285_v16 = vsel %vm4634_vm2, %v4033_v2, %v2038_v3  ;;  %v2040_v17 = vrot.slane %v2038_v3, 4  ;;  %v2041_v18 = vrot.slane %v3995_v15, 5  ;;  %v3229_v20 = vpop.permute.xlu1 %3228  ;;  %v4042_v26 = vrot.slane %v4020_v4, 9  ;;  %v4554_v61 = vld [vmem:[%s4632_s17 + $0xa8] sm:$0xff]   ;;  %v4148_v2 = vld [vmem:[%s4632_s17 + $0xb4] sm:$0xf] }
  0xcf   : > { %v1548_v21 = vsel %vm4684_vm5, %v1543_v7, %v1547_v57  ;;  %v1553_v25 = vrot.slane %v1552_v8, 4  ;;  %v2098_v28 = vsel %vm4634_vm2, %v2096_v14, %v2097_v46  ;;  %v2101_v29 = vrot.slane %v4021_v10, 5  ;;  %2941 = vst.msk [vmem:[#allocation2 + $0x8] sm:$0xff] %vm2939_vm13, %v2894_v12  ;;  %v4149_v14 = vld [vmem:[%s4632_s17 + $0xb8] sm:$0xf] }
  0xd0   : > { %1873 = vrot.lane.b32.xlu1 %v3978_v6, %s4593_s21  ;;  %v2042_v24 = vsel %vm4634_vm2, %v2040_v17, %v2041_v18  ;;  %v2104_v30 = vrot.slane %v4022_v11, 5  ;;  %v4057_v34 = vcombine.low %v2095_v9, %v2098_v28  ;;  %v4034_v36 = vrot.slane %v3996_v19, 9  ;;  %3269 = vst.msk [vmem:[#allocation2 + $0x40] sm:$0xff] %vm3260_vm14, %v3229_v20  ;;  %v4150_v18 = vld [vmem:[%s4632_s17 + $0xbc] sm:$0x1]  ;;  %v4557_v20 = vld [vmem:[%s4632_s17 + $0xb4] sm:$0xff]  }
  0xd1   : > { %v1558_v33 = vsel %vm4684_vm5, %v1553_v25, %v1557_v63  ;;  %v4049_v35 = vcombine.low %v5285_v16, %v2042_v24  ;;  %v2102_v40 = vsel %vm4634_vm2, %v4042_v26, %v2101_v29  ;;  %v2103_v41 = vrot.slane %v2101_v29, 4 }
  0xd2   : > { %v3213_v1 = vpop.permute.xlu0 %3212  ;;  %v3970_v38 = vcombine.low %v1548_v21, %v1558_v33  ;;  %v2045_v42 = vrot.slane %v3997_v27, 5  ;;  %v2048_v44 = vrot.slane %v3998_v31, 5  ;;  %v2748_v47 = vshrl.u32 %v4145_v32, 16 }
  0xd3   : > { %v2751_v49 = vshll.u32 %v4145_v32, 16  ;;  %v2105_v51 = vsel %vm4634_vm2, %v2103_v41, %v2104_v30  ;;  %3261 = vst.msk [vmem:[#allocation2] sm:$0xff] %vm3260_vm14, %v3213_v1  ;;  %v2757_v55 = vshll.u32 %v4146_v37, 16  ;;  %v2761_v57 = vshrl.u32 %v4146_v37, 16  ;;  %v4555_v30 = vld [vmem:[%s4632_s17 + $0x48] sm:$0xff]  }
  0xd4   : > { %2192 = vrot.lane.b32.xlu1 %v4057_v34, %s4594_s22  ;;  %1857 = vrot.lane.b32.xlu0 %v3970_v38, %s4593_s21  ;;  %v2046_v52 = vsel %vm4634_vm2, %v4034_v36, %v2045_v42  ;;  %v2047_v53 = vrot.slane %v2045_v42, 4  ;;  %v4058_v23 = vcombine.low %v2102_v40, %v2105_v51  ;;  %v2750_v39 = vrot.slane %v2748_v47, 4  ;;  %v4125_v40 = vld [vmem:[%s4632_s17 + $0x58] sm:$0xf] }
  0xd5   : > { %v821_v54 = vpop.permute.xlu1 %820  ;;  %v2753_v56 = vrot.slane %v2751_v49, 5  ;;  %v2759_v48 = vrot.slane %v2757_v55, 5  ;;  %v2767_v58 = vshll.u32 %v4147_v43, 16  ;;  %v2556_v45 = vshrl.u32 %v4121_v50, 16  ;;  %v4558_v47 = vld [vmem:[%s4632_s17 + $0x54] sm:$0xff]  }
  0xd6   : > { %859 = vst.msk [vmem:[#allocation2 + $0x50] sm:$0xff] %vm848_vm7, %v821_v54  ;;  %v2049_v59 = vsel %vm4634_vm2, %v2047_v53, %v2048_v44  ;;  %v2763_v62 = vrot.slane %v2761_v57, 4  ;;  %v2559_v63 = vshll.u32 %v4121_v50, 16  ;;  %v2565_v6 = vshll.u32 %v4122_v13, 16  ;;  %v4209_v57 = vld [vmem:[%s4632_s17 + $0xa8] sm:$0xe] }
  0xd7   : > { %v4050_v22 = vcombine.low %v2046_v52, %v2049_v59  ;;  %v2754_v15 = vor.u32 %v2753_v56, %v2750_v39  ;;  %v2769_v3 = vrot.slane %v2767_v58, 5  ;;  %v2558_v4 = vrot.slane %v2556_v45, 4  ;;  %v3285_v29 = vld [vmem:[#allocation2 + $0x40] sm:$0xff]  ;;  %v4126_v52 = vld [vmem:[%s4632_s17 + $0x5c] sm:$0x1] }
  0xd8   : > { %2194 = vrot.lane.b32.xlu1 %v4058_v23, %s4594_s22  ;;  %2176 = vrot.lane.b32.xlu0 %v4049_v35, %s4594_s22  ;;  %v2569_v7 = vshrl.u32 %v4122_v13, 16  ;;  %v2764_v10 = vor.u32 %v2763_v62, %v2759_v48  ;;  %v2561_v11 = vrot.slane %v2559_v63, 5  ;;  %v2575_v12 = vshll.u32 %v4123_v60, 16  ;;  %v4124_v35 = vld [vmem:[%s4632_s17 + $0x54] sm:$0xf] }
  0xd9   : > { %v805_v46 = vpop.permute.xlu0 %804  ;;  %v3231_v8 = vpop.permute.xlu1 %3230  ;;  %v2755_v9 = vrot.slane %v2754_v15, 4  ;;  %v2567_v16 = vrot.slane %v2565_v6, 5  ;;  %v2772_v19 = vshrl.u32 %v4148_v2, 16  ;;  %v2775_v33 = vshll.u32 %v4148_v2, 16  ;;  %4484 = vmatprep.mubr.msk.bf16.mxu1 %vm3336_vm15, %v3285_v29  ;;  %v4565_v56 = vld [vmem:[%s5800_s1 + $0x20] ss:$0 sps:$4 sm:$0xff]  }
  0xda   : > { %851 = vst.msk [vmem:[#allocation2 + $0x10] sm:$0xff] %vm848_vm7, %v805_v46  ;;  %v2571_v17 = vrot.slane %v2569_v7, 4  ;;  %v2765_v25 = vrot.slane %v2764_v10, 4  ;;  %v2562_v26 = vor.u32 %v2561_v11, %v2558_v4  ;;  %v2577_v27 = vrot.slane %v2575_v12, 5  ;;  %v3277_v24 = vld [vmem:[#allocation2] sm:$0xff]  ;;  %4510 = vmatprep.subr.msk.bf16.mxu0 %vm3385_vm0, %v4565_v56  ;;  %4511 = vmatprep.subr.msk.bf16.mxu1 %vm3385_vm0, %v4565_v56 }
  0xdb   : > { %3270 = vst.msk [vmem:[#allocation2 + $0x48] sm:$0xff] %vm3260_vm14, %v3231_v8  ;;  %v2760_v21 = vsel %vm4684_vm5, %v2755_v9, %v2759_v48  ;;  %4468 = vmatprep.mubr.msk.bf16.mxu0 %vm3336_vm15, %v3277_v24  ;;  %v2774_v32 = vrot.slane %v2772_v19, 4  ;;  %v2781_v34 = vshll.u32 %v4149_v14, 16  ;;  %v2785_v37 = vshrl.u32 %v4149_v14, 16  ;;  %v4210_v45 = vld [vmem:[%s4632_s17 + $0xac] sm:$0xf] }
  0xdc   : > { %2370 = vrot.lane.b32.xlu1 %v4554_v61, %s4595_s23  ;;  %2178 = vrot.lane.b32.xlu0 %v4050_v22, %s4594_s22  ;;  %v2572_v31 = vor.u32 %v2571_v17, %v2567_v16  ;;  %v2770_v36 = vsel %vm4684_vm5, %v2765_v25, %v2769_v3  ;;  %v2563_v1 = vrot.slane %v2562_v26, 4  ;;  %v2791_v38 = vshll.u32 %v4150_v18, 16  ;;  %v4211_v22 = vld [vmem:[%s4632_s17 + $0xb0] sm:$0x1]  ;;  %v4185_v63 = vld [vmem:[%s4632_s17 + $0x48] sm:$0xe] }
  0xdd   : > { %v3215_v28 = vpop.permute.xlu0 %3214  ;;  %v4169_v41 = vcombine.low %v2760_v21, %v2770_v36  ;;  %v2777_v43 = vrot.slane %v2775_v33, 5  ;;  %v2783_v44 = vrot.slane %v2781_v34, 5  ;;  %v2787_v50 = vrot.slane %v2785_v37, 4  ;;  %v4186_v7 = vld [vmem:[%s4632_s17 + $0x4c] sm:$0xf] }
  0xde   : > { %3262 = vst.msk [vmem:[#allocation2 + $0x8] sm:$0xff] %vm3260_vm14, %v3215_v28  ;;  %v2573_v42 = vrot.slane %v2572_v31, 4  ;;  %v2568_v49 = vsel %vm4684_vm5, %v2563_v1, %v2567_v16  ;;  %v2793_v51 = vrot.slane %v2791_v38, 5  ;;  %v2580_v53 = vshrl.u32 %v4124_v35, 16  ;;  %v4187_v12 = vld [vmem:[%s4632_s17 + $0x50] sm:$0x1] }
  0xdf   : > { %v2778_v55 = vor.u32 %v2777_v43, %v2774_v32  ;;  %v2583_v23 = vshll.u32 %v4124_v35, 16  ;;  %v2589_v39 = vshll.u32 %v4125_v40, 16  ;;  %v2788_v59 = vor.u32 %v2787_v50, %v2783_v44  ;;  %v360_v21 = vld [vmem:[%s4632_s17 + $0xac] sm:$0xf]  ;;  %v361_v35 = vld [vmem:[%s4632_s17 + $0xb0] sm:$0x1] }
  0xe0   : > { %2372 = vrot.lane.b32.xlu1 %v4557_v20, %s4595_s23  ;;  %2354 = vrot.lane.b32.xlu0 %v4555_v30, %s4595_s23  ;;  %v2578_v54 = vsel %vm4684_vm5, %v2573_v42, %v2577_v27  ;;  %v2582_v48 = vrot.slane %v2580_v53, 4  ;;  %v2593_v58 = vshrl.u32 %v4125_v40, 16  ;;  %v2599_v62 = vshll.u32 %v4126_v52, 16  ;;  %v359_v20 = vld [vmem:[%s4632_s17 + $0xa8] sm:$0xf] }
  0xe1   : > { %v4161_v13 = vcombine.low %v2568_v49, %v2578_v54  ;;  %v2779_v61 = vrot.slane %v2778_v55, 4  ;;  %v2585_v46 = vrot.slane %v2583_v23, 5  ;;  %v2591_v15 = vrot.slane %v2589_v39, 5  ;;  %v335_v36 = vld [vmem:[%s4632_s17 + $0x48] sm:$0xf] }
  0xe2   : > { %v2789_v2 = vrot.slane %v2788_v59, 4  ;;  %v2595_v3 = vrot.slane %v2593_v58, 4  ;;  %v4233_v6 = vrot.slane %v4209_v57, 9  ;;  %v2601_v10 = vrot.slane %v2599_v62, 5  ;;  %v3286_v29 = vld [vmem:[#allocation2 + $0x48] sm:$0xff] }
  0xe3   : > { %v823_v60 = vpop.permute.xlu1 %822  ;;  %v2784_v8 = vsel %vm4684_vm5, %v2779_v61, %v2783_v44  ;;  %v2586_v9 = vor.u32 %v2585_v46, %v2582_v48  ;;  %v3387_v11 = vsel %vm3385_vm0, %v4565_v56, 0  ;;  %v3138_v17 = vrot.slane %v4210_v45, 5  ;;  %v336_v1 = vld [vmem:[%s4632_s17 + $0x4c] sm:$0xf]  ;;  %v337_v42 = vld [vmem:[%s4632_s17 + $0x50] sm:$0x1] }
  0xe4   : > { %860 = vst.msk [vmem:[#allocation2 + $0x58] sm:$0xff] %vm848_vm7, %v823_v60  ;;  %2915 = vrot.lane.b32.xlu1 %v4169_v41, %s4596_s24  ;;  %v807_v4 = vpop.permute.xlu0 %806  ;;  %2356 = vrot.lane.b32.xlu0 %v4558_v47, %s4595_s23  ;;  %v2794_v14 = vsel %vm4684_vm5, %v2789_v2, %v2793_v51  ;;  %v2596_v16 = vor.u32 %v2595_v3, %v2591_v15  ;;  %v3141_v18 = vrot.slane %v4211_v22, 5  ;;  %v4225_v27 = vrot.slane %v4185_v63, 9  ;;  %v4578_v55 = vld [vmem:[%s4632_s17 + $0xa8] sm:$0xff]   ;;  %v4212_v59 = vld [vmem:[%s4632_s17 + $0xb4] sm:$0xe] }
  0xe5   : > { %852 = vst.msk [vmem:[#allocation2 + $0x18] sm:$0xff] %vm848_vm7, %v807_v4  ;;  %4467 = vmatpush3.bf16.msra.mxu0 %v3387_v11  ;;  %v4170_v25 = vcombine.low %v2784_v8, %v2794_v14  ;;  %v2587_v26 = vrot.slane %v2586_v9, 4  ;;  %4509 = vmatpush3.bf16.msra.mxu1 %v3387_v11  ;;  %v3082_v28 = vrot.slane %v4186_v7, 5  ;;  %v3278_v24 = vld [vmem:[#allocation2 + $0x8] sm:$0xff]  ;;  %v3139_v31 = vsel %vm4634_vm2, %v4233_v6, %v3138_v17  ;;  %v4213_v48 = vld [vmem:[%s4632_s17 + $0xb8] sm:$0xf] }
  0xe6   : > { %v2597_v30 = vrot.slane %v2596_v16, 4  ;;  %v3140_v32 = vrot.slane %v3138_v17, 4  ;;  %v3085_v33 = vrot.slane %v4187_v12, 5  ;;  %v705_v41 = vshrl.u32 %v359_v20, 16  ;;  %v4579_v58 = vld [vmem:[%s4632_s17 + $0x48] sm:$0xff]   ;;  %315 = vst.msk [vmem:[#allocation2 + $0x70] sm:$0xff] %vm300_vm6, %v4578_v55 }
  0xe7   : > { %v1145_v19 = vpop.permute.xlu1 %1144  ;;  %v2592_v37 = vsel %vm4684_vm5, %v2587_v26, %v2591_v15  ;;  %v3083_v38 = vsel %vm4634_vm2, %v4225_v27, %v3082_v28  ;;  %v3084_v40 = vrot.slane %v3082_v28, 4  ;;  %v708_v47 = vshll.u32 %v359_v20, 16  ;;  %v4214_v46 = vld [vmem:[%s4632_s17 + $0xbc] sm:$0x1]  ;;  %v4188_v3 = vld [vmem:[%s4632_s17 + $0x54] sm:$0xe] }
  0xe8   : > { %1183 = vst.msk [vmem:[#allocation2 + $0x50] sm:$0xff] %vm1172_vm8, %v1145_v19  ;;  %v1129_v34 = vpop.permute.xlu0 %1128  ;;  %2899 = vrot.lane.b32.xlu0 %v4161_v13, %s4596_s24  ;;  %2917 = vrot.lane.b32.xlu1 %v4170_v25, %s4596_s24  ;;  %v2602_v43 = vsel %vm4684_vm5, %v2597_v30, %v2601_v10  ;;  %v3142_v44 = vsel %vm4634_vm2, %v3140_v32, %v3141_v18  ;;  %v714_v49 = vshll.u32 %v360_v21, 16  ;;  %v707_v54 = vrot.slane %v705_v41, 4  ;;  %v4189_v10 = vld [vmem:[%s4632_s17 + $0x58] sm:$0xf] }
  0xe9   : > { %1175 = vst.msk [vmem:[#allocation2 + $0x10] sm:$0xff] %vm1172_vm8, %v1129_v34  ;;  %4469 = vmatmul.mubr.msk.bf16.vlgmr.msra.gmra.mrb[0].mxu0 %vm3336_vm15, %v3278_v24  ;;  %4485 = vmatmul.mubr.msk.bf16.vlgmr.msra.gmra.mrb[0].mxu1 %vm3336_vm15, %v3286_v29  ;;  %v4162_v51 = vcombine.low %v2592_v37, %v2602_v43  ;;  %v4249_v52 = vcombine.low %v3139_v31, %v3142_v44  ;;  %v710_v39 = vrot.slane %v708_v47, 5  ;;  %v718_v57 = vshrl.u32 %v360_v21, 16  ;;  %v4190_v17 = vld [vmem:[%s4632_s17 + $0x5c] sm:$0x1]  ;;  %v4580_v41 = vld [vmem:[%s4632_s17 + $0xb4] sm:$0xff]  }
  0xea   : > { %v3086_v53 = vsel %vm4634_vm2, %v3084_v40, %v3085_v33  ;;  %v716_v56 = vrot.slane %v714_v49, 5  ;;  %v724_v60 = vshll.u32 %v361_v35, 16  ;;  %v513_v45 = vshrl.u32 %v335_v36, 16  ;;  %307 = vst.msk [vmem:[#allocation2 + $0x30] sm:$0xff] %vm300_vm6, %v4579_v58  ;;  %v362_v26 = vld [vmem:[%s4632_s17 + $0xb4] sm:$0xf] }
  0xeb   : > { %v1147_v50 = vpop.permute.xlu1 %1146  ;;  %v4241_v23 = vcombine.low %v3083_v38, %v3086_v53  ;;  %v516_v22 = vshll.u32 %v335_v36, 16  ;;  %v522_v61 = vshll.u32 %v336_v1, 16  ;;  %v711_v15 = vor.u32 %v710_v39, %v707_v54  ;;  %v363_v37 = vld [vmem:[%s4632_s17 + $0xb8] sm:$0xf]  ;;  %v364_v49 = vld [vmem:[%s4632_s17 + $0xbc] sm:$0x1] }
  0xec   : > { %1184 = vst.msk [vmem:[#allocation2 + $0x58] sm:$0xff] %vm1172_vm8, %v1147_v50  ;;  %v1131_v13 = vpop.permute.xlu0 %1130  ;;  %2901 = vrot.lane.b32.xlu0 %v4162_v51, %s4596_s24  ;;  %3236 = vrot.lane.b32.xlu1 %v4249_v52, %s4597_s25  ;;  %v720_v62 = vrot.slane %v718_v57, 4  ;;  %v526_v63 = vshrl.u32 %v336_v1, 16  ;;  %v532_v2 = vshll.u32 %v337_v42, 16  ;;  %v726_v6 = vrot.slane %v724_v60, 5 }
  0xed   : > { %1176 = vst.msk [vmem:[#allocation2 + $0x18] sm:$0xff] %vm1172_vm8, %v1131_v13  ;;  %v515_v7 = vrot.slane %v513_v45, 4  ;;  %v518_v8 = vrot.slane %v516_v22, 5  ;;  %v524_v9 = vrot.slane %v522_v61, 5  ;;  %v712_v11 = vrot.slane %v711_v15, 4 }
  0xee   : > { %v721_v12 = vor.u32 %v720_v62, %v716_v56  ;;  %v528_v14 = vrot.slane %v526_v63, 4  ;;  %v534_v16 = vrot.slane %v532_v2, 5  ;;  %v4234_v20 = vrot.slane %v4212_v59, 9  ;;  %v338_v50 = vld [vmem:[%s4632_s17 + $0x54] sm:$0xf]  ;;  %316 = vst.msk [vmem:[#allocation2 + $0x78] sm:$0xff] %vm300_vm6, %v4580_v41 }
  0xef   : > { %v1323_v4 = vpop.permute.xlu1 %1322  ;;  %v519_v19 = vor.u32 %v518_v8, %v515_v7  ;;  %v3145_v21 = vrot.slane %v4213_v48, 5  ;;  %v3148_v25 = vrot.slane %v4214_v46, 5  ;;  %v717_v27 = vsel %vm4684_vm5, %v712_v11, %v716_v56  ;;  %v339_v55 = vld [vmem:[%s4632_s17 + $0x58] sm:$0xf]  ;;  %v340_v59 = vld [vmem:[%s4632_s17 + $0x5c] sm:$0x1] }
  0xf0   : > { %1361 = vst.msk [vmem:[#allocation2 + $0x50] sm:$0xff] %vm1350_vm9, %v1323_v4  ;;  %v1307_v18 = vpop.permute.xlu0 %1306  ;;  %3220 = vrot.lane.b32.xlu0 %v4241_v23, %s4597_s25  ;;  %v722_v28 = vrot.slane %v721_v12, 4  ;;  %v529_v24 = vor.u32 %v528_v14, %v524_v9  ;;  %v4226_v29 = vrot.slane %v4188_v3, 9  ;;  %v3089_v34 = vrot.slane %v4189_v10, 5  ;;  %v4581_v48 = vld [vmem:[%s4632_s17 + $0x54] sm:$0xff]  }
  0xf1   : > { %1353 = vst.msk [vmem:[#allocation2 + $0x10] sm:$0xff] %vm1350_vm9, %v1307_v18  ;;  %v520_v31 = vrot.slane %v519_v19, 4  ;;  %v3146_v32 = vsel %vm4634_vm2, %v4234_v20, %v3145_v21  ;;  %v3147_v33 = vrot.slane %v3145_v21, 4  ;;  %v3092_v1 = vrot.slane %v4190_v17, 5  ;;  %v907_v61 = vld [vmem:[%s4632_s17 + $0xa8] sm:$0xe] }
  0xf2   : > { %v727_v35 = vsel %vm4684_vm5, %v722_v28, %v726_v6  ;;  %v530_v36 = vrot.slane %v529_v24, 4  ;;  %v729_v38 = vshrl.u32 %v362_v26, 16  ;;  %v3090_v47 = vsel %vm4634_vm2, %v4226_v29, %v3089_v34  ;;  %v908_v3 = vld [vmem:[%s4632_s17 + $0xac] sm:$0xf]  ;;  %308 = vst.msk [vmem:[#allocation2 + $0x38] sm:$0xff] %vm300_vm6, %v4581_v48 }
  0xf3   : > { %v1325_v30 = vpop.permute.xlu1 %1324  ;;  %v3835_v42 = vcombine.low %v717_v27, %v727_v35  ;;  %v525_v43 = vsel %vm4684_vm5, %v520_v31, %v524_v9  ;;  %v3149_v44 = vsel %vm4634_vm2, %v3147_v33, %v3148_v25  ;;  %v3091_v53 = vrot.slane %v3089_v34, 4  ;;  %v909_v9 = vld [vmem:[%s4632_s17 + $0xb0] sm:$0x1]  ;;  %v883_v17 = vld [vmem:[%s4632_s17 + $0x48] sm:$0xe] }
  0xf4   : > { %1362 = vst.msk [vmem:[#allocation2 + $0x58] sm:$0xff] %vm1350_vm9, %v1325_v30  ;;  %v1309_v40 = vpop.permute.xlu0 %1308  ;;  %v535_v51 = vsel %vm4684_vm5, %v530_v36, %v534_v16  ;;  %v4250_v52 = vcombine.low %v3146_v32, %v3149_v44  ;;  %v731_v54 = vrot.slane %v729_v38, 4  ;;  %v732_v56 = vshll.u32 %v362_v26, 16  ;;  %v884_v18 = vld [vmem:[%s4632_s17 + $0x4c] sm:$0xf] }
  0xf5   : > { %1354 = vst.msk [vmem:[#allocation2 + $0x18] sm:$0xff] %vm1350_vm9, %v1309_v40  ;;  %828 = vrot.lane.b32.xlu1 %v3835_v42, %s4592_s20  ;;  %v3827_v39 = vcombine.low %v525_v43, %v535_v51  ;;  %v738_v57 = vshll.u32 %v363_v37, 16  ;;  %v742_v13 = vshrl.u32 %v363_v37, 16  ;;  %v3093_v58 = vsel %vm4634_vm2, %v3091_v53, %v3092_v1  ;;  %v885_v26 = vld [vmem:[%s4632_s17 + $0x50] sm:$0x1] }
  0xf6   : > { %v748_v60 = vshll.u32 %v364_v49, 16  ;;  %v537_v45 = vshrl.u32 %v338_v50, 16  ;;  %v540_v22 = vshll.u32 %v338_v50, 16  ;;  %v4242_v15 = vcombine.low %v3090_v47, %v3093_v58  ;;  %v910_v27 = vld [vmem:[%s4632_s17 + $0xb4] sm:$0xe] }
  0xf7   : > { %v1868_v23 = vpop.permute.xlu1 %1867  ;;  %812 = vrot.lane.b32.xlu0 %v3827_v39, %s4592_s20  ;;  %v734_v62 = vrot.slane %v732_v56, 5  ;;  %v740_v63 = vrot.slane %v738_v57, 5  ;;  %v744_v2 = vrot.slane %v742_v13, 4  ;;  %v546_v8 = vshll.u32 %v339_v55, 16  ;;  %v911_v31 = vld [vmem:[%s4632_s17 + $0xb8] sm:$0xf] }
  0xf8   : > { %1906 = vst.msk [vmem:[#allocation2 + $0x50] sm:$0xff] %vm1895_vm10, %v1868_v23  ;;  %v1852_v46 = vpop.permute.xlu0 %1851  ;;  %v750_v4 = vrot.slane %v748_v60, 5  ;;  %v539_v6 = vrot.slane %v537_v45, 4  ;;  %v542_v7 = vrot.slane %v540_v22, 5  ;;  %v550_v14 = vshrl.u32 %v339_v55, 16 }
  0xf9   : > { %1898 = vst.msk [vmem:[#allocation2 + $0x10] sm:$0xff] %vm1895_vm10, %v1852_v46  ;;  %3238 = vrot.lane.b32.xlu1 %v4250_v52, %s4597_s25  ;;  %v735_v11 = vor.u32 %v734_v62, %v731_v54  ;;  %v745_v12 = vor.u32 %v744_v2, %v740_v63  ;;  %v556_v16 = vshll.u32 %v340_v59, 16  ;;  %v548_v20 = vrot.slane %v546_v8, 5  ;;  %v912_v32 = vld [vmem:[%s4632_s17 + $0xbc] sm:$0x1] }
  0xfa   : > { %v543_v19 = vor.u32 %v542_v7, %v539_v6  ;;  %v3851_v21 = vrot.slane %v907_v61, 9  ;;  %v1064_v25 = vrot.slane %v908_v3, 5  ;;  %v552_v29 = vrot.slane %v550_v14, 4  ;;  %v886_v1 = vld [vmem:[%s4632_s17 + $0x54] sm:$0xe] }
  0xfb   : > { %v1870_v10 = vpop.permute.xlu1 %1869  ;;  %3222 = vrot.lane.b32.xlu0 %v4242_v15, %s4597_s25  ;;  %v736_v28 = vrot.slane %v735_v11, 4  ;;  %v746_v24 = vrot.slane %v745_v12, 4  ;;  %v558_v30 = vrot.slane %v556_v16, 5  ;;  %v1067_v36 = vrot.slane %v909_v9, 5  ;;  %v887_v37 = vld [vmem:[%s4632_s17 + $0x58] sm:$0xf] }
  0xfc   : > { %1907 = vst.msk [vmem:[#allocation2 + $0x58] sm:$0xff] %vm1895_vm10, %v1870_v10  ;;  %v544_v33 = vrot.slane %v543_v19, 4  ;;  %v1065_v34 = vsel %vm4634_vm2, %v3851_v21, %v1064_v25  ;;  %v1066_v35 = vrot.slane %v1064_v25, 4  ;;  %v553_v43 = vor.u32 %v552_v29, %v548_v20  ;;  %v888_v47 = vld [vmem:[%s4632_s17 + $0x5c] sm:$0x1] }
  0xfd   : > { %v741_v41 = vsel %vm4684_vm5, %v736_v28, %v740_v63  ;;  %v751_v42 = vsel %vm4684_vm5, %v746_v24, %v750_v4  ;;  %v3843_v44 = vrot.slane %v883_v17, 9  ;;  %v1008_v52 = vrot.slane %v884_v18, 5  ;;  %v3959_v53 = vld [vmem:[%s4632_s17 + $0xb4] sm:$0xf]  ;;  %v3960_v56 = vld [vmem:[%s4632_s17 + $0xb8] sm:$0xf] }
  0xfe   : > { %v1854_v38 = vpop.permute.xlu0 %1853  ;;  %v3836_v49 = vcombine.low %v741_v41, %v751_v42  ;;  %v549_v50 = vsel %vm4684_vm5, %v544_v33, %v548_v20  ;;  %v1068_v51 = vsel %vm4634_vm2, %v1066_v35, %v1067_v36  ;;  %v554_v54 = vrot.slane %v553_v43, 4  ;;  %v3961_v45 = vld [vmem:[%s4632_s17 + $0xbc] sm:$0x1]  ;;  %v3935_v4 = vld [vmem:[%s4632_s17 + $0x54] sm:$0xf] }
  0xff   : > { %v2189_v40 = vpop.permute.xlu1 %2188  ;;  %1899 = vst.msk [vmem:[#allocation2 + $0x18] sm:$0xff] %vm1895_vm10, %v1854_v38  ;;  %v3867_v55 = vcombine.low %v1065_v34, %v1068_v51  ;;  %v1011_v23 = vrot.slane %v885_v26, 5  ;;  %v3852_v39 = vrot.slane %v910_v27, 9  ;;  %v1009_v57 = vsel %vm4634_vm2, %v3843_v44, %v1008_v52  ;;  %v3936_v6 = vld [vmem:[%s4632_s17 + $0x58] sm:$0xf] }
 0x100   : > { %2227 = vst.msk [vmem:[#allocation2 + $0x50] sm:$0xff] %vm2216_vm11, %v2189_v40  ;;  %830 = vrot.lane.b32.xlu1 %v3836_v49, %s4592_s20  ;;  %v1010_v13 = vrot.slane %v1008_v52, 4  ;;  %v1071_v59 = vrot.slane %v911_v31, 5  ;;  %v1074_v48 = vrot.slane %v912_v32, 5  ;;  %v559_v22 = vsel %vm4684_vm5, %v554_v54, %v558_v30  ;;  %v3937_v26 = vld [vmem:[%s4632_s17 + $0x5c] sm:$0x1] }
 0x101   : > { %v3844_v61 = vrot.slane %v886_v1, 9  ;;  %v1015_v46 = vrot.slane %v887_v37, 5  ;;  %v1018_v15 = vrot.slane %v888_v47, 5  ;;  %v3828_v62 = vcombine.low %v549_v50, %v559_v22  ;;  %v3962_v30 = vld [vmem:[%s4632_s17 + $0xc0] sm:$0xf]  ;;  %v4566_v35 = vld [vmem:[%s4632_s17 + $0xb4] sm:$0xff]  }
 0x102   : > { %v2173_v58 = vpop.permute.xlu0 %2172  ;;  %v1012_v63 = vsel %vm4634_vm2, %v1010_v13, %v1011_v23  ;;  %v1072_v2 = vsel %vm4634_vm2, %v3852_v39, %v1071_v59  ;;  %v1073_v3 = vrot.slane %v1071_v59, 4  ;;  %v1752_v10 = vshrl.u32 %v3959_v53, 16  ;;  %v3963_v41 = vld [vmem:[%s4632_s17 + $0xc4] sm:$0xf]  ;;  %v3964_v54 = vld [vmem:[%s4632_s17 + $0xc8] sm:$0x1] }
 0x103   : > { %v2191_v60 = vpop.permute.xlu1 %2190  ;;  %2219 = vst.msk [vmem:[#allocation2 + $0x10] sm:$0xff] %vm2216_vm11, %v2173_v58  ;;  %v3859_v7 = vcombine.low %v1009_v57, %v1012_v63  ;;  %v1016_v8 = vsel %vm4634_vm2, %v3844_v61, %v1015_v46  ;;  %v1017_v9 = vrot.slane %v1015_v46, 4  ;;  %814 = vrot.lane.b32.xlu0 %v3828_v62, %s4592_s20  ;;  %v1755_v14 = vshll.u32 %v3959_v53, 16  ;;  %v3938_v13 = vld [vmem:[%s4632_s17 + $0x60] sm:$0xf] }
 0x104   : > { %2228 = vst.msk [vmem:[#allocation2 + $0x58] sm:$0xff] %vm2216_vm11, %v2191_v60  ;;  %1152 = vrot.lane.b32.xlu1 %v3867_v55, %s4591_s19  ;;  %v1075_v11 = vsel %vm4634_vm2, %v1073_v3, %v1074_v48  ;;  %v1761_v16 = vshll.u32 %v3960_v56, 16  ;;  %v1765_v17 = vshrl.u32 %v3960_v56, 16  ;;  %v1754_v21 = vrot.slane %v1752_v10, 4  ;;  %v4567_v55 = vld [vmem:[%s4632_s17 + $0x54] sm:$0xff]   ;;  %v4568_v59 = vld [vmem:[%s4632_s17 + $0xc0] sm:$0xff]  }
 0x105   : > { %v3868_v19 = vcombine.low %v1072_v2, %v1075_v11  ;;  %v1019_v20 = vsel %vm4634_vm2, %v1017_v9, %v1018_v15  ;;  %v1771_v25 = vshll.u32 %v3961_v45, 16  ;;  %v1757_v28 = vrot.slane %v1755_v14, 5  ;;  %v3939_v22 = vld [vmem:[%s4632_s17 + $0x64] sm:$0xf]  ;;  %v3940_v3 = vld [vmem:[%s4632_s17 + $0x68] sm:$0x1] }
 0x106   : > { %v2175_v12 = vpop.permute.xlu0 %2174  ;;  %v3860_v27 = vcombine.low %v1016_v8, %v1019_v20  ;;  %v1763_v24 = vrot.slane %v1761_v16, 5  ;;  %v1767_v29 = vrot.slane %v1765_v17, 4  ;;  %v1560_v32 = vshrl.u32 %v3935_v4, 16  ;;  %v4024_v11 = vld [vmem:[%s4632_s17 + $0xb8] sm:$0xf] }
 0x107   : > { %v2367_v18 = vpop.permute.xlu1 %2366  ;;  %2220 = vst.msk [vmem:[#allocation2 + $0x18] sm:$0xff] %vm2216_vm11, %v2175_v12  ;;  %v1773_v31 = vrot.slane %v1771_v25, 5  ;;  %v1563_v33 = vshll.u32 %v3935_v4, 16  ;;  %v1569_v34 = vshll.u32 %v3936_v6, 16  ;;  %1136 = vrot.lane.b32.xlu0 %v3859_v7, %s4591_s19  ;;  %v1758_v36 = vor.u32 %v1757_v28, %v1754_v21  ;;  %v4023_v4 = vld [vmem:[%s4632_s17 + $0xb4] sm:$0xe] }
 0x108   : > { %2405 = vst.msk [vmem:[#allocation2 + $0x50] sm:$0xff] %vm2394_vm12, %v2367_v18  ;;  %1154 = vrot.lane.b32.xlu1 %v3868_v19, %s4591_s19  ;;  %v1768_v1 = vor.u32 %v1767_v29, %v1763_v24  ;;  %v1573_v37 = vshrl.u32 %v3936_v6, 16  ;;  %v1579_v38 = vshll.u32 %v3937_v26, 16  ;;  %v1562_v43 = vrot.slane %v1560_v32, 4  ;;  %v4569_v6 = vld [vmem:[%s4632_s17 + $0x60] sm:$0xff]  }
 0x109   : > { %v1565_v44 = vrot.slane %v1563_v33, 5  ;;  %v1571_v47 = vrot.slane %v1569_v34, 5  ;;  %v1776_v49 = vshrl.u32 %v3962_v30, 16  ;;  %v1759_v50 = vrot.slane %v1758_v36, 4  ;;  %v4025_v12 = vld [vmem:[%s4632_s17 + $0xbc] sm:$0x1] }
 0x10a   : > { %v2351_v40 = vpop.permute.xlu0 %2350  ;;  %v1769_v51 = vrot.slane %v1768_v1, 4  ;;  %v1575_v52 = vrot.slane %v1573_v37, 4  ;;  %v1581_v53 = vrot.slane %v1579_v38, 5  ;;  %v1779_v56 = vshll.u32 %v3962_v30, 16  ;;  %v3999_v19 = vld [vmem:[%s4632_s17 + $0x54] sm:$0xe] }
 0x10b   : > { %v2369_v42 = vpop.permute.xlu1 %2368  ;;  %2397 = vst.msk [vmem:[#allocation2 + $0x10] sm:$0xff] %vm2394_vm12, %v2351_v40  ;;  %v1566_v23 = vor.u32 %v1565_v44, %v1562_v43  ;;  %v1778_v39 = vrot.slane %v1776_v49, 4  ;;  %v1785_v57 = vshll.u32 %v3963_v41, 16  ;;  %1138 = vrot.lane.b32.xlu0 %v3860_v27, %s4591_s19  ;;  %v1764_v48 = vsel %vm4684_vm5, %v1759_v50, %v1763_v24  ;;  %v4000_v32 = vld [vmem:[%s4632_s17 + $0x58] sm:$0xf] }
 0x10c   : > { %2406 = vst.msk [vmem:[#allocation2 + $0x58] sm:$0xff] %vm2394_vm12, %v2369_v42  ;;  %1330 = vrot.lane.b32.xlu1 %v4566_v35, %s4590_s18  ;;  %v1774_v58 = vsel %vm4684_vm5, %v1769_v51, %v1773_v31  ;;  %v1576_v60 = vor.u32 %v1575_v52, %v1571_v47  ;;  %v1789_v45 = vshrl.u32 %v3963_v41, 16  ;;  %v1781_v63 = vrot.slane %v1779_v56, 5  ;;  %v4001_v1 = vld [vmem:[%s4632_s17 + $0x5c] sm:$0x1] }
 0x10d   : > { %v3979_v15 = vcombine.low %v1764_v48, %v1774_v58  ;;  %v1567_v62 = vrot.slane %v1566_v23, 4  ;;  %v1787_v2 = vrot.slane %v1785_v57, 5  ;;  %v1795_v9 = vshll.u32 %v3964_v54, 16  ;;  %v4026_v42 = vld [vmem:[%s4632_s17 + $0xc0] sm:$0xe] }
 0x10e   : > { %v2353_v61 = vpop.permute.xlu0 %2352  ;;  %v1577_v7 = vrot.slane %v1576_v60, 4  ;;  %v1791_v8 = vrot.slane %v1789_v45, 4  ;;  %v1584_v10 = vshrl.u32 %v3938_v13, 16  ;;  %v1782_v16 = vor.u32 %v1781_v63, %v1778_v39  ;;  %v4027_v43 = vld [vmem:[%s4632_s17 + $0xc4] sm:$0xf] }
 0x10f   : > { %v2912_v46 = vpop.permute.xlu1 %2911  ;;  %2398 = vst.msk [vmem:[#allocation2 + $0x18] sm:$0xff] %vm2394_vm12, %v2353_v61  ;;  %v1572_v14 = vsel %vm4684_vm5, %v1567_v62, %v1571_v47  ;;  %v1587_v17 = vshll.u32 %v3938_v13, 16  ;;  %v1593_v18 = vshll.u32 %v3939_v22, 16  ;;  %1314 = vrot.lane.b32.xlu0 %v4567_v55, %s4590_s18  ;;  %v1797_v25 = vrot.slane %v1795_v9, 5  ;;  %v4028_v51 = vld [vmem:[%s4632_s17 + $0xc8] sm:$0x1] }
 0x110   : > { %2950 = vst.msk [vmem:[#allocation2 + $0x50] sm:$0xff] %vm2939_vm13, %v2912_v46  ;;  %1332 = vrot.lane.b32.xlu1 %v4568_v59, %s4590_s18  ;;  %v1582_v20 = vsel %vm4684_vm5, %v1577_v7, %v1581_v53  ;;  %v1792_v21 = vor.u32 %v1791_v8, %v1787_v2  ;;  %v1586_v26 = vrot.slane %v1584_v10, 4  ;;  %v1783_v29 = vrot.slane %v1782_v16, 4  ;;  %v4002_v56 = vld [vmem:[%s4632_s17 + $0x60] sm:$0xe] }
 0x111   : > { %v3971_v24 = vcombine.low %v1572_v14, %v1582_v20  ;;  %v1589_v30 = vrot.slane %v1587_v17, 5  ;;  %v5529_v31 = vrot.slane %v1593_v18, 5  ;;  %v1597_v34 = vshrl.u32 %v3939_v22, 16  ;;  %v4003_v58 = vld [vmem:[%s4632_s17 + $0x64] sm:$0xf] }
 0x112   : > { %v2896_v27 = vpop.permute.xlu0 %2895  ;;  %v1793_v33 = vrot.slane %v1792_v21, 4  ;;  %v1603_v35 = vshll.u32 %v3940_v3, 16  ;;  %v4043_v36 = vrot.slane %v4023_v4, 9  ;;  %v1788_v37 = vsel %vm4684_vm5, %v1783_v29, %v1787_v2  ;;  %v4004_v46 = vld [vmem:[%s4632_s17 + $0x68] sm:$0x1] }
 0x113   : > { %v2914_v28 = vpop.permute.xlu1 %2913  ;;  %2942 = vst.msk [vmem:[#allocation2 + $0x10] sm:$0xff] %vm2939_vm13, %v2896_v27  ;;  %v1590_v38 = vor.u32 %v1589_v30, %v1586_v26  ;;  %v2108_v40 = vrot.slane %v4024_v11, 5  ;;  %v2111_v41 = vrot.slane %v4025_v12, 5  ;;  %1316 = vrot.lane.b32.xlu0 %v4569_v6, %s4590_s18  ;;  %v1599_v47 = vrot.slane %v1597_v34, 4  ;;  %v4152_v6 = vld [vmem:[%s4632_s17 + $0xc4] sm:$0xf] }
 0x114   : > { %2951 = vst.msk [vmem:[#allocation2 + $0x58] sm:$0xff] %vm2939_vm13, %v2914_v28  ;;  %1875 = vrot.lane.b32.xlu1 %v3979_v15, %s4593_s21  ;;  %v1798_v44 = vsel %vm4684_vm5, %v1793_v33, %v1797_v25  ;;  %v1605_v49 = vrot.slane %v1603_v35, 5  ;;  %v4035_v50 = vrot.slane %v3999_v19, 9  ;;  %v2052_v13 = vrot.slane %v4000_v32, 5  ;;  %v4151_v15 = vld [vmem:[%s4632_s17 + $0xc0] sm:$0xf] }
 0x115   : > { %v3980_v54 = vcombine.low %v1788_v37, %v1798_v44  ;;  %v1591_v55 = vrot.slane %v1590_v38, 4  ;;  %v2109_v23 = vsel %vm4634_vm2, %v4043_v36, %v2108_v40  ;;  %v2110_v39 = vrot.slane %v2108_v40, 4  ;;  %v4153_v7 = vld [vmem:[%s4632_s17 + $0xc8] sm:$0x1]  ;;  %v4127_v8 = vld [vmem:[%s4632_s17 + $0x60] sm:$0xf] }
 0x116   : > { %v2898_v52 = vpop.permute.xlu0 %2897  ;;  %v1600_v57 = vor.u32 %v1599_v47, %v5529_v31  ;;  %v2055_v59 = vrot.slane %v4001_v1, 5  ;;  %v4044_v48 = vrot.slane %v4026_v42, 9  ;;  %v2115_v22 = vrot.slane %v4027_v43, 5  ;;  %v4128_v14 = vld [vmem:[%s4632_s17 + $0x64] sm:$0xf] }
 0x117   : > { %v3233_v53 = vpop.permute.xlu1 %3232  ;;  %2943 = vst.msk [vmem:[#allocation2 + $0x18] sm:$0xff] %vm2939_vm13, %v2898_v52  ;;  %v1596_v60 = vsel %vm4684_vm5, %v1591_v55, %v5529_v31  ;;  %v2112_v45 = vsel %vm4634_vm2, %v2110_v39, %v2111_v41  ;;  %v2118_v61 = vrot.slane %v4028_v51, 5  ;;  %1859 = vrot.lane.b32.xlu0 %v3971_v24, %s4593_s21  ;;  %v2053_v2 = vsel %vm4634_vm2, %v4035_v50, %v2052_v13  ;;  %v4129_v31 = vld [vmem:[%s4632_s17 + $0x68] sm:$0x1]  ;;  %v4154_v42 = vld [vmem:[%s4632_s17 + $0xcc] sm:$0xf] }
 0x118   : > { %3271 = vst.msk [vmem:[#allocation2 + $0x50] sm:$0xff] %vm3260_vm14, %v3233_v53  ;;  %1877 = vrot.lane.b32.xlu1 %v3980_v54, %s4593_s21  ;;  %v1601_v62 = vrot.slane %v1600_v57, 4  ;;  %v4059_v63 = vcombine.low %v2109_v23, %v2112_v45  ;;  %v2054_v3 = vrot.slane %v2052_v13, 4  ;;  %v2116_v9 = vsel %vm4634_vm2, %v4044_v48, %v2115_v22  ;;  %v4155_v50 = vld [vmem:[%s4632_s17 + $0xd0] sm:$0xf]  ;;  %v4570_v51 = vld [vmem:[%s4632_s17 + $0xc0] sm:$0xff]  }
 0x119   : > { %v2117_v10 = vrot.slane %v2115_v22, 4  ;;  %v4036_v11 = vrot.slane %v4002_v56, 9  ;;  %v2059_v12 = vrot.slane %v4003_v58, 5  ;;  %v2062_v18 = vrot.slane %v4004_v46, 5  ;;  %v4156_v45 = vld [vmem:[%s4632_s17 + $0xd4] sm:$0x1] }
 0x11a   : > { %v3217_v4 = vpop.permute.xlu0 %3216  ;;  %v1606_v16 = vsel %vm4684_vm5, %v1601_v62, %v1605_v49  ;;  %v2056_v17 = vsel %vm4634_vm2, %v2054_v3, %v2055_v59  ;;  %v2796_v19 = vshrl.u32 %v4151_v15, 16  ;;  %v2799_v30 = vshll.u32 %v4151_v15, 16  ;;  %v4572_v3 = vld [vmem:[%s4632_s17 + $0xcc] sm:$0xff]  }
 0x11b   : > { %3263 = vst.msk [vmem:[#allocation2 + $0x10] sm:$0xff] %vm3260_vm14, %v3217_v4  ;;  %v3972_v20 = vcombine.low %v1596_v60, %v1606_v16  ;;  %v4051_v21 = vcombine.low %v2053_v2, %v2056_v17  ;;  %v2119_v25 = vsel %vm4634_vm2, %v2117_v10, %v2118_v61  ;;  %v2060_v26 = vsel %vm4634_vm2, %v4036_v11, %v2059_v12  ;;  %v4130_v2 = vld [vmem:[%s4632_s17 + $0x6c] sm:$0xf]  ;;  %v4131_v16 = vld [vmem:[%s4632_s17 + $0x70] sm:$0xf] }
 0x11c   : > { %2196 = vrot.lane.b32.xlu1 %v4059_v63, %s4594_s22  ;;  %v4060_v27 = vcombine.low %v2116_v9, %v2119_v25  ;;  %v2061_v28 = vrot.slane %v2059_v12, 4  ;;  %v2798_v29 = vrot.slane %v2796_v19, 4  ;;  %v2805_v33 = vshll.u32 %v4152_v6, 16  ;;  %v4571_v9 = vld [vmem:[%s4632_s17 + $0x60] sm:$0xff]  }
 0x11d   : > { %1861 = vrot.lane.b32.xlu0 %v3972_v20, %s4593_s21  ;;  %v2809_v34 = vshrl.u32 %v4152_v6, 16  ;;  %v2815_v35 = vshll.u32 %v4153_v7, 16  ;;  %v2604_v36 = vshrl.u32 %v4127_v8, 16  ;;  %v2801_v38 = vrot.slane %v2799_v30, 5  ;;  %v4132_v20 = vld [vmem:[%s4632_s17 + $0x74] sm:$0x1] }
 0x11e   : > { %v825_v24 = vpop.permute.xlu1 %824  ;;  %v2063_v1 = vsel %vm4634_vm2, %v2061_v28, %v2062_v18  ;;  %v2607_v40 = vshll.u32 %v4127_v8, 16  ;;  %v2613_v41 = vshll.u32 %v4128_v14, 16  ;;  %v2807_v44 = vrot.slane %v2805_v33, 5  ;;  %v4215_v25 = vld [vmem:[%s4632_s17 + $0xc0] sm:$0xe] }
 0x11f   : > { %v3287_v32 = vld [vmem:[#allocation2 + $0x50] sm:$0xff]  ;;  %861 = vst.msk [vmem:[#allocation2 + $0x60] sm:$0xff] %vm848_vm7, %v825_v24  ;;  %v4052_v43 = vcombine.low %v2060_v26, %v2063_v1  ;;  %v2811_v47 = vrot.slane %v2809_v34, 4  ;;  %v2817_v49 = vrot.slane %v2815_v35, 5  ;;  %v2802_v52 = vor.u32 %v2801_v38, %v2798_v29  ;;  %v4216_v29 = vld [vmem:[%s4632_s17 + $0xc4] sm:$0xf] }
 0x120   : > { %4488 = vmatprep.mubr.msk.bf16.mxu1 %vm3336_vm15, %v3287_v32  ;;  %v809_v37 = vpop.permute.xlu0 %808  ;;  %2198 = vrot.lane.b32.xlu1 %v4060_v27, %s4594_s22  ;;  %v2606_v53 = vrot.slane %v2604_v36, 4  ;;  %v2609_v54 = vrot.slane %v2607_v40, 5  ;;  %v5589_v55 = vrot.slane %v2613_v41, 5  ;;  %v2617_v57 = vshrl.u32 %v4128_v14, 16  ;;  %v4217_v30 = vld [vmem:[%s4632_s17 + $0xc8] sm:$0x1] }
 0x121   : > { %853 = vst.msk [vmem:[#allocation2 + $0x20] sm:$0xff] %vm848_vm7, %v809_v37  ;;  %2180 = vrot.lane.b32.xlu0 %v4051_v21, %s4594_s22  ;;  %v2812_v56 = vor.u32 %v2811_v47, %v2807_v44  ;;  %v2623_v13 = vshll.u32 %v4129_v31, 16  ;;  %v2820_v59 = vshrl.u32 %v4154_v42, 16  ;;  %v2803_v48 = vrot.slane %v2802_v52, 4  ;;  %v4573_v31 = vld [vmem:[%s4632_s17 + $0x6c] sm:$0xff]  }
 0x122   : > { %v3235_v23 = vpop.permute.xlu1 %3234  ;;  %v3279_v39 = vld [vmem:[#allocation2 + $0x10] sm:$0xff]  ;;  %v2610_v58 = vor.u32 %v2609_v54, %v2606_v53  ;;  %v2823_v22 = vshll.u32 %v4154_v42, 16  ;;  %v2829_v61 = vshll.u32 %v4155_v50, 16  ;;  %v2619_v15 = vrot.slane %v2617_v57, 4  ;;  %v4191_v42 = vld [vmem:[%s4632_s17 + $0x60] sm:$0xe] }
 0x123   : > { %3272 = vst.msk [vmem:[#allocation2 + $0x58] sm:$0xff] %vm3260_vm14, %v3235_v23  ;;  %4472 = vmatprep.mubr.msk.bf16.mxu0 %vm3336_vm15, %v3279_v39  ;;  %v2813_v46 = vrot.slane %v2812_v56, 4  ;;  %v2625_v62 = vrot.slane %v2623_v13, 5  ;;  %v2822_v63 = vrot.slane %v2820_v59, 4  ;;  %v2808_v4 = vsel %vm4684_vm5, %v2803_v48, %v2807_v44  ;;  %v4218_v56 = vld [vmem:[%s4632_s17 + $0xcc] sm:$0xe] }
 0x124   : > { %v3219_v60 = vpop.permute.xlu0 %3218  ;;  %2374 = vrot.lane.b32.xlu1 %v4570_v51, %s4595_s23  ;;  %v2611_v6 = vrot.slane %v2610_v58, 4  ;;  %v2825_v7 = vrot.slane %v2823_v22, 5  ;;  %v5601_v8 = vrot.slane %v2829_v61, 5  ;;  %v2620_v11 = vor.u32 %v2619_v15, %v5589_v55  ;;  %v4193_v51 = vld [vmem:[%s4632_s17 + $0x68] sm:$0x1] }
 0x125   : > { %3264 = vst.msk [vmem:[#allocation2 + $0x18] sm:$0xff] %vm3260_vm14, %v3219_v60  ;;  %2182 = vrot.lane.b32.xlu0 %v4052_v43, %s4594_s22  ;;  %v2818_v10 = vsel %vm4684_vm5, %v2813_v46, %v2817_v49  ;;  %v2833_v12 = vshrl.u32 %v4155_v50, 16  ;;  %v2839_v14 = vshll.u32 %v4156_v45, 16  ;;  %v2628_v21 = vshrl.u32 %v4130_v2, 16  ;;  %v4192_v43 = vld [vmem:[%s4632_s17 + $0x64] sm:$0xf] }
 0x126   : > { %v4171_v17 = vcombine.low %v2808_v4, %v2818_v10  ;;  %v2616_v18 = vsel %vm4684_vm5, %v2611_v6, %v5589_v55  ;;  %v2826_v19 = vor.u32 %v2825_v7, %v2822_v63  ;;  %v2621_v26 = vrot.slane %v2620_v11, 4  ;;  %v4219_v60 = vld [vmem:[%s4632_s17 + $0xd0] sm:$0xf]  ;;  %v4220_v15 = vld [vmem:[%s4632_s17 + $0xd4] sm:$0x1] }
 0x127   : > { %v2835_v27 = vrot.slane %v2833_v12, 4  ;;  %v2841_v28 = vrot.slane %v2839_v14, 5  ;;  %v2631_v24 = vshll.u32 %v4130_v2, 16  ;;  %v2630_v33 = vrot.slane %v2628_v21, 4  ;;  %v4195_v10 = vld [vmem:[%s4632_s17 + $0x70] sm:$0xf] }
 0x128   : > { %2376 = vrot.lane.b32.xlu1 %v4572_v3, %s4595_s23  ;;  %v2827_v32 = vrot.slane %v2826_v19, 4  ;;  %v2637_v34 = vshll.u32 %v4131_v16, 16  ;;  %v2641_v35 = vshrl.u32 %v4131_v16, 16  ;;  %v2626_v37 = vsel %vm4684_vm5, %v2621_v26, %v2625_v62 }
 0x129   : > { %2358 = vrot.lane.b32.xlu0 %v4571_v9, %s4595_s23  ;;  %v2836_v38 = vor.u32 %v2835_v27, %v5601_v8  ;;  %v2633_v40 = vrot.slane %v2631_v24, 5  ;;  %v2647_v41 = vshll.u32 %v4132_v20, 16  ;;  %v4163_v44 = vcombine.low %v2616_v18, %v2626_v37  ;;  %v4194_v9 = vld [vmem:[%s4632_s17 + $0x6c] sm:$0xe] }
 0x12a   : > { %v827_v36 = vpop.permute.xlu1 %826  ;;  %v3288_v1 = vld [vmem:[#allocation2 + $0x58] sm:$0xff]  ;;  %v2832_v47 = vsel %vm4684_vm5, %v2827_v32, %v5601_v8  ;;  %v2639_v49 = vrot.slane %v2637_v34, 5  ;;  %v2643_v50 = vrot.slane %v2641_v35, 4  ;;  %v4235_v39 = vrot.slane %v4215_v25, 9 }
 0x12b   : > { %862 = vst.msk [vmem:[#allocation2 + $0x68] sm:$0xff] %vm848_vm7, %v827_v36  ;;  %4489 = vmatmul.mubr.msk.bf16.gmra.mrb[4].mxu1 %vm3336_vm15, %v3288_v1  ;;  %v2837_v53 = vrot.slane %v2836_v38, 4  ;;  %v2634_v54 = vor.u32 %v2633_v40, %v2630_v33  ;;  %v2649_v55 = vrot.slane %v2647_v41, 5  ;;  %v3152_v13 = vrot.slane %v4216_v29, 5 }
 0x12c   : > { %v3280_v52 = vld [vmem:[#allocation2 + $0x18] sm:$0xff]  ;;  %v811_v23 = vpop.permute.xlu0 %810  ;;  %2919 = vrot.lane.b32.xlu1 %v4171_v17, %s4596_s24  ;;  %v2644_v57 = vor.u32 %v2643_v50, %v2639_v49  ;;  %v3155_v59 = vrot.slane %v4217_v30, 5  ;;  %v4227_v48 = vrot.slane %v4191_v42, 9  ;;  %v3096_v61 = vrot.slane %v4192_v43, 5  ;;  %v4196_v17 = vld [vmem:[%s4632_s17 + $0x74] sm:$0x1] }
 0x12d   : > { %4473 = vmatmul.mubr.msk.bf16.gmra.mrb[4].mxu0 %vm3336_vm15, %v3280_v52  ;;  %854 = vst.msk [vmem:[#allocation2 + $0x28] sm:$0xff] %vm848_vm7, %v811_v23  ;;  %2360 = vrot.lane.b32.xlu0 %v4573_v31, %s4595_s23  ;;  %v2842_v45 = vsel %vm4684_vm5, %v2837_v53, %v2841_v28  ;;  %v2635_v22 = vrot.slane %v2634_v54, 4  ;;  %v3099_v46 = vrot.slane %v4193_v51, 5  ;;  %v3153_v2 = vsel %vm4634_vm2, %v4235_v39, %v3152_v13 }
 0x12e   : > { %v1149_v58 = vpop.permute.xlu1 %1148  ;;  %v4172_v62 = vcombine.low %v2832_v47, %v2842_v45  ;;  %v2645_v63 = vrot.slane %v2644_v57, 4  ;;  %v3154_v3 = vrot.slane %v3152_v13, 4  ;;  %v3098_v6 = vrot.slane %v3096_v61, 4 }
 0x12f   : > { %1185 = vst.msk [vmem:[#allocation2 + $0x60] sm:$0xff] %vm1172_vm8, %v1149_v58  ;;  %v2640_v4 = vsel %vm4684_vm5, %v2635_v22, %v2639_v49  ;;  %v4236_v8 = vrot.slane %v4218_v56, 9  ;;  %v3159_v14 = vrot.slane %v4219_v60, 5  ;;  %v3162_v16 = vrot.slane %v4220_v15, 5 }
 0x130   : > { %v1133_v7 = vpop.permute.xlu0 %1132  ;;  %2921 = vrot.lane.b32.xlu1 %v4172_v62, %s4596_s24  ;;  %v2650_v11 = vsel %vm4684_vm5, %v2645_v63, %v2649_v55  ;;  %v3156_v12 = vsel %vm4634_vm2, %v3154_v3, %v3155_v59  ;;  %v3097_v21 = vsel %vm4634_vm2, %v4227_v48, %v3096_v61  ;;  %v3100_v5 = vsel %vm4634_vm2, %v3098_v6, %v3099_v46 }
 0x131   : > { %1177 = vst.msk [vmem:[#allocation2 + $0x20] sm:$0xff] %vm1172_vm8, %v1133_v7  ;;  %2903 = vrot.lane.b32.xlu0 %v4163_v44, %s4596_s24  ;;  %v4164_v19 = vcombine.low %v2640_v4, %v2650_v11  ;;  %v4251_v20 = vcombine.low %v3153_v2, %v3156_v12  ;;  %v3160_v25 = vsel %vm4634_vm2, %v4236_v8, %v3159_v14  ;;  %v3161_v26 = vrot.slane %v3159_v14, 4 }
 0x132   : > { %v1151_v18 = vpop.permute.xlu1 %1150  ;;  %v4228_v27 = vrot.slane %v4194_v9, 9  ;;  %v3103_v28 = vrot.slane %v4195_v10, 5  ;;  %v3106_v24 = vrot.slane %v4196_v17, 5  ;;  %v4243_v33 = vcombine.low %v3097_v21, %v3100_v5 }
 0x133   : > { %1186 = vst.msk [vmem:[#allocation2 + $0x68] sm:$0xff] %vm1172_vm8, %v1151_v18  ;;  %v3163_v30 = vsel %vm4634_vm2, %v3161_v26, %v3162_v16 }
 0x134   : > { %v1135_v29 = vpop.permute.xlu0 %1134  ;;  %3240 = vrot.lane.b32.xlu1 %v4251_v20, %s4597_s25  ;;  %v3105_v31 = vrot.slane %v3103_v28, 4  ;;  %v4252_v34 = vcombine.low %v3160_v25, %v3163_v30  ;;  %v3104_v35 = vsel %vm4634_vm2, %v4228_v27, %v3103_v28 }
 0x135   : > { %1178 = vst.msk [vmem:[#allocation2 + $0x28] sm:$0xff] %vm1172_vm8, %v1135_v29  ;;  %2905 = vrot.lane.b32.xlu0 %v4164_v19, %s4596_s24 }
 0x136   : > { %v1327_v32 = vpop.permute.xlu1 %1326  ;;  %v3107_v36 = vsel %vm4634_vm2, %v3105_v31, %v3106_v24 }
 0x137   : > { %1363 = vst.msk [vmem:[#allocation2 + $0x60] sm:$0xff] %vm1350_vm9, %v1327_v32  ;;  %v4244_v38 = vcombine.low %v3104_v35, %v3107_v36 }
 0x138   : > { %v1311_v1 = vpop.permute.xlu0 %1310  ;;  %3242 = vrot.lane.b32.xlu1 %v4252_v34, %s4597_s25 }
 0x139   : > { %1355 = vst.msk [vmem:[#allocation2 + $0x20] sm:$0xff] %vm1350_vm9, %v1311_v1  ;;  %3224 = vrot.lane.b32.xlu0 %v4243_v33, %s4597_s25  ;;  %v5740_v1 = vld [vmem:[%s5801_s2] ss:$0 sm:$0xff] }
 0x13a   : > { %v1329_v37 = vpop.permute.xlu1 %1328 }
 0x13b   : > { %1364 = vst.msk [vmem:[#allocation2 + $0x68] sm:$0xff] %vm1350_vm9, %v1329_v37 }
 0x13c   : > { %v1313_v40 = vpop.permute.xlu0 %1312 }
 0x13d   : > { %1356 = vst.msk [vmem:[#allocation2 + $0x28] sm:$0xff] %vm1350_vm9, %v1313_v40  ;;  %3226 = vrot.lane.b32.xlu0 %v4244_v38, %s4597_s25 }
 0x13e   : > { %v1872_v41 = vpop.permute.xlu1 %1871 }
 0x13f   : > { %1908 = vst.msk [vmem:[#allocation2 + $0x60] sm:$0xff] %vm1895_vm10, %v1872_v41 }
 0x140   : > { %v1856_v0 = vpop.permute.xlu0 %1855 }
 0x141   : > { %1900 = vst.msk [vmem:[#allocation2 + $0x20] sm:$0xff] %vm1895_vm10, %v1856_v0 }
 0x142   : > { %v1874_v42 = vpop.permute.xlu1 %1873 }
 0x143   : > { %1909 = vst.msk [vmem:[#allocation2 + $0x68] sm:$0xff] %vm1895_vm10, %v1874_v42 }
 0x146   : > { %v2193_v43 = vpop.permute.xlu1 %2192  ;;  %v1858_v44 = vpop.permute.xlu0 %1857 }
 0x147   : > { %2229 = vst.msk [vmem:[#allocation2 + $0x60] sm:$0xff] %vm2216_vm11, %v2193_v43 }
 0x148   : > { %1901 = vst.msk [vmem:[#allocation2 + $0x28] sm:$0xff] %vm1895_vm10, %v1858_v44 }
 0x14a   : > { %v2195_v47 = vpop.permute.xlu1 %2194  ;;  %v2177_v49 = vpop.permute.xlu0 %2176 }
 0x14b   : > { %2230 = vst.msk [vmem:[#allocation2 + $0x68] sm:$0xff] %vm2216_vm11, %v2195_v47  ;;  %2221 = vst.msk [vmem:[#allocation2 + $0x20] sm:$0xff] %vm2216_vm11, %v2177_v49 }
 0x14e   : > { %v2371_v50 = vpop.permute.xlu1 %2370  ;;  %v2179_v51 = vpop.permute.xlu0 %2178 }
 0x14f   : > { %2407 = vst.msk [vmem:[#allocation2 + $0x60] sm:$0xff] %vm2394_vm12, %v2371_v50 }
 0x150   : > { %2222 = vst.msk [vmem:[#allocation2 + $0x28] sm:$0xff] %vm2216_vm11, %v2179_v51 }
 0x152   : > { %v2373_v52 = vpop.permute.xlu1 %2372  ;;  %v2355_v53 = vpop.permute.xlu0 %2354 }
 0x153   : > { %2408 = vst.msk [vmem:[#allocation2 + $0x68] sm:$0xff] %vm2394_vm12, %v2373_v52  ;;  %2399 = vst.msk [vmem:[#allocation2 + $0x20] sm:$0xff] %vm2394_vm12, %v2355_v53 }
 0x156   : > { %v2916_v54 = vpop.permute.xlu1 %2915  ;;  %v2357_v55 = vpop.permute.xlu0 %2356 }
 0x157   : > { %2952 = vst.msk [vmem:[#allocation2 + $0x60] sm:$0xff] %vm2939_vm13, %v2916_v54 }
 0x158   : > { %2400 = vst.msk [vmem:[#allocation2 + $0x28] sm:$0xff] %vm2394_vm12, %v2357_v55 }
 0x15a   : > { %v2900_v23 = vpop.permute.xlu0 %2899  ;;  %v2918_v39 = vpop.permute.xlu1 %2917 }
 0x15b   : > { %2944 = vst.msk [vmem:[#allocation2 + $0x20] sm:$0xff] %vm2939_vm13, %v2900_v23  ;;  %2953 = vst.msk [vmem:[#allocation2 + $0x68] sm:$0xff] %vm2939_vm13, %v2918_v39 }
 0x15e   : > { %v2902_v56 = vpop.permute.xlu0 %2901  ;;  %v3237_v57 = vpop.permute.xlu1 %3236 }
 0x15f   : > { %2945 = vst.msk [vmem:[#allocation2 + $0x28] sm:$0xff] %vm2939_vm13, %v2902_v56 }
 0x160   : > { %3273 = vst.msk [vmem:[#allocation2 + $0x60] sm:$0xff] %vm3260_vm14, %v3237_v57 }
 0x162   : > { %v3221_v13 = vpop.permute.xlu0 %3220 }
 0x163   : > { %3265 = vst.msk [vmem:[#allocation2 + $0x20] sm:$0xff] %vm3260_vm14, %v3221_v13 }
 0x167   : > { %v3289_v59 = vld [vmem:[#allocation2 + $0x60] sm:$0xff]  ;;  %v829_v48 = vpop.permute.xlu1 %828 }
 0x168   : > { %4492 = vmatprep.mubr.msk.bf16.mxu1 %vm3336_vm15, %v3289_v59  ;;  %863 = vst.msk [vmem:[#allocation2 + $0x70] sm:$0xff] %vm848_vm7, %v829_v48 }
 0x169   : > { %v813_v58 = vpop.permute.xlu0 %812 }
 0x16a   : > { %v3281_v60 = vld [vmem:[#allocation2 + $0x20] sm:$0xff]  ;;  %855 = vst.msk [vmem:[#allocation2 + $0x30] sm:$0xff] %vm848_vm7, %v813_v58 }
 0x16b   : > { %4476 = vmatprep.mubr.msk.bf16.mxu0 %vm3336_vm15, %v3281_v60  ;;  %v3239_v45 = vpop.permute.xlu1 %3238 }
 0x16c   : > { %3274 = vst.msk [vmem:[#allocation2 + $0x68] sm:$0xff] %vm3260_vm14, %v3239_v45 }
 0x16d   : > { %v3223_v22 = vpop.permute.xlu0 %3222 }
 0x16e   : > { %3266 = vst.msk [vmem:[#allocation2 + $0x28] sm:$0xff] %vm3260_vm14, %v3223_v22 }
 0x172   : > { %v831_v61 = vpop.permute.xlu1 %830 }
 0x173   : > { %864 = vst.msk [vmem:[#allocation2 + $0x78] sm:$0xff] %vm848_vm7, %v831_v61  ;;  %v3290_v46 = vld [vmem:[#allocation2 + $0x68] sm:$0xff] }
 0x174   : > { %4493 = vmatmul.mubr.msk.bf16.gmra.mrb[8].mxu1 %vm3336_vm15, %v3290_v46 }
 0x175   : > { %v3282_v15 = vld [vmem:[#allocation2 + $0x28] sm:$0xff]  ;;  %v815_v62 = vpop.permute.xlu0 %814 }
 0x176   : > { %v1153_v63 = vpop.permute.xlu1 %1152  ;;  %4477 = vmatmul.mubr.msk.bf16.gmra.mrb[8].mxu0 %vm3336_vm15, %v3282_v15  ;;  %856 = vst.msk [vmem:[#allocation2 + $0x38] sm:$0xff] %vm848_vm7, %v815_v62 }
 0x177   : > { %1187 = vst.msk [vmem:[#allocation2 + $0x70] sm:$0xff] %vm1172_vm8, %v1153_v63 }
 0x179   : > { %v1137_v2 = vpop.permute.xlu0 %1136 }
 0x17a   : > { %v1155_v3 = vpop.permute.xlu1 %1154  ;;  %1179 = vst.msk [vmem:[#allocation2 + $0x30] sm:$0xff] %vm1172_vm8, %v1137_v2 }
 0x17b   : > { %1188 = vst.msk [vmem:[#allocation2 + $0x78] sm:$0xff] %vm1172_vm8, %v1155_v3 }
 0x17d   : > { %v1139_v4 = vpop.permute.xlu0 %1138 }
 0x17e   : > { %v1331_v6 = vpop.permute.xlu1 %1330  ;;  %1180 = vst.msk [vmem:[#allocation2 + $0x38] sm:$0xff] %vm1172_vm8, %v1139_v4 }
 0x17f   : > { %1365 = vst.msk [vmem:[#allocation2 + $0x70] sm:$0xff] %vm1350_vm9, %v1331_v6 }
 0x181   : > { %v1315_v7 = vpop.permute.xlu0 %1314 }
 0x182   : > { %v1333_v8 = vpop.permute.xlu1 %1332  ;;  %1357 = vst.msk [vmem:[#allocation2 + $0x30] sm:$0xff] %vm1350_vm9, %v1315_v7 }
 0x183   : > { %1366 = vst.msk [vmem:[#allocation2 + $0x78] sm:$0xff] %vm1350_vm9, %v1333_v8 }
 0x185   : > { %v1317_v9 = vpop.permute.xlu0 %1316 }
 0x186   : > { %v1876_v10 = vpop.permute.xlu1 %1875  ;;  %1358 = vst.msk [vmem:[#allocation2 + $0x38] sm:$0xff] %vm1350_vm9, %v1317_v9 }
 0x187   : > { %1910 = vst.msk [vmem:[#allocation2 + $0x70] sm:$0xff] %vm1895_vm10, %v1876_v10 }
 0x189   : > { %v1860_v11 = vpop.permute.xlu0 %1859 }
 0x18a   : > { %v1878_v12 = vpop.permute.xlu1 %1877  ;;  %1902 = vst.msk [vmem:[#allocation2 + $0x30] sm:$0xff] %vm1895_vm10, %v1860_v11 }
 0x18b   : > { %1911 = vst.msk [vmem:[#allocation2 + $0x78] sm:$0xff] %vm1895_vm10, %v1878_v12 }
 0x18e   : > { %v2197_v14 = vpop.permute.xlu1 %2196 }
 0x18f   : > { %v1862_v16 = vpop.permute.xlu0 %1861  ;;  %2231 = vst.msk [vmem:[#allocation2 + $0x70] sm:$0xff] %vm2216_vm11, %v2197_v14 }
 0x190   : > { %1903 = vst.msk [vmem:[#allocation2 + $0x38] sm:$0xff] %vm1895_vm10, %v1862_v16 }
 0x192   : > { %v2199_v17 = vpop.permute.xlu1 %2198 }
 0x193   : > { %v2181_v18 = vpop.permute.xlu0 %2180  ;;  %2232 = vst.msk [vmem:[#allocation2 + $0x78] sm:$0xff] %vm2216_vm11, %v2199_v17 }
 0x194   : > { %2223 = vst.msk [vmem:[#allocation2 + $0x30] sm:$0xff] %vm2216_vm11, %v2181_v18 }
 0x196   : > { %v2375_v19 = vpop.permute.xlu1 %2374 }
 0x197   : > { %v2183_v20 = vpop.permute.xlu0 %2182  ;;  %2409 = vst.msk [vmem:[#allocation2 + $0x70] sm:$0xff] %vm2394_vm12, %v2375_v19 }
 0x198   : > { %2224 = vst.msk [vmem:[#allocation2 + $0x38] sm:$0xff] %vm2216_vm11, %v2183_v20 }
 0x19a   : > { %v2377_v21 = vpop.permute.xlu1 %2376 }
 0x19b   : > { %v2359_v5 = vpop.permute.xlu0 %2358  ;;  %2410 = vst.msk [vmem:[#allocation2 + $0x78] sm:$0xff] %vm2394_vm12, %v2377_v21 }
 0x19c   : > { %2401 = vst.msk [vmem:[#allocation2 + $0x30] sm:$0xff] %vm2394_vm12, %v2359_v5 }
 0x19e   : > { %v2920_v25 = vpop.permute.xlu1 %2919 }
 0x19f   : > { %v2361_v26 = vpop.permute.xlu0 %2360  ;;  %2954 = vst.msk [vmem:[#allocation2 + $0x70] sm:$0xff] %vm2939_vm13, %v2920_v25 }
 0x1a0   : > { %2402 = vst.msk [vmem:[#allocation2 + $0x38] sm:$0xff] %vm2394_vm12, %v2361_v26 }
 0x1a2   : > { %v2922_v27 = vpop.permute.xlu1 %2921 }
 0x1a3   : > { %v2904_v28 = vpop.permute.xlu0 %2903  ;;  %2955 = vst.msk [vmem:[#allocation2 + $0x78] sm:$0xff] %vm2939_vm13, %v2922_v27 }
 0x1a4   : > { %2946 = vst.msk [vmem:[#allocation2 + $0x30] sm:$0xff] %vm2939_vm13, %v2904_v28 }
 0x1a6   : > { %v3241_v24 = vpop.permute.xlu1 %3240 }
 0x1a7   : > { %v2906_v29 = vpop.permute.xlu0 %2905  ;;  %3275 = vst.msk [vmem:[#allocation2 + $0x70] sm:$0xff] %vm3260_vm14, %v3241_v24 }
 0x1a8   : > { %2947 = vst.msk [vmem:[#allocation2 + $0x38] sm:$0xff] %vm2939_vm13, %v2906_v29 }
 0x1aa   : > { %v3243_v30 = vpop.permute.xlu1 %3242 }
 0x1ab   : > { %v3225_v31 = vpop.permute.xlu0 %3224  ;;  %3276 = vst.msk [vmem:[#allocation2 + $0x78] sm:$0xff] %vm3260_vm14, %v3243_v30 }
 0x1ac   : > { %3267 = vst.msk [vmem:[#allocation2 + $0x30] sm:$0xff] %vm3260_vm14, %v3225_v31 }
 0x1ae   : > { %v3291_v32 = vld [vmem:[#allocation2 + $0x70] sm:$0xff] }
 0x1af   : > { %v3227_v33 = vpop.permute.xlu0 %3226  ;;  %4496 = vmatprep.mubr.msk.bf16.mxu1 %vm3336_vm15, %v3291_v32 }
 0x1b0   : > { %3268 = vst.msk [vmem:[#allocation2 + $0x38] sm:$0xff] %vm3260_vm14, %v3227_v33 }
 0x1b2   : > { %v3292_v34 = vld [vmem:[#allocation2 + $0x78] sm:$0xff] }
 0x1b3   : > { %v3283_v35 = vld [vmem:[#allocation2 + $0x30] sm:$0xff]  ;;  %4497 = vmatmul.mubr.msk.bf16.gmra.mrb[12].mxu1 %vm3336_vm15, %v3292_v34 }
 0x1b4   : > { %4480 = vmatprep.mubr.msk.bf16.mxu0 %vm3336_vm15, %v3283_v35 }
 0x1b7   : > { %v3284_v36 = vld [vmem:[#allocation2 + $0x38] sm:$0xff] }
 0x1b8   : > { %4481 = vmatmul.mubr.msk.bf16.gmra.mrb[12].mxu0 %vm3336_vm15, %v3284_v36 }
 0x1bc   : > { %v4470_v37 = vpop.f32.mrb[0].mxu0  ;;  %v4486_v38 = vpop.f32.mrb[0].mxu1 }
 0x1bd   : > { %v3432_v40 = vadd.f32 %v4470_v37, %v5740_v1  ;;  %v3496_v41 = vadd.f32 %v4486_v38, %v5740_v1  ;;  %v3423_v0 = vpop.f32.mrb[1].mxu0  ;;  %v3487_v42 = vpop.f32.mrb[1].mxu1 }
 0x1be   : > { %v3424_v43 = vadd.f32 %v5740_v1, %v3423_v0  ;;  %v3488_v44 = vadd.f32 %v5740_v1, %v3487_v42  ;;  %v4471_v47 = vpop.f32.mrb[2].mxu0  ;;  %v4487_v49 = vpop.f32.mrb[2].mxu1 }
 0x1bf   : > { %v3435_v50 = vadd.f32 %v4471_v47, %v5740_v1  ;;  %v3499_v51 = vadd.f32 %v4487_v49, %v5740_v1  ;;  %v3426_v52 = vpop.f32.mrb[3].mxu0  ;;  %v3490_v53 = vpop.f32.mrb[3].mxu1  ;;  %v3552_v23 = vmax.f32 %v3432_v40, 0.0  ;;  %v3568_v39 = vmax.f32 %v3496_v41, 0.0 }
 0x1c0   : > { %v3427_v54 = vadd.f32 %v5740_v1, %v3426_v52  ;;  %v3491_v55 = vadd.f32 %v5740_v1, %v3490_v53  ;;  %v3550_v13 = vmax.f32 %v3424_v43, 0.0  ;;  %v3566_v59 = vmax.f32 %v3488_v44, 0.0 }
 0x1c1   : > { %v3553_v56 = vmax.f32 %v3435_v50, 0.0  ;;  %v3569_v57 = vmax.f32 %v3499_v51, 0.0 }
 0x1c2   : > { %v3551_v48 = vmax.f32 %v3427_v54, 0.0  ;;  %v3567_v58 = vmax.f32 %v3491_v55, 0.0 }
 0x1c3   : > { %v4350_v60 = vpack.c.bf16 %v3553_v56, %v3552_v23  ;;  %v4390_v45 = vpack.c.bf16 %v3569_v57, %v3568_v39 }
 0x1c4   : > { %v4345_v22 = vpack.c.bf16 %v3551_v48, %v3550_v13  ;;  %v4385_v61 = vpack.c.bf16 %v3567_v58, %v3566_v59 }
 0x1c5   : > { %4422 = vst [vmem:[%s5754_s13 + $0x8] sm:$0xff] %v4350_v60   ;;  %4430 = vst [vmem:[%s5754_s13 + $0x48] sm:$0xff] %v4390_v45  }
 0x1c6   : > { %4346 = vst [vmem:[%s5754_s13] sm:$0xff] %v4345_v22   ;;  %4429 = vst [vmem:[%s5754_s13 + $0x40] sm:$0xff] %v4385_v61  }
 0x1fe   : > { %v4490_v46 = vpop.f32.mrb[4].mxu1 }
 0x1ff   : > { %v3512_v15 = vadd.f32 %v4490_v46, %v5740_v1  ;;  %v3503_v62 = vpop.f32.mrb[5].mxu1 }
 0x200   : > { %v4474_v63 = vpop.f32.mrb[4].mxu0  ;;  %v3504_v2 = vadd.f32 %v5740_v1, %v3503_v62  ;;  %v4491_v3 = vpop.f32.mrb[6].mxu1 }
 0x201   : > { %v3448_v4 = vadd.f32 %v4474_v63, %v5740_v1  ;;  %v3439_v6 = vpop.f32.mrb[5].mxu0  ;;  %v3515_v7 = vadd.f32 %v4491_v3, %v5740_v1  ;;  %v3506_v8 = vpop.f32.mrb[7].mxu1  ;;  %v3572_v12 = vmax.f32 %v3512_v15, 0.0 }
 0x202   : > { %v3440_v9 = vadd.f32 %v5740_v1, %v3439_v6  ;;  %v4475_v10 = vpop.f32.mrb[6].mxu0  ;;  %v3507_v11 = vadd.f32 %v5740_v1, %v3506_v8  ;;  %v3570_v18 = vmax.f32 %v3504_v2, 0.0 }
 0x203   : > { %v3451_v14 = vadd.f32 %v4475_v10, %v5740_v1  ;;  %v3573_v16 = vmax.f32 %v3515_v7, 0.0  ;;  %v3442_v17 = vpop.f32.mrb[7].mxu0  ;;  %v3556_v21 = vmax.f32 %v3448_v4, 0.0 }
 0x204   : > { %v3443_v19 = vadd.f32 %v5740_v1, %v3442_v17  ;;  %v3571_v20 = vmax.f32 %v3507_v11, 0.0  ;;  %v3554_v26 = vmax.f32 %v3440_v9, 0.0 }
 0x205   : > { %v3557_v5 = vmax.f32 %v3451_v14, 0.0  ;;  %v4400_v25 = vpack.c.bf16 %v3573_v16, %v3572_v12 }
 0x206   : > { %v3555_v27 = vmax.f32 %v3443_v19, 0.0  ;;  %v4395_v28 = vpack.c.bf16 %v3571_v20, %v3570_v18 }
 0x207   : > { %v4360_v24 = vpack.c.bf16 %v3557_v5, %v3556_v21  ;;  %4432 = vst [vmem:[%s5754_s13 + $0x58] sm:$0xff] %v4400_v25  }
 0x208   : > { %v4355_v29 = vpack.c.bf16 %v3555_v27, %v3554_v26  ;;  %4431 = vst [vmem:[%s5754_s13 + $0x50] sm:$0xff] %v4395_v28  }
 0x209   : > { %4424 = vst [vmem:[%s5754_s13 + $0x18] sm:$0xff] %v4360_v24  }
 0x20a   : > { %4423 = vst [vmem:[%s5754_s13 + $0x10] sm:$0xff] %v4355_v29  }
 0x247   : > { %v4494_v30 = vpop.f32.mrb[8].mxu1 }
 0x248   : > { %v3528_v31 = vadd.f32 %v4494_v30, %v5740_v1  ;;  %v3519_v32 = vpop.f32.mrb[9].mxu1 }
 0x249   : > { %v4478_v33 = vpop.f32.mrb[8].mxu0  ;;  %v3520_v34 = vadd.f32 %v5740_v1, %v3519_v32  ;;  %v4495_v35 = vpop.f32.mrb[10].mxu1 }
 0x24a   : > { %v3464_v36 = vadd.f32 %v4478_v33, %v5740_v1  ;;  %v3455_v37 = vpop.f32.mrb[9].mxu0  ;;  %v3531_v38 = vadd.f32 %v4495_v35, %v5740_v1  ;;  %v3522_v40 = vpop.f32.mrb[11].mxu1  ;;  %v3576_v43 = vmax.f32 %v3528_v31, 0.0 }
 0x24b   : > { %v3456_v41 = vadd.f32 %v5740_v1, %v3455_v37  ;;  %v4479_v0 = vpop.f32.mrb[10].mxu0  ;;  %v3523_v42 = vadd.f32 %v5740_v1, %v3522_v40  ;;  %v3574_v50 = vmax.f32 %v3520_v34, 0.0 }
 0x24c   : > { %v3467_v44 = vadd.f32 %v4479_v0, %v5740_v1  ;;  %v3577_v47 = vmax.f32 %v3531_v38, 0.0  ;;  %v3458_v49 = vpop.f32.mrb[11].mxu0  ;;  %v3560_v53 = vmax.f32 %v3464_v36, 0.0 }
 0x24d   : > { %v3459_v51 = vadd.f32 %v5740_v1, %v3458_v49  ;;  %v3575_v52 = vmax.f32 %v3523_v42, 0.0  ;;  %v3558_v23 = vmax.f32 %v3456_v41, 0.0 }
 0x24e   : > { %v3561_v54 = vmax.f32 %v3467_v44, 0.0  ;;  %v4410_v55 = vpack.c.bf16 %v3577_v47, %v3576_v43 }
 0x24f   : > { %v3559_v39 = vmax.f32 %v3459_v51, 0.0  ;;  %v4405_v56 = vpack.c.bf16 %v3575_v52, %v3574_v50 }
 0x250   : > { %v4370_v57 = vpack.c.bf16 %v3561_v54, %v3560_v53  ;;  %4434 = vst [vmem:[%s5754_s13 + $0x68] sm:$0xff] %v4410_v55  }
 0x251   : > { %v4365_v13 = vpack.c.bf16 %v3559_v39, %v3558_v23  ;;  %4433 = vst [vmem:[%s5754_s13 + $0x60] sm:$0xff] %v4405_v56  }
 0x252   : > { %4426 = vst [vmem:[%s5754_s13 + $0x28] sm:$0xff] %v4370_v57  }
 0x253   : > { %4425 = vst [vmem:[%s5754_s13 + $0x20] sm:$0xff] %v4365_v13  }
 0x286   : > { %v4498_v59 = vpop.f32.mrb[12].mxu1 }
 0x287   : > { %v3544_v48 = vadd.f32 %v4498_v59, %v5740_v1  ;;  %v3535_v58 = vpop.f32.mrb[13].mxu1 }
 0x288   : > { %v3536_v60 = vadd.f32 %v5740_v1, %v3535_v58  ;;  %v4499_v45 = vpop.f32.mrb[14].mxu1 }
 0x289   : > { %v3547_v22 = vadd.f32 %v4499_v45, %v5740_v1  ;;  %v3538_v61 = vpop.f32.mrb[15].mxu1  ;;  %v3580_v62 = vmax.f32 %v3544_v48, 0.0 }
 0x28a   : > { %v3539_v46 = vadd.f32 %v5740_v1, %v3538_v61  ;;  %v3578_v4 = vmax.f32 %v3536_v60, 0.0 }
 0x28b   : > { %v4482_v15 = vpop.f32.mrb[12].mxu0  ;;  %v3581_v63 = vmax.f32 %v3547_v22, 0.0 }
 0x28c   : > { %v3480_v2 = vadd.f32 %v4482_v15, %v5740_v1  ;;  %v3471_v3 = vpop.f32.mrb[13].mxu0  ;;  %v3579_v6 = vmax.f32 %v3539_v46, 0.0 }
 0x28d   : > { %v3472_v7 = vadd.f32 %v5740_v1, %v3471_v3  ;;  %v4483_v8 = vpop.f32.mrb[14].mxu0  ;;  %v4420_v9 = vpack.c.bf16 %v3581_v63, %v3580_v62 }
 0x28e   : > { %v3483_v10 = vadd.f32 %v4483_v8, %v5740_v1  ;;  %v3474_v11 = vpop.f32.mrb[15].mxu0  ;;  %v4415_v12 = vpack.c.bf16 %v3579_v6, %v3578_v4  ;;  %v3564_v16 = vmax.f32 %v3480_v2, 0.0 }
 0x28f   : > { %4436 = vst [vmem:[%s5754_s13 + $0x78] sm:$0xff] %v4420_v9   ;;  %v3475_v14 = vadd.f32 %v5740_v1, %v3474_v11  ;;  %v3562_v18 = vmax.f32 %v3472_v7, 0.0 }
 0x290   : > { %v3565_v17 = vmax.f32 %v3483_v10, 0.0  ;;  %4435 = vst [vmem:[%s5754_s13 + $0x70] sm:$0xff] %v4415_v12  }
 0x291   : > { %v3563_v19 = vmax.f32 %v3475_v14, 0.0 }
 0x292   : > { %v4380_v20 = vpack.c.bf16 %v3565_v17, %v3564_v16 }
 0x293   : > { %v4375_v21 = vpack.c.bf16 %v3563_v19, %v3562_v18 }
 0x294   : > { %4428 = vst [vmem:[%s5754_s13 + $0x38] sm:$0xff] %v4380_v20  }
 0x295   : > { %4427 = vst [vmem:[%s5754_s13 + $0x30] sm:$0xff] %v4375_v21  }
 0x296 PF: > { %s13_s12 = sadd.s32 1, %s4588_s12  }
 0x297   : > { %p10_p4 = scmp.ge.s32.totalorder %s13_s12, 4  }
 0x299   :  { %12 = sbr.rel (!%p10_p4) target bundleno = 1 (0x1), region = 64 }

</bundles_post_ra>
